<compile_context>
chip_gen: v7x
topology: tpu7x:2x2x1
jax: 0.10.0
libtpu: 0.0.40
codegen_flags: <defaults>
</compile_context>

<pallas_src>
import math
import jax
import jax.numpy as jnp
from jax import lax
from jax.experimental import pallas as pl
from jax.experimental.pallas import tpu as pltpu

NUM_CLASSES = 5
KSIZE = 3
POOL = 2


# ----------------------------------------------------------------------------
# Pallas kernels
# ----------------------------------------------------------------------------
def conv_relu_pool_kernel(p_ref, w_ref, b_ref, o_ref):
    """Fused conv (im2col matmul) + 2x2 max-pool + bias + ReLU, lane-dense output.

    p_ref: (P=4, tm, Kg)  4 pooling phases; each row packs `g` neighbouring
                          output pixels (g*Cout == 128 lanes), Kg % 128 == 0.
    w_ref: (Kg, 128)      block-diagonal conv weight (g copies of (k_pad, Cout))
    b_ref: (1, 128)       bias tiled g times
    o_ref: (tm, 128)      pooled output rows, 128-lane dense
    """
    tm = o_ref.shape[0]
    P = p_ref.shape[0]
    kg = p_ref.shape[-1]
    # Collapse (phase, row) -> rows.  tm % 8 == 0 and kg % 128 == 0, so this is a
    # layout-preserving (free) reshape of the loaded value.
    p = p_ref[...].reshape(P * tm, kg)
    # One long MXU stream over all 4 phases instead of 4 short push/pop sequences.
    y = jnp.dot(p, w_ref[...], preferred_element_type=jnp.float32)
    # 2x2 max-pool == elementwise max across the 4 phase slabs (VPU; static,
    # sublane-aligned slices since tm % 8 == 0).
    m = y[0:tm]
    for ph in range(1, P):
        m = jnp.maximum(m, y[ph * tm:(ph + 1) * tm])
    # Bias added once after the max (bias constant across phases), then ReLU
    # (ReLU commutes with max) -> exact.
    o_ref[...] = jnp.maximum(m + b_ref[...], 0.0).astype(o_ref.dtype)


def mlp_kernel(x_ref, w1_ref, b1_ref, w2_ref, b2_ref, o_ref, acc_ref):
    """Fused classifier: ReLU(x @ W1 + b1) @ W2 + b2, tiled over the K axis."""
    k = pl.program_id(0)

    @pl.when(k == 0)
    def _():
        acc_ref[...] = jnp.zeros_like(acc_ref)

    acc_ref[...] += jnp.dot(x_ref[...], w1_ref[...],
                            preferred_element_type=jnp.float32)

    @pl.when(k == pl.num_programs(0) - 1)
    def _():
        h = jnp.maximum(acc_ref[...] + b1_ref[...], 0.0)
        o_ref[...] = (jnp.dot(h, w2_ref[...], preferred_element_type=jnp.float32)
                      + b2_ref[...]).astype(o_ref.dtype)


# ----------------------------------------------------------------------------
# Tile pickers / hardware query
# ----------------------------------------------------------------------------
def _tensorcores_per_chip():
    """Best-effort TensorCore count per chip (v7x -> 2, v5e/v6e -> 1)."""
    try:
        kind = jax.devices()[0].device_kind.lower()
    except Exception:
        return 1
    if "7" in kind or "v4" in kind:
        return 2
    return 1


def _pick_row_tile(m, cap, min_tiles=1):
    """Largest multiple-of-8 divisor of m (m % 8 == 0) that is <= cap and gives
    at least `min_tiles` grid steps (falls back gracefully if m is too small)."""
    limit = min(m, cap)
    if min_tiles > 1:
        limit = min(limit, m // min_tiles)
    best = 8
    t = 16
    while t <= limit:
        if m % t == 0:
            best = t
        t += 8
    return best


def _pick_k_tile(k, align, cap):
    for t in range(min(k, cap), 0, -1):
        if k % t == 0 and t % align == 0:
            return t
    return k


# ----------------------------------------------------------------------------
# Glue: im2col with pooling phases (pure slices/concat, stays in XLA)
# ----------------------------------------------------------------------------
def im2col_pool_patches_packed(x_nhwc, group, k_pad, ksize=KSIZE, pool=POOL):
    """Patch tensor for conv(3x3, VALID) followed by 2x2 max-pool.

    Returns (P=pool*pool, Mp, group*k_pad): each row packs `group` consecutive
    pooled-output pixels; each pixel's ksize*ksize*C patch is zero-padded to
    k_pad features (lane alignment).  Row r of phase (ph, pw) holds the conv
    patches taken at conv-output positions (pool*ho+ph, pool*wo+pw).
    """
    N, H, W, C = x_nhwc.shape
    Hc, Wc = H - ksize + 1, W - ksize + 1          # conv "VALID" output
    Ho, Wo = Hc // pool, Wc // pool                # pooled output (floor, PyTorch)
    K = ksize * ksize * C
    M = N * Ho * Wo
    assert M % group == 0
    Mp = M // group
    phases = []
    for ph in range(pool):
        for pw in range(pool):
            cols = []
            for kh in range(ksize):
                for kw in range(ksize):
                    sl = x_nhwc[:,
                                ph + kh: ph + kh + pool * Ho: pool,
                                pw + kw: pw + kw + pool * Wo: pool, :]
                    cols.append(sl)                # (N, Ho, Wo, C), (kh, kw) order
            patch = jnp.concatenate(cols, axis=-1)             # (N, Ho, Wo, K)
            if k_pad > K:
                patch = jnp.pad(patch, ((0, 0), (0, 0), (0, 0), (0, k_pad - K)))
            phases.append(patch.reshape(Mp, group * k_pad))
    return jnp.stack(phases, axis=0), (N, Ho, Wo)


# ----------------------------------------------------------------------------
# Wrappers around pallas_call
# ----------------------------------------------------------------------------
def conv_relu_pool_stage(x_nhwc, w_oihw, b, num_cores):
    """Conv2d(3x3, VALID) + ReLU + MaxPool2d(2) as a single Pallas kernel."""
    cout, cin = w_oihw.shape[0], w_oihw.shape[1]
    assert 128 % cout == 0
    g = 128 // cout                                 # pixels packed per 128-lane row
    K = KSIZE * KSIZE * cin
    unit = 128 // g                                 # per-pixel pad unit -> Kg % 128 == 0
    k_pad = -(-K // unit) * unit
    Kg = g * k_pad

    packed, (N, Ho, Wo) = im2col_pool_patches_packed(x_nhwc, g, k_pad)
    P, Mp, _ = packed.shape                         # P = 4 pooling phases
    pad_rows = (-Mp) % 8                            # keep row tiles sublane-aligned
    if pad_rows:
        packed = jnp.pad(packed, ((0, 0), (0, pad_rows), (0, 0)))
    Mp_pad = Mp + pad_rows

    # <= ~4 MB per input block; on 2-TC chips force >= 2 grid steps so
    # dimension_semantics=("parallel",) can use both TensorCores.
    cap = max(8, (4 << 20) // (P * Kg * 4))
    tm = _pick_row_tile(Mp_pad, cap=cap, min_tiles=2 if num_cores > 1 else 1)
    nt = Mp_pad // tm

    # Block-diagonal weight: g copies of the (k_pad, cout) conv matrix, zero rows
    # in the padded feature slots (exact math) -> (Kg, 128).
    wm = jnp.transpose(w_oihw, (2, 3, 1, 0)).reshape(K, cout)   # (kh, kw, cin) rows
    wm = jnp.pad(wm, ((0, k_pad - K), (0, 0)))
    w_big = jnp.kron(jnp.eye(g, dtype=wm.dtype), wm)
    b_big = jnp.tile(b, g).reshape(1, g * cout)

    out = pl.pallas_call(
        conv_relu_pool_kernel,
        out_shape=jax.ShapeDtypeStruct((Mp_pad, 128), jnp.float32),
        grid_spec=pltpu.PrefetchScalarGridSpec(
            num_scalar_prefetch=0,
            grid=(nt,),
            in_specs=[
                pl.BlockSpec((P, tm, Kg), lambda i: (0, i, 0)),
                pl.BlockSpec((Kg, 128), lambda i: (0, 0)),
                pl.BlockSpec((1, 128), lambda i: (0, 0)),
            ],
            out_specs=pl.BlockSpec((tm, 128), lambda i: (i, 0)),
        ),
        compiler_params=pltpu.CompilerParams(
            dimension_semantics=("parallel",),
            vmem_limit_bytes=32 << 20,
        ),
    )(packed, w_big, b_big)

    # (Mp, 128) row-major is bit-identical to (M, cout) -> free reshape to NHWC.
    return out[:Mp].reshape(N, Ho, Wo, cout)


def mlp_head(xf, w1, b1, w2, b2):
    """ReLU(xf @ W1 + b1) @ W2 + b2, streaming W1 in large K blocks."""
    nb, K = xf.shape
    H = w1.shape[1]
    C = w2.shape[1]
    # Few, large K tiles: K=12544 -> tk=6272 (2 grid steps).  Double-buffered
    # fc1_w blocks are 2 x 3.2 MB, inside scoped VMEM on v5e/v6e/v7x.
    tk = _pick_k_tile(K, 128, 8192)
    assert 2 * tk * H * 4 <= (24 << 20), "fc1_w K tile too large for VMEM budget"
    return pl.pallas_call(
        mlp_kernel,
        out_shape=jax.ShapeDtypeStruct((nb, C), jnp.float32),
        grid_spec=pltpu.PrefetchScalarGridSpec(
            num_scalar_prefetch=0,
            grid=(K // tk,),
            in_specs=[
                pl.BlockSpec((nb, tk), lambda k: (0, k)),
                pl.BlockSpec((tk, H), lambda k: (k, 0)),
                pl.BlockSpec((1, H), lambda k: (0, 0)),
                pl.BlockSpec((H, C), lambda k: (0, 0)),
                pl.BlockSpec((1, C), lambda k: (0, 0)),
            ],
            out_specs=pl.BlockSpec((nb, C), lambda k: (0, 0)),
            scratch_shapes=[pltpu.VMEM((nb, H), jnp.float32)],
        ),
        compiler_params=pltpu.CompilerParams(
            dimension_semantics=("arbitrary",),
            vmem_limit_bytes=32 << 20,
        ),
    )(xf, w1, b1.reshape(1, H), w2, b2.reshape(1, C))


# ----------------------------------------------------------------------------
# Parameter prep (one-time, outside jit) and forward pass
# ----------------------------------------------------------------------------
def prepare_params(p):
    """Fold the PyTorch NCHW flatten into fc1_w: permute its rows from (c,h,w)
    to (h,w,c) order so the NHWC conv2 output feeds the MLP with a plain reshape
    (removes the transpose between the conv2 and MLP pallas_calls)."""
    q = dict(p)
    c = p["conv2_w"].shape[0]
    hw = p["fc1_w"].shape[0] // c
    s = int(round(math.sqrt(hw)))
    assert s * s == hw
    q["fc1_w"] = (p["fc1_w"]
                  .reshape(c, s, s, p["fc1_w"].shape[1])
                  .transpose(1, 2, 0, 3)
                  .reshape(p["fc1_w"].shape))
    return q


def gazenet_forward(x_nchw, params, *, num_cores=1):
    """Forward pass; expects params already run through prepare_params."""
    N = x_nchw.shape[0]
    x_nhwc = jnp.transpose(x_nchw, (0, 2, 3, 1))

    # features: Conv2d(3,32,3)+ReLU+MaxPool2d(2), Conv2d(32,64,3)+ReLU+MaxPool2d(2)
    y1 = conv_relu_pool_stage(x_nhwc, params["conv1_w"], params["conv1_b"], num_cores)
    y2 = conv_relu_pool_stage(y1, params["conv2_w"], params["conv2_b"], num_cores)

    # classifier: fc1_w rows pre-permuted to (h,w,c) order -> NHWC flatten directly.
    xf = y2.reshape(N, -1)
    return mlp_head(xf, params["fc1_w"], params["fc1_b"],
                    params["fc2_w"], params["fc2_b"])


# ----------------------------------------------------------------------------
# Pure-JAX reference for correctness checking (uses the ORIGINAL params)
# ----------------------------------------------------------------------------
def ref_forward(x, p):
    dn = ("NCHW", "OIHW", "NCHW")
    y = lax.conv_general_dilated(x, p["conv1_w"], (1, 1), "VALID",
                                 dimension_numbers=dn)
    y = jnp.maximum(y + p["conv1_b"][None, :, None, None], 0.0)
    y = lax.reduce_window(y, -jnp.inf, lax.max, (1, 1, 2, 2), (1, 1, 2, 2), "VALID")
    y = lax.conv_general_dilated(y, p["conv2_w"], (1, 1), "VALID",
                                 dimension_numbers=dn)
    y = jnp.maximum(y + p["conv2_b"][None, :, None, None], 0.0)
    y = lax.reduce_window(y, -jnp.inf, lax.max, (1, 1, 2, 2), (1, 1, 2, 2), "VALID")
    y = y.reshape(y.shape[0], -1)
    y = jnp.maximum(y @ p["fc1_w"] + p["fc1_b"], 0.0)
    return y @ p["fc2_w"] + p["fc2_b"]


# ----------------------------------------------------------------------------
if __name__ == "__main__":
    key = jax.random.PRNGKey(0)
    ks = jax.random.split(key, 9)

    # Input: 62x62 RGB -> conv/pool/conv/pool -> (64, 14, 14), matching
    # Linear(64*14*14, 128) in the original module.
    x = jax.random.normal(ks[0], (2, 3, 62, 62), jnp.float32)

    params = {
        "conv1_w": jax.random.normal(ks[1], (32, 3, 3, 3), jnp.float32) / math.sqrt(27.0),
        "conv1_b": jax.random.normal(ks[2], (32,), jnp.float32) * 0.1,
        "conv2_w": jax.random.normal(ks[3], (64, 32, 3, 3), jnp.float32) / math.sqrt(288.0),
        "conv2_b": jax.random.normal(ks[4], (64,), jnp.float32) * 0.1,
        "fc1_w": jax.random.normal(ks[5], (64 * 14 * 14, 128), jnp.float32) / math.sqrt(64 * 14 * 14),
        "fc1_b": jax.random.normal(ks[6], (128,), jnp.float32) * 0.1,
        "fc2_w": jax.random.normal(ks[7], (128, NUM_CLASSES), jnp.float32) / math.sqrt(128.0),
        "fc2_b": jax.random.normal(ks[8], (NUM_CLASSES,), jnp.float32) * 0.1,
    }

    prepped = prepare_params(params)            # one-time fc1_w row permutation
    num_cores = _tensorcores_per_chip()

    fwd = jax.jit(gazenet_forward, static_argnames=("num_cores",))
    out = fwd(x, prepped, num_cores=num_cores)
    out = jax.block_until_ready(out)
    assert out.shape == (2, NUM_CLASSES) and out.dtype == jnp.float32

    ref = jax.block_until_ready(ref_forward(x, params))
    assert jnp.allclose(out, ref, rtol=1e-3, atol=1e-3), (out, ref)

    print("KERNEL_OK")
</pallas_src>

<mosaic_0001>
module attributes {stable_mosaic.version = 11 : i64} {
  func.func @conv_relu_pool_kernel(%arg0: i32, %arg1: memref<4x456x128xf32, #tpu.memory_space<vmem>>, %arg2: memref<128x128xf32, #tpu.memory_space<vmem>>, %arg3: memref<1x128xf32, #tpu.memory_space<vmem>>, %arg4: memref<456x128xf32, #tpu.memory_space<vmem>>) attributes {dimension_semantics = [#tpu.dimension_semantics<parallel>], iteration_bounds = array<i64: 1>, scalar_prefetch = 0 : i64, scratch_operands = 0 : i64, tpu.core_type = #tpu.core_type<tc>, window_params = [{transform_indices = @transform_0, window_bounds = array<i64: 4, 456, 128>}, {pipeline_mode = #tpu.pipeline_mode<synchronous>, transform_indices = @transform_1, window_bounds = array<i64: 128, 128>}, {pipeline_mode = #tpu.pipeline_mode<synchronous>, transform_indices = @transform_2, window_bounds = array<i64: 1, 128>}, {transform_indices = @transform_3, window_bounds = array<i64: 456, 128>}]} {
    %c0 = arith.constant 0 : index
    %c0_0 = arith.constant 0 : index
    %c0_1 = arith.constant 0 : index
    %0 = vector.load %arg1[%c0, %c0_0, %c0_1] : memref<4x456x128xf32, #tpu.memory_space<vmem>>, vector<4x456x128xf32>
    %1 = vector.shape_cast %0 : vector<4x456x128xf32> to vector<1824x128xf32>
    %c0_2 = arith.constant 0 : index
    %c0_3 = arith.constant 0 : index
    %2 = vector.load %arg2[%c0_2, %c0_3] : memref<128x128xf32, #tpu.memory_space<vmem>>, vector<128x128xf32>
    %cst = arith.constant dense<0.000000e+00> : vector<1824x128xf32>
    %3 = tpu.matmul %1, %2, %cst {dimension_numbers = #tpu.dot_dimension_numbers<[1], [0], [0], [1], [0, 0, 1, 1], [], []>} : vector<1824x128xf32>, vector<128x128xf32>, vector<1824x128xf32> -> vector<1824x128xf32>
    %4 = vector.extract_strided_slice %3 {offsets = [0, 0], sizes = [456, 128], strides = [1, 1]} : vector<1824x128xf32> to vector<456x128xf32>
    %5 = vector.extract_strided_slice %3 {offsets = [456, 0], sizes = [456, 128], strides = [1, 1]} : vector<1824x128xf32> to vector<456x128xf32>
    %6 = arith.maximumf %4, %5 : vector<456x128xf32>
    %7 = vector.extract_strided_slice %3 {offsets = [912, 0], sizes = [456, 128], strides = [1, 1]} : vector<1824x128xf32> to vector<456x128xf32>
    %8 = arith.maximumf %6, %7 : vector<456x128xf32>
    %9 = vector.extract_strided_slice %3 {offsets = [1368, 0], sizes = [456, 128], strides = [1, 1]} : vector<1824x128xf32> to vector<456x128xf32>
    %10 = arith.maximumf %8, %9 : vector<456x128xf32>
    %c0_4 = arith.constant 0 : index
    %c0_5 = arith.constant 0 : index
    %11 = vector.load %arg3[%c0_4, %c0_5] : memref<1x128xf32, #tpu.memory_space<vmem>>, vector<1x128xf32>
    %12 = vector.broadcast %11 : vector<1x128xf32> to vector<456x128xf32>
    %13 = arith.addf %10, %12 : vector<456x128xf32>
    %cst_6 = arith.constant 0.000000e+00 : f32
    %14 = vector.broadcast %cst_6 : f32 to vector<456x128xf32>
    %15 = arith.maximumf %13, %14 : vector<456x128xf32>
    %c0_7 = arith.constant 0 : index
    %c0_8 = arith.constant 0 : index
    %16 = vector.load %arg4[%c0_7, %c0_8] : memref<456x128xf32, #tpu.memory_space<vmem>>, vector<456x128xf32>
    tpu.vector_store %arg4[%c0_7, %c0_8], %15 {strides = array<i32>} : memref<456x128xf32, #tpu.memory_space<vmem>>, vector<456x128xf32>,
    return
  }
  func.func @transform_0(%arg0: i32) -> (i32, i32, i32) {
    %c0_i32 = arith.constant 0 : i32
    %c0_i32_0 = arith.constant 0 : i32
    %c0_i32_1 = arith.constant 0 : i32
    return %c0_i32, %arg0, %c0_i32_0 : i32, i32, i32
  }
  func.func @transform_1(%arg0: i32) -> (i32, i32) {
    %c0_i32 = arith.constant 0 : i32
    %c0_i32_0 = arith.constant 0 : i32
    %c0_i32_1 = arith.constant 0 : i32
    return %c0_i32, %c0_i32_0 : i32, i32
  }
  func.func @transform_2(%arg0: i32) -> (i32, i32) {
    %c0_i32 = arith.constant 0 : i32
    %c0_i32_0 = arith.constant 0 : i32
    %c0_i32_1 = arith.constant 0 : i32
    return %c0_i32, %c0_i32_0 : i32, i32
  }
  func.func @transform_3(%arg0: i32) -> (i32, i32) {
    %c0_i32 = arith.constant 0 : i32
    %c0_i32_0 = arith.constant 0 : i32
    return %arg0, %c0_i32 : i32, i32
  }
}

module attributes {stable_mosaic.version = 11 : i64} {
  func.func @conv_relu_pool_kernel(%arg0: i32, %arg1: memref<4x200x640xf32, #tpu.memory_space<vmem>>, %arg2: memref<640x128xf32, #tpu.memory_space<vmem>>, %arg3: memref<1x128xf32, #tpu.memory_space<vmem>>, %arg4: memref<200x128xf32, #tpu.memory_space<vmem>>) attributes {dimension_semantics = [#tpu.dimension_semantics<parallel>], iteration_bounds = array<i64: 1>, scalar_prefetch = 0 : i64, scratch_operands = 0 : i64, tpu.core_type = #tpu.core_type<tc>, window_params = [{transform_indices = @transform_0, window_bounds = array<i64: 4, 200, 640>}, {pipeline_mode = #tpu.pipeline_mode<synchronous>, transform_indices = @transform_1, window_bounds = array<i64: 640, 128>}, {pipeline_mode = #tpu.pipeline_mode<synchronous>, transform_indices = @transform_2, window_bounds = array<i64: 1, 128>}, {transform_indices = @transform_3, window_bounds = array<i64: 200, 128>}]} {
    %c0 = arith.constant 0 : index
    %c0_0 = arith.constant 0 : index
    %c0_1 = arith.constant 0 : index
    %0 = vector.load %arg1[%c0, %c0_0, %c0_1] : memref<4x200x640xf32, #tpu.memory_space<vmem>>, vector<4x200x640xf32>
    %1 = vector.shape_cast %0 : vector<4x200x640xf32> to vector<800x640xf32>
    %c0_2 = arith.constant 0 : index
    %c0_3 = arith.constant 0 : index
    %2 = vector.load %arg2[%c0_2, %c0_3] : memref<640x128xf32, #tpu.memory_space<vmem>>, vector<640x128xf32>
    %cst = arith.constant dense<0.000000e+00> : vector<800x128xf32>
    %3 = tpu.matmul %1, %2, %cst {dimension_numbers = #tpu.dot_dimension_numbers<[1], [0], [0], [1], [0, 0, 1, 1], [], []>} : vector<800x640xf32>, vector<640x128xf32>, vector<800x128xf32> -> vector<800x128xf32>
    %4 = vector.extract_strided_slice %3 {offsets = [0, 0], sizes = [200, 128], strides = [1, 1]} : vector<800x128xf32> to vector<200x128xf32>
    %5 = vector.extract_strided_slice %3 {offsets = [200, 0], sizes = [200, 128], strides = [1, 1]} : vector<800x128xf32> to vector<200x128xf32>
    %6 = arith.maximumf %4, %5 : vector<200x128xf32>
    %7 = vector.extract_strided_slice %3 {offsets = [400, 0], sizes = [200, 128], strides = [1, 1]} : vector<800x128xf32> to vector<200x128xf32>
    %8 = arith.maximumf %6, %7 : vector<200x128xf32>
    %9 = vector.extract_strided_slice %3 {offsets = [600, 0], sizes = [200, 128], strides = [1, 1]} : vector<800x128xf32> to vector<200x128xf32>
    %10 = arith.maximumf %8, %9 : vector<200x128xf32>
    %c0_4 = arith.constant 0 : index
    %c0_5 = arith.constant 0 : index
    %11 = vector.load %arg3[%c0_4, %c0_5] : memref<1x128xf32, #tpu.memory_space<vmem>>, vector<1x128xf32>
    %12 = vector.broadcast %11 : vector<1x128xf32> to vector<200x128xf32>
    %13 = arith.addf %10, %12 : vector<200x128xf32>
    %cst_6 = arith.constant 0.000000e+00 : f32
    %14 = vector.broadcast %cst_6 : f32 to vector<200x128xf32>
    %15 = arith.maximumf %13, %14 : vector<200x128xf32>
    %c0_7 = arith.constant 0 : index
    %c0_8 = arith.constant 0 : index
    %16 = vector.load %arg4[%c0_7, %c0_8] : memref<200x128xf32, #tpu.memory_space<vmem>>, vector<200x128xf32>
    tpu.vector_store %arg4[%c0_7, %c0_8], %15 {strides = array<i32>} : memref<200x128xf32, #tpu.memory_space<vmem>>, vector<200x128xf32>,
    return
  }
  func.func @transform_0(%arg0: i32) -> (i32, i32, i32) {
    %c0_i32 = arith.constant 0 : i32
    %c0_i32_0 = arith.constant 0 : i32
    %c0_i32_1 = arith.constant 0 : i32
    return %c0_i32, %arg0, %c0_i32_0 : i32, i32, i32
  }
  func.func @transform_1(%arg0: i32) -> (i32, i32) {
    %c0_i32 = arith.constant 0 : i32
    %c0_i32_0 = arith.constant 0 : i32
    %c0_i32_1 = arith.constant 0 : i32
    return %c0_i32, %c0_i32_0 : i32, i32
  }
  func.func @transform_2(%arg0: i32) -> (i32, i32) {
    %c0_i32 = arith.constant 0 : i32
    %c0_i32_0 = arith.constant 0 : i32
    %c0_i32_1 = arith.constant 0 : i32
    return %c0_i32, %c0_i32_0 : i32, i32
  }
  func.func @transform_3(%arg0: i32) -> (i32, i32) {
    %c0_i32 = arith.constant 0 : i32
    %c0_i32_0 = arith.constant 0 : i32
    return %arg0, %c0_i32 : i32, i32
  }
}

module attributes {stable_mosaic.version = 11 : i64} {
  func.func @mlp_kernel(%arg0: i32, %arg1: memref<2x6272xf32, #tpu.memory_space<vmem>>, %arg2: memref<6272x128xf32, #tpu.memory_space<vmem>>, %arg3: memref<1x128xf32, #tpu.memory_space<vmem>>, %arg4: memref<128x5xf32, #tpu.memory_space<vmem>>, %arg5: memref<1x5xf32, #tpu.memory_space<vmem>>, %arg6: memref<2x5xf32, #tpu.memory_space<vmem>>, %arg7: memref<2x128xf32, #tpu.memory_space<vmem>>) attributes {dimension_semantics = [#tpu.dimension_semantics<arbitrary>], iteration_bounds = array<i64: 2>, scalar_prefetch = 0 : i64, scratch_operands = 1 : i64, tpu.core_type = #tpu.core_type<tc>, window_params = [{transform_indices = @transform_0, window_bounds = array<i64: 2, 6272>}, {transform_indices = @transform_1, window_bounds = array<i64: 6272, 128>}, {pipeline_mode = #tpu.pipeline_mode<synchronous>, transform_indices = @transform_2, window_bounds = array<i64: 1, 128>}, {pipeline_mode = #tpu.pipeline_mode<synchronous>, transform_indices = @transform_3, window_bounds = array<i64: 128, 5>}, {pipeline_mode = #tpu.pipeline_mode<synchronous>, transform_indices = @transform_4, window_bounds = array<i64: 1, 5>}, {pipeline_mode = #tpu.pipeline_mode<synchronous>, transform_indices = @transform_5, window_bounds = array<i64: 2, 5>}]} {
    %c0_i32 = arith.constant 0 : i32
    %0 = arith.cmpi eq, %arg0, %c0_i32 : i32
    %1 = arith.extui %0 : i1 to i32
    %c0_i32_0 = arith.constant 0 : i32
    %2 = arith.cmpi ne, %1, %c0_i32_0 : i32
    scf.if %2 {
      %cst_9 = arith.constant 0.000000e+00 : f32
      %12 = vector.broadcast %cst_9 : f32 to vector<2x128xf32>
      %c0_10 = arith.constant 0 : index
      %c0_11 = arith.constant 0 : index
      %13 = vector.load %arg7[%c0_10, %c0_11] : memref<2x128xf32, #tpu.memory_space<vmem>>, vector<2x128xf32>
      tpu.vector_store %arg7[%c0_10, %c0_11], %12 {strides = array<i32>} : memref<2x128xf32, #tpu.memory_space<vmem>>, vector<2x128xf32>,
    } else {
    }
    %c0 = arith.constant 0 : index
    %c0_1 = arith.constant 0 : index
    %3 = vector.load %arg7[%c0, %c0_1] : memref<2x128xf32, #tpu.memory_space<vmem>>, vector<2x128xf32>
    %c0_2 = arith.constant 0 : index
    %c0_3 = arith.constant 0 : index
    %4 = vector.load %arg1[%c0_2, %c0_3] : memref<2x6272xf32, #tpu.memory_space<vmem>>, vector<2x6272xf32>
    %c0_4 = arith.constant 0 : index
    %c0_5 = arith.constant 0 : index
    %5 = vector.load %arg2[%c0_4, %c0_5] : memref<6272x128xf32, #tpu.memory_space<vmem>>, vector<6272x128xf32>
    %cst = arith.constant dense<0.000000e+00> : vector<2x128xf32>
    %6 = tpu.matmul %4, %5, %cst {dimension_numbers = #tpu.dot_dimension_numbers<[1], [0], [0], [1], [0, 0, 1, 1], [], []>} : vector<2x6272xf32>, vector<6272x128xf32>, vector<2x128xf32> -> vector<2x128xf32>
    %7 = arith.addf %3, %6 : vector<2x128xf32>
    %c0_6 = arith.constant 0 : index
    %c0_7 = arith.constant 0 : index
    %8 = vector.load %arg7[%c0_6, %c0_7] : memref<2x128xf32, #tpu.memory_space<vmem>>, vector<2x128xf32>
    tpu.vector_store %arg7[%c0_6, %c0_7], %7 {strides = array<i32>} : memref<2x128xf32, #tpu.memory_space<vmem>>, vector<2x128xf32>,
    %c1_i32 = arith.constant 1 : i32
    %9 = arith.cmpi eq, %arg0, %c1_i32 : i32
    %10 = arith.extui %9 : i1 to i32
    %c0_i32_8 = arith.constant 0 : i32
    %11 = arith.cmpi ne, %10, %c0_i32_8 : i32
    scf.if %11 {
      %c0_9 = arith.constant 0 : index
      %c0_10 = arith.constant 0 : index
      %12 = vector.load %arg7[%c0_9, %c0_10] : memref<2x128xf32, #tpu.memory_space<vmem>>, vector<2x128xf32>
      %c0_11 = arith.constant 0 : index
      %c0_12 = arith.constant 0 : index
      %13 = vector.load %arg3[%c0_11, %c0_12] : memref<1x128xf32, #tpu.memory_space<vmem>>, vector<1x128xf32>
      %14 = vector.broadcast %13 : vector<1x128xf32> to vector<2x128xf32>
      %15 = arith.addf %12, %14 : vector<2x128xf32>
      %cst_13 = arith.constant 0.000000e+00 : f32
      %16 = vector.broadcast %cst_13 : f32 to vector<2x128xf32>
      %17 = arith.maximumf %15, %16 : vector<2x128xf32>
      %c0_14 = arith.constant 0 : index
      %c0_15 = arith.constant 0 : index
      %18 = vector.load %arg4[%c0_14, %c0_15] : memref<128x5xf32, #tpu.memory_space<vmem>>, vector<128x5xf32>
      %cst_16 = arith.constant dense<0.000000e+00> : vector<2x5xf32>
      %19 = tpu.matmul %17, %18, %cst_16 {dimension_numbers = #tpu.dot_dimension_numbers<[1], [0], [0], [1], [0, 0, 1, 1], [], []>} : vector<2x128xf32>, vector<128x5xf32>, vector<2x5xf32> -> vector<2x5xf32>
      %c0_17 = arith.constant 0 : index
      %c0_18 = arith.constant 0 : index
      %20 = vector.load %arg5[%c0_17, %c0_18] : memref<1x5xf32, #tpu.memory_space<vmem>>, vector<1x5xf32>
      %21 = vector.broadcast %20 : vector<1x5xf32> to vector<2x5xf32>
      %22 = arith.addf %19, %21 : vector<2x5xf32>
      %c0_19 = arith.constant 0 : index
      %c0_20 = arith.constant 0 : index
      %23 = vector.load %arg6[%c0_19, %c0_20] : memref<2x5xf32, #tpu.memory_space<vmem>>, vector<2x5xf32>
      tpu.vector_store %arg6[%c0_19, %c0_20], %22 {strides = array<i32>} : memref<2x5xf32, #tpu.memory_space<vmem>>, vector<2x5xf32>,
    } else {
    }
    return
  }
  func.func @transform_0(%arg0: i32) -> (i32, i32) {
    %c0_i32 = arith.constant 0 : i32
    %c0_i32_0 = arith.constant 0 : i32
    return %c0_i32, %arg0 : i32, i32
  }
  func.func @transform_1(%arg0: i32) -> (i32, i32) {
    %c0_i32 = arith.constant 0 : i32
    %c0_i32_0 = arith.constant 0 : i32
    return %arg0, %c0_i32 : i32, i32
  }
  func.func @transform_2(%arg0: i32) -> (i32, i32) {
    %c0_i32 = arith.constant 0 : i32
    %c0_i32_0 = arith.constant 0 : i32
    %c0_i32_1 = arith.constant 0 : i32
    return %c0_i32, %c0_i32_0 : i32, i32
  }
  func.func @transform_3(%arg0: i32) -> (i32, i32) {
    %c0_i32 = arith.constant 0 : i32
    %c0_i32_0 = arith.constant 0 : i32
    %c0_i32_1 = arith.constant 0 : i32
    return %c0_i32, %c0_i32_0 : i32, i32
  }
  func.func @transform_4(%arg0: i32) -> (i32, i32) {
    %c0_i32 = arith.constant 0 : i32
    %c0_i32_0 = arith.constant 0 : i32
    %c0_i32_1 = arith.constant 0 : i32
    return %c0_i32, %c0_i32_0 : i32, i32
  }
  func.func @transform_5(%arg0: i32) -> (i32, i32) {
    %c0_i32 = arith.constant 0 : i32
    %c0_i32_0 = arith.constant 0 : i32
    %c0_i32_1 = arith.constant 0 : i32
    return %c0_i32, %c0_i32_0 : i32, i32
  }
}

</mosaic_0001>

<bundles_post_ra>
// kernel: tile.13
= control target key start
LH: loop header
LB: loop body
LE: loop exit
PB: predicated region body
PF: predicated region fallthrough
CT: control target
= control target key end

     0   :  { %s22_s0 = inlined_call_operand.vmem [shape: f32[32], index: 0, kind: input, shape index: {}]   ;;  %s23_s1 = inlined_call_operand.vmem [shape: f32[4,32], index: 1, kind: output, shape index: {}]  }
   0x1   :  { %v4_v0 = vld [vmem:[%s22_s0] ss:$0 sm:$0xff] }
   0x2   :  { %5 = vst [vmem:[%s23_s1] sm:$0xf] %v4_v0 }

// kernel: tile.14
= control target key start
LH: loop header
LB: loop body
LE: loop exit
PB: predicated region body
PF: predicated region fallthrough
CT: control target
= control target key end

     0   :  { %vm7_vm0 = vcmask 261120   ;;  %s37_s8 = smov 32   ;;  %s38_s9 = smov 64   ;;  %vm13_vm1 = vcmask 1048320   ;;  %vm19_vm2 = vcmask 785920   ;;  %vm25_vm3 = vcmask 523520   ;;  %s55_s0 = inlined_call_operand.vmem [shape: f32[4,32], index: 0, kind: input, shape index: {}]   ;;  %s56_s1 = inlined_call_operand.vmem [shape: f32[1,128], index: 1, kind: output, shape index: {}]  }
   0x1   :  { %v4_v0 = vld [vmem:[%s55_s0] sm:$0xf]  ;;  %s36_s0 = smov 96  }
   0x2   :  { %5 = vst [vmem:[#allocation1] sm:$0xf] %v4_v0 }
   0x9   :  { %v10_v1 = vld [vmem:[#allocation1 + $0x3] sm:$0x1]   ;;  %v22_v2 = vld [vmem:[#allocation1 + $0x1] sm:$0x1]   ;;  %v6_v3 = vld [vmem:[#allocation1] sm:$0x1]  }
   0xa   :  { %11 = vrot.lane.b32.xlu0 %v10_v1, %s36_s0  ;;  %23 = vrot.lane.b32.xlu1 %v22_v2, %s37_s8  ;;  %v16_v4 = vld [vmem:[#allocation1 + $0x2] sm:$0x1]   ;;  %8 = vst.msk [vmem:[#allocation0] sm:$0x1] %vm7_vm0, %v6_v3  }
   0xe   :  { %17 = vrot.lane.b32.xlu0 %v16_v4, %s38_s9 }
  0x7c   :  { %v12_v5 = vpop.permute.xlu0 %11   ;;  %v24_v6 = vpop.permute.xlu1 %23  }
  0x7d   :  { %14 = vst.msk [vmem:[#allocation0] sm:$0x1] %vm13_vm1, %v12_v5  }
  0x80   :  { %v18_v7 = vpop.permute.xlu0 %17  }
  0x81   :  { %20 = vst.msk [vmem:[#allocation0] sm:$0x1] %vm19_vm2, %v18_v7  }
  0x82   :  { %26 = vst.msk [vmem:[#allocation0] sm:$0x1] %vm25_vm3, %v24_v6  }
  0x89   :  { %v30_v8 = vld [vmem:[#allocation0] sm:$0x1] }
  0x8a   :  { %32 = vst [vmem:[%s56_s1] sm:$0x1] %v30_v8 }

// kernel: gazenet_forward.3
= control target key start
LH: loop header
LB: loop body
LE: loop exit
PB: predicated region body
PF: predicated region fallthrough
CT: control target
= control target key end

     0   :  { %s3810_s1 = inlined_call_operand.vmem [shape: f32[128,128], index: 1, kind: input, shape index: {}]   ;;  %s3811_s0 = inlined_call_operand.vmem [shape: f32[4,456,128], index: 0, kind: input, shape index: {}]   ;;  %s3812_s2 = inlined_call_operand.vmem [shape: f32[1,128], index: 2, kind: input, shape index: {}]   ;;  %s3813_s3 = inlined_call_operand.vmem [shape: f32[456,128], index: 3, kind: output, shape index: {}]  }
   0x1   :  { %v242_v0 = vld [vmem:[%s3810_s1] sm:$0xff]  ;;  %v243_v1 = vld [vmem:[%s3810_s1 + $0x8] sm:$0xff]  ;;  %v244_v2 = vld [vmem:[%s3810_s1 + $0x10] sm:$0xff] }
   0x2   :  { %v2435_v3 = vpack.c.bf16 %v243_v1, %v242_v0  ;;  %v245_v4 = vld [vmem:[%s3810_s1 + $0x18] sm:$0xff]  ;;  %v246_v6 = vld [vmem:[%s3810_s1 + $0x20] sm:$0xff]  ;;  %v247_v7 = vld [vmem:[%s3810_s1 + $0x28] sm:$0xff] }
   0x3   :  { %v2439_v5 = vpack.c.bf16 %v245_v4, %v244_v2  ;;  %v2443_v8 = vpack.c.bf16 %v247_v7, %v246_v6  ;;  %v14_v9 = vld [vmem:[%s3811_s0] sm:$0xff]  ;;  %v248_v10 = vld [vmem:[%s3810_s1 + $0x30] sm:$0xff]  ;;  %v249_v11 = vld [vmem:[%s3810_s1 + $0x38] sm:$0xff] }
   0x4   :  { %2436 = vmatprep.subr.bf16.mxu0 %v2435_v3  ;;  %2467 = vmatprep.subr.bf16.mxu1 %v2435_v3  ;;  %v128_v12 = vld [vmem:[%s3811_s0 + $0x390] sm:$0xff]  ;;  %v2447_v13 = vpack.c.bf16 %v249_v11, %v248_v10  ;;  %v250_v14 = vld [vmem:[%s3810_s1 + $0x40] sm:$0xff]  ;;  %v251_v15 = vld [vmem:[%s3810_s1 + $0x48] sm:$0xff] }
   0x5   :  { %2438 = vmatpush3.bf16.msra.mxu0 %v2435_v3  ;;  %2475 = vmatpush3.bf16.msra.mxu1 %v2435_v3  ;;  %v2451_v16 = vpack.c.bf16 %v251_v15, %v250_v14  ;;  %v252_v17 = vld [vmem:[%s3810_s1 + $0x50] sm:$0xff]  ;;  %v253_v18 = vld [vmem:[%s3810_s1 + $0x58] sm:$0xff]  ;;  %v254_v20 = vld [vmem:[%s3810_s1 + $0x60] sm:$0xff] }
   0x6   :  { %2440 = vmatprep.subr.bf16.mxu0 %v2439_v5  ;;  %2468 = vmatprep.subr.bf16.mxu1 %v2439_v5  ;;  %v2455_v19 = vpack.c.bf16 %v253_v18, %v252_v17  ;;  %v255_v21 = vld [vmem:[%s3810_s1 + $0x68] sm:$0xff]  ;;  %v256_v23 = vld [vmem:[%s3810_s1 + $0x70] sm:$0xff]  ;;  %v257_v24 = vld [vmem:[%s3810_s1 + $0x78] sm:$0xff] }
   0x7   :  { %2093 = vmatprep.mubr.f32.mxu0 %v14_v9  ;;  %2264 = vmatprep.mubr.f32.mxu1 %v128_v12  ;;  %v2459_v22 = vpack.c.bf16 %v255_v21, %v254_v20  ;;  %v2463_v25 = vpack.c.bf16 %v257_v24, %v256_v23  ;;  %v15_v26 = vld [vmem:[%s3811_s0 + $0x8] sm:$0xff]  ;;  %v129_v27 = vld [vmem:[%s3811_s0 + $0x398] sm:$0xff]  ;;  %v16_v28 = vld [vmem:[%s3811_s0 + $0x10] sm:$0xff] }
   0x8   :  { %v130_v29 = vld [vmem:[%s3811_s0 + $0x3a0] sm:$0xff]  ;;  %v17_v30 = vld [vmem:[%s3811_s0 + $0x18] sm:$0xff]  ;;  %v131_v31 = vld [vmem:[%s3811_s0 + $0x3a8] sm:$0xff] }
   0x9   :  { %2442 = vmatpush3.bf16.msra.mxu0 %v2439_v5  ;;  %2476 = vmatpush3.bf16.msra.mxu1 %v2439_v5  ;;  %v18_v32 = vld [vmem:[%s3811_s0 + $0x20] sm:$0xff]  ;;  %v132_v33 = vld [vmem:[%s3811_s0 + $0x3b0] sm:$0xff]  ;;  %v19_v34 = vld [vmem:[%s3811_s0 + $0x28] sm:$0xff] }
   0xa   :  { %2444 = vmatprep.subr.bf16.mxu0 %v2443_v8  ;;  %2469 = vmatprep.subr.bf16.mxu1 %v2443_v8  ;;  %v133_v35 = vld [vmem:[%s3811_s0 + $0x3b8] sm:$0xff]  ;;  %v20_v36 = vld [vmem:[%s3811_s0 + $0x30] sm:$0xff]  ;;  %v134_v37 = vld [vmem:[%s3811_s0 + $0x3c0] sm:$0xff] }
   0xb   :  { %v21_v38 = vld [vmem:[%s3811_s0 + $0x38] sm:$0xff]  ;;  %v135_v39 = vld [vmem:[%s3811_s0 + $0x3c8] sm:$0xff]  ;;  %v22_v40 = vld [vmem:[%s3811_s0 + $0x40] sm:$0xff] }
   0xc   :  { %v136_v41 = vld [vmem:[%s3811_s0 + $0x3d0] sm:$0xff]  ;;  %v23_v42 = vld [vmem:[%s3811_s0 + $0x48] sm:$0xff]  ;;  %v137_v43 = vld [vmem:[%s3811_s0 + $0x3d8] sm:$0xff] }
   0xd   :  { %2446 = vmatpush3.bf16.msra.mxu0 %v2443_v8  ;;  %2477 = vmatpush3.bf16.msra.mxu1 %v2443_v8  ;;  %v24_v44 = vld [vmem:[%s3811_s0 + $0x50] sm:$0xff]  ;;  %v138_v45 = vld [vmem:[%s3811_s0 + $0x3e0] sm:$0xff]  ;;  %v25_v46 = vld [vmem:[%s3811_s0 + $0x58] sm:$0xff] }
   0xe   :  { %2448 = vmatprep.subr.bf16.mxu0 %v2447_v13  ;;  %2470 = vmatprep.subr.bf16.mxu1 %v2447_v13  ;;  %v139_v47 = vld [vmem:[%s3811_s0 + $0x3e8] sm:$0xff]  ;;  %v26_v48 = vld [vmem:[%s3811_s0 + $0x60] sm:$0xff]  ;;  %v140_v49 = vld [vmem:[%s3811_s0 + $0x3f0] sm:$0xff] }
   0xf   :  { %v27_v50 = vld [vmem:[%s3811_s0 + $0x68] sm:$0xff]  ;;  %v141_v51 = vld [vmem:[%s3811_s0 + $0x3f8] sm:$0xff]  ;;  %v28_v52 = vld [vmem:[%s3811_s0 + $0x70] sm:$0xff] }
  0x10   :  { %v142_v53 = vld [vmem:[%s3811_s0 + $0x400] sm:$0xff]  ;;  %v29_v54 = vld [vmem:[%s3811_s0 + $0x78] sm:$0xff]  ;;  %v143_v55 = vld [vmem:[%s3811_s0 + $0x408] sm:$0xff] }
  0x11   :  { %2450 = vmatpush3.bf16.msra.mxu0 %v2447_v13  ;;  %2478 = vmatpush3.bf16.msra.mxu1 %v2447_v13  ;;  %v30_v56 = vld [vmem:[%s3811_s0 + $0x80] sm:$0xff]  ;;  %v144_v57 = vld [vmem:[%s3811_s0 + $0x410] sm:$0xff]  ;;  %v31_v58 = vld [vmem:[%s3811_s0 + $0x88] sm:$0xff] }
  0x12   :  { %2452 = vmatprep.subr.bf16.mxu0 %v2451_v16  ;;  %2471 = vmatprep.subr.bf16.mxu1 %v2451_v16  ;;  %v145_v59 = vld [vmem:[%s3811_s0 + $0x418] sm:$0xff]  ;;  %v32_v60 = vld [vmem:[%s3811_s0 + $0x90] sm:$0xff]  ;;  %v146_v61 = vld [vmem:[%s3811_s0 + $0x420] sm:$0xff] }
  0x13   :  { %v33_v62 = vld [vmem:[%s3811_s0 + $0x98] sm:$0xff]  ;;  %v147_v63 = vld [vmem:[%s3811_s0 + $0x428] sm:$0xff]  ;;  %v34_v0 = vld [vmem:[%s3811_s0 + $0xa0] sm:$0xff] }
  0x14   :  { %v148_v1 = vld [vmem:[%s3811_s0 + $0x430] sm:$0xff]  ;;  %v35_v2 = vld [vmem:[%s3811_s0 + $0xa8] sm:$0xff]  ;;  %v149_v3 = vld [vmem:[%s3811_s0 + $0x438] sm:$0xff] }
  0x15   :  { %2454 = vmatpush3.bf16.msra.mxu0 %v2451_v16  ;;  %2479 = vmatpush3.bf16.msra.mxu1 %v2451_v16  ;;  %v36_v4 = vld [vmem:[%s3811_s0 + $0xb0] sm:$0xff]  ;;  %v150_v5 = vld [vmem:[%s3811_s0 + $0x440] sm:$0xff]  ;;  %v37_v6 = vld [vmem:[%s3811_s0 + $0xb8] sm:$0xff] }
  0x16   :  { %2456 = vmatprep.subr.bf16.mxu0 %v2455_v19  ;;  %2472 = vmatprep.subr.bf16.mxu1 %v2455_v19  ;;  %v151_v7 = vld [vmem:[%s3811_s0 + $0x448] sm:$0xff]  ;;  %v38_v8 = vld [vmem:[%s3811_s0 + $0xc0] sm:$0xff]  ;;  %v152_v9 = vld [vmem:[%s3811_s0 + $0x450] sm:$0xff] }
  0x17   :  { %v39_v10 = vld [vmem:[%s3811_s0 + $0xc8] sm:$0xff]  ;;  %v153_v11 = vld [vmem:[%s3811_s0 + $0x458] sm:$0xff]  ;;  %v40_v12 = vld [vmem:[%s3811_s0 + $0xd0] sm:$0xff] }
  0x18   :  { %v154_v13 = vld [vmem:[%s3811_s0 + $0x460] sm:$0xff]  ;;  %v41_v14 = vld [vmem:[%s3811_s0 + $0xd8] sm:$0xff]  ;;  %v155_v15 = vld [vmem:[%s3811_s0 + $0x468] sm:$0xff] }
  0x19   :  { %2458 = vmatpush3.bf16.msra.mxu0 %v2455_v19  ;;  %2480 = vmatpush3.bf16.msra.mxu1 %v2455_v19  ;;  %v42_v16 = vld [vmem:[%s3811_s0 + $0xe0] sm:$0xff]  ;;  %v156_v17 = vld [vmem:[%s3811_s0 + $0x470] sm:$0xff]  ;;  %v43_v18 = vld [vmem:[%s3811_s0 + $0xe8] sm:$0xff] }
  0x1a   :  { %2460 = vmatprep.subr.bf16.mxu0 %v2459_v22  ;;  %2473 = vmatprep.subr.bf16.mxu1 %v2459_v22  ;;  %v157_v19 = vld [vmem:[%s3811_s0 + $0x478] sm:$0xff]  ;;  %v44_v20 = vld [vmem:[%s3811_s0 + $0xf0] sm:$0xff]  ;;  %v158_v21 = vld [vmem:[%s3811_s0 + $0x480] sm:$0xff] }
  0x1b   :  { %v159_v23 = vld [vmem:[%s3811_s0 + $0x488] sm:$0xff]  ;;  %v46_v24 = vld [vmem:[%s3811_s0 + $0x100] sm:$0xff] }
  0x1d   :  { %2462 = vmatpush3.bf16.msra.mxu0 %v2459_v22  ;;  %2481 = vmatpush3.bf16.msra.mxu1 %v2459_v22  ;;  %v45_v22 = vld [vmem:[%s3811_s0 + $0xf8] sm:$0xff] }
  0x1e   :  { %2464 = vmatprep.subr.bf16.mxu0 %v2463_v25  ;;  %2474 = vmatprep.subr.bf16.mxu1 %v2463_v25 }
  0x21   :  { %2466 = vmatpush3.bf16.msra.mxu0 %v2463_v25  ;;  %2482 = vmatpush3.bf16.msra.mxu1 %v2463_v25  ;;  %v160_v25 = vld [vmem:[%s3811_s0 + $0x490] sm:$0xff] }
  0x24   :  { %2094 = vmatmul.mubr.f32.vlgmr.msra.gmra.mrb[0].mxu0 %v15_v26  ;;  %2265 = vmatmul.mubr.f32.vlgmr.msra.gmra.mrb[0].mxu1 %v129_v27  ;;  %v47_v26 = vld [vmem:[%s3811_s0 + $0x108] sm:$0xff]  ;;  %v161_v27 = vld [vmem:[%s3811_s0 + $0x498] sm:$0xff] }
  0x25   :  { %2096 = vmatprep.mubr.f32.mxu0 %v16_v28  ;;  %2267 = vmatprep.mubr.f32.mxu1 %v130_v29  ;;  %v48_v28 = vld [vmem:[%s3811_s0 + $0x110] sm:$0xff]  ;;  %v162_v29 = vld [vmem:[%s3811_s0 + $0x4a0] sm:$0xff] }
  0x28   :  { %2097 = vmatmul.mubr.f32.gmra.mrb[2].mxu0 %v17_v30  ;;  %2268 = vmatmul.mubr.f32.gmra.mrb[2].mxu1 %v131_v31  ;;  %v49_v30 = vld [vmem:[%s3811_s0 + $0x118] sm:$0xff]  ;;  %v163_v31 = vld [vmem:[%s3811_s0 + $0x4a8] sm:$0xff] }
  0x29   :  { %2099 = vmatprep.mubr.f32.mxu0 %v18_v32  ;;  %2270 = vmatprep.mubr.f32.mxu1 %v132_v33  ;;  %v50_v32 = vld [vmem:[%s3811_s0 + $0x120] sm:$0xff]  ;;  %v164_v33 = vld [vmem:[%s3811_s0 + $0x4b0] sm:$0xff] }
  0x2c   :  { %2100 = vmatmul.mubr.f32.gmra.mrb[4].mxu0 %v19_v34  ;;  %2271 = vmatmul.mubr.f32.gmra.mrb[4].mxu1 %v133_v35  ;;  %v51_v34 = vld [vmem:[%s3811_s0 + $0x128] sm:$0xff]  ;;  %v165_v35 = vld [vmem:[%s3811_s0 + $0x4b8] sm:$0xff] }
  0x2d   :  { %2102 = vmatprep.mubr.f32.mxu0 %v20_v36  ;;  %2273 = vmatprep.mubr.f32.mxu1 %v134_v37  ;;  %v52_v36 = vld [vmem:[%s3811_s0 + $0x130] sm:$0xff]  ;;  %v166_v37 = vld [vmem:[%s3811_s0 + $0x4c0] sm:$0xff] }
  0x30   :  { %2103 = vmatmul.mubr.f32.gmra.mrb[6].mxu0 %v21_v38  ;;  %2274 = vmatmul.mubr.f32.gmra.mrb[6].mxu1 %v135_v39  ;;  %v53_v38 = vld [vmem:[%s3811_s0 + $0x138] sm:$0xff]  ;;  %v167_v39 = vld [vmem:[%s3811_s0 + $0x4c8] sm:$0xff] }
  0x31   :  { %2105 = vmatprep.mubr.f32.mxu0 %v22_v40  ;;  %2276 = vmatprep.mubr.f32.mxu1 %v136_v41  ;;  %v54_v40 = vld [vmem:[%s3811_s0 + $0x140] sm:$0xff]  ;;  %v168_v41 = vld [vmem:[%s3811_s0 + $0x4d0] sm:$0xff] }
  0x34   :  { %2106 = vmatmul.mubr.f32.gmra.mrb[8].mxu0 %v23_v42  ;;  %2277 = vmatmul.mubr.f32.gmra.mrb[8].mxu1 %v137_v43  ;;  %v55_v42 = vld [vmem:[%s3811_s0 + $0x148] sm:$0xff]  ;;  %v169_v43 = vld [vmem:[%s3811_s0 + $0x4d8] sm:$0xff] }
  0x35   :  { %2108 = vmatprep.mubr.f32.mxu0 %v24_v44  ;;  %2279 = vmatprep.mubr.f32.mxu1 %v138_v45  ;;  %v56_v44 = vld [vmem:[%s3811_s0 + $0x150] sm:$0xff]  ;;  %v170_v45 = vld [vmem:[%s3811_s0 + $0x4e0] sm:$0xff] }
  0x38   :  { %2109 = vmatmul.mubr.f32.gmra.mrb[10].mxu0 %v25_v46  ;;  %2280 = vmatmul.mubr.f32.gmra.mrb[10].mxu1 %v139_v47  ;;  %v57_v46 = vld [vmem:[%s3811_s0 + $0x158] sm:$0xff]  ;;  %v171_v47 = vld [vmem:[%s3811_s0 + $0x4e8] sm:$0xff] }
  0x39   :  { %2111 = vmatprep.mubr.f32.mxu0 %v26_v48  ;;  %2282 = vmatprep.mubr.f32.mxu1 %v140_v49  ;;  %v58_v48 = vld [vmem:[%s3811_s0 + $0x160] sm:$0xff]  ;;  %v172_v49 = vld [vmem:[%s3811_s0 + $0x4f0] sm:$0xff] }
  0x3c   :  { %2112 = vmatmul.mubr.f32.gmra.mrb[12].mxu0 %v27_v50  ;;  %2283 = vmatmul.mubr.f32.gmra.mrb[12].mxu1 %v141_v51  ;;  %v59_v50 = vld [vmem:[%s3811_s0 + $0x168] sm:$0xff]  ;;  %v173_v51 = vld [vmem:[%s3811_s0 + $0x4f8] sm:$0xff] }
  0x3d   :  { %2114 = vmatprep.mubr.f32.mxu0 %v28_v52  ;;  %2285 = vmatprep.mubr.f32.mxu1 %v142_v53  ;;  %v60_v52 = vld [vmem:[%s3811_s0 + $0x170] sm:$0xff]  ;;  %v174_v53 = vld [vmem:[%s3811_s0 + $0x500] sm:$0xff] }
  0x40   :  { %2115 = vmatmul.mubr.f32.gmra.mrb[14].mxu0 %v29_v54  ;;  %2286 = vmatmul.mubr.f32.gmra.mrb[14].mxu1 %v143_v55  ;;  %v61_v54 = vld [vmem:[%s3811_s0 + $0x178] sm:$0xff]  ;;  %v175_v55 = vld [vmem:[%s3811_s0 + $0x508] sm:$0xff] }
  0x41   :  { %2117 = vmatprep.mubr.f32.mxu0 %v30_v56  ;;  %2288 = vmatprep.mubr.f32.mxu1 %v144_v57  ;;  %v62_v56 = vld [vmem:[%s3811_s0 + $0x180] sm:$0xff]  ;;  %v176_v57 = vld [vmem:[%s3811_s0 + $0x510] sm:$0xff] }
  0x44   :  { %2118 = vmatmul.mubr.f32.gmra.mrb[16].mxu0 %v31_v58  ;;  %2289 = vmatmul.mubr.f32.gmra.mrb[16].mxu1 %v145_v59  ;;  %v63_v58 = vld [vmem:[%s3811_s0 + $0x188] sm:$0xff]  ;;  %v177_v59 = vld [vmem:[%s3811_s0 + $0x518] sm:$0xff] }
  0x45   :  { %2120 = vmatprep.mubr.f32.mxu0 %v32_v60  ;;  %2291 = vmatprep.mubr.f32.mxu1 %v146_v61  ;;  %v64_v60 = vld [vmem:[%s3811_s0 + $0x190] sm:$0xff]  ;;  %v178_v61 = vld [vmem:[%s3811_s0 + $0x520] sm:$0xff] }
  0x48   :  { %2121 = vmatmul.mubr.f32.gmra.mrb[18].mxu0 %v33_v62  ;;  %2292 = vmatmul.mubr.f32.gmra.mrb[18].mxu1 %v147_v63  ;;  %v65_v62 = vld [vmem:[%s3811_s0 + $0x198] sm:$0xff]  ;;  %v179_v63 = vld [vmem:[%s3811_s0 + $0x528] sm:$0xff] }
  0x49   :  { %2123 = vmatprep.mubr.f32.mxu0 %v34_v0  ;;  %2294 = vmatprep.mubr.f32.mxu1 %v148_v1  ;;  %v66_v0 = vld [vmem:[%s3811_s0 + $0x1a0] sm:$0xff]  ;;  %v180_v1 = vld [vmem:[%s3811_s0 + $0x530] sm:$0xff] }
  0x4c   :  { %2124 = vmatmul.mubr.f32.gmra.mrb[20].mxu0 %v35_v2  ;;  %2295 = vmatmul.mubr.f32.gmra.mrb[20].mxu1 %v149_v3  ;;  %v67_v2 = vld [vmem:[%s3811_s0 + $0x1a8] sm:$0xff]  ;;  %v181_v3 = vld [vmem:[%s3811_s0 + $0x538] sm:$0xff] }
  0x4d   :  { %2126 = vmatprep.mubr.f32.mxu0 %v36_v4  ;;  %2297 = vmatprep.mubr.f32.mxu1 %v150_v5  ;;  %v68_v4 = vld [vmem:[%s3811_s0 + $0x1b0] sm:$0xff]  ;;  %v182_v5 = vld [vmem:[%s3811_s0 + $0x540] sm:$0xff] }
  0x50   :  { %2127 = vmatmul.mubr.f32.gmra.mrb[22].mxu0 %v37_v6  ;;  %2298 = vmatmul.mubr.f32.gmra.mrb[22].mxu1 %v151_v7  ;;  %v69_v6 = vld [vmem:[%s3811_s0 + $0x1b8] sm:$0xff]  ;;  %v183_v7 = vld [vmem:[%s3811_s0 + $0x548] sm:$0xff] }
  0x51   :  { %2129 = vmatprep.mubr.f32.mxu0 %v38_v8  ;;  %2300 = vmatprep.mubr.f32.mxu1 %v152_v9  ;;  %v70_v8 = vld [vmem:[%s3811_s0 + $0x1c0] sm:$0xff]  ;;  %v184_v9 = vld [vmem:[%s3811_s0 + $0x550] sm:$0xff] }
  0x54   :  { %2130 = vmatmul.mubr.f32.gmra.mrb[24].mxu0 %v39_v10  ;;  %2301 = vmatmul.mubr.f32.gmra.mrb[24].mxu1 %v153_v11  ;;  %v71_v10 = vld [vmem:[%s3811_s0 + $0x1c8] sm:$0xff]  ;;  %v185_v11 = vld [vmem:[%s3811_s0 + $0x558] sm:$0xff] }
  0x55   :  { %2132 = vmatprep.mubr.f32.mxu0 %v40_v12  ;;  %2303 = vmatprep.mubr.f32.mxu1 %v154_v13  ;;  %v72_v12 = vld [vmem:[%s3811_s0 + $0x1d0] sm:$0xff]  ;;  %v186_v13 = vld [vmem:[%s3811_s0 + $0x560] sm:$0xff] }
  0x58   :  { %2133 = vmatmul.mubr.f32.gmra.mrb[26].mxu0 %v41_v14  ;;  %2304 = vmatmul.mubr.f32.gmra.mrb[26].mxu1 %v155_v15  ;;  %v73_v14 = vld [vmem:[%s3811_s0 + $0x1d8] sm:$0xff]  ;;  %v187_v15 = vld [vmem:[%s3811_s0 + $0x568] sm:$0xff] }
  0x59   :  { %2135 = vmatprep.mubr.f32.mxu0 %v42_v16  ;;  %2306 = vmatprep.mubr.f32.mxu1 %v156_v17  ;;  %v74_v16 = vld [vmem:[%s3811_s0 + $0x1e0] sm:$0xff]  ;;  %v188_v17 = vld [vmem:[%s3811_s0 + $0x570] sm:$0xff] }
  0x5c   :  { %2136 = vmatmul.mubr.f32.gmra.mrb[28].mxu0 %v43_v18  ;;  %2307 = vmatmul.mubr.f32.gmra.mrb[28].mxu1 %v157_v19  ;;  %v75_v18 = vld [vmem:[%s3811_s0 + $0x1e8] sm:$0xff]  ;;  %v189_v19 = vld [vmem:[%s3811_s0 + $0x578] sm:$0xff] }
  0x5d   :  { %2138 = vmatprep.mubr.f32.mxu0 %v44_v20  ;;  %2309 = vmatprep.mubr.f32.mxu1 %v158_v21  ;;  %v76_v20 = vld [vmem:[%s3811_s0 + $0x1f0] sm:$0xff]  ;;  %v190_v21 = vld [vmem:[%s3811_s0 + $0x580] sm:$0xff] }
  0x60   :  { %2139 = vmatmul.mubr.f32.gmra.mrb[30].mxu0 %v45_v22  ;;  %2310 = vmatmul.mubr.f32.gmra.mrb[30].mxu1 %v159_v23  ;;  %v77_v22 = vld [vmem:[%s3811_s0 + $0x1f8] sm:$0xff]  ;;  %v191_v23 = vld [vmem:[%s3811_s0 + $0x588] sm:$0xff] }
  0x61   :  { %2141 = vmatprep.mubr.f32.mxu0 %v46_v24  ;;  %2312 = vmatprep.mubr.f32.mxu1 %v160_v25  ;;  %v78_v24 = vld [vmem:[%s3811_s0 + $0x200] sm:$0xff]  ;;  %v192_v25 = vld [vmem:[%s3811_s0 + $0x590] sm:$0xff] }
  0x64   :  { %2142 = vmatmul.mubr.f32.gmra.mrb[32].mxu0 %v47_v26  ;;  %2313 = vmatmul.mubr.f32.gmra.mrb[32].mxu1 %v161_v27  ;;  %v79_v26 = vld [vmem:[%s3811_s0 + $0x208] sm:$0xff]  ;;  %v193_v27 = vld [vmem:[%s3811_s0 + $0x598] sm:$0xff] }
  0x65   :  { %2144 = vmatprep.mubr.f32.mxu0 %v48_v28  ;;  %2315 = vmatprep.mubr.f32.mxu1 %v162_v29  ;;  %v80_v28 = vld [vmem:[%s3811_s0 + $0x210] sm:$0xff]  ;;  %v194_v29 = vld [vmem:[%s3811_s0 + $0x5a0] sm:$0xff] }
  0x68   :  { %2145 = vmatmul.mubr.f32.gmra.mrb[34].mxu0 %v49_v30  ;;  %2316 = vmatmul.mubr.f32.gmra.mrb[34].mxu1 %v163_v31  ;;  %v81_v30 = vld [vmem:[%s3811_s0 + $0x218] sm:$0xff]  ;;  %v195_v31 = vld [vmem:[%s3811_s0 + $0x5a8] sm:$0xff] }
  0x69   :  { %2147 = vmatprep.mubr.f32.mxu0 %v50_v32  ;;  %2318 = vmatprep.mubr.f32.mxu1 %v164_v33  ;;  %v82_v32 = vld [vmem:[%s3811_s0 + $0x220] sm:$0xff]  ;;  %v196_v33 = vld [vmem:[%s3811_s0 + $0x5b0] sm:$0xff] }
  0x6c   :  { %2148 = vmatmul.mubr.f32.gmra.mrb[36].mxu0 %v51_v34  ;;  %2319 = vmatmul.mubr.f32.gmra.mrb[36].mxu1 %v165_v35  ;;  %v83_v34 = vld [vmem:[%s3811_s0 + $0x228] sm:$0xff]  ;;  %v197_v35 = vld [vmem:[%s3811_s0 + $0x5b8] sm:$0xff] }
  0x6d   :  { %2150 = vmatprep.mubr.f32.mxu0 %v52_v36  ;;  %2321 = vmatprep.mubr.f32.mxu1 %v166_v37  ;;  %v84_v36 = vld [vmem:[%s3811_s0 + $0x230] sm:$0xff]  ;;  %v198_v37 = vld [vmem:[%s3811_s0 + $0x5c0] sm:$0xff] }
  0x70   :  { %2151 = vmatmul.mubr.f32.gmra.mrb[38].mxu0 %v53_v38  ;;  %2322 = vmatmul.mubr.f32.gmra.mrb[38].mxu1 %v167_v39  ;;  %v85_v38 = vld [vmem:[%s3811_s0 + $0x238] sm:$0xff]  ;;  %v199_v39 = vld [vmem:[%s3811_s0 + $0x5c8] sm:$0xff] }
  0x71   :  { %2153 = vmatprep.mubr.f32.mxu0 %v54_v40  ;;  %2324 = vmatprep.mubr.f32.mxu1 %v168_v41  ;;  %v86_v40 = vld [vmem:[%s3811_s0 + $0x240] sm:$0xff]  ;;  %v200_v41 = vld [vmem:[%s3811_s0 + $0x5d0] sm:$0xff] }
  0x74   :  { %2154 = vmatmul.mubr.f32.gmra.mrb[40].mxu0 %v55_v42  ;;  %2325 = vmatmul.mubr.f32.gmra.mrb[40].mxu1 %v169_v43  ;;  %v87_v42 = vld [vmem:[%s3811_s0 + $0x248] sm:$0xff]  ;;  %v201_v43 = vld [vmem:[%s3811_s0 + $0x5d8] sm:$0xff] }
  0x75   :  { %2156 = vmatprep.mubr.f32.mxu0 %v56_v44  ;;  %2327 = vmatprep.mubr.f32.mxu1 %v170_v45  ;;  %v88_v44 = vld [vmem:[%s3811_s0 + $0x250] sm:$0xff]  ;;  %v202_v45 = vld [vmem:[%s3811_s0 + $0x5e0] sm:$0xff] }
  0x78   :  { %2157 = vmatmul.mubr.f32.gmra.mrb[42].mxu0 %v57_v46  ;;  %2328 = vmatmul.mubr.f32.gmra.mrb[42].mxu1 %v171_v47  ;;  %v89_v46 = vld [vmem:[%s3811_s0 + $0x258] sm:$0xff]  ;;  %v203_v47 = vld [vmem:[%s3811_s0 + $0x5e8] sm:$0xff] }
  0x79   :  { %2159 = vmatprep.mubr.f32.mxu0 %v58_v48  ;;  %2330 = vmatprep.mubr.f32.mxu1 %v172_v49  ;;  %v90_v48 = vld [vmem:[%s3811_s0 + $0x260] sm:$0xff]  ;;  %v204_v49 = vld [vmem:[%s3811_s0 + $0x5f0] sm:$0xff] }
  0x7c   :  { %2160 = vmatmul.mubr.f32.gmra.mrb[44].mxu0 %v59_v50  ;;  %2331 = vmatmul.mubr.f32.gmra.mrb[44].mxu1 %v173_v51  ;;  %v91_v50 = vld [vmem:[%s3811_s0 + $0x268] sm:$0xff]  ;;  %v205_v51 = vld [vmem:[%s3811_s0 + $0x5f8] sm:$0xff] }
  0x7d   :  { %2162 = vmatprep.mubr.f32.mxu0 %v60_v52  ;;  %2333 = vmatprep.mubr.f32.mxu1 %v174_v53  ;;  %v92_v52 = vld [vmem:[%s3811_s0 + $0x270] sm:$0xff]  ;;  %v206_v53 = vld [vmem:[%s3811_s0 + $0x600] sm:$0xff] }
  0x80   :  { %2163 = vmatmul.mubr.f32.gmra.mrb[46].mxu0 %v61_v54  ;;  %2334 = vmatmul.mubr.f32.gmra.mrb[46].mxu1 %v175_v55  ;;  %v93_v54 = vld [vmem:[%s3811_s0 + $0x278] sm:$0xff]  ;;  %v207_v55 = vld [vmem:[%s3811_s0 + $0x608] sm:$0xff] }
  0x81   :  { %2165 = vmatprep.mubr.f32.mxu0 %v62_v56  ;;  %2336 = vmatprep.mubr.f32.mxu1 %v176_v57  ;;  %v94_v56 = vld [vmem:[%s3811_s0 + $0x280] sm:$0xff]  ;;  %v208_v57 = vld [vmem:[%s3811_s0 + $0x610] sm:$0xff] }
  0x84   :  { %2166 = vmatmul.mubr.f32.gmra.mrb[48].mxu0 %v63_v58  ;;  %2337 = vmatmul.mubr.f32.gmra.mrb[48].mxu1 %v177_v59  ;;  %v95_v58 = vld [vmem:[%s3811_s0 + $0x288] sm:$0xff]  ;;  %v209_v59 = vld [vmem:[%s3811_s0 + $0x618] sm:$0xff] }
  0x85   :  { %2168 = vmatprep.mubr.f32.mxu0 %v64_v60  ;;  %2339 = vmatprep.mubr.f32.mxu1 %v178_v61  ;;  %v96_v60 = vld [vmem:[%s3811_s0 + $0x290] sm:$0xff]  ;;  %v210_v61 = vld [vmem:[%s3811_s0 + $0x620] sm:$0xff] }
  0x88   :  { %2169 = vmatmul.mubr.f32.gmra.mrb[50].mxu0 %v65_v62  ;;  %2340 = vmatmul.mubr.f32.gmra.mrb[50].mxu1 %v179_v63  ;;  %v97_v62 = vld [vmem:[%s3811_s0 + $0x298] sm:$0xff]  ;;  %v211_v63 = vld [vmem:[%s3811_s0 + $0x628] sm:$0xff] }
  0x89   :  { %2171 = vmatprep.mubr.f32.mxu0 %v66_v0  ;;  %2342 = vmatprep.mubr.f32.mxu1 %v180_v1  ;;  %v98_v0 = vld [vmem:[%s3811_s0 + $0x2a0] sm:$0xff]  ;;  %v212_v1 = vld [vmem:[%s3811_s0 + $0x630] sm:$0xff] }
  0x8c   :  { %2172 = vmatmul.mubr.f32.gmra.mrb[52].mxu0 %v67_v2  ;;  %2343 = vmatmul.mubr.f32.gmra.mrb[52].mxu1 %v181_v3  ;;  %v99_v2 = vld [vmem:[%s3811_s0 + $0x2a8] sm:$0xff]  ;;  %v213_v3 = vld [vmem:[%s3811_s0 + $0x638] sm:$0xff] }
  0x8d   :  { %2174 = vmatprep.mubr.f32.mxu0 %v68_v4  ;;  %2345 = vmatprep.mubr.f32.mxu1 %v182_v5  ;;  %v100_v4 = vld [vmem:[%s3811_s0 + $0x2b0] sm:$0xff]  ;;  %v214_v5 = vld [vmem:[%s3811_s0 + $0x640] sm:$0xff] }
  0x90   :  { %2175 = vmatmul.mubr.f32.gmra.mrb[54].mxu0 %v69_v6  ;;  %2346 = vmatmul.mubr.f32.gmra.mrb[54].mxu1 %v183_v7  ;;  %v101_v6 = vld [vmem:[%s3811_s0 + $0x2b8] sm:$0xff]  ;;  %v215_v7 = vld [vmem:[%s3811_s0 + $0x648] sm:$0xff] }
  0x91   :  { %2177 = vmatprep.mubr.f32.mxu0 %v70_v8  ;;  %2348 = vmatprep.mubr.f32.mxu1 %v184_v9  ;;  %v102_v8 = vld [vmem:[%s3811_s0 + $0x2c0] sm:$0xff]  ;;  %v216_v9 = vld [vmem:[%s3811_s0 + $0x650] sm:$0xff] }
  0x94   :  { %2178 = vmatmul.mubr.f32.gmra.mrb[56].mxu0 %v71_v10  ;;  %2349 = vmatmul.mubr.f32.gmra.mrb[56].mxu1 %v185_v11  ;;  %v103_v10 = vld [vmem:[%s3811_s0 + $0x2c8] sm:$0xff]  ;;  %v217_v11 = vld [vmem:[%s3811_s0 + $0x658] sm:$0xff] }
  0x95   :  { %2180 = vmatprep.mubr.f32.mxu0 %v72_v12  ;;  %2351 = vmatprep.mubr.f32.mxu1 %v186_v13  ;;  %v104_v12 = vld [vmem:[%s3811_s0 + $0x2d0] sm:$0xff]  ;;  %v218_v13 = vld [vmem:[%s3811_s0 + $0x660] sm:$0xff] }
  0x98   :  { %2181 = vmatmul.mubr.f32.gmra.mrb[58].mxu0 %v73_v14  ;;  %2352 = vmatmul.mubr.f32.gmra.mrb[58].mxu1 %v187_v15  ;;  %v105_v14 = vld [vmem:[%s3811_s0 + $0x2d8] sm:$0xff]  ;;  %v219_v15 = vld [vmem:[%s3811_s0 + $0x668] sm:$0xff] }
  0x99   :  { %2183 = vmatprep.mubr.f32.mxu0 %v74_v16  ;;  %2354 = vmatprep.mubr.f32.mxu1 %v188_v17  ;;  %v106_v16 = vld [vmem:[%s3811_s0 + $0x2e0] sm:$0xff]  ;;  %v220_v17 = vld [vmem:[%s3811_s0 + $0x670] sm:$0xff] }
  0x9c   :  { %2184 = vmatmul.mubr.f32.gmra.mrb[60].mxu0 %v75_v18  ;;  %2355 = vmatmul.mubr.f32.gmra.mrb[60].mxu1 %v189_v19  ;;  %v107_v18 = vld [vmem:[%s3811_s0 + $0x2e8] sm:$0xff]  ;;  %v221_v19 = vld [vmem:[%s3811_s0 + $0x678] sm:$0xff] }
  0x9d   :  { %2186 = vmatprep.mubr.f32.mxu0 %v76_v20  ;;  %2357 = vmatprep.mubr.f32.mxu1 %v190_v21  ;;  %v108_v20 = vld [vmem:[%s3811_s0 + $0x2f0] sm:$0xff]  ;;  %v222_v21 = vld [vmem:[%s3811_s0 + $0x680] sm:$0xff] }
  0xa0   :  { %2187 = vmatmul.mubr.f32.gmra.mrb[62].mxu0 %v77_v22  ;;  %2358 = vmatmul.mubr.f32.gmra.mrb[62].mxu1 %v191_v23  ;;  %v109_v22 = vld [vmem:[%s3811_s0 + $0x2f8] sm:$0xff]  ;;  %v223_v23 = vld [vmem:[%s3811_s0 + $0x688] sm:$0xff] }
  0xa1   :  { %2189 = vmatprep.mubr.f32.mxu0 %v78_v24  ;;  %2360 = vmatprep.mubr.f32.mxu1 %v192_v25  ;;  %v110_v24 = vld [vmem:[%s3811_s0 + $0x300] sm:$0xff]  ;;  %v224_v25 = vld [vmem:[%s3811_s0 + $0x690] sm:$0xff] }
  0xa4   :  { %2190 = vmatmul.mubr.f32.gmra.mrb[64].mxu0 %v79_v26  ;;  %2361 = vmatmul.mubr.f32.gmra.mrb[64].mxu1 %v193_v27  ;;  %v111_v26 = vld [vmem:[%s3811_s0 + $0x308] sm:$0xff]  ;;  %v225_v27 = vld [vmem:[%s3811_s0 + $0x698] sm:$0xff] }
  0xa5   :  { %2192 = vmatprep.mubr.f32.mxu0 %v80_v28  ;;  %2363 = vmatprep.mubr.f32.mxu1 %v194_v29  ;;  %v112_v28 = vld [vmem:[%s3811_s0 + $0x310] sm:$0xff]  ;;  %v226_v29 = vld [vmem:[%s3811_s0 + $0x6a0] sm:$0xff] }
  0xa8   :  { %2193 = vmatmul.mubr.f32.gmra.mrb[66].mxu0 %v81_v30  ;;  %2364 = vmatmul.mubr.f32.gmra.mrb[66].mxu1 %v195_v31  ;;  %v113_v30 = vld [vmem:[%s3811_s0 + $0x318] sm:$0xff]  ;;  %v227_v31 = vld [vmem:[%s3811_s0 + $0x6a8] sm:$0xff] }
  0xa9   :  { %2195 = vmatprep.mubr.f32.mxu0 %v82_v32  ;;  %2366 = vmatprep.mubr.f32.mxu1 %v196_v33  ;;  %v114_v32 = vld [vmem:[%s3811_s0 + $0x320] sm:$0xff]  ;;  %v228_v33 = vld [vmem:[%s3811_s0 + $0x6b0] sm:$0xff] }
  0xac   :  { %2196 = vmatmul.mubr.f32.gmra.mrb[68].mxu0 %v83_v34  ;;  %2367 = vmatmul.mubr.f32.gmra.mrb[68].mxu1 %v197_v35  ;;  %v115_v34 = vld [vmem:[%s3811_s0 + $0x328] sm:$0xff]  ;;  %v229_v35 = vld [vmem:[%s3811_s0 + $0x6b8] sm:$0xff] }
  0xad   :  { %2198 = vmatprep.mubr.f32.mxu0 %v84_v36  ;;  %2369 = vmatprep.mubr.f32.mxu1 %v198_v37  ;;  %v116_v36 = vld [vmem:[%s3811_s0 + $0x330] sm:$0xff]  ;;  %v230_v37 = vld [vmem:[%s3811_s0 + $0x6c0] sm:$0xff] }
  0xb0   :  { %2199 = vmatmul.mubr.f32.gmra.mrb[70].mxu0 %v85_v38  ;;  %2370 = vmatmul.mubr.f32.gmra.mrb[70].mxu1 %v199_v39  ;;  %v117_v38 = vld [vmem:[%s3811_s0 + $0x338] sm:$0xff]  ;;  %v231_v39 = vld [vmem:[%s3811_s0 + $0x6c8] sm:$0xff] }
  0xb1   :  { %2201 = vmatprep.mubr.f32.mxu0 %v86_v40  ;;  %2372 = vmatprep.mubr.f32.mxu1 %v200_v41  ;;  %v118_v40 = vld [vmem:[%s3811_s0 + $0x340] sm:$0xff]  ;;  %v232_v41 = vld [vmem:[%s3811_s0 + $0x6d0] sm:$0xff] }
  0xb4   :  { %2202 = vmatmul.mubr.f32.gmra.mrb[72].mxu0 %v87_v42  ;;  %2373 = vmatmul.mubr.f32.gmra.mrb[72].mxu1 %v201_v43  ;;  %v119_v42 = vld [vmem:[%s3811_s0 + $0x348] sm:$0xff]  ;;  %v233_v43 = vld [vmem:[%s3811_s0 + $0x6d8] sm:$0xff] }
  0xb5   :  { %2204 = vmatprep.mubr.f32.mxu0 %v88_v44  ;;  %2375 = vmatprep.mubr.f32.mxu1 %v202_v45  ;;  %v120_v44 = vld [vmem:[%s3811_s0 + $0x350] sm:$0xff]  ;;  %v234_v45 = vld [vmem:[%s3811_s0 + $0x6e0] sm:$0xff] }
  0xb8   :  { %2205 = vmatmul.mubr.f32.gmra.mrb[74].mxu0 %v89_v46  ;;  %2376 = vmatmul.mubr.f32.gmra.mrb[74].mxu1 %v203_v47  ;;  %v121_v46 = vld [vmem:[%s3811_s0 + $0x358] sm:$0xff]  ;;  %v235_v47 = vld [vmem:[%s3811_s0 + $0x6e8] sm:$0xff] }
  0xb9   :  { %2207 = vmatprep.mubr.f32.mxu0 %v90_v48  ;;  %2378 = vmatprep.mubr.f32.mxu1 %v204_v49  ;;  %v122_v48 = vld [vmem:[%s3811_s0 + $0x360] sm:$0xff]  ;;  %v236_v49 = vld [vmem:[%s3811_s0 + $0x6f0] sm:$0xff] }
  0xbc   :  { %2208 = vmatmul.mubr.f32.gmra.mrb[76].mxu0 %v91_v50  ;;  %2379 = vmatmul.mubr.f32.gmra.mrb[76].mxu1 %v205_v51 }
  0xbd   :  { %2210 = vmatprep.mubr.f32.mxu0 %v92_v52  ;;  %2381 = vmatprep.mubr.f32.mxu1 %v206_v53 }
  0xc0   :  { %2211 = vmatmul.mubr.f32.gmra.mrb[78].mxu0 %v93_v54  ;;  %2382 = vmatmul.mubr.f32.gmra.mrb[78].mxu1 %v207_v55  ;;  %v123_v54 = vld [vmem:[%s3811_s0 + $0x368] sm:$0xff]  ;;  %v237_v55 = vld [vmem:[%s3811_s0 + $0x6f8] sm:$0xff] }
  0xc1   :  { %2213 = vmatprep.mubr.f32.mxu0 %v94_v56  ;;  %2384 = vmatprep.mubr.f32.mxu1 %v208_v57  ;;  %v124_v56 = vld [vmem:[%s3811_s0 + $0x370] sm:$0xff]  ;;  %v238_v57 = vld [vmem:[%s3811_s0 + $0x700] sm:$0xff] }
  0xc4   :  { %2214 = vmatmul.mubr.f32.gmra.mrb[80].mxu0 %v95_v58  ;;  %2385 = vmatmul.mubr.f32.gmra.mrb[80].mxu1 %v209_v59 }
  0xc5   :  { %2216 = vmatprep.mubr.f32.mxu0 %v96_v60  ;;  %2387 = vmatprep.mubr.f32.mxu1 %v210_v61 }
  0xc8   :  { %2217 = vmatmul.mubr.f32.gmra.mrb[82].mxu0 %v97_v62  ;;  %2388 = vmatmul.mubr.f32.gmra.mrb[82].mxu1 %v211_v63  ;;  %v125_v62 = vld [vmem:[%s3811_s0 + $0x378] sm:$0xff]  ;;  %v239_v63 = vld [vmem:[%s3811_s0 + $0x708] sm:$0xff] }
  0xc9   :  { %2219 = vmatprep.mubr.f32.mxu0 %v98_v0  ;;  %2390 = vmatprep.mubr.f32.mxu1 %v212_v1  ;;  %v126_v0 = vld [vmem:[%s3811_s0 + $0x380] sm:$0xff]  ;;  %v240_v1 = vld [vmem:[%s3811_s0 + $0x710] sm:$0xff] }
  0xcc   :  { %2220 = vmatmul.mubr.f32.gmra.mrb[84].mxu0 %v99_v2  ;;  %2391 = vmatmul.mubr.f32.gmra.mrb[84].mxu1 %v213_v3 }
  0xcd   :  { %2222 = vmatprep.mubr.f32.mxu0 %v100_v4  ;;  %2393 = vmatprep.mubr.f32.mxu1 %v214_v5 }
  0xd0   :  { %2223 = vmatmul.mubr.f32.gmra.mrb[86].mxu0 %v101_v6  ;;  %2394 = vmatmul.mubr.f32.gmra.mrb[86].mxu1 %v215_v7  ;;  %v127_v6 = vld [vmem:[%s3811_s0 + $0x388] sm:$0xff]  ;;  %v241_v7 = vld [vmem:[%s3811_s0 + $0x718] sm:$0xff] }
  0xd1   :  { %2225 = vmatprep.mubr.f32.mxu0 %v102_v8  ;;  %2396 = vmatprep.mubr.f32.mxu1 %v216_v9 }
  0xd4   :  { %2226 = vmatmul.mubr.f32.gmra.mrb[88].mxu0 %v103_v10  ;;  %2397 = vmatmul.mubr.f32.gmra.mrb[88].mxu1 %v217_v11 }
  0xd5   :  { %2228 = vmatprep.mubr.f32.mxu0 %v104_v12  ;;  %2399 = vmatprep.mubr.f32.mxu1 %v218_v13 }
  0xd8   :  { %2229 = vmatmul.mubr.f32.gmra.mrb[90].mxu0 %v105_v14  ;;  %2400 = vmatmul.mubr.f32.gmra.mrb[90].mxu1 %v219_v15 }
  0xd9   :  { %2231 = vmatprep.mubr.f32.mxu0 %v106_v16  ;;  %2402 = vmatprep.mubr.f32.mxu1 %v220_v17 }
  0xdc   :  { %2232 = vmatmul.mubr.f32.gmra.mrb[92].mxu0 %v107_v18  ;;  %2403 = vmatmul.mubr.f32.gmra.mrb[92].mxu1 %v221_v19 }
  0xdd   :  { %2234 = vmatprep.mubr.f32.mxu0 %v108_v20  ;;  %2405 = vmatprep.mubr.f32.mxu1 %v222_v21 }
  0xe0   :  { %2235 = vmatmul.mubr.f32.gmra.mrb[94].mxu0 %v109_v22  ;;  %2406 = vmatmul.mubr.f32.gmra.mrb[94].mxu1 %v223_v23 }
  0xe1   :  { %2237 = vmatprep.mubr.f32.mxu0 %v110_v24  ;;  %2408 = vmatprep.mubr.f32.mxu1 %v224_v25 }
  0xe4   :  { %2238 = vmatmul.mubr.f32.gmra.mrb[96].mxu0 %v111_v26  ;;  %2409 = vmatmul.mubr.f32.gmra.mrb[96].mxu1 %v225_v27 }
  0xe5   :  { %2240 = vmatprep.mubr.f32.mxu0 %v112_v28  ;;  %2411 = vmatprep.mubr.f32.mxu1 %v226_v29 }
  0xe8   :  { %2241 = vmatmul.mubr.f32.gmra.mrb[98].mxu0 %v113_v30  ;;  %2412 = vmatmul.mubr.f32.gmra.mrb[98].mxu1 %v227_v31 }
  0xe9   :  { %2243 = vmatprep.mubr.f32.mxu0 %v114_v32  ;;  %2414 = vmatprep.mubr.f32.mxu1 %v228_v33 }
  0xec   :  { %2244 = vmatmul.mubr.f32.gmra.mrb[100].mxu0 %v115_v34  ;;  %2415 = vmatmul.mubr.f32.gmra.mrb[100].mxu1 %v229_v35 }
  0xed   :  { %2246 = vmatprep.mubr.f32.mxu0 %v116_v36  ;;  %2417 = vmatprep.mubr.f32.mxu1 %v230_v37 }
  0xf0   :  { %2247 = vmatmul.mubr.f32.gmra.mrb[102].mxu0 %v117_v38  ;;  %2418 = vmatmul.mubr.f32.gmra.mrb[102].mxu1 %v231_v39 }
  0xf1   :  { %2249 = vmatprep.mubr.f32.mxu0 %v118_v40  ;;  %2420 = vmatprep.mubr.f32.mxu1 %v232_v41 }
  0xf4   :  { %2250 = vmatmul.mubr.f32.gmra.mrb[104].mxu0 %v119_v42  ;;  %2421 = vmatmul.mubr.f32.gmra.mrb[104].mxu1 %v233_v43 }
  0xf5   :  { %2252 = vmatprep.mubr.f32.mxu0 %v120_v44  ;;  %2423 = vmatprep.mubr.f32.mxu1 %v234_v45 }
  0xf7   :  { %v3205_v50 = vpop.f32.mrb[0].mxu0  ;;  %v3207_v51 = vpop.f32.mrb[0].mxu1 }
  0xf8   :  { %v3209_v52 = vpop.f32.mrb[1].mxu0  ;;  %2253 = vmatmul.mubr.f32.gmra.mrb[106].mxu0 %v121_v46  ;;  %v3211_v53 = vpop.f32.mrb[1].mxu1  ;;  %2424 = vmatmul.mubr.f32.gmra.mrb[106].mxu1 %v235_v47 }
  0xf9   :  { %2255 = vmatprep.mubr.f32.mxu0 %v122_v48  ;;  %2426 = vmatprep.mubr.f32.mxu1 %v236_v49 }
  0xfb   :  { %v3225_v58 = vpop.f32.mrb[2].mxu0  ;;  %v3227_v59 = vpop.f32.mrb[2].mxu1 }
  0xfc   :  { %v3229_v60 = vpop.f32.mrb[3].mxu0  ;;  %2256 = vmatmul.mubr.f32.gmra.mrb[108].mxu0 %v123_v54  ;;  %v3231_v61 = vpop.f32.mrb[3].mxu1  ;;  %2427 = vmatmul.mubr.f32.gmra.mrb[108].mxu1 %v237_v55 }
  0xfd   :  { %2258 = vmatprep.mubr.f32.mxu0 %v124_v56  ;;  %2429 = vmatprep.mubr.f32.mxu1 %v238_v57 }
  0xff   :  { %v3245_v2 = vpop.f32.mrb[4].mxu0  ;;  %v3247_v3 = vpop.f32.mrb[4].mxu1 }
 0x100   :  { %v3249_v4 = vpop.f32.mrb[5].mxu0  ;;  %2259 = vmatmul.mubr.f32.gmra.mrb[110].mxu0 %v125_v62  ;;  %v3251_v5 = vpop.f32.mrb[5].mxu1  ;;  %2430 = vmatmul.mubr.f32.gmra.mrb[110].mxu1 %v239_v63 }
 0x101   :  { %2261 = vmatprep.mubr.f32.mxu0 %v126_v0  ;;  %2432 = vmatprep.mubr.f32.mxu1 %v240_v1 }
 0x103   :  { %v3259_v8 = vpop.f32.mrb[6].mxu0  ;;  %v3261_v9 = vpop.f32.mrb[6].mxu1 }
 0x104   :  { %v3263_v10 = vpop.f32.mrb[7].mxu0  ;;  %2262 = vmatmul.mubr.f32.gmra.mrb[112].mxu0 %v127_v6  ;;  %v3265_v11 = vpop.f32.mrb[7].mxu1  ;;  %2433 = vmatmul.mubr.f32.gmra.mrb[112].mxu1 %v241_v7 }
 0x107   :  { %v3267_v12 = vpop.f32.mrb[8].mxu0  ;;  %v3269_v13 = vpop.f32.mrb[8].mxu1 }
 0x108   :  { %v3271_v14 = vpop.f32.mrb[9].mxu0  ;;  %v3273_v15 = vpop.f32.mrb[9].mxu1 }
 0x10b   :  { %v3275_v16 = vpop.f32.mrb[10].mxu0  ;;  %v3277_v17 = vpop.f32.mrb[10].mxu1 }
 0x10c   :  { %v3279_v18 = vpop.f32.mrb[11].mxu0  ;;  %v3281_v19 = vpop.f32.mrb[11].mxu1 }
 0x10f   :  { %v3283_v20 = vpop.f32.mrb[12].mxu0  ;;  %v3285_v21 = vpop.f32.mrb[12].mxu1 }
 0x110   :  { %v3287_v22 = vpop.f32.mrb[13].mxu0  ;;  %v3289_v23 = vpop.f32.mrb[13].mxu1 }
 0x113   :  { %v3291_v24 = vpop.f32.mrb[14].mxu0  ;;  %v3293_v25 = vpop.f32.mrb[14].mxu1 }
 0x114   :  { %v3295_v26 = vpop.f32.mrb[15].mxu0  ;;  %v3297_v27 = vpop.f32.mrb[15].mxu1 }
 0x117   :  { %v3299_v28 = vpop.f32.mrb[16].mxu0  ;;  %v3301_v29 = vpop.f32.mrb[16].mxu1 }
 0x118   :  { %v3303_v30 = vpop.f32.mrb[17].mxu0  ;;  %v3305_v31 = vpop.f32.mrb[17].mxu1 }
 0x11b   :  { %v3307_v32 = vpop.f32.mrb[18].mxu0  ;;  %v3309_v33 = vpop.f32.mrb[18].mxu1 }
 0x11c   :  { %v3311_v34 = vpop.f32.mrb[19].mxu0  ;;  %v3313_v35 = vpop.f32.mrb[19].mxu1 }
 0x11f   :  { %v3315_v36 = vpop.f32.mrb[20].mxu0  ;;  %v3317_v37 = vpop.f32.mrb[20].mxu1 }
 0x120   :  { %v3319_v38 = vpop.f32.mrb[21].mxu0  ;;  %v3321_v39 = vpop.f32.mrb[21].mxu1 }
 0x123   :  { %v3323_v40 = vpop.f32.mrb[22].mxu0  ;;  %v3325_v41 = vpop.f32.mrb[22].mxu1 }
 0x124   :  { %3814 = vst [vmem:[#allocation2_spill] sm:$0xff] %v3323_v40  ;;  %3815 = vst [vmem:[#allocation3_spill] sm:$0xff] %v3325_v41  ;;  %v3327_v42 = vpop.f32.mrb[23].mxu0  ;;  %v3329_v43 = vpop.f32.mrb[23].mxu1 }
 0x127   :  { %v3331_v44 = vpop.f32.mrb[24].mxu0  ;;  %v3333_v45 = vpop.f32.mrb[24].mxu1 }
 0x128   :  { %3816 = vst [vmem:[#allocation4_spill] sm:$0xff] %v3331_v44  ;;  %3817 = vst [vmem:[#allocation5_spill] sm:$0xff] %v3333_v45  ;;  %v3335_v46 = vpop.f32.mrb[25].mxu0  ;;  %v3337_v47 = vpop.f32.mrb[25].mxu1 }
 0x129   :  { %3818 = vst [vmem:[#allocation6_spill] sm:$0xff] %v3337_v47 }
 0x12b   :  { %v3339_v48 = vpop.f32.mrb[26].mxu0  ;;  %v3341_v49 = vpop.f32.mrb[26].mxu1 }
 0x12c   :  { %3819 = vst [vmem:[#allocation7_spill] sm:$0xff] %v3339_v48  ;;  %3820 = vst [vmem:[#allocation8_spill] sm:$0xff] %v3341_v49  ;;  %v3343_v54 = vpop.f32.mrb[27].mxu0  ;;  %v3345_v55 = vpop.f32.mrb[27].mxu1 }
 0x12d   :  { %3821 = vst [vmem:[#allocation9_spill] sm:$0xff] %v3343_v54  ;;  %3822 = vst [vmem:[#allocation10_spill] sm:$0xff] %v3345_v55 }
 0x12f   :  { %v3347_v56 = vpop.f32.mrb[28].mxu0  ;;  %v3349_v57 = vpop.f32.mrb[28].mxu1 }
 0x130   :  { %3823 = vst [vmem:[#allocation11_spill] sm:$0xff] %v3347_v56  ;;  %3824 = vst [vmem:[#allocation12_spill] sm:$0xff] %v3349_v57  ;;  %v3351_v62 = vpop.f32.mrb[29].mxu0  ;;  %v3353_v63 = vpop.f32.mrb[29].mxu1 }
 0x131   :  { %3825 = vst [vmem:[#allocation13_spill] sm:$0xff] %v3351_v62  ;;  %3826 = vst [vmem:[#allocation14_spill] sm:$0xff] %v3353_v63 }
 0x133   :  { %v3355_v0 = vpop.f32.mrb[30].mxu0  ;;  %v3357_v1 = vpop.f32.mrb[30].mxu1 }
 0x134   :  { %3827 = vst [vmem:[#allocation15_spill] sm:$0xff] %v3355_v0  ;;  %3828 = vst [vmem:[#allocation16_spill] sm:$0xff] %v3357_v1  ;;  %v3359_v6 = vpop.f32.mrb[31].mxu0  ;;  %v3361_v7 = vpop.f32.mrb[31].mxu1 }
 0x135   :  { %3829 = vst [vmem:[#allocation17_spill] sm:$0xff] %v3359_v6  ;;  %3830 = vst [vmem:[#allocation18_spill] sm:$0xff] %v3361_v7 }
 0x137   :  { %v3363_v49 = vpop.f32.mrb[32].mxu0  ;;  %v3365_v48 = vpop.f32.mrb[32].mxu1 }
 0x138   :  { %3831 = vst [vmem:[#allocation19_spill] sm:$0xff] %v3363_v49  ;;  %3832 = vst [vmem:[#allocation20_spill] sm:$0xff] %v3365_v48  ;;  %v3367_v45 = vpop.f32.mrb[33].mxu0  ;;  %v3369_v56 = vpop.f32.mrb[33].mxu1 }
 0x139   :  { %3833 = vst [vmem:[#allocation21_spill] sm:$0xff] %v3367_v45  ;;  %3834 = vst [vmem:[#allocation22_spill] sm:$0xff] %v3369_v56 }
 0x13b   :  { %v3371_v57 = vpop.f32.mrb[34].mxu0  ;;  %v3373_v62 = vpop.f32.mrb[34].mxu1 }
 0x13c   :  { %3835 = vst [vmem:[#allocation23_spill] sm:$0xff] %v3371_v57  ;;  %3836 = vst [vmem:[#allocation24_spill] sm:$0xff] %v3373_v62  ;;  %v3375_v63 = vpop.f32.mrb[35].mxu0  ;;  %v3377_v0 = vpop.f32.mrb[35].mxu1 }
 0x13d   :  { %3837 = vst [vmem:[#allocation25_spill] sm:$0xff] %v3375_v63  ;;  %3838 = vst [vmem:[#allocation26_spill] sm:$0xff] %v3377_v0 }
 0x13f   :  { %v3379_v1 = vpop.f32.mrb[36].mxu0  ;;  %v3381_v6 = vpop.f32.mrb[36].mxu1 }
 0x140   :  { %3839 = vst [vmem:[#allocation27_spill] sm:$0xff] %v3379_v1  ;;  %3840 = vst [vmem:[#allocation28_spill] sm:$0xff] %v3381_v6  ;;  %v3383_v7 = vpop.f32.mrb[37].mxu0  ;;  %v3385_v49 = vpop.f32.mrb[37].mxu1 }
 0x141   :  { %3841 = vst [vmem:[#allocation29_spill] sm:$0xff] %v3383_v7  ;;  %3842 = vst [vmem:[#allocation30_spill] sm:$0xff] %v3385_v49 }
 0x143   :  { %v3387_v48 = vpop.f32.mrb[38].mxu0  ;;  %v3389_v45 = vpop.f32.mrb[38].mxu1 }
 0x144   :  { %3843 = vst [vmem:[#allocation31_spill] sm:$0xff] %v3387_v48  ;;  %3844 = vst [vmem:[#allocation32_spill] sm:$0xff] %v3389_v45  ;;  %v3391_v56 = vpop.f32.mrb[39].mxu0  ;;  %v3393_v57 = vpop.f32.mrb[39].mxu1 }
 0x145   :  { %3845 = vst [vmem:[#allocation33_spill] sm:$0xff] %v3391_v56  ;;  %3846 = vst [vmem:[#allocation34_spill] sm:$0xff] %v3393_v57 }
 0x147   :  { %v3395_v62 = vpop.f32.mrb[40].mxu0  ;;  %v3397_v63 = vpop.f32.mrb[40].mxu1 }
 0x148   :  { %3847 = vst [vmem:[#allocation35_spill] sm:$0xff] %v3395_v62  ;;  %3848 = vst [vmem:[#allocation36_spill] sm:$0xff] %v3397_v63  ;;  %v3399_v0 = vpop.f32.mrb[41].mxu0  ;;  %v3401_v1 = vpop.f32.mrb[41].mxu1 }
 0x149   :  { %3849 = vst [vmem:[#allocation37_spill] sm:$0xff] %v3399_v0  ;;  %3850 = vst [vmem:[#allocation38_spill] sm:$0xff] %v3401_v1 }
 0x14b   :  { %v3403_v6 = vpop.f32.mrb[42].mxu0  ;;  %v3405_v7 = vpop.f32.mrb[42].mxu1 }
 0x14c   :  { %3851 = vst [vmem:[#allocation39_spill] sm:$0xff] %v3403_v6  ;;  %3852 = vst [vmem:[#allocation40_spill] sm:$0xff] %v3405_v7  ;;  %v3407_v49 = vpop.f32.mrb[43].mxu0  ;;  %v3409_v48 = vpop.f32.mrb[43].mxu1 }
 0x14d   :  { %3853 = vst [vmem:[#allocation41_spill] sm:$0xff] %v3407_v49  ;;  %3854 = vst [vmem:[#allocation42_spill] sm:$0xff] %v3409_v48 }
 0x14f   :  { %v3411_v45 = vpop.f32.mrb[44].mxu0  ;;  %v3413_v56 = vpop.f32.mrb[44].mxu1 }
 0x150   :  { %3855 = vst [vmem:[#allocation43_spill] sm:$0xff] %v3411_v45  ;;  %3856 = vst [vmem:[#allocation44_spill] sm:$0xff] %v3413_v56  ;;  %v3415_v57 = vpop.f32.mrb[45].mxu0  ;;  %v3417_v62 = vpop.f32.mrb[45].mxu1 }
 0x151   :  { %3857 = vst [vmem:[#allocation45_spill] sm:$0xff] %v3415_v57  ;;  %3858 = vst [vmem:[#allocation46_spill] sm:$0xff] %v3417_v62 }
 0x153   :  { %v3419_v63 = vpop.f32.mrb[46].mxu0  ;;  %v3421_v0 = vpop.f32.mrb[46].mxu1 }
 0x154   :  { %3859 = vst [vmem:[#allocation47_spill] sm:$0xff] %v3419_v63  ;;  %3860 = vst [vmem:[#allocation48_spill] sm:$0xff] %v3421_v0  ;;  %v3423_v1 = vpop.f32.mrb[47].mxu0  ;;  %v3425_v6 = vpop.f32.mrb[47].mxu1 }
 0x155   :  { %3861 = vst [vmem:[#allocation49_spill] sm:$0xff] %v3423_v1  ;;  %3862 = vst [vmem:[#allocation50_spill] sm:$0xff] %v3425_v6 }
 0x157   :  { %v3427_v7 = vpop.f32.mrb[48].mxu0  ;;  %v3429_v49 = vpop.f32.mrb[48].mxu1 }
 0x158   :  { %3863 = vst [vmem:[#allocation51_spill] sm:$0xff] %v3427_v7  ;;  %3864 = vst [vmem:[#allocation52_spill] sm:$0xff] %v3429_v49  ;;  %v3431_v48 = vpop.f32.mrb[49].mxu0  ;;  %v3433_v45 = vpop.f32.mrb[49].mxu1 }
 0x159   :  { %3865 = vst [vmem:[#allocation53_spill] sm:$0xff] %v3431_v48  ;;  %3866 = vst [vmem:[#allocation54_spill] sm:$0xff] %v3433_v45 }
 0x15b   :  { %v3435_v56 = vpop.f32.mrb[50].mxu0  ;;  %v3437_v57 = vpop.f32.mrb[50].mxu1 }
 0x15c   :  { %3867 = vst [vmem:[#allocation55_spill] sm:$0xff] %v3435_v56  ;;  %3868 = vst [vmem:[#allocation56_spill] sm:$0xff] %v3437_v57  ;;  %v3439_v62 = vpop.f32.mrb[51].mxu0  ;;  %v3441_v63 = vpop.f32.mrb[51].mxu1 }
 0x15d   :  { %3869 = vst [vmem:[#allocation57_spill] sm:$0xff] %v3439_v62  ;;  %3870 = vst [vmem:[#allocation58_spill] sm:$0xff] %v3441_v63 }
 0x15f   :  { %v3443_v0 = vpop.f32.mrb[52].mxu0  ;;  %v3445_v1 = vpop.f32.mrb[52].mxu1 }
 0x160   :  { %3871 = vst [vmem:[#allocation59_spill] sm:$0xff] %v3443_v0  ;;  %3872 = vst [vmem:[#allocation60_spill] sm:$0xff] %v3445_v1  ;;  %v3447_v6 = vpop.f32.mrb[53].mxu0  ;;  %v3449_v7 = vpop.f32.mrb[53].mxu1 }
 0x161   :  { %3873 = vst [vmem:[#allocation61_spill] sm:$0xff] %v3447_v6  ;;  %3874 = vst [vmem:[#allocation62_spill] sm:$0xff] %v3449_v7 }
 0x163   :  { %v3451_v49 = vpop.f32.mrb[54].mxu0  ;;  %v3453_v48 = vpop.f32.mrb[54].mxu1 }
 0x164   :  { %3875 = vst [vmem:[#allocation63_spill] sm:$0xff] %v3451_v49  ;;  %3876 = vst [vmem:[#allocation64_spill] sm:$0xff] %v3453_v48  ;;  %v3455_v45 = vpop.f32.mrb[55].mxu0  ;;  %v3457_v56 = vpop.f32.mrb[55].mxu1  ;;  %v3468_v49 = vld [vmem:[%s3812_s2] ss:$0 sm:$0xff] }
 0x165   :  { %3877 = vst [vmem:[#allocation65_spill] sm:$0xff] %v3455_v45  ;;  %3878 = vst [vmem:[#allocation66_spill] sm:$0xff] %v3457_v56 }
 0x167   :  { %v2179_v57 = vpop.f32.mrb[56].mxu0  ;;  %v2350_v62 = vpop.f32.mrb[56].mxu1 }
 0x168   :  { %v1463_v63 = vmax.f32 %v3209_v52, %v2179_v57  ;;  %v3460_v55 = vpop.f32.mrb[57].mxu0  ;;  %v3462_v0 = vpop.f32.mrb[57].mxu1 }
 0x169   :  { %3879 = vst [vmem:[#allocation67_spill] sm:$0xff] %v3460_v55  ;;  %3880 = vst [vmem:[#allocation68_spill] sm:$0xff] %v3462_v0 }
 0x16a   :  { %v1520_v1 = vmax.f32 %v1463_v63, %v3211_v53 }
 0x16b   :  { %v2182_v48 = vpop.f32.mrb[58].mxu0  ;;  %v2353_v7 = vpop.f32.mrb[58].mxu1 }
 0x16c   :  { %v1577_v45 = vmax.f32 %v1520_v1, %v2350_v62  ;;  %v1465_v56 = vmax.f32 %v3229_v60, %v2182_v48  ;;  %v614_v6 = vpop.f32.mrb[59].mxu0  ;;  %v1184_v44 = vpop.f32.mrb[59].mxu1 }
 0x16d   :  { %v1464_v52 = vmax.f32 %v3205_v50, %v614_v6 }
 0x16e   :  { %v1641_v57 = vadd.f32 %v3468_v49, %v1577_v45  ;;  %v1522_v0 = vmax.f32 %v1465_v56, %v3231_v61 }
 0x16f   :  { %v2185_v55 = vpop.f32.mrb[60].mxu0  ;;  %v1521_v53 = vmax.f32 %v1464_v52, %v3207_v51  ;;  %v2356_v63 = vpop.f32.mrb[60].mxu1 }
 0x170   :  { %v1698_v54 = vmax.f32 %v1641_v57, 0.0  ;;  %v1579_v41 = vmax.f32 %v1522_v0, %v2353_v7  ;;  %v1467_v47 = vmax.f32 %v3249_v4, %v2185_v55  ;;  %v624_v40 = vpop.f32.mrb[61].mxu0  ;;  %v1194_v62 = vpop.f32.mrb[61].mxu1 }
 0x171   :  { %v1578_v1 = vmax.f32 %v1521_v53, %v1184_v44  ;;  %v1466_v60 = vmax.f32 %v3225_v58, %v624_v40 }
 0x172   :  { %1755 = vst [vmem:[%s3813_s3] sm:$0xff] %v1698_v54  ;;  %v1643_v50 = vadd.f32 %v3468_v49, %v1579_v41  ;;  %v1524_v61 = vmax.f32 %v1467_v47, %v3251_v5 }
 0x173   :  { %v1642_v51 = vadd.f32 %v3468_v49, %v1578_v1  ;;  %v2188_v45 = vpop.f32.mrb[62].mxu0  ;;  %v1523_v48 = vmax.f32 %v1466_v60, %v3227_v59  ;;  %v2359_v56 = vpop.f32.mrb[62].mxu1 }
 0x174   :  { %v1700_v4 = vmax.f32 %v1643_v50, 0.0  ;;  %v1581_v55 = vmax.f32 %v1524_v61, %v2356_v63  ;;  %v1469_v44 = vmax.f32 %v3263_v10, %v2188_v45  ;;  %v634_v0 = vpop.f32.mrb[63].mxu0  ;;  %v1204_v58 = vpop.f32.mrb[63].mxu1 }
 0x175   :  { %v1699_v40 = vmax.f32 %v1642_v51, 0.0  ;;  %v1580_v6 = vmax.f32 %v1523_v48, %v1194_v62  ;;  %v1468_v54 = vmax.f32 %v3245_v2, %v634_v0 }
 0x176   :  { %1757 = vst [vmem:[%s3813_s3 + $0x10] sm:$0xff] %v1700_v4  ;;  %v1645_v5 = vadd.f32 %v3468_v49, %v1581_v55  ;;  %v1526_v41 = vmax.f32 %v1469_v44, %v3265_v11 }
 0x177   :  { %1756 = vst [vmem:[%s3813_s3 + $0x8] sm:$0xff] %v1699_v40  ;;  %v1644_v59 = vadd.f32 %v3468_v49, %v1580_v6  ;;  %v2191_v10 = vpop.f32.mrb[64].mxu0  ;;  %v1525_v47 = vmax.f32 %v1468_v54, %v3247_v3  ;;  %v2362_v7 = vpop.f32.mrb[64].mxu1 }
 0x178   :  { %v1702_v52 = vmax.f32 %v1645_v5, 0.0  ;;  %v1583_v2 = vmax.f32 %v1526_v41, %v2359_v56  ;;  %v1471_v57 = vmax.f32 %v3271_v14, %v2191_v10  ;;  %v644_v53 = vpop.f32.mrb[65].mxu0  ;;  %v1214_v63 = vpop.f32.mrb[65].mxu1 }
 0x179   :  { %v1701_v62 = vmax.f32 %v1644_v59, 0.0  ;;  %v1582_v1 = vmax.f32 %v1525_v47, %v1204_v58  ;;  %v1470_v11 = vmax.f32 %v3259_v8, %v644_v53 }
 0x17a   :  { %1759 = vst [vmem:[%s3813_s3 + $0x20] sm:$0xff] %v1702_v52  ;;  %v1647_v60 = vadd.f32 %v3468_v49, %v1583_v2  ;;  %v1528_v50 = vmax.f32 %v1471_v57, %v3273_v15 }
 0x17b   :  { %1758 = vst [vmem:[%s3813_s3 + $0x18] sm:$0xff] %v1701_v62  ;;  %v1646_v3 = vadd.f32 %v3468_v49, %v1582_v1  ;;  %v2194_v14 = vpop.f32.mrb[66].mxu0  ;;  %v1527_v61 = vmax.f32 %v1470_v11, %v3261_v9  ;;  %v2365_v51 = vpop.f32.mrb[66].mxu1 }
 0x17c   :  { %v1704_v45 = vmax.f32 %v1647_v60, 0.0  ;;  %v1585_v8 = vmax.f32 %v1528_v50, %v2362_v7  ;;  %v1473_v48 = vmax.f32 %v3279_v18, %v2194_v14  ;;  %v654_v56 = vpop.f32.mrb[67].mxu0  ;;  %v1224_v4 = vpop.f32.mrb[67].mxu1 }
 0x17d   :  { %v1703_v55 = vmax.f32 %v1646_v3, 0.0  ;;  %v1584_v44 = vmax.f32 %v1527_v61, %v1214_v63  ;;  %v1472_v15 = vmax.f32 %v3267_v12, %v654_v56 }
 0x17e   :  { %1761 = vst [vmem:[%s3813_s3 + $0x30] sm:$0xff] %v1704_v45  ;;  %v1649_v0 = vadd.f32 %v3468_v49, %v1585_v8  ;;  %v1530_v58 = vmax.f32 %v1473_v48, %v3281_v19 }
 0x17f   :  { %1760 = vst [vmem:[%s3813_s3 + $0x28] sm:$0xff] %v1703_v55  ;;  %v1648_v9 = vadd.f32 %v3468_v49, %v1584_v44  ;;  %v2197_v18 = vpop.f32.mrb[68].mxu0  ;;  %v1529_v40 = vmax.f32 %v1472_v15, %v3269_v13  ;;  %v2368_v6 = vpop.f32.mrb[68].mxu1 }
 0x180   :  { %v1706_v54 = vmax.f32 %v1649_v0, 0.0  ;;  %v1587_v12 = vmax.f32 %v1530_v58, %v2365_v51  ;;  %v1475_v5 = vmax.f32 %v3287_v22, %v2197_v18  ;;  %v664_v41 = vpop.f32.mrb[69].mxu0  ;;  %v1234_v59 = vpop.f32.mrb[69].mxu1 }
 0x181   :  { %v1705_v10 = vmax.f32 %v1648_v9, 0.0  ;;  %v1586_v47 = vmax.f32 %v1529_v40, %v1224_v4  ;;  %v1474_v19 = vmax.f32 %v3275_v16, %v664_v41 }
 0x182   :  { %1763 = vst [vmem:[%s3813_s3 + $0x40] sm:$0xff] %v1706_v54  ;;  %v1651_v7 = vadd.f32 %v3468_v49, %v1587_v12  ;;  %v1532_v52 = vmax.f32 %v1475_v5, %v3289_v23 }
 0x183   :  { %1762 = vst [vmem:[%s3813_s3 + $0x38] sm:$0xff] %v1705_v10  ;;  %v1650_v13 = vadd.f32 %v3468_v49, %v1586_v47  ;;  %v2200_v22 = vpop.f32.mrb[70].mxu0  ;;  %v1531_v2 = vmax.f32 %v1474_v19, %v3277_v17  ;;  %v2371_v57 = vpop.f32.mrb[70].mxu1 }
 0x184   :  { %v1708_v53 = vmax.f32 %v1651_v7, 0.0  ;;  %v1589_v16 = vmax.f32 %v1532_v52, %v2368_v6  ;;  %v1477_v63 = vmax.f32 %v3295_v26, %v2200_v22  ;;  %v674_v62 = vpop.f32.mrb[71].mxu0  ;;  %v1244_v1 = vpop.f32.mrb[71].mxu1 }
 0x185   :  { %v1707_v11 = vmax.f32 %v1650_v13, 0.0  ;;  %v1588_v60 = vmax.f32 %v1531_v2, %v1234_v59  ;;  %v1476_v23 = vmax.f32 %v3283_v20, %v674_v62 }
 0x186   :  { %1765 = vst [vmem:[%s3813_s3 + $0x50] sm:$0xff] %v1708_v53  ;;  %v1653_v50 = vadd.f32 %v3468_v49, %v1589_v16  ;;  %v1534_v3 = vmax.f32 %v1477_v63, %v3297_v27 }
 0x187   :  { %1764 = vst [vmem:[%s3813_s3 + $0x48] sm:$0xff] %v1707_v11  ;;  %v1652_v17 = vadd.f32 %v3468_v49, %v1588_v60  ;;  %v2203_v26 = vpop.f32.mrb[72].mxu0  ;;  %v1533_v14 = vmax.f32 %v1476_v23, %v3285_v21  ;;  %v2374_v61 = vpop.f32.mrb[72].mxu1 }
 0x188   :  { %v1710_v51 = vmax.f32 %v1653_v50, 0.0  ;;  %v1591_v20 = vmax.f32 %v1534_v3, %v2371_v57  ;;  %v1479_v45 = vmax.f32 %v3303_v30, %v2203_v26  ;;  %v684_v8 = vpop.f32.mrb[73].mxu0  ;;  %v1254_v48 = vpop.f32.mrb[73].mxu1 }
 0x189   :  { %v1709_v56 = vmax.f32 %v1652_v17, 0.0  ;;  %v1590_v4 = vmax.f32 %v1533_v14, %v1244_v1  ;;  %v1478_v27 = vmax.f32 %v3291_v24, %v684_v8  ;;  %v3881_v8 = vld [vmem:[#allocation2_spill] sm:$0xff] }
 0x18a   :  { %1767 = vst [vmem:[%s3813_s3 + $0x60] sm:$0xff] %v1710_v51  ;;  %v1655_v55 = vadd.f32 %v3468_v49, %v1591_v20  ;;  %v1536_v44 = vmax.f32 %v1479_v45, %v3305_v31 }
 0x18b   :  { %1766 = vst [vmem:[%s3813_s3 + $0x58] sm:$0xff] %v1709_v56  ;;  %v1654_v21 = vadd.f32 %v3468_v49, %v1590_v4  ;;  %v2206_v30 = vpop.f32.mrb[74].mxu0  ;;  %v1535_v15 = vmax.f32 %v1478_v27, %v3293_v25  ;;  %v2377_v0 = vpop.f32.mrb[74].mxu1  ;;  %v3882_v56 = vld [vmem:[#allocation6_spill] sm:$0xff]  ;;  %v3883_v27 = vld [vmem:[#allocation3_spill] sm:$0xff] }
 0x18c   :  { %v1712_v58 = vmax.f32 %v1655_v55, 0.0  ;;  %v1593_v24 = vmax.f32 %v1536_v44, %v2374_v61  ;;  %v1481_v9 = vmax.f32 %v3311_v34, %v2206_v30  ;;  %v694_v18 = vpop.f32.mrb[75].mxu0  ;;  %v1264_v40 = vpop.f32.mrb[75].mxu1 }
 0x18d   :  { %v1711_v6 = vmax.f32 %v1654_v21, 0.0  ;;  %v1592_v54 = vmax.f32 %v1535_v15, %v1254_v48  ;;  %v1480_v31 = vmax.f32 %v3299_v28, %v694_v18  ;;  %v3884_v15 = vld [vmem:[#allocation9_spill] sm:$0xff] }
 0x18e   :  { %1769 = vst [vmem:[%s3813_s3 + $0x70] sm:$0xff] %v1712_v58  ;;  %v1657_v12 = vadd.f32 %v3468_v49, %v1593_v24  ;;  %v1538_v5 = vmax.f32 %v1481_v9, %v3313_v35 }
 0x18f   :  { %1768 = vst [vmem:[%s3813_s3 + $0x68] sm:$0xff] %v1711_v6  ;;  %v1656_v25 = vadd.f32 %v3468_v49, %v1592_v54  ;;  %v2209_v34 = vpop.f32.mrb[76].mxu0  ;;  %v1537_v41 = vmax.f32 %v1480_v31, %v3301_v29  ;;  %v2380_v59 = vpop.f32.mrb[76].mxu1  ;;  %v3886_v31 = vld [vmem:[#allocation10_spill] sm:$0xff] }
 0x190   :  { %v1714_v10 = vmax.f32 %v1657_v12, 0.0  ;;  %v1595_v28 = vmax.f32 %v1538_v5, %v2377_v0  ;;  %v1483_v47 = vmax.f32 %v3319_v38, %v2209_v34  ;;  %v704_v19 = vpop.f32.mrb[77].mxu0  ;;  %v1274_v7 = vpop.f32.mrb[77].mxu1  ;;  %v3887_v34 = vld [vmem:[#allocation5_spill] sm:$0xff] }
 0x191   :  { %v1713_v52 = vmax.f32 %v1656_v25, 0.0  ;;  %v1594_v13 = vmax.f32 %v1537_v41, %v1264_v40  ;;  %v1482_v35 = vmax.f32 %v3307_v32, %v704_v19  ;;  %v3885_v40 = vld [vmem:[#allocation4_spill] sm:$0xff] }
 0x192   :  { %1771 = vst [vmem:[%s3813_s3 + $0x80] sm:$0xff] %v1714_v10  ;;  %v1659_v22 = vadd.f32 %v3468_v49, %v1595_v28  ;;  %v1540_v2 = vmax.f32 %v1483_v47, %v3321_v39  ;;  %v3888_v47 = vld [vmem:[#allocation13_spill] sm:$0xff] }
 0x193   :  { %1770 = vst [vmem:[%s3813_s3 + $0x78] sm:$0xff] %v1713_v52  ;;  %v1658_v29 = vadd.f32 %v3468_v49, %v1594_v13  ;;  %v2212_v38 = vpop.f32.mrb[78].mxu0  ;;  %v1539_v57 = vmax.f32 %v1482_v35, %v3309_v33  ;;  %v2383_v53 = vpop.f32.mrb[78].mxu1 }
 0x194   :  { %v1716_v16 = vmax.f32 %v1659_v22, 0.0  ;;  %v1597_v32 = vmax.f32 %v1540_v2, %v2380_v59  ;;  %v1485_v63 = vmax.f32 %v3327_v42, %v2212_v38  ;;  %v714_v62 = vpop.f32.mrb[79].mxu0  ;;  %v1284_v1 = vpop.f32.mrb[79].mxu1  ;;  %v3889_v22 = vld [vmem:[#allocation7_spill] sm:$0xff]  ;;  %v3890_v38 = vld [vmem:[#allocation14_spill] sm:$0xff] }
 0x195   :  { %v1715_v11 = vmax.f32 %v1658_v29, 0.0  ;;  %v1596_v60 = vmax.f32 %v1539_v57, %v1274_v7  ;;  %v1484_v39 = vmax.f32 %v3315_v36, %v714_v62 }
 0x196   :  { %1773 = vst [vmem:[%s3813_s3 + $0x90] sm:$0xff] %v1716_v16  ;;  %v1661_v23 = vadd.f32 %v3468_v49, %v1597_v32  ;;  %v1542_v50 = vmax.f32 %v1485_v63, %v3329_v43  ;;  %v3891_v32 = vld [vmem:[#allocation8_spill] sm:$0xff] }
 0x197   :  { %1772 = vst [vmem:[%s3813_s3 + $0x88] sm:$0xff] %v1715_v11  ;;  %v1660_v33 = vadd.f32 %v3468_v49, %v1596_v60  ;;  %v2215_v42 = vpop.f32.mrb[80].mxu0  ;;  %v1541_v3 = vmax.f32 %v1484_v39, %v3317_v37  ;;  %v2386_v17 = vpop.f32.mrb[80].mxu1  ;;  %v3892_v60 = vld [vmem:[#allocation17_spill] sm:$0xff] }
 0x198   :  { %v1718_v26 = vmax.f32 %v1661_v23, 0.0  ;;  %v1599_v36 = vmax.f32 %v1542_v50, %v2383_v53  ;;  %v1487_v14 = vmax.f32 %v3335_v46, %v2215_v42  ;;  %v724_v61 = vpop.f32.mrb[81].mxu0  ;;  %v1294_v51 = vpop.f32.mrb[81].mxu1 }
 0x199   :  { %v1717_v20 = vmax.f32 %v1660_v33, 0.0  ;;  %v1598_v45 = vmax.f32 %v1541_v3, %v1284_v1  ;;  %v1486_v43 = vmax.f32 %v3881_v8, %v724_v61  ;;  %v3893_v3 = vld [vmem:[#allocation11_spill] sm:$0xff] }
 0x19a   :  { %1775 = vst [vmem:[%s3813_s3 + $0xa0] sm:$0xff] %v1718_v26  ;;  %v1663_v48 = vadd.f32 %v3468_v49, %v1599_v36  ;;  %v1544_v4 = vmax.f32 %v1487_v14, %v3882_v56  ;;  %v3894_v36 = vld [vmem:[#allocation18_spill] sm:$0xff]  ;;  %v3896_v56 = vld [vmem:[#allocation21_spill] sm:$0xff] }
 0x19b   :  { %1774 = vst [vmem:[%s3813_s3 + $0x98] sm:$0xff] %v1717_v20  ;;  %v1662_v37 = vadd.f32 %v3468_v49, %v1598_v45  ;;  %v2218_v46 = vpop.f32.mrb[82].mxu0  ;;  %v1543_v55 = vmax.f32 %v1486_v43, %v3883_v27  ;;  %v2389_v44 = vpop.f32.mrb[82].mxu1  ;;  %v3895_v20 = vld [vmem:[#allocation12_spill] sm:$0xff] }
 0x19c   :  { %v1720_v21 = vmax.f32 %v1663_v48, 0.0  ;;  %v1601_v30 = vmax.f32 %v1544_v4, %v2386_v17  ;;  %v1489_v0 = vmax.f32 %v3884_v15, %v2218_v46  ;;  %v734_v58 = vpop.f32.mrb[83].mxu0  ;;  %v1304_v24 = vpop.f32.mrb[83].mxu1  ;;  %v3898_v15 = vld [vmem:[#allocation22_spill] sm:$0xff] }
 0x19d   :  { %v1719_v9 = vmax.f32 %v1662_v37, 0.0  ;;  %v1600_v18 = vmax.f32 %v1543_v55, %v1294_v51  ;;  %v1488_v6 = vmax.f32 %v3885_v40, %v734_v58 }
 0x19e   :  { %1777 = vst [vmem:[%s3813_s3 + $0xb0] sm:$0xff] %v1720_v21  ;;  %v1665_v54 = vadd.f32 %v3468_v49, %v1601_v30  ;;  %v1546_v12 = vmax.f32 %v1489_v0, %v3886_v31  ;;  %v3900_v31 = vld [vmem:[#allocation25_spill] sm:$0xff] }
 0x19f   :  { %1776 = vst [vmem:[%s3813_s3 + $0xa8] sm:$0xff] %v1719_v9  ;;  %v1664_v5 = vadd.f32 %v3468_v49, %v1600_v18  ;;  %v2221_v25 = vpop.f32.mrb[84].mxu0  ;;  %v1545_v41 = vmax.f32 %v1488_v6, %v3887_v34  ;;  %v2392_v59 = vpop.f32.mrb[84].mxu1  ;;  %v3899_v9 = vld [vmem:[#allocation16_spill] sm:$0xff] }
 0x1a0   :  { %v1722_v10 = vmax.f32 %v1665_v54, 0.0  ;;  %v1603_v28 = vmax.f32 %v1546_v12, %v2389_v44  ;;  %v1491_v19 = vmax.f32 %v3888_v47, %v2221_v25  ;;  %v744_v7 = vpop.f32.mrb[85].mxu0  ;;  %v1314_v52 = vpop.f32.mrb[85].mxu1  ;;  %v3897_v44 = vld [vmem:[#allocation15_spill] sm:$0xff]  ;;  %v3902_v47 = vld [vmem:[#allocation26_spill] sm:$0xff] }
 0x1a1   :  { %v1721_v13 = vmax.f32 %v1664_v5, 0.0  ;;  %v1602_v35 = vmax.f32 %v1545_v41, %v1304_v24  ;;  %v1490_v2 = vmax.f32 %v3889_v22, %v744_v7 }
 0x1a2   :  { %1779 = vst [vmem:[%s3813_s3 + $0xc0] sm:$0xff] %v1722_v10  ;;  %v1667_v29 = vadd.f32 %v3468_v49, %v1603_v28  ;;  %v1548_v57 = vmax.f32 %v1491_v19, %v3890_v38  ;;  %v3904_v38 = vld [vmem:[#allocation29_spill] sm:$0xff] }
 0x1a3   :  { %1778 = vst [vmem:[%s3813_s3 + $0xb8] sm:$0xff] %v1721_v13  ;;  %v1666_v53 = vadd.f32 %v3468_v49, %v1602_v35  ;;  %v2224_v16 = vpop.f32.mrb[86].mxu0  ;;  %v1547_v63 = vmax.f32 %v1490_v2, %v3891_v32  ;;  %v2395_v62 = vpop.f32.mrb[86].mxu1  ;;  %v3903_v13 = vld [vmem:[#allocation20_spill] sm:$0xff] }
 0x1a4   :  { %v1724_v1 = vmax.f32 %v1667_v29, 0.0  ;;  %v1605_v11 = vmax.f32 %v1548_v57, %v2392_v59  ;;  %v1493_v39 = vmax.f32 %v3892_v60, %v2224_v16  ;;  %v754_v23 = vpop.f32.mrb[87].mxu0  ;;  %v1324_v50 = vpop.f32.mrb[87].mxu1  ;;  %v3901_v59 = vld [vmem:[#allocation19_spill] sm:$0xff]  ;;  %v3906_v60 = vld [vmem:[#allocation30_spill] sm:$0xff] }
 0x1a5   :  { %v1723_v33 = vmax.f32 %v1666_v53, 0.0  ;;  %v1604_v42 = vmax.f32 %v1547_v63, %v1314_v52  ;;  %v1492_v17 = vmax.f32 %v3893_v3, %v754_v23 }
 0x1a6   :  { %1781 = vst [vmem:[%s3813_s3 + $0xd0] sm:$0xff] %v1724_v1  ;;  %v1669_v26 = vadd.f32 %v3468_v49, %v1605_v11  ;;  %v1550_v14 = vmax.f32 %v1493_v39, %v3894_v36  ;;  %v3908_v36 = vld [vmem:[#allocation33_spill] sm:$0xff] }
 0x1a7   :  { %1780 = vst [vmem:[%s3813_s3 + $0xc8] sm:$0xff] %v1723_v33  ;;  %v1668_v61 = vadd.f32 %v3468_v49, %v1604_v42  ;;  %v2227_v51 = vpop.f32.mrb[88].mxu0  ;;  %v1549_v45 = vmax.f32 %v1492_v17, %v3895_v20  ;;  %v2398_v8 = vpop.f32.mrb[88].mxu1  ;;  %v3907_v33 = vld [vmem:[#allocation24_spill] sm:$0xff] }
 0x1a8   :  { %v1726_v43 = vmax.f32 %v1669_v26, 0.0  ;;  %v1607_v48 = vmax.f32 %v1550_v14, %v2395_v62  ;;  %v1495_v4 = vmax.f32 %v3896_v56, %v2227_v51  ;;  %v764_v37 = vpop.f32.mrb[89].mxu0  ;;  %v1334_v46 = vpop.f32.mrb[89].mxu1  ;;  %v3905_v62 = vld [vmem:[#allocation23_spill] sm:$0xff]  ;;  %v3910_v56 = vld [vmem:[#allocation34_spill] sm:$0xff] }
 0x1a9   :  { %v1725_v27 = vmax.f32 %v1668_v61, 0.0  ;;  %v1606_v55 = vmax.f32 %v1549_v45, %v1324_v50  ;;  %v1494_v21 = vmax.f32 %v3897_v44, %v764_v37 }
 0x1aa   :  { %1783 = vst [vmem:[%s3813_s3 + $0xe0] sm:$0xff] %v1726_v43  ;;  %v1671_v30 = vadd.f32 %v3468_v49, %v1607_v48  ;;  %v1552_v0 = vmax.f32 %v1495_v4, %v3898_v15  ;;  %v3912_v15 = vld [vmem:[#allocation37_spill] sm:$0xff] }
 0x1ab   :  { %1782 = vst [vmem:[%s3813_s3 + $0xd8] sm:$0xff] %v1725_v27  ;;  %v1670_v58 = vadd.f32 %v3468_v49, %v1606_v55  ;;  %v2230_v24 = vpop.f32.mrb[90].mxu0  ;;  %v1551_v18 = vmax.f32 %v1494_v21, %v3899_v9  ;;  %v2401_v40 = vpop.f32.mrb[90].mxu1  ;;  %v3911_v27 = vld [vmem:[#allocation28_spill] sm:$0xff] }
 0x1ac   :  { %v1728_v6 = vmax.f32 %v1671_v30, 0.0  ;;  %v1609_v54 = vmax.f32 %v1552_v0, %v2398_v8  ;;  %v1497_v12 = vmax.f32 %v3900_v31, %v2230_v24  ;;  %v774_v5 = vpop.f32.mrb[91].mxu0  ;;  %v1344_v25 = vpop.f32.mrb[91].mxu1  ;;  %v3909_v8 = vld [vmem:[#allocation27_spill] sm:$0xff]  ;;  %v3914_v31 = vld [vmem:[#allocation38_spill] sm:$0xff] }
 0x1ad   :  { %v1727_v34 = vmax.f32 %v1670_v58, 0.0  ;;  %v1608_v41 = vmax.f32 %v1551_v18, %v1334_v46  ;;  %v1496_v10 = vmax.f32 %v3901_v59, %v774_v5 }
 0x1ae   :  { %1785 = vst [vmem:[%s3813_s3 + $0xf0] sm:$0xff] %v1728_v6  ;;  %v1673_v28 = vadd.f32 %v3468_v49, %v1609_v54  ;;  %v1554_v19 = vmax.f32 %v1497_v12, %v3902_v47  ;;  %v3916_v47 = vld [vmem:[#allocation41_spill] sm:$0xff] }
 0x1af   :  { %1784 = vst [vmem:[%s3813_s3 + $0xe8] sm:$0xff] %v1727_v34  ;;  %v1672_v7 = vadd.f32 %v3468_v49, %v1608_v41  ;;  %v2233_v52 = vpop.f32.mrb[92].mxu0  ;;  %v1553_v35 = vmax.f32 %v1496_v10, %v3903_v13  ;;  %v2404_v22 = vpop.f32.mrb[92].mxu1  ;;  %v3915_v34 = vld [vmem:[#allocation32_spill] sm:$0xff] }
 0x1b0   :  { %v1730_v2 = vmax.f32 %v1673_v28, 0.0  ;;  %v1611_v29 = vmax.f32 %v1554_v19, %v2401_v40  ;;  %v1499_v57 = vmax.f32 %v3904_v38, %v2233_v52  ;;  %v784_v53 = vpop.f32.mrb[93].mxu0  ;;  %v1354_v16 = vpop.f32.mrb[93].mxu1  ;;  %v3913_v40 = vld [vmem:[#allocation31_spill] sm:$0xff]  ;;  %v3918_v38 = vld [vmem:[#allocation42_spill] sm:$0xff] }
 0x1b1   :  { %v1729_v32 = vmax.f32 %v1672_v7, 0.0  ;;  %v1610_v63 = vmax.f32 %v1553_v35, %v1344_v25  ;;  %v1498_v1 = vmax.f32 %v3905_v62, %v784_v53 }
 0x1b2   :  { %1787 = vst [vmem:[%s3813_s3 + $0x100] sm:$0xff] %v1730_v2  ;;  %v1675_v11 = vadd.f32 %v3468_v49, %v1611_v29  ;;  %v1556_v39 = vmax.f32 %v1499_v57, %v3906_v60  ;;  %v3920_v60 = vld [vmem:[#allocation45_spill] sm:$0xff] }
 0x1b3   :  { %1786 = vst [vmem:[%s3813_s3 + $0xf8] sm:$0xff] %v1729_v32  ;;  %v1674_v23 = vadd.f32 %v3468_v49, %v1610_v63  ;;  %v2236_v50 = vpop.f32.mrb[94].mxu0  ;;  %v1555_v42 = vmax.f32 %v1498_v1, %v3907_v33  ;;  %v2407_v3 = vpop.f32.mrb[94].mxu1  ;;  %v3919_v32 = vld [vmem:[#allocation36_spill] sm:$0xff] }
 0x1b4   :  { %v1732_v17 = vmax.f32 %v1675_v11, 0.0  ;;  %v1613_v26 = vmax.f32 %v1556_v39, %v2404_v22  ;;  %v1501_v14 = vmax.f32 %v3908_v36, %v2236_v50  ;;  %v794_v61 = vpop.f32.mrb[95].mxu0  ;;  %v1364_v51 = vpop.f32.mrb[95].mxu1  ;;  %v3917_v22 = vld [vmem:[#allocation35_spill] sm:$0xff]  ;;  %v3922_v36 = vld [vmem:[#allocation46_spill] sm:$0xff] }
 0x1b5   :  { %v1731_v20 = vmax.f32 %v1674_v23, 0.0  ;;  %v1612_v45 = vmax.f32 %v1555_v42, %v1354_v16  ;;  %v1500_v43 = vmax.f32 %v3909_v8, %v794_v61 }
 0x1b6   :  { %1789 = vst [vmem:[%s3813_s3 + $0x110] sm:$0xff] %v1732_v17  ;;  %v1677_v48 = vadd.f32 %v3468_v49, %v1613_v26  ;;  %v1558_v4 = vmax.f32 %v1501_v14, %v3910_v56  ;;  %v3924_v56 = vld [vmem:[#allocation49_spill] sm:$0xff] }
 0x1b7   :  { %1788 = vst [vmem:[%s3813_s3 + $0x108] sm:$0xff] %v1731_v20  ;;  %v1676_v37 = vadd.f32 %v3468_v49, %v1612_v45  ;;  %v2239_v46 = vpop.f32.mrb[96].mxu0  ;;  %v1557_v55 = vmax.f32 %v1500_v43, %v3911_v27  ;;  %v2410_v44 = vpop.f32.mrb[96].mxu1  ;;  %v3923_v20 = vld [vmem:[#allocation40_spill] sm:$0xff] }
 0x1b8   :  { %v1734_v21 = vmax.f32 %v1677_v48, 0.0  ;;  %v1615_v30 = vmax.f32 %v1558_v4, %v2407_v3  ;;  %v1503_v0 = vmax.f32 %v3912_v15, %v2239_v46  ;;  %v804_v58 = vpop.f32.mrb[97].mxu0  ;;  %v1374_v24 = vpop.f32.mrb[97].mxu1  ;;  %v3921_v3 = vld [vmem:[#allocation39_spill] sm:$0xff]  ;;  %v3926_v15 = vld [vmem:[#allocation50_spill] sm:$0xff] }
 0x1b9   :  { %v1733_v9 = vmax.f32 %v1676_v37, 0.0  ;;  %v1614_v18 = vmax.f32 %v1557_v55, %v1364_v51  ;;  %v1502_v6 = vmax.f32 %v3913_v40, %v804_v58 }
 0x1ba   :  { %1791 = vst [vmem:[%s3813_s3 + $0x120] sm:$0xff] %v1734_v21  ;;  %v1679_v54 = vadd.f32 %v3468_v49, %v1615_v30  ;;  %v1560_v12 = vmax.f32 %v1503_v0, %v3914_v31  ;;  %v3928_v31 = vld [vmem:[#allocation53_spill] sm:$0xff] }
 0x1bb   :  { %1790 = vst [vmem:[%s3813_s3 + $0x118] sm:$0xff] %v1733_v9  ;;  %v1678_v5 = vadd.f32 %v3468_v49, %v1614_v18  ;;  %v2242_v25 = vpop.f32.mrb[98].mxu0  ;;  %v1559_v41 = vmax.f32 %v1502_v6, %v3915_v34  ;;  %v2413_v59 = vpop.f32.mrb[98].mxu1  ;;  %v3927_v9 = vld [vmem:[#allocation44_spill] sm:$0xff] }
 0x1bc   :  { %v1736_v10 = vmax.f32 %v1679_v54, 0.0  ;;  %v1617_v28 = vmax.f32 %v1560_v12, %v2410_v44  ;;  %v1505_v19 = vmax.f32 %v3916_v47, %v2242_v25  ;;  %v814_v7 = vpop.f32.mrb[99].mxu0  ;;  %v1384_v52 = vpop.f32.mrb[99].mxu1  ;;  %v3925_v44 = vld [vmem:[#allocation43_spill] sm:$0xff]  ;;  %v3930_v47 = vld [vmem:[#allocation54_spill] sm:$0xff] }
 0x1bd   :  { %v1735_v13 = vmax.f32 %v1678_v5, 0.0  ;;  %v1616_v35 = vmax.f32 %v1559_v41, %v1374_v24  ;;  %v1504_v2 = vmax.f32 %v3917_v22, %v814_v7 }
 0x1be   :  { %1793 = vst [vmem:[%s3813_s3 + $0x130] sm:$0xff] %v1736_v10  ;;  %v1681_v29 = vadd.f32 %v3468_v49, %v1617_v28  ;;  %v1562_v57 = vmax.f32 %v1505_v19, %v3918_v38  ;;  %v3932_v38 = vld [vmem:[#allocation57_spill] sm:$0xff] }
 0x1bf   :  { %1792 = vst [vmem:[%s3813_s3 + $0x128] sm:$0xff] %v1735_v13  ;;  %v1680_v53 = vadd.f32 %v3468_v49, %v1616_v35  ;;  %v2245_v16 = vpop.f32.mrb[100].mxu0  ;;  %v1561_v63 = vmax.f32 %v1504_v2, %v3919_v32  ;;  %v2416_v62 = vpop.f32.mrb[100].mxu1  ;;  %v3931_v13 = vld [vmem:[#allocation48_spill] sm:$0xff] }
 0x1c0   :  { %v1738_v1 = vmax.f32 %v1681_v29, 0.0  ;;  %v1619_v11 = vmax.f32 %v1562_v57, %v2413_v59  ;;  %v1507_v39 = vmax.f32 %v3920_v60, %v2245_v16  ;;  %v824_v23 = vpop.f32.mrb[101].mxu0  ;;  %v1394_v50 = vpop.f32.mrb[101].mxu1  ;;  %v3929_v59 = vld [vmem:[#allocation47_spill] sm:$0xff]  ;;  %v3934_v60 = vld [vmem:[#allocation58_spill] sm:$0xff] }
 0x1c1   :  { %v1737_v33 = vmax.f32 %v1680_v53, 0.0  ;;  %v1618_v42 = vmax.f32 %v1561_v63, %v1384_v52  ;;  %v1506_v17 = vmax.f32 %v3921_v3, %v824_v23 }
 0x1c2   :  { %1795 = vst [vmem:[%s3813_s3 + $0x140] sm:$0xff] %v1738_v1  ;;  %v1683_v26 = vadd.f32 %v3468_v49, %v1619_v11  ;;  %v1564_v14 = vmax.f32 %v1507_v39, %v3922_v36  ;;  %v3936_v36 = vld [vmem:[#allocation61_spill] sm:$0xff] }
 0x1c3   :  { %1794 = vst [vmem:[%s3813_s3 + $0x138] sm:$0xff] %v1737_v33  ;;  %v1682_v61 = vadd.f32 %v3468_v49, %v1618_v42  ;;  %v2248_v51 = vpop.f32.mrb[102].mxu0  ;;  %v1563_v45 = vmax.f32 %v1506_v17, %v3923_v20  ;;  %v2419_v8 = vpop.f32.mrb[102].mxu1  ;;  %v3935_v33 = vld [vmem:[#allocation52_spill] sm:$0xff] }
 0x1c4   :  { %v1740_v43 = vmax.f32 %v1683_v26, 0.0  ;;  %v1621_v48 = vmax.f32 %v1564_v14, %v2416_v62  ;;  %v1509_v4 = vmax.f32 %v3924_v56, %v2248_v51  ;;  %v834_v37 = vpop.f32.mrb[103].mxu0  ;;  %v1404_v46 = vpop.f32.mrb[103].mxu1  ;;  %v3933_v62 = vld [vmem:[#allocation51_spill] sm:$0xff]  ;;  %v3938_v56 = vld [vmem:[#allocation62_spill] sm:$0xff] }
 0x1c5   :  { %v1739_v27 = vmax.f32 %v1682_v61, 0.0  ;;  %v1620_v55 = vmax.f32 %v1563_v45, %v1394_v50  ;;  %v1508_v21 = vmax.f32 %v3925_v44, %v834_v37 }
 0x1c6   :  { %1797 = vst [vmem:[%s3813_s3 + $0x150] sm:$0xff] %v1740_v43  ;;  %v1685_v30 = vadd.f32 %v3468_v49, %v1621_v48  ;;  %v1566_v0 = vmax.f32 %v1509_v4, %v3926_v15  ;;  %v3940_v15 = vld [vmem:[#allocation65_spill] sm:$0xff] }
 0x1c7   :  { %1796 = vst [vmem:[%s3813_s3 + $0x148] sm:$0xff] %v1739_v27  ;;  %v1684_v58 = vadd.f32 %v3468_v49, %v1620_v55  ;;  %v2251_v24 = vpop.f32.mrb[104].mxu0  ;;  %v1565_v18 = vmax.f32 %v1508_v21, %v3927_v9  ;;  %v2422_v40 = vpop.f32.mrb[104].mxu1  ;;  %v3939_v27 = vld [vmem:[#allocation56_spill] sm:$0xff] }
 0x1c8   :  { %v1742_v6 = vmax.f32 %v1685_v30, 0.0  ;;  %v1623_v54 = vmax.f32 %v1566_v0, %v2419_v8  ;;  %v1511_v12 = vmax.f32 %v3928_v31, %v2251_v24  ;;  %v844_v5 = vpop.f32.mrb[105].mxu0  ;;  %v1414_v25 = vpop.f32.mrb[105].mxu1  ;;  %v3937_v8 = vld [vmem:[#allocation55_spill] sm:$0xff]  ;;  %v3942_v31 = vld [vmem:[#allocation66_spill] sm:$0xff] }
 0x1c9   :  { %v1741_v34 = vmax.f32 %v1684_v58, 0.0  ;;  %v1622_v41 = vmax.f32 %v1565_v18, %v1404_v46  ;;  %v1510_v10 = vmax.f32 %v3929_v59, %v844_v5 }
 0x1ca   :  { %1799 = vst [vmem:[%s3813_s3 + $0x160] sm:$0xff] %v1742_v6  ;;  %v1687_v28 = vadd.f32 %v3468_v49, %v1623_v54  ;;  %v1568_v19 = vmax.f32 %v1511_v12, %v3930_v47  ;;  %v3944_v47 = vld [vmem:[#allocation67_spill] sm:$0xff] }
 0x1cb   :  { %1798 = vst [vmem:[%s3813_s3 + $0x158] sm:$0xff] %v1741_v34  ;;  %v1686_v7 = vadd.f32 %v3468_v49, %v1622_v41  ;;  %v2254_v52 = vpop.f32.mrb[106].mxu0  ;;  %v1567_v35 = vmax.f32 %v1510_v10, %v3931_v13  ;;  %v2425_v22 = vpop.f32.mrb[106].mxu1  ;;  %v3943_v34 = vld [vmem:[#allocation60_spill] sm:$0xff] }
 0x1cc   :  { %v1744_v2 = vmax.f32 %v1687_v28, 0.0  ;;  %v1625_v29 = vmax.f32 %v1568_v19, %v2422_v40  ;;  %v1513_v57 = vmax.f32 %v3932_v38, %v2254_v52  ;;  %v854_v53 = vpop.f32.mrb[107].mxu0  ;;  %v1424_v16 = vpop.f32.mrb[107].mxu1  ;;  %v3941_v40 = vld [vmem:[#allocation59_spill] sm:$0xff]  ;;  %v3946_v38 = vld [vmem:[#allocation68_spill] sm:$0xff] }
 0x1cd   :  { %v1743_v32 = vmax.f32 %v1686_v7, 0.0  ;;  %v1624_v63 = vmax.f32 %v1567_v35, %v1414_v25  ;;  %v1512_v1 = vmax.f32 %v3933_v62, %v854_v53 }
 0x1ce   :  { %1801 = vst [vmem:[%s3813_s3 + $0x170] sm:$0xff] %v1744_v2  ;;  %v1689_v11 = vadd.f32 %v3468_v49, %v1625_v29  ;;  %v1570_v39 = vmax.f32 %v1513_v57, %v3934_v60 }
 0x1cf   :  { %1800 = vst [vmem:[%s3813_s3 + $0x168] sm:$0xff] %v1743_v32  ;;  %v1688_v23 = vadd.f32 %v3468_v49, %v1624_v63  ;;  %v2257_v50 = vpop.f32.mrb[108].mxu0  ;;  %v1569_v42 = vmax.f32 %v1512_v1, %v3935_v33  ;;  %v2428_v3 = vpop.f32.mrb[108].mxu1 }
 0x1d0   :  { %v1746_v17 = vmax.f32 %v1689_v11, 0.0  ;;  %v1627_v26 = vmax.f32 %v1570_v39, %v2425_v22  ;;  %v1515_v14 = vmax.f32 %v3936_v36, %v2257_v50  ;;  %v864_v61 = vpop.f32.mrb[109].mxu0  ;;  %v1434_v51 = vpop.f32.mrb[109].mxu1  ;;  %v3945_v22 = vld [vmem:[#allocation63_spill] sm:$0xff] }
 0x1d1   :  { %v1745_v20 = vmax.f32 %v1688_v23, 0.0  ;;  %v1626_v45 = vmax.f32 %v1569_v42, %v1424_v16  ;;  %v1514_v43 = vmax.f32 %v3937_v8, %v864_v61  ;;  %v3947_v16 = vld [vmem:[#allocation64_spill] sm:$0xff] }
 0x1d2   :  { %1803 = vst [vmem:[%s3813_s3 + $0x180] sm:$0xff] %v1746_v17  ;;  %v1691_v48 = vadd.f32 %v3468_v49, %v1627_v26  ;;  %v1572_v4 = vmax.f32 %v1515_v14, %v3938_v56 }
 0x1d3   :  { %1802 = vst [vmem:[%s3813_s3 + $0x178] sm:$0xff] %v1745_v20  ;;  %v1690_v37 = vadd.f32 %v3468_v49, %v1626_v45  ;;  %v2260_v46 = vpop.f32.mrb[110].mxu0  ;;  %v1571_v55 = vmax.f32 %v1514_v43, %v3939_v27  ;;  %v2431_v44 = vpop.f32.mrb[110].mxu1 }
 0x1d4   :  { %v1748_v21 = vmax.f32 %v1691_v48, 0.0  ;;  %v1629_v30 = vmax.f32 %v1572_v4, %v2428_v3  ;;  %v1517_v0 = vmax.f32 %v3940_v15, %v2260_v46  ;;  %v874_v58 = vpop.f32.mrb[111].mxu0  ;;  %v1444_v24 = vpop.f32.mrb[111].mxu1 }
 0x1d5   :  { %v1747_v9 = vmax.f32 %v1690_v37, 0.0  ;;  %v1628_v18 = vmax.f32 %v1571_v55, %v1434_v51  ;;  %v1516_v6 = vmax.f32 %v3941_v40, %v874_v58 }
 0x1d6   :  { %1805 = vst [vmem:[%s3813_s3 + $0x190] sm:$0xff] %v1748_v21  ;;  %v1693_v54 = vadd.f32 %v3468_v49, %v1629_v30  ;;  %v1574_v12 = vmax.f32 %v1517_v0, %v3942_v31 }
 0x1d7   :  { %1804 = vst [vmem:[%s3813_s3 + $0x188] sm:$0xff] %v1747_v9  ;;  %v1692_v5 = vadd.f32 %v3468_v49, %v1628_v18  ;;  %v2263_v25 = vpop.f32.mrb[112].mxu0  ;;  %v1573_v41 = vmax.f32 %v1516_v6, %v3943_v34  ;;  %v2434_v59 = vpop.f32.mrb[112].mxu1 }
 0x1d8   :  { %v1750_v10 = vmax.f32 %v1693_v54, 0.0  ;;  %v1631_v28 = vmax.f32 %v1574_v12, %v2431_v44  ;;  %v1519_v19 = vmax.f32 %v3944_v47, %v2263_v25  ;;  %v884_v7 = vpop.f32.mrb[113].mxu0  ;;  %v1454_v52 = vpop.f32.mrb[113].mxu1 }
 0x1d9   :  { %v1749_v13 = vmax.f32 %v1692_v5, 0.0  ;;  %v1630_v35 = vmax.f32 %v1573_v41, %v1444_v24  ;;  %v1518_v2 = vmax.f32 %v3945_v22, %v884_v7 }
 0x1da   :  { %1807 = vst [vmem:[%s3813_s3 + $0x1a0] sm:$0xff] %v1750_v10  ;;  %v1695_v29 = vadd.f32 %v3468_v49, %v1631_v28  ;;  %v1576_v57 = vmax.f32 %v1519_v19, %v3946_v38 }
 0x1db   :  { %1806 = vst [vmem:[%s3813_s3 + $0x198] sm:$0xff] %v1749_v13  ;;  %v1694_v53 = vadd.f32 %v3468_v49, %v1630_v35  ;;  %v1575_v32 = vmax.f32 %v1518_v2, %v3947_v16 }
 0x1dc   :  { %v1752_v63 = vmax.f32 %v1695_v29, 0.0  ;;  %v1633_v62 = vmax.f32 %v1576_v57, %v2434_v59 }
 0x1dd   :  { %v1751_v1 = vmax.f32 %v1694_v53, 0.0  ;;  %v1632_v11 = vmax.f32 %v1575_v32, %v1454_v52 }
 0x1de   :  { %1809 = vst [vmem:[%s3813_s3 + $0x1b0] sm:$0xff] %v1752_v63  ;;  %v1697_v60 = vadd.f32 %v3468_v49, %v1633_v62 }
 0x1df   :  { %1808 = vst [vmem:[%s3813_s3 + $0x1a8] sm:$0xff] %v1751_v1  ;;  %v1696_v39 = vadd.f32 %v3468_v49, %v1632_v11 }
 0x1e0   :  { %v1754_v23 = vmax.f32 %v1697_v60, 0.0 }
 0x1e1   :  { %v1753_v50 = vmax.f32 %v1696_v39, 0.0 }
 0x1e2   :  { %1811 = vst [vmem:[%s3813_s3 + $0x1c0] sm:$0xff] %v1754_v23 }
 0x1e3   :  { %1810 = vst [vmem:[%s3813_s3 + $0x1b8] sm:$0xff] %v1753_v50 }

// kernel: tile.18
= control target key start
LH: loop header
LB: loop body
LE: loop exit
PB: predicated region body
PF: predicated region fallthrough
CT: control target
= control target key end

     0   :  { %s22_s0 = inlined_call_operand.vmem [shape: f32[64], index: 0, kind: input, shape index: {}]   ;;  %s23_s1 = inlined_call_operand.vmem [shape: f32[2,64], index: 1, kind: output, shape index: {}]  }
   0x1   :  { %v4_v0 = vld [vmem:[%s22_s0] ss:$0 sm:$0xff] }
   0x2   :  { %5 = vst [vmem:[%s23_s1] sm:$0x3] %v4_v0 }

// kernel: tile.19
= control target key start
LH: loop header
LB: loop body
LE: loop exit
PB: predicated region body
PF: predicated region fallthrough
CT: control target
= control target key end

     0   :  { %vm7_vm0 = vcmask 523264   ;;  %vm13_vm1 = vcmask 1048064   ;;  %s39_s0 = inlined_call_operand.vmem [shape: f32[2,64], index: 0, kind: input, shape index: {}]   ;;  %s40_s1 = inlined_call_operand.vmem [shape: f32[1,128], index: 1, kind: output, shape index: {}]  }
   0x1   :  { %v4_v0 = vld [vmem:[%s39_s0] sm:$0x3]  ;;  %s22_s0 = smov 64  }
   0x2   :  { %5 = vst [vmem:[#allocation1] sm:$0x3] %v4_v0 }
   0x9   :  { %v10_v1 = vld [vmem:[#allocation1 + $0x1] sm:$0x1]   ;;  %v6_v2 = vld [vmem:[#allocation1] sm:$0x1]  }
   0xa   :  { %11 = vrot.lane.b32.xlu0 %v10_v1, %s22_s0  ;;  %8 = vst.msk [vmem:[#allocation0] sm:$0x1] %vm7_vm0, %v6_v2  }
  0x7c   :  { %v12_v3 = vpop.permute.xlu0 %11  }
  0x7d   :  { %14 = vst.msk [vmem:[#allocation0] sm:$0x1] %vm13_vm1, %v12_v3  }
  0x84   :  { %v18_v4 = vld [vmem:[#allocation0] sm:$0x1] }
  0x85   :  { %20 = vst [vmem:[%s40_s1] sm:$0x1] %v18_v4 }

// kernel: gazenet_forward.4
= control target key start
LH: loop header
LB: loop body
LE: loop exit
PB: predicated region body
PF: predicated region fallthrough
CT: control target
= control target key end

     0   :  { %v3035_v0 = vmov 0.0|0.0   ;;  %s5750_s1 = inlined_call_operand.vmem [shape: f32[640,128], index: 1, kind: input, shape index: {}]   ;;  %s5751_s0 = inlined_call_operand.vmem [shape: f32[4,200,640], index: 0, kind: input, shape index: {}]   ;;  %s5752_s2 = inlined_call_operand.vmem [shape: f32[1,128], index: 2, kind: input, shape index: {}]   ;;  %s5753_s3 = inlined_call_operand.vmem [shape: f32[200,128], index: 3, kind: output, shape index: {}]  }
   0x1   :  { %2749 = vmatprep.subr.bf16.mxu0 %v3035_v0  ;;  %2877 = vmatprep.subr.bf16.mxu1 %v3035_v0  ;;  %v514_v1 = vld [vmem:[%s5750_s1] sm:$0xff]  ;;  %v515_v2 = vld [vmem:[%s5750_s1 + $0x8] sm:$0xff]  ;;  %v516_v3 = vld [vmem:[%s5750_s1 + $0x10] sm:$0xff] }
   0x2   :  { %v2750_v4 = vpack.c.bf16 %v515_v2, %v514_v1  ;;  %v517_v5 = vld [vmem:[%s5750_s1 + $0x18] sm:$0xff]  ;;  %v518_v7 = vld [vmem:[%s5750_s1 + $0x20] sm:$0xff]  ;;  %v519_v8 = vld [vmem:[%s5750_s1 + $0x28] sm:$0xff] }
   0x3   :  { %v2753_v6 = vpack.c.bf16 %v517_v5, %v516_v3  ;;  %v2756_v9 = vpack.c.bf16 %v519_v8, %v518_v7  ;;  %v520_v10 = vld [vmem:[%s5750_s1 + $0x30] sm:$0xff]  ;;  %v521_v11 = vld [vmem:[%s5750_s1 + $0x38] sm:$0xff]  ;;  %v15_v12 = vld [vmem:[%s5751_s0 + $0x8] sm:$0xff] }
   0x4   :  { %2751 = vmatpush1.bf16.msra.mxu0 %v2750_v4  ;;  %2893 = vmatpush1.bf16.msra.mxu1 %v2750_v4  ;;  %v2759_v13 = vpack.c.bf16 %v521_v11, %v520_v10  ;;  %v140_v14 = vld [vmem:[%s5751_s0 + $0x3f0] sm:$0xff]  ;;  %v522_v15 = vld [vmem:[%s5750_s1 + $0x40] sm:$0xff]  ;;  %v523_v16 = vld [vmem:[%s5750_s1 + $0x48] sm:$0xff] }
   0x5   :  { %2752 = vmatprep.subr.bf16.mxu0 %v3035_v0  ;;  %2878 = vmatprep.subr.bf16.mxu1 %v3035_v0  ;;  %v2762_v17 = vpack.c.bf16 %v523_v16, %v522_v15  ;;  %v524_v18 = vld [vmem:[%s5750_s1 + $0x50] sm:$0xff]  ;;  %v525_v19 = vld [vmem:[%s5750_s1 + $0x58] sm:$0xff]  ;;  %v526_v21 = vld [vmem:[%s5750_s1 + $0x60] sm:$0xff] }
   0x6   :  { %658 = vmatprep.mubr.f32.mxu0 %v15_v12  ;;  %783 = vmatprep.mubr.f32.mxu1 %v140_v14  ;;  %v2765_v20 = vpack.c.bf16 %v525_v19, %v524_v18  ;;  %v527_v22 = vld [vmem:[%s5750_s1 + $0x68] sm:$0xff]  ;;  %v528_v24 = vld [vmem:[%s5750_s1 + $0x70] sm:$0xff]  ;;  %v529_v25 = vld [vmem:[%s5750_s1 + $0x78] sm:$0xff] }
   0x7   :  { %v2768_v23 = vpack.c.bf16 %v527_v22, %v526_v21  ;;  %v2771_v26 = vpack.c.bf16 %v529_v25, %v528_v24  ;;  %v530_v27 = vld [vmem:[%s5750_s1 + $0x80] sm:$0xff]  ;;  %v531_v28 = vld [vmem:[%s5750_s1 + $0x88] sm:$0xff]  ;;  %v532_v30 = vld [vmem:[%s5750_s1 + $0x90] sm:$0xff] }
   0x8   :  { %2754 = vmatpush1.bf16.msra.mxu0 %v2753_v6  ;;  %2894 = vmatpush1.bf16.msra.mxu1 %v2753_v6  ;;  %v2774_v29 = vpack.c.bf16 %v531_v28, %v530_v27  ;;  %v533_v31 = vld [vmem:[%s5750_s1 + $0x98] sm:$0xff]  ;;  %v534_v33 = vld [vmem:[%s5750_s1 + $0xa0] sm:$0xff]  ;;  %v535_v34 = vld [vmem:[%s5750_s1 + $0xa8] sm:$0xff] }
   0x9   :  { %2755 = vmatprep.subr.bf16.mxu0 %v3035_v0  ;;  %2879 = vmatprep.subr.bf16.mxu1 %v3035_v0  ;;  %v2777_v32 = vpack.c.bf16 %v533_v31, %v532_v30  ;;  %v2780_v35 = vpack.c.bf16 %v535_v34, %v534_v33  ;;  %v536_v36 = vld [vmem:[%s5750_s1 + $0xb0] sm:$0xff]  ;;  %v537_v37 = vld [vmem:[%s5750_s1 + $0xb8] sm:$0xff]  ;;  %v538_v39 = vld [vmem:[%s5750_s1 + $0xc0] sm:$0xff] }
   0xa   :  { %v2783_v38 = vpack.c.bf16 %v537_v37, %v536_v36  ;;  %v539_v40 = vld [vmem:[%s5750_s1 + $0xc8] sm:$0xff]  ;;  %v540_v42 = vld [vmem:[%s5750_s1 + $0xd0] sm:$0xff]  ;;  %v541_v43 = vld [vmem:[%s5750_s1 + $0xd8] sm:$0xff] }
   0xb   :  { %v2786_v41 = vpack.c.bf16 %v539_v40, %v538_v39  ;;  %v2789_v44 = vpack.c.bf16 %v541_v43, %v540_v42  ;;  %v542_v45 = vld [vmem:[%s5750_s1 + $0xe0] sm:$0xff]  ;;  %v543_v46 = vld [vmem:[%s5750_s1 + $0xe8] sm:$0xff]  ;;  %v544_v48 = vld [vmem:[%s5750_s1 + $0xf0] sm:$0xff] }
   0xc   :  { %2757 = vmatpush1.bf16.msra.mxu0 %v2756_v9  ;;  %2895 = vmatpush1.bf16.msra.mxu1 %v2756_v9  ;;  %v2792_v47 = vpack.c.bf16 %v543_v46, %v542_v45  ;;  %v545_v49 = vld [vmem:[%s5750_s1 + $0xf8] sm:$0xff]  ;;  %v578_v50 = vld [vmem:[%s5750_s1 + $0x200] sm:$0xff]  ;;  %v579_v51 = vld [vmem:[%s5750_s1 + $0x208] sm:$0xff] }
   0xd   :  { %2758 = vmatprep.subr.bf16.mxu0 %v3035_v0  ;;  %2880 = vmatprep.subr.bf16.mxu1 %v3035_v0  ;;  %v2795_v52 = vpack.c.bf16 %v545_v49, %v544_v48  ;;  %v546_v53 = vld [vmem:[%s5750_s1 + $0x100] sm:$0xff]  ;;  %v547_v54 = vld [vmem:[%s5750_s1 + $0x108] sm:$0xff]  ;;  %v2845_v55 = vpack.c.bf16 %v579_v51, %v578_v50  ;;  %v580_v56 = vld [vmem:[%s5750_s1 + $0x210] sm:$0xff] }
   0xe   :  { %v581_v57 = vld [vmem:[%s5750_s1 + $0x218] sm:$0xff]  ;;  %v14_v58 = vld [vmem:[%s5751_s0] sm:$0xff]  ;;  %v139_v59 = vld [vmem:[%s5751_s0 + $0x3e8] sm:$0xff]  ;;  %v2798_v60 = vpack.c.bf16 %v547_v54, %v546_v53 }
   0xf   :  { %v20_v61 = vld [vmem:[%s5751_s0 + $0x30] sm:$0xff]  ;;  %v145_v62 = vld [vmem:[%s5751_s0 + $0x418] sm:$0xff]  ;;  %v2849_v2 = vpack.c.bf16 %v581_v57, %v580_v56  ;;  %v582_v3 = vld [vmem:[%s5750_s1 + $0x220] sm:$0xff] }
  0x10   :  { %2760 = vmatpush1.bf16.msra.mxu0 %v2759_v13  ;;  %2896 = vmatpush1.bf16.msra.mxu1 %v2759_v13  ;;  %v548_v63 = vld [vmem:[%s5750_s1 + $0x110] sm:$0xff]  ;;  %v549_v1 = vld [vmem:[%s5750_s1 + $0x118] sm:$0xff]  ;;  %v583_v4 = vld [vmem:[%s5750_s1 + $0x228] sm:$0xff] }
  0x11   :  { %2761 = vmatprep.subr.bf16.mxu0 %v3035_v0  ;;  %2881 = vmatprep.subr.bf16.mxu1 %v3035_v0  ;;  %v19_v5 = vld [vmem:[%s5751_s0 + $0x28] sm:$0xff]  ;;  %v144_v6 = vld [vmem:[%s5751_s0 + $0x410] sm:$0xff]  ;;  %v25_v7 = vld [vmem:[%s5751_s0 + $0x58] sm:$0xff]  ;;  %v2801_v9 = vpack.c.bf16 %v549_v1, %v548_v63  ;;  %v2853_v12 = vpack.c.bf16 %v583_v4, %v582_v3 }
  0x12   :  { %v150_v8 = vld [vmem:[%s5751_s0 + $0x440] sm:$0xff]  ;;  %v551_v11 = vld [vmem:[%s5750_s1 + $0x128] sm:$0xff]  ;;  %v584_v13 = vld [vmem:[%s5750_s1 + $0x230] sm:$0xff] }
  0x13   :  { %v550_v10 = vld [vmem:[%s5750_s1 + $0x120] sm:$0xff]  ;;  %v585_v14 = vld [vmem:[%s5750_s1 + $0x238] sm:$0xff]  ;;  %v24_v15 = vld [vmem:[%s5751_s0 + $0x50] sm:$0xff] }
  0x14   :  { %2763 = vmatpush1.bf16.msra.mxu0 %v2762_v17  ;;  %2897 = vmatpush1.bf16.msra.mxu1 %v2762_v17  ;;  %v149_v16 = vld [vmem:[%s5751_s0 + $0x438] sm:$0xff]  ;;  %v30_v17 = vld [vmem:[%s5751_s0 + $0x80] sm:$0xff]  ;;  %v155_v18 = vld [vmem:[%s5751_s0 + $0x468] sm:$0xff]  ;;  %v2804_v19 = vpack.c.bf16 %v551_v11, %v550_v10  ;;  %v2857_v22 = vpack.c.bf16 %v585_v14, %v584_v13 }
  0x15   :  { %2764 = vmatprep.subr.bf16.mxu0 %v3035_v0  ;;  %2882 = vmatprep.subr.bf16.mxu1 %v3035_v0  ;;  %v553_v21 = vld [vmem:[%s5750_s1 + $0x138] sm:$0xff]  ;;  %v154_v24 = vld [vmem:[%s5751_s0 + $0x460] sm:$0xff]  ;;  %v35_v25 = vld [vmem:[%s5751_s0 + $0xa8] sm:$0xff] }
  0x16   :  { %v554_v28 = vld [vmem:[%s5750_s1 + $0x140] sm:$0xff]  ;;  %v159_v31 = vld [vmem:[%s5751_s0 + $0x488] sm:$0xff]  ;;  %v165_v33 = vld [vmem:[%s5751_s0 + $0x4b8] sm:$0xff] }
  0x17   :  { %v34_v30 = vld [vmem:[%s5751_s0 + $0xa0] sm:$0xff]  ;;  %v557_v36 = vld [vmem:[%s5750_s1 + $0x158] sm:$0xff]  ;;  %v39_v37 = vld [vmem:[%s5751_s0 + $0xc8] sm:$0xff] }
  0x18   :  { %2766 = vmatpush1.bf16.msra.mxu0 %v2765_v20  ;;  %2898 = vmatpush1.bf16.msra.mxu1 %v2765_v20  ;;  %v552_v20 = vld [vmem:[%s5750_s1 + $0x130] sm:$0xff]  ;;  %v45_v39 = vld [vmem:[%s5751_s0 + $0xf8] sm:$0xff]  ;;  %v170_v40 = vld [vmem:[%s5751_s0 + $0x4e0] sm:$0xff] }
  0x19   :  { %2767 = vmatprep.subr.bf16.mxu0 %v3035_v0  ;;  %2883 = vmatprep.subr.bf16.mxu1 %v3035_v0  ;;  %v2807_v27 = vpack.c.bf16 %v553_v21, %v552_v20  ;;  %v558_v42 = vld [vmem:[%s5750_s1 + $0x160] sm:$0xff]  ;;  %v559_v43 = vld [vmem:[%s5750_s1 + $0x168] sm:$0xff]  ;;  %v169_v45 = vld [vmem:[%s5751_s0 + $0x4d8] sm:$0xff] }
  0x1a   :  { %v586_v46 = vld [vmem:[%s5750_s1 + $0x240] sm:$0xff]  ;;  %v175_v49 = vld [vmem:[%s5751_s0 + $0x508] sm:$0xff]  ;;  %v2816_v50 = vpack.c.bf16 %v559_v43, %v558_v42  ;;  %v561_v53 = vld [vmem:[%s5750_s1 + $0x178] sm:$0xff] }
  0x1b   :  { %v50_v48 = vld [vmem:[%s5751_s0 + $0x120] sm:$0xff]  ;;  %v49_v54 = vld [vmem:[%s5751_s0 + $0x118] sm:$0xff]  ;;  %v55_v56 = vld [vmem:[%s5751_s0 + $0x148] sm:$0xff] }
  0x1c   :  { %2769 = vmatpush1.bf16.msra.mxu0 %v2768_v23  ;;  %2899 = vmatpush1.bf16.msra.mxu1 %v2768_v23  ;;  %v29_v23 = vld [vmem:[%s5751_s0 + $0x78] sm:$0xff]  ;;  %v180_v57 = vld [vmem:[%s5751_s0 + $0x530] sm:$0xff]  ;;  %v566_v10 = vld [vmem:[%s5750_s1 + $0x1a0] sm:$0xff] }
  0x1d   :  { %2770 = vmatprep.subr.bf16.mxu0 %v3035_v0  ;;  %2884 = vmatprep.subr.bf16.mxu1 %v3035_v0  ;;  %v60_v63 = vld [vmem:[%s5751_s0 + $0x170] sm:$0xff]  ;;  %v185_v1 = vld [vmem:[%s5751_s0 + $0x558] sm:$0xff]  ;;  %v567_v11 = vld [vmem:[%s5750_s1 + $0x1a8] sm:$0xff] }
  0x1e   :  { %v564_v3 = vld [vmem:[%s5750_s1 + $0x190] sm:$0xff]  ;;  %v565_v4 = vld [vmem:[%s5750_s1 + $0x198] sm:$0xff]  ;;  %v70_v14 = vld [vmem:[%s5751_s0 + $0x1c0] sm:$0xff] }
  0x1f   :  { %v189_v13 = vld [vmem:[%s5751_s0 + $0x578] sm:$0xff]  ;;  %v194_v20 = vld [vmem:[%s5751_s0 + $0x5a0] sm:$0xff]  ;;  %v75_v21 = vld [vmem:[%s5751_s0 + $0x1e8] sm:$0xff] }
  0x20   :  { %2772 = vmatpush1.bf16.msra.mxu0 %v2771_v26  ;;  %2900 = vmatpush1.bf16.msra.mxu1 %v2771_v26  ;;  %v160_v26 = vld [vmem:[%s5751_s0 + $0x490] sm:$0xff]  ;;  %v90_v42 = vld [vmem:[%s5751_s0 + $0x260] sm:$0xff]  ;;  %v215_v43 = vld [vmem:[%s5751_s0 + $0x648] sm:$0xff] }
  0x21   :  { %2773 = vmatprep.subr.bf16.mxu0 %v3035_v0  ;;  %2885 = vmatprep.subr.bf16.mxu1 %v3035_v0 }
  0x24   :  { %2775 = vmatpush1.bf16.msra.mxu0 %v2774_v29  ;;  %2901 = vmatpush1.bf16.msra.mxu1 %v2774_v29  ;;  %v555_v29 = vld [vmem:[%s5750_s1 + $0x148] sm:$0xff] }
  0x25   :  { %2776 = vmatprep.subr.bf16.mxu0 %v3035_v0  ;;  %2886 = vmatprep.subr.bf16.mxu1 %v3035_v0  ;;  %v2810_v34 = vpack.c.bf16 %v555_v29, %v554_v28  ;;  %v80_v28 = vld [vmem:[%s5751_s0 + $0x210] sm:$0xff]  ;;  %v205_v29 = vld [vmem:[%s5751_s0 + $0x5f8] sm:$0xff] }
  0x28   :  { %2778 = vmatpush1.bf16.msra.mxu0 %v2777_v32  ;;  %2902 = vmatpush1.bf16.msra.mxu1 %v2777_v32  ;;  %v40_v32 = vld [vmem:[%s5751_s0 + $0xd0] sm:$0xff] }
  0x29   :  { %2779 = vmatprep.subr.bf16.mxu0 %v3035_v0  ;;  %2887 = vmatprep.subr.bf16.mxu1 %v3035_v0 }
  0x2c   :  { %2781 = vmatpush1.bf16.msra.mxu0 %v2780_v35  ;;  %2903 = vmatpush1.bf16.msra.mxu1 %v2780_v35  ;;  %v556_v35 = vld [vmem:[%s5750_s1 + $0x150] sm:$0xff] }
  0x2d   :  { %2782 = vmatprep.subr.bf16.mxu0 %v3035_v0  ;;  %2888 = vmatprep.subr.bf16.mxu1 %v3035_v0 }
  0x30   :  { %2784 = vmatpush1.bf16.msra.mxu0 %v2783_v38  ;;  %2904 = vmatpush1.bf16.msra.mxu1 %v2783_v38  ;;  %v164_v38 = vld [vmem:[%s5751_s0 + $0x4b0] sm:$0xff] }
  0x31   :  { %2785 = vmatprep.subr.bf16.mxu0 %v3035_v0  ;;  %2889 = vmatprep.subr.bf16.mxu1 %v3035_v0 }
  0x34   :  { %2787 = vmatpush1.bf16.msra.mxu0 %v2786_v41  ;;  %2905 = vmatpush1.bf16.msra.mxu1 %v2786_v41  ;;  %v2813_v41 = vpack.c.bf16 %v557_v36, %v556_v35  ;;  %v85_v35 = vld [vmem:[%s5751_s0 + $0x238] sm:$0xff]  ;;  %v210_v36 = vld [vmem:[%s5751_s0 + $0x620] sm:$0xff] }
  0x35   :  { %2788 = vmatprep.subr.bf16.mxu0 %v3035_v0  ;;  %2890 = vmatprep.subr.bf16.mxu1 %v3035_v0 }
  0x38   :  { %2790 = vmatpush1.bf16.msra.mxu0 %v2789_v44  ;;  %2906 = vmatpush1.bf16.msra.mxu1 %v2789_v44  ;;  %v44_v44 = vld [vmem:[%s5751_s0 + $0xf0] sm:$0xff] }
  0x39   :  { %2791 = vmatprep.subr.bf16.mxu0 %v3035_v0  ;;  %2891 = vmatprep.subr.bf16.mxu1 %v3035_v0 }
  0x3c   :  { %2793 = vmatpush1.bf16.msra.mxu0 %v2792_v47  ;;  %2907 = vmatpush1.bf16.msra.mxu1 %v2792_v47  ;;  %v587_v47 = vld [vmem:[%s5750_s1 + $0x248] sm:$0xff] }
  0x3d   :  { %2794 = vmatprep.subr.bf16.mxu0 %v3035_v0  ;;  %2892 = vmatprep.subr.bf16.mxu1 %v3035_v0  ;;  %v2861_v51 = vpack.c.bf16 %v587_v47, %v586_v46  ;;  %v577_v46 = vld [vmem:[%s5750_s1 + $0x1f8] sm:$0xff] }
  0x3e   :  { %v89_v47 = vld [vmem:[%s5751_s0 + $0x258] sm:$0xff] }
  0x40   :  { %2796 = vmatpush1.bf16.msra.mxu0 %v2795_v52  ;;  %2908 = vmatpush1.bf16.msra.mxu1 %v2795_v52  ;;  %v560_v52 = vld [vmem:[%s5750_s1 + $0x170] sm:$0xff] }
  0x41   :  { %2797 = vmatprep.subr.bf16.mxu0 %v3035_v0  ;;  %2846 = vmatprep.subr.bf16.mxu1 %v2845_v55 }
  0x43   :  { %659 = vmatmul.mubr.f32.vlgmr.msra.gmra.mrb[0].mxu0 %v14_v58  ;;  %784 = vmatmul.mubr.f32.vlgmr.msra.gmra.mrb[0].mxu1 %v139_v59  ;;  %v2819_v58 = vpack.c.bf16 %v561_v53, %v560_v52  ;;  %v562_v59 = vld [vmem:[%s5750_s1 + $0x180] sm:$0xff]  ;;  %v588_v52 = vld [vmem:[%s5750_s1 + $0x250] sm:$0xff]  ;;  %v589_v53 = vld [vmem:[%s5750_s1 + $0x258] sm:$0xff] }
  0x44   :  { %2799 = vmatpush1.bf16.msra.mxu0 %v2798_v60  ;;  %2848 = vmatpush3.bf16.msra.mxu1 %v2845_v55  ;;  %v174_v55 = vld [vmem:[%s5751_s0 + $0x500] sm:$0xff]  ;;  %v563_v60 = vld [vmem:[%s5750_s1 + $0x188] sm:$0xff] }
  0x45   :  { %663 = vmatprep.mubr.f32.mxu0 %v20_v61  ;;  %788 = vmatprep.mubr.f32.mxu1 %v145_v62  ;;  %v54_v61 = vld [vmem:[%s5751_s0 + $0x140] sm:$0xff]  ;;  %v179_v62 = vld [vmem:[%s5751_s0 + $0x528] sm:$0xff] }
  0x46   :  { %2800 = vmatprep.subr.bf16.mxu0 %v3035_v0  ;;  %2850 = vmatprep.subr.bf16.mxu1 %v2849_v2 }
  0x47   :  { %664 = vmatmul.mubr.f32.gmra.mrb[2].mxu0 %v19_v5  ;;  %789 = vmatmul.mubr.f32.gmra.mrb[2].mxu1 %v144_v6  ;;  %v59_v5 = vld [vmem:[%s5751_s0 + $0x168] sm:$0xff]  ;;  %v184_v6 = vld [vmem:[%s5751_s0 + $0x550] sm:$0xff] }
  0x48   :  { %668 = vmatprep.mubr.f32.mxu0 %v25_v7  ;;  %793 = vmatprep.mubr.f32.mxu1 %v150_v8  ;;  %v65_v7 = vld [vmem:[%s5751_s0 + $0x198] sm:$0xff]  ;;  %v190_v8 = vld [vmem:[%s5751_s0 + $0x580] sm:$0xff] }
  0x49   :  { %2802 = vmatpush1.bf16.msra.mxu0 %v2801_v9  ;;  %2852 = vmatpush3.bf16.msra.mxu1 %v2849_v2  ;;  %v2822_v2 = vpack.c.bf16 %v563_v60, %v562_v59  ;;  %v2825_v9 = vpack.c.bf16 %v565_v4, %v564_v3  ;;  %v224_v59 = vld [vmem:[%s5751_s0 + $0x690] sm:$0xff]  ;;  %v105_v60 = vld [vmem:[%s5751_s0 + $0x2d8] sm:$0xff]  ;;  %v234_v4 = vld [vmem:[%s5751_s0 + $0x6e0] sm:$0xff] }
  0x4a   :  { %2803 = vmatprep.subr.bf16.mxu0 %v3035_v0  ;;  %2854 = vmatprep.subr.bf16.mxu1 %v2853_v12  ;;  %v109_v3 = vld [vmem:[%s5751_s0 + $0x2f8] sm:$0xff] }
  0x4b   :  { %669 = vmatmul.mubr.f32.gmra.mrb[4].mxu0 %v24_v15  ;;  %794 = vmatmul.mubr.f32.gmra.mrb[4].mxu1 %v149_v16  ;;  %v195_v15 = vld [vmem:[%s5751_s0 + $0x5a8] sm:$0xff]  ;;  %v2828_v16 = vpack.c.bf16 %v567_v11, %v566_v10  ;;  %v245_v10 = vld [vmem:[%s5751_s0 + $0x738] sm:$0xff] }
  0x4c   :  { %673 = vmatprep.mubr.f32.mxu0 %v30_v17  ;;  %798 = vmatprep.mubr.f32.mxu1 %v155_v18  ;;  %v568_v17 = vld [vmem:[%s5750_s1 + $0x1b0] sm:$0xff]  ;;  %v569_v18 = vld [vmem:[%s5750_s1 + $0x1b8] sm:$0xff]  ;;  %v119_v11 = vld [vmem:[%s5751_s0 + $0x348] sm:$0xff] }
  0x4d   :  { %2805 = vmatpush1.bf16.msra.mxu0 %v2804_v19  ;;  %2856 = vmatpush3.bf16.msra.mxu1 %v2853_v12  ;;  %v64_v12 = vld [vmem:[%s5751_s0 + $0x190] sm:$0xff]  ;;  %v69_v19 = vld [vmem:[%s5751_s0 + $0x1b8] sm:$0xff] }
  0x4e   :  { %2806 = vmatprep.subr.bf16.mxu0 %v3035_v0  ;;  %2858 = vmatprep.subr.bf16.mxu1 %v2857_v22 }
  0x4f   :  { %674 = vmatmul.mubr.f32.gmra.mrb[6].mxu0 %v29_v23  ;;  %799 = vmatmul.mubr.f32.gmra.mrb[6].mxu1 %v154_v24  ;;  %v2831_v23 = vpack.c.bf16 %v569_v18, %v568_v17  ;;  %v570_v24 = vld [vmem:[%s5750_s1 + $0x1c0] sm:$0xff]  ;;  %v255_v18 = vld [vmem:[%s5751_s0 + $0x788] sm:$0xff] }
  0x50   :  { %678 = vmatprep.mubr.f32.mxu0 %v35_v25  ;;  %803 = vmatprep.mubr.f32.mxu1 %v160_v26  ;;  %v571_v25 = vld [vmem:[%s5750_s1 + $0x1c8] sm:$0xff]  ;;  %v74_v26 = vld [vmem:[%s5751_s0 + $0x1e0] sm:$0xff] }
  0x51   :  { %2808 = vmatpush1.bf16.msra.mxu0 %v2807_v27  ;;  %2860 = vmatpush3.bf16.msra.mxu1 %v2857_v22  ;;  %v200_v22 = vld [vmem:[%s5751_s0 + $0x5d0] sm:$0xff]  ;;  %v199_v27 = vld [vmem:[%s5751_s0 + $0x5c8] sm:$0xff]  ;;  %v130_v17 = vld [vmem:[%s5751_s0 + $0x3a0] sm:$0xff] }
  0x52   :  { %2809 = vmatprep.subr.bf16.mxu0 %v3035_v0  ;;  %2862 = vmatprep.subr.bf16.mxu1 %v2861_v51 }
  0x53   :  { %679 = vmatmul.mubr.f32.gmra.mrb[8].mxu0 %v34_v30  ;;  %804 = vmatmul.mubr.f32.gmra.mrb[8].mxu1 %v159_v31  ;;  %v2834_v30 = vpack.c.bf16 %v571_v25, %v570_v24  ;;  %v572_v31 = vld [vmem:[%s5750_s1 + $0x1d0] sm:$0xff]  ;;  %v259_v24 = vld [vmem:[%s5751_s0 + $0x7a8] sm:$0xff]  ;;  %v265_v25 = vld [vmem:[%s5751_s0 + $0x7d8] sm:$0xff] }
  0x54   :  { %683 = vmatprep.mubr.f32.mxu0 %v40_v32  ;;  %808 = vmatprep.mubr.f32.mxu1 %v165_v33  ;;  %v573_v32 = vld [vmem:[%s5750_s1 + $0x1d8] sm:$0xff]  ;;  %v79_v33 = vld [vmem:[%s5751_s0 + $0x208] sm:$0xff] }
  0x55   :  { %2811 = vmatpush1.bf16.msra.mxu0 %v2810_v34  ;;  %2864 = vmatpush3.bf16.msra.mxu1 %v2861_v51  ;;  %v204_v34 = vld [vmem:[%s5751_s0 + $0x5f0] sm:$0xff] }
  0x56   :  { %2812 = vmatprep.subr.bf16.mxu0 %v3035_v0 }
  0x57   :  { %684 = vmatmul.mubr.f32.gmra.mrb[10].mxu0 %v39_v37  ;;  %809 = vmatmul.mubr.f32.gmra.mrb[10].mxu1 %v164_v38  ;;  %v2837_v37 = vpack.c.bf16 %v573_v32, %v572_v31  ;;  %v574_v38 = vld [vmem:[%s5750_s1 + $0x1e0] sm:$0xff] }
  0x58   :  { %688 = vmatprep.mubr.f32.mxu0 %v45_v39  ;;  %813 = vmatprep.mubr.f32.mxu1 %v170_v40  ;;  %v575_v39 = vld [vmem:[%s5750_s1 + $0x1e8] sm:$0xff]  ;;  %v84_v40 = vld [vmem:[%s5751_s0 + $0x230] sm:$0xff]  ;;  %v270_v32 = vld [vmem:[%s5751_s0 + $0x800] sm:$0xff] }
  0x59   :  { %2814 = vmatpush1.bf16.msra.mxu0 %v2813_v41  ;;  %v209_v41 = vld [vmem:[%s5751_s0 + $0x618] sm:$0xff] }
  0x5a   :  { %2815 = vmatprep.subr.bf16.mxu0 %v3035_v0 }
  0x5b   :  { %689 = vmatmul.mubr.f32.gmra.mrb[12].mxu0 %v44_v44  ;;  %814 = vmatmul.mubr.f32.gmra.mrb[12].mxu1 %v169_v45  ;;  %v2840_v44 = vpack.c.bf16 %v575_v39, %v574_v38  ;;  %v576_v45 = vld [vmem:[%s5750_s1 + $0x1f0] sm:$0xff]  ;;  %v274_v38 = vld [vmem:[%s5751_s0 + $0x820] sm:$0xff] }
  0x5c   :  { %693 = vmatprep.mubr.f32.mxu0 %v50_v48  ;;  %818 = vmatprep.mubr.f32.mxu1 %v175_v49  ;;  %v214_v48 = vld [vmem:[%s5751_s0 + $0x640] sm:$0xff]  ;;  %v95_v49 = vld [vmem:[%s5751_s0 + $0x288] sm:$0xff]  ;;  %v2843_v51 = vpack.c.bf16 %v577_v46, %v576_v45  ;;  %v37_v45 = vld [vmem:[%s5751_s0 + $0xb8] sm:$0xff] }
  0x5d   :  { %2817 = vmatpush1.bf16.msra.mxu0 %v2816_v50  ;;  %v220_v50 = vld [vmem:[%s5751_s0 + $0x670] sm:$0xff]  ;;  %v26_v39 = vld [vmem:[%s5751_s0 + $0x60] sm:$0xff] }
  0x5e   :  { %2818 = vmatprep.subr.bf16.mxu0 %v3035_v0  ;;  %v284_v46 = vld [vmem:[%s5751_s0 + $0x870] sm:$0xff] }
  0x5f   :  { %694 = vmatmul.mubr.f32.gmra.mrb[14].mxu0 %v49_v54  ;;  %819 = vmatmul.mubr.f32.gmra.mrb[14].mxu1 %v174_v55  ;;  %v94_v54 = vld [vmem:[%s5751_s0 + $0x280] sm:$0xff]  ;;  %v2865_v55 = vpack.c.bf16 %v589_v53, %v588_v52  ;;  %v295_v52 = vld [vmem:[%s5751_s0 + $0x8c8] sm:$0xff] }
  0x60   :  { %698 = vmatprep.mubr.f32.mxu0 %v55_v56  ;;  %823 = vmatprep.mubr.f32.mxu1 %v180_v57  ;;  %v100_v56 = vld [vmem:[%s5751_s0 + $0x2b0] sm:$0xff]  ;;  %v225_v57 = vld [vmem:[%s5751_s0 + $0x698] sm:$0xff]  ;;  %v47_v53 = vld [vmem:[%s5751_s0 + $0x108] sm:$0xff] }
  0x61   :  { %2820 = vmatpush1.bf16.msra.mxu0 %v2819_v58  ;;  %2866 = vmatprep.subr.bf16.mxu1 %v2865_v55  ;;  %v99_v58 = vld [vmem:[%s5751_s0 + $0x2a8] sm:$0xff] }
  0x62   :  { %2821 = vmatprep.subr.bf16.mxu0 %v3035_v0  ;;  %2868 = vmatpush3.bf16.msra.mxu1 %v2865_v55  ;;  %v300_v55 = vld [vmem:[%s5751_s0 + $0x8f0] sm:$0xff] }
  0x63   :  { %699 = vmatmul.mubr.f32.gmra.mrb[16].mxu0 %v54_v61  ;;  %824 = vmatmul.mubr.f32.gmra.mrb[16].mxu1 %v179_v62  ;;  %v230_v61 = vld [vmem:[%s5751_s0 + $0x6c0] sm:$0xff]  ;;  %v104_v62 = vld [vmem:[%s5751_s0 + $0x2d0] sm:$0xff] }
  0x64   :  { %703 = vmatprep.mubr.f32.mxu0 %v60_v63  ;;  %828 = vmatprep.mubr.f32.mxu1 %v185_v1  ;;  %v229_v63 = vld [vmem:[%s5751_s0 + $0x6b8] sm:$0xff]  ;;  %v110_v1 = vld [vmem:[%s5751_s0 + $0x300] sm:$0xff] }
  0x65   :  { %2823 = vmatpush1.bf16.msra.mxu0 %v2822_v2  ;;  %v235_v2 = vld [vmem:[%s5751_s0 + $0x6e8] sm:$0xff] }
  0x66   :  { %2824 = vmatprep.subr.bf16.mxu0 %v3035_v0 }
  0x67   :  { %704 = vmatmul.mubr.f32.gmra.mrb[18].mxu0 %v59_v5  ;;  %829 = vmatmul.mubr.f32.gmra.mrb[18].mxu1 %v184_v6  ;;  %v115_v5 = vld [vmem:[%s5751_s0 + $0x328] sm:$0xff]  ;;  %v240_v6 = vld [vmem:[%s5751_s0 + $0x710] sm:$0xff] }
  0x68   :  { %708 = vmatprep.mubr.f32.mxu0 %v65_v7  ;;  %833 = vmatprep.mubr.f32.mxu1 %v190_v8  ;;  %v114_v7 = vld [vmem:[%s5751_s0 + $0x320] sm:$0xff]  ;;  %v239_v8 = vld [vmem:[%s5751_s0 + $0x708] sm:$0xff] }
  0x69   :  { %2826 = vmatpush1.bf16.msra.mxu0 %v2825_v9  ;;  %v120_v9 = vld [vmem:[%s5751_s0 + $0x350] sm:$0xff] }
  0x6a   :  { %2827 = vmatprep.subr.bf16.mxu0 %v3035_v0 }
  0x6b   :  { %709 = vmatmul.mubr.f32.gmra.mrb[20].mxu0 %v64_v12  ;;  %834 = vmatmul.mubr.f32.gmra.mrb[20].mxu1 %v189_v13  ;;  %v244_v12 = vld [vmem:[%s5751_s0 + $0x730] sm:$0xff]  ;;  %v125_v13 = vld [vmem:[%s5751_s0 + $0x378] sm:$0xff] }
  0x6c   :  { %713 = vmatprep.mubr.f32.mxu0 %v70_v14  ;;  %838 = vmatprep.mubr.f32.mxu1 %v195_v15  ;;  %v250_v14 = vld [vmem:[%s5751_s0 + $0x760] sm:$0xff]  ;;  %v124_v15 = vld [vmem:[%s5751_s0 + $0x370] sm:$0xff] }
  0x6d   :  { %2829 = vmatpush1.bf16.msra.mxu0 %v2828_v16  ;;  %v249_v16 = vld [vmem:[%s5751_s0 + $0x758] sm:$0xff] }
  0x6e   :  { %2830 = vmatprep.subr.bf16.mxu0 %v3035_v0 }
  0x6f   :  { %714 = vmatmul.mubr.f32.gmra.mrb[22].mxu0 %v69_v19  ;;  %839 = vmatmul.mubr.f32.gmra.mrb[22].mxu1 %v194_v20  ;;  %v129_v19 = vld [vmem:[%s5751_s0 + $0x398] sm:$0xff]  ;;  %v254_v20 = vld [vmem:[%s5751_s0 + $0x780] sm:$0xff] }
  0x70   :  { %718 = vmatprep.mubr.f32.mxu0 %v75_v21  ;;  %843 = vmatprep.mubr.f32.mxu1 %v200_v22  ;;  %v135_v21 = vld [vmem:[%s5751_s0 + $0x3c8] sm:$0xff]  ;;  %v260_v22 = vld [vmem:[%s5751_s0 + $0x7b0] sm:$0xff] }
  0x71   :  { %2832 = vmatpush1.bf16.msra.mxu0 %v2831_v23  ;;  %v134_v23 = vld [vmem:[%s5751_s0 + $0x3c0] sm:$0xff] }
  0x72   :  { %2833 = vmatprep.subr.bf16.mxu0 %v3035_v0 }
  0x73   :  { %719 = vmatmul.mubr.f32.gmra.mrb[24].mxu0 %v74_v26  ;;  %844 = vmatmul.mubr.f32.gmra.mrb[24].mxu1 %v199_v27  ;;  %v17_v26 = vld [vmem:[%s5751_s0 + $0x18] sm:$0xff]  ;;  %v590_v27 = vld [vmem:[%s5750_s1 + $0x260] sm:$0xff] }
  0x74   :  { %723 = vmatprep.mubr.f32.mxu0 %v80_v28  ;;  %848 = vmatprep.mubr.f32.mxu1 %v205_v29  ;;  %v591_v28 = vld [vmem:[%s5750_s1 + $0x268] sm:$0xff]  ;;  %v264_v29 = vld [vmem:[%s5751_s0 + $0x7d0] sm:$0xff] }
  0x75   :  { %2835 = vmatpush1.bf16.msra.mxu0 %v2834_v30  ;;  %v16_v30 = vld [vmem:[%s5751_s0 + $0x10] sm:$0xff]  ;;  %v2869_v31 = vpack.c.bf16 %v591_v28, %v590_v27 }
  0x76   :  { %2836 = vmatprep.subr.bf16.mxu0 %v3035_v0  ;;  %v340_v27 = vld [vmem:[%s5751_s0 + $0xa30] sm:$0xff] }
  0x77   :  { %724 = vmatmul.mubr.f32.gmra.mrb[26].mxu0 %v79_v33  ;;  %849 = vmatmul.mubr.f32.gmra.mrb[26].mxu1 %v204_v34  ;;  %v22_v33 = vld [vmem:[%s5751_s0 + $0x40] sm:$0xff]  ;;  %v269_v34 = vld [vmem:[%s5751_s0 + $0x7f8] sm:$0xff]  ;;  %v92_v28 = vld [vmem:[%s5751_s0 + $0x270] sm:$0xff] }
  0x78   :  { %728 = vmatprep.mubr.f32.mxu0 %v85_v35  ;;  %853 = vmatprep.mubr.f32.mxu1 %v210_v36  ;;  %v21_v35 = vld [vmem:[%s5751_s0 + $0x38] sm:$0xff]  ;;  %v275_v36 = vld [vmem:[%s5751_s0 + $0x828] sm:$0xff] }
  0x79   :  { %2838 = vmatpush1.bf16.msra.mxu0 %v2837_v37  ;;  %2870 = vmatprep.subr.bf16.mxu1 %v2869_v31  ;;  %v27_v37 = vld [vmem:[%s5751_s0 + $0x68] sm:$0xff] }
  0x7a   :  { %2839 = vmatprep.subr.bf16.mxu0 %v3035_v0  ;;  %2872 = vmatpush3.bf16.msra.mxu1 %v2869_v31  ;;  %v345_v31 = vld [vmem:[%s5751_s0 + $0xa58] sm:$0xff] }
  0x7b   :  { %729 = vmatmul.mubr.f32.gmra.mrb[28].mxu0 %v84_v40  ;;  %854 = vmatmul.mubr.f32.gmra.mrb[28].mxu1 %v209_v41  ;;  %v280_v40 = vld [vmem:[%s5751_s0 + $0x850] sm:$0xff] }
  0x7c   :  { %733 = vmatprep.mubr.f32.mxu0 %v90_v42  ;;  %858 = vmatprep.mubr.f32.mxu1 %v215_v43  ;;  %v32_v41 = vld [vmem:[%s5751_s0 + $0x90] sm:$0xff]  ;;  %v279_v42 = vld [vmem:[%s5751_s0 + $0x848] sm:$0xff] }
  0x7d   :  { %2841 = vmatpush1.bf16.msra.mxu0 %v2840_v44  ;;  %v31_v43 = vld [vmem:[%s5751_s0 + $0x88] sm:$0xff]  ;;  %v285_v44 = vld [vmem:[%s5751_s0 + $0x878] sm:$0xff] }
  0x7e   :  { %2842 = vmatprep.subr.bf16.mxu0 %v3035_v0  ;;  %v219_v0 = vld [vmem:[%s5751_s0 + $0x668] sm:$0xff] }
  0x7f   :  { %734 = vmatmul.mubr.f32.gmra.mrb[30].mxu0 %v89_v47  ;;  %859 = vmatmul.mubr.f32.gmra.mrb[30].mxu1 %v214_v48  ;;  %v36_v47 = vld [vmem:[%s5751_s0 + $0xb0] sm:$0xff]  ;;  %v290_v48 = vld [vmem:[%s5751_s0 + $0x8a0] sm:$0xff] }
  0x80   :  { %738 = vmatprep.mubr.f32.mxu0 %v95_v49  ;;  %863 = vmatprep.mubr.f32.mxu1 %v220_v50  ;;  %v42_v49 = vld [vmem:[%s5751_s0 + $0xe0] sm:$0xff]  ;;  %v289_v50 = vld [vmem:[%s5751_s0 + $0x898] sm:$0xff] }
  0x81   :  { %2844 = vmatpush1.bf16.msra.mxu0 %v2843_v51  ;;  %v41_v51 = vld [vmem:[%s5751_s0 + $0xd8] sm:$0xff] }
  0x83   :  { %739 = vmatmul.mubr.f32.gmra.mrb[32].mxu0 %v94_v54  ;;  %864 = vmatmul.mubr.f32.gmra.mrb[32].mxu1 %v219_v0  ;;  %v294_v54 = vld [vmem:[%s5751_s0 + $0x8c0] sm:$0xff] }
  0x84   :  { %743 = vmatprep.mubr.f32.mxu0 %v100_v56  ;;  %868 = vmatprep.mubr.f32.mxu1 %v225_v57  ;;  %v46_v0 = vld [vmem:[%s5751_s0 + $0x100] sm:$0xff]  ;;  %v52_v56 = vld [vmem:[%s5751_s0 + $0x130] sm:$0xff]  ;;  %v299_v57 = vld [vmem:[%s5751_s0 + $0x8e8] sm:$0xff] }
  0x87   :  { %744 = vmatmul.mubr.f32.gmra.mrb[34].mxu0 %v99_v58  ;;  %869 = vmatmul.mubr.f32.gmra.mrb[34].mxu1 %v224_v59  ;;  %v51_v58 = vld [vmem:[%s5751_s0 + $0x128] sm:$0xff]  ;;  %v305_v59 = vld [vmem:[%s5751_s0 + $0x918] sm:$0xff] }
  0x88   :  { %748 = vmatprep.mubr.f32.mxu0 %v105_v60  ;;  %873 = vmatprep.mubr.f32.mxu1 %v230_v61  ;;  %v57_v60 = vld [vmem:[%s5751_s0 + $0x158] sm:$0xff]  ;;  %v304_v61 = vld [vmem:[%s5751_s0 + $0x910] sm:$0xff] }
  0x8b   :  { %749 = vmatmul.mubr.f32.gmra.mrb[36].mxu0 %v104_v62  ;;  %874 = vmatmul.mubr.f32.gmra.mrb[36].mxu1 %v229_v63  ;;  %v56_v62 = vld [vmem:[%s5751_s0 + $0x150] sm:$0xff]  ;;  %v310_v63 = vld [vmem:[%s5751_s0 + $0x940] sm:$0xff] }
  0x8c   :  { %753 = vmatprep.mubr.f32.mxu0 %v110_v1  ;;  %878 = vmatprep.mubr.f32.mxu1 %v235_v2  ;;  %v62_v1 = vld [vmem:[%s5751_s0 + $0x180] sm:$0xff]  ;;  %v309_v2 = vld [vmem:[%s5751_s0 + $0x938] sm:$0xff] }
  0x8f   :  { %754 = vmatmul.mubr.f32.gmra.mrb[38].mxu0 %v109_v3  ;;  %879 = vmatmul.mubr.f32.gmra.mrb[38].mxu1 %v234_v4  ;;  %v61_v3 = vld [vmem:[%s5751_s0 + $0x178] sm:$0xff]  ;;  %v315_v4 = vld [vmem:[%s5751_s0 + $0x968] sm:$0xff] }
  0x90   :  { %758 = vmatprep.mubr.f32.mxu0 %v115_v5  ;;  %883 = vmatprep.mubr.f32.mxu1 %v240_v6  ;;  %v67_v5 = vld [vmem:[%s5751_s0 + $0x1a8] sm:$0xff]  ;;  %v592_v6 = vld [vmem:[%s5750_s1 + $0x270] sm:$0xff] }
  0x93   :  { %759 = vmatmul.mubr.f32.gmra.mrb[40].mxu0 %v114_v7  ;;  %884 = vmatmul.mubr.f32.gmra.mrb[40].mxu1 %v239_v8  ;;  %v593_v7 = vld [vmem:[%s5750_s1 + $0x278] sm:$0xff]  ;;  %v314_v8 = vld [vmem:[%s5751_s0 + $0x960] sm:$0xff] }
  0x94   :  { %763 = vmatprep.mubr.f32.mxu0 %v120_v9  ;;  %888 = vmatprep.mubr.f32.mxu1 %v245_v10  ;;  %v66_v9 = vld [vmem:[%s5751_s0 + $0x1a0] sm:$0xff]  ;;  %v2873_v10 = vpack.c.bf16 %v593_v7, %v592_v6  ;;  %v141_v6 = vld [vmem:[%s5751_s0 + $0x3f8] sm:$0xff]  ;;  %v395_v7 = vld [vmem:[%s5751_s0 + $0xbe8] sm:$0xff] }
  0x96   :  { %2874 = vmatprep.subr.bf16.mxu1 %v2873_v10 }
  0x97   :  { %764 = vmatmul.mubr.f32.gmra.mrb[42].mxu0 %v119_v11  ;;  %889 = vmatmul.mubr.f32.gmra.mrb[42].mxu1 %v244_v12  ;;  %v320_v11 = vld [vmem:[%s5751_s0 + $0x990] sm:$0xff] }
  0x98   :  { %768 = vmatprep.mubr.f32.mxu0 %v125_v13  ;;  %893 = vmatprep.mubr.f32.mxu1 %v250_v14  ;;  %v72_v12 = vld [vmem:[%s5751_s0 + $0x1d0] sm:$0xff]  ;;  %v319_v13 = vld [vmem:[%s5751_s0 + $0x988] sm:$0xff] }
  0x99   :  { %v71_v14 = vld [vmem:[%s5751_s0 + $0x1c8] sm:$0xff]  ;;  %2876 = vmatpush3.bf16.msra.mxu1 %v2873_v10  ;;  %v146_v10 = vld [vmem:[%s5751_s0 + $0x420] sm:$0xff] }
  0x9b   :  { %769 = vmatmul.mubr.f32.gmra.mrb[44].mxu0 %v124_v15  ;;  %894 = vmatmul.mubr.f32.gmra.mrb[44].mxu1 %v249_v16  ;;  %v325_v15 = vld [vmem:[%s5751_s0 + $0x9b8] sm:$0xff] }
  0x9c   :  { %773 = vmatprep.mubr.f32.mxu0 %v130_v17  ;;  %898 = vmatprep.mubr.f32.mxu1 %v255_v18  ;;  %v77_v16 = vld [vmem:[%s5751_s0 + $0x1f8] sm:$0xff]  ;;  %v324_v17 = vld [vmem:[%s5751_s0 + $0x9b0] sm:$0xff] }
  0x9d   :  { %v76_v18 = vld [vmem:[%s5751_s0 + $0x1f0] sm:$0xff] }
  0x9f   :  { %774 = vmatmul.mubr.f32.gmra.mrb[46].mxu0 %v129_v19  ;;  %899 = vmatmul.mubr.f32.gmra.mrb[46].mxu1 %v254_v20  ;;  %v330_v19 = vld [vmem:[%s5751_s0 + $0x9e0] sm:$0xff] }
  0xa0   :  { %778 = vmatprep.mubr.f32.mxu0 %v135_v21  ;;  %903 = vmatprep.mubr.f32.mxu1 %v260_v22  ;;  %v82_v20 = vld [vmem:[%s5751_s0 + $0x220] sm:$0xff]  ;;  %v329_v21 = vld [vmem:[%s5751_s0 + $0x9d8] sm:$0xff] }
  0xa1   :  { %v81_v22 = vld [vmem:[%s5751_s0 + $0x218] sm:$0xff] }
  0xa3   :  { %779 = vmatmul.mubr.f32.gmra.mrb[48].mxu0 %v134_v23  ;;  %904 = vmatmul.mubr.f32.gmra.mrb[48].mxu1 %v259_v24  ;;  %v335_v23 = vld [vmem:[%s5751_s0 + $0xa08] sm:$0xff] }
  0xa4   :  { %908 = vmatprep.mubr.f32.mxu1 %v265_v25  ;;  %1223 = vmatprep.mubr.f32.mxu0 %v17_v26  ;;  %v87_v24 = vld [vmem:[%s5751_s0 + $0x248] sm:$0xff]  ;;  %v334_v25 = vld [vmem:[%s5751_s0 + $0xa00] sm:$0xff] }
  0xa5   :  { %v86_v26 = vld [vmem:[%s5751_s0 + $0x240] sm:$0xff] }
  0xa7   :  { %909 = vmatmul.mubr.f32.gmra.mrb[50].mxu1 %v264_v29  ;;  %1224 = vmatmul.mubr.f32.vlgmr.msra.gmra.mrb[0].mxu0 %v16_v30  ;;  %v339_v29 = vld [vmem:[%s5751_s0 + $0xa28] sm:$0xff] }
  0xa8   :  { %913 = vmatprep.mubr.f32.mxu1 %v270_v32  ;;  %1228 = vmatprep.mubr.f32.mxu0 %v22_v33  ;;  %v91_v30 = vld [vmem:[%s5751_s0 + $0x268] sm:$0xff]  ;;  %v97_v32 = vld [vmem:[%s5751_s0 + $0x298] sm:$0xff]  ;;  %v344_v33 = vld [vmem:[%s5751_s0 + $0xa50] sm:$0xff] }
  0xab   :  { %914 = vmatmul.mubr.f32.gmra.mrb[52].mxu1 %v269_v34  ;;  %1229 = vmatmul.mubr.f32.gmra.mrb[2].mxu0 %v21_v35  ;;  %v96_v34 = vld [vmem:[%s5751_s0 + $0x290] sm:$0xff]  ;;  %v350_v35 = vld [vmem:[%s5751_s0 + $0xa80] sm:$0xff] }
  0xac   :  { %918 = vmatprep.mubr.f32.mxu1 %v275_v36  ;;  %1233 = vmatprep.mubr.f32.mxu0 %v27_v37  ;;  %v102_v36 = vld [vmem:[%s5751_s0 + $0x2c0] sm:$0xff]  ;;  %v349_v37 = vld [vmem:[%s5751_s0 + $0xa78] sm:$0xff] }
  0xaf   :  { %919 = vmatmul.mubr.f32.gmra.mrb[54].mxu1 %v274_v38  ;;  %1234 = vmatmul.mubr.f32.gmra.mrb[4].mxu0 %v26_v39  ;;  %v101_v38 = vld [vmem:[%s5751_s0 + $0x2b8] sm:$0xff]  ;;  %v355_v39 = vld [vmem:[%s5751_s0 + $0xaa8] sm:$0xff] }
  0xb0   :  { %923 = vmatprep.mubr.f32.mxu1 %v280_v40  ;;  %1238 = vmatprep.mubr.f32.mxu0 %v32_v41  ;;  %v107_v40 = vld [vmem:[%s5751_s0 + $0x2e8] sm:$0xff]  ;;  %v354_v41 = vld [vmem:[%s5751_s0 + $0xaa0] sm:$0xff] }
  0xb3   :  { %924 = vmatmul.mubr.f32.gmra.mrb[56].mxu1 %v279_v42  ;;  %1239 = vmatmul.mubr.f32.gmra.mrb[6].mxu0 %v31_v43  ;;  %v106_v42 = vld [vmem:[%s5751_s0 + $0x2e0] sm:$0xff]  ;;  %v360_v43 = vld [vmem:[%s5751_s0 + $0xad0] sm:$0xff] }
  0xb4   :  { %928 = vmatprep.mubr.f32.mxu1 %v285_v44  ;;  %1243 = vmatprep.mubr.f32.mxu0 %v37_v45  ;;  %v112_v44 = vld [vmem:[%s5751_s0 + $0x310] sm:$0xff]  ;;  %v359_v45 = vld [vmem:[%s5751_s0 + $0xac8] sm:$0xff] }
  0xb7   :  { %929 = vmatmul.mubr.f32.gmra.mrb[58].mxu1 %v284_v46  ;;  %1244 = vmatmul.mubr.f32.gmra.mrb[8].mxu0 %v36_v47  ;;  %v111_v46 = vld [vmem:[%s5751_s0 + $0x308] sm:$0xff]  ;;  %v365_v47 = vld [vmem:[%s5751_s0 + $0xaf8] sm:$0xff] }
  0xb8   :  { %933 = vmatprep.mubr.f32.mxu1 %v290_v48  ;;  %1248 = vmatprep.mubr.f32.mxu0 %v42_v49  ;;  %v117_v48 = vld [vmem:[%s5751_s0 + $0x338] sm:$0xff]  ;;  %v364_v49 = vld [vmem:[%s5751_s0 + $0xaf0] sm:$0xff] }
  0xbb   :  { %934 = vmatmul.mubr.f32.gmra.mrb[60].mxu1 %v289_v50  ;;  %1249 = vmatmul.mubr.f32.gmra.mrb[10].mxu0 %v41_v51  ;;  %v116_v50 = vld [vmem:[%s5751_s0 + $0x330] sm:$0xff]  ;;  %v370_v51 = vld [vmem:[%s5751_s0 + $0xb20] sm:$0xff] }
  0xbc   :  { %938 = vmatprep.mubr.f32.mxu1 %v295_v52  ;;  %1253 = vmatprep.mubr.f32.mxu0 %v47_v53  ;;  %v122_v52 = vld [vmem:[%s5751_s0 + $0x360] sm:$0xff]  ;;  %v369_v53 = vld [vmem:[%s5751_s0 + $0xb18] sm:$0xff] }
  0xbf   :  { %939 = vmatmul.mubr.f32.gmra.mrb[62].mxu1 %v294_v54  ;;  %1254 = vmatmul.mubr.f32.gmra.mrb[12].mxu0 %v46_v0  ;;  %v121_v54 = vld [vmem:[%s5751_s0 + $0x358] sm:$0xff]  ;;  %v375_v0 = vld [vmem:[%s5751_s0 + $0xb48] sm:$0xff] }
  0xc0   :  { %943 = vmatprep.mubr.f32.mxu1 %v300_v55  ;;  %1258 = vmatprep.mubr.f32.mxu0 %v52_v56  ;;  %v127_v55 = vld [vmem:[%s5751_s0 + $0x388] sm:$0xff]  ;;  %v374_v56 = vld [vmem:[%s5751_s0 + $0xb40] sm:$0xff] }
  0xc3   :  { %944 = vmatmul.mubr.f32.gmra.mrb[64].mxu1 %v299_v57  ;;  %1259 = vmatmul.mubr.f32.gmra.mrb[14].mxu0 %v51_v58  ;;  %v126_v57 = vld [vmem:[%s5751_s0 + $0x380] sm:$0xff]  ;;  %v380_v58 = vld [vmem:[%s5751_s0 + $0xb70] sm:$0xff] }
  0xc4   :  { %948 = vmatprep.mubr.f32.mxu1 %v305_v59  ;;  %1263 = vmatprep.mubr.f32.mxu0 %v57_v60  ;;  %v132_v59 = vld [vmem:[%s5751_s0 + $0x3b0] sm:$0xff]  ;;  %v379_v60 = vld [vmem:[%s5751_s0 + $0xb68] sm:$0xff] }
  0xc7   :  { %949 = vmatmul.mubr.f32.gmra.mrb[66].mxu1 %v304_v61  ;;  %1264 = vmatmul.mubr.f32.gmra.mrb[16].mxu0 %v56_v62  ;;  %v131_v61 = vld [vmem:[%s5751_s0 + $0x3a8] sm:$0xff]  ;;  %v385_v62 = vld [vmem:[%s5751_s0 + $0xb98] sm:$0xff] }
  0xc8   :  { %953 = vmatprep.mubr.f32.mxu1 %v310_v63  ;;  %1268 = vmatprep.mubr.f32.mxu0 %v62_v1  ;;  %v137_v63 = vld [vmem:[%s5751_s0 + $0x3d8] sm:$0xff]  ;;  %v384_v1 = vld [vmem:[%s5751_s0 + $0xb90] sm:$0xff] }
  0xcb   :  { %954 = vmatmul.mubr.f32.gmra.mrb[68].mxu1 %v309_v2  ;;  %1269 = vmatmul.mubr.f32.gmra.mrb[18].mxu0 %v61_v3  ;;  %v136_v2 = vld [vmem:[%s5751_s0 + $0x3d0] sm:$0xff]  ;;  %v390_v3 = vld [vmem:[%s5751_s0 + $0xbc0] sm:$0xff] }
  0xcc   :  { %958 = vmatprep.mubr.f32.mxu1 %v315_v4  ;;  %1273 = vmatprep.mubr.f32.mxu0 %v67_v5  ;;  %v142_v4 = vld [vmem:[%s5751_s0 + $0x400] sm:$0xff]  ;;  %v389_v5 = vld [vmem:[%s5751_s0 + $0xbb8] sm:$0xff] }
  0xcf   :  { %959 = vmatmul.mubr.f32.gmra.mrb[70].mxu1 %v314_v8  ;;  %1274 = vmatmul.mubr.f32.gmra.mrb[20].mxu0 %v66_v9  ;;  %v147_v8 = vld [vmem:[%s5751_s0 + $0x428] sm:$0xff]  ;;  %v394_v9 = vld [vmem:[%s5751_s0 + $0xbe0] sm:$0xff] }
  0xd0   :  { %963 = vmatprep.mubr.f32.mxu1 %v320_v11  ;;  %1278 = vmatprep.mubr.f32.mxu0 %v72_v12  ;;  %v400_v11 = vld [vmem:[%s5751_s0 + $0xc10] sm:$0xff] }
  0xd1   :  { %v152_v12 = vld [vmem:[%s5751_s0 + $0x450] sm:$0xff] }
  0xd3   :  { %964 = vmatmul.mubr.f32.gmra.mrb[72].mxu1 %v319_v13  ;;  %1279 = vmatmul.mubr.f32.gmra.mrb[22].mxu0 %v71_v14  ;;  %v399_v13 = vld [vmem:[%s5751_s0 + $0xc08] sm:$0xff] }
  0xd4   :  { %968 = vmatprep.mubr.f32.mxu1 %v325_v15  ;;  %1283 = vmatprep.mubr.f32.mxu0 %v77_v16  ;;  %v151_v14 = vld [vmem:[%s5751_s0 + $0x448] sm:$0xff]  ;;  %v405_v15 = vld [vmem:[%s5751_s0 + $0xc38] sm:$0xff] }
  0xd5   :  { %v157_v16 = vld [vmem:[%s5751_s0 + $0x478] sm:$0xff] }
  0xd7   :  { %969 = vmatmul.mubr.f32.gmra.mrb[74].mxu1 %v324_v17  ;;  %1284 = vmatmul.mubr.f32.gmra.mrb[24].mxu0 %v76_v18  ;;  %v404_v17 = vld [vmem:[%s5751_s0 + $0xc30] sm:$0xff] }
  0xd8   :  { %973 = vmatprep.mubr.f32.mxu1 %v330_v19  ;;  %1288 = vmatprep.mubr.f32.mxu0 %v82_v20  ;;  %v156_v18 = vld [vmem:[%s5751_s0 + $0x470] sm:$0xff]  ;;  %v410_v19 = vld [vmem:[%s5751_s0 + $0xc60] sm:$0xff] }
  0xd9   :  { %v162_v20 = vld [vmem:[%s5751_s0 + $0x4a0] sm:$0xff] }
  0xdb   :  { %974 = vmatmul.mubr.f32.gmra.mrb[76].mxu1 %v329_v21  ;;  %1289 = vmatmul.mubr.f32.gmra.mrb[26].mxu0 %v81_v22 }
  0xdc   :  { %978 = vmatprep.mubr.f32.mxu1 %v335_v23  ;;  %1293 = vmatprep.mubr.f32.mxu0 %v87_v24  ;;  %v409_v23 = vld [vmem:[%s5751_s0 + $0xc58] sm:$0xff] }
  0xdd   :  { %v161_v24 = vld [vmem:[%s5751_s0 + $0x498] sm:$0xff] }
  0xdf   :  { %979 = vmatmul.mubr.f32.gmra.mrb[78].mxu1 %v334_v25  ;;  %1294 = vmatmul.mubr.f32.gmra.mrb[28].mxu0 %v86_v26  ;;  %v415_v25 = vld [vmem:[%s5751_s0 + $0xc88] sm:$0xff] }
  0xe0   :  { %983 = vmatprep.mubr.f32.mxu1 %v340_v27  ;;  %1298 = vmatprep.mubr.f32.mxu0 %v92_v28  ;;  %v167_v26 = vld [vmem:[%s5751_s0 + $0x4c8] sm:$0xff] }
  0xe3   :  { %984 = vmatmul.mubr.f32.gmra.mrb[80].mxu1 %v339_v29  ;;  %1299 = vmatmul.mubr.f32.gmra.mrb[30].mxu0 %v91_v30  ;;  %v414_v29 = vld [vmem:[%s5751_s0 + $0xc80] sm:$0xff] }
  0xe4   :  { %988 = vmatprep.mubr.f32.mxu1 %v345_v31  ;;  %1303 = vmatprep.mubr.f32.mxu0 %v97_v32  ;;  %v166_v30 = vld [vmem:[%s5751_s0 + $0x4c0] sm:$0xff]  ;;  %v420_v31 = vld [vmem:[%s5751_s0 + $0xcb0] sm:$0xff] }
  0xe5   :  { %v172_v32 = vld [vmem:[%s5751_s0 + $0x4f0] sm:$0xff] }
  0xe7   :  { %989 = vmatmul.mubr.f32.gmra.mrb[82].mxu1 %v344_v33  ;;  %1304 = vmatmul.mubr.f32.gmra.mrb[32].mxu0 %v96_v34 }
  0xe8   :  { %993 = vmatprep.mubr.f32.mxu1 %v350_v35  ;;  %1308 = vmatprep.mubr.f32.mxu0 %v102_v36  ;;  %v419_v35 = vld [vmem:[%s5751_s0 + $0xca8] sm:$0xff] }
  0xe9   :  { %v171_v36 = vld [vmem:[%s5751_s0 + $0x4e8] sm:$0xff] }
  0xeb   :  { %994 = vmatmul.mubr.f32.gmra.mrb[84].mxu1 %v349_v37  ;;  %1309 = vmatmul.mubr.f32.gmra.mrb[34].mxu0 %v101_v38  ;;  %v425_v37 = vld [vmem:[%s5751_s0 + $0xcd8] sm:$0xff] }
  0xec   :  { %998 = vmatprep.mubr.f32.mxu1 %v355_v39  ;;  %1313 = vmatprep.mubr.f32.mxu0 %v107_v40  ;;  %v177_v38 = vld [vmem:[%s5751_s0 + $0x518] sm:$0xff] }
  0xef   :  { %999 = vmatmul.mubr.f32.gmra.mrb[86].mxu1 %v354_v41  ;;  %1314 = vmatmul.mubr.f32.gmra.mrb[36].mxu0 %v106_v42  ;;  %v424_v41 = vld [vmem:[%s5751_s0 + $0xcd0] sm:$0xff] }
  0xf0   :  { %1003 = vmatprep.mubr.f32.mxu1 %v360_v43  ;;  %1318 = vmatprep.mubr.f32.mxu0 %v112_v44  ;;  %v176_v42 = vld [vmem:[%s5751_s0 + $0x510] sm:$0xff]  ;;  %v430_v43 = vld [vmem:[%s5751_s0 + $0xd00] sm:$0xff] }
  0xf1   :  { %v182_v44 = vld [vmem:[%s5751_s0 + $0x540] sm:$0xff] }
  0xf3   :  { %1004 = vmatmul.mubr.f32.gmra.mrb[88].mxu1 %v359_v45  ;;  %1319 = vmatmul.mubr.f32.gmra.mrb[38].mxu0 %v111_v46 }
  0xf4   :  { %1008 = vmatprep.mubr.f32.mxu1 %v365_v47  ;;  %1323 = vmatprep.mubr.f32.mxu0 %v117_v48  ;;  %v429_v47 = vld [vmem:[%s5751_s0 + $0xcf8] sm:$0xff] }
  0xf5   :  { %v181_v48 = vld [vmem:[%s5751_s0 + $0x538] sm:$0xff] }
  0xf7   :  { %1009 = vmatmul.mubr.f32.gmra.mrb[90].mxu1 %v364_v49  ;;  %1324 = vmatmul.mubr.f32.gmra.mrb[40].mxu0 %v116_v50  ;;  %v435_v49 = vld [vmem:[%s5751_s0 + $0xd28] sm:$0xff] }
  0xf8   :  { %1013 = vmatprep.mubr.f32.mxu1 %v370_v51  ;;  %1328 = vmatprep.mubr.f32.mxu0 %v122_v52  ;;  %v187_v50 = vld [vmem:[%s5751_s0 + $0x568] sm:$0xff] }
  0xfb   :  { %1014 = vmatmul.mubr.f32.gmra.mrb[92].mxu1 %v369_v53  ;;  %1329 = vmatmul.mubr.f32.gmra.mrb[42].mxu0 %v121_v54  ;;  %v434_v53 = vld [vmem:[%s5751_s0 + $0xd20] sm:$0xff] }
  0xfc   :  { %1018 = vmatprep.mubr.f32.mxu1 %v375_v0  ;;  %1333 = vmatprep.mubr.f32.mxu0 %v127_v55  ;;  %v186_v54 = vld [vmem:[%s5751_s0 + $0x560] sm:$0xff]  ;;  %v440_v0 = vld [vmem:[%s5751_s0 + $0xd50] sm:$0xff] }
  0xfd   :  { %v192_v55 = vld [vmem:[%s5751_s0 + $0x590] sm:$0xff] }
  0xff   :  { %1019 = vmatmul.mubr.f32.gmra.mrb[94].mxu1 %v374_v56  ;;  %1334 = vmatmul.mubr.f32.gmra.mrb[44].mxu0 %v126_v57 }
 0x100   :  { %1023 = vmatprep.mubr.f32.mxu1 %v380_v58  ;;  %1338 = vmatprep.mubr.f32.mxu0 %v132_v59  ;;  %v439_v58 = vld [vmem:[%s5751_s0 + $0xd48] sm:$0xff] }
 0x101   :  { %v191_v59 = vld [vmem:[%s5751_s0 + $0x588] sm:$0xff] }
 0x103   :  { %1024 = vmatmul.mubr.f32.gmra.mrb[96].mxu1 %v379_v60  ;;  %1339 = vmatmul.mubr.f32.gmra.mrb[46].mxu0 %v131_v61  ;;  %v445_v60 = vld [vmem:[%s5751_s0 + $0xd78] sm:$0xff] }
 0x104   :  { %1028 = vmatprep.mubr.f32.mxu1 %v385_v62  ;;  %1343 = vmatprep.mubr.f32.mxu0 %v137_v63  ;;  %v197_v61 = vld [vmem:[%s5751_s0 + $0x5b8] sm:$0xff] }
 0x107   :  { %1029 = vmatmul.mubr.f32.gmra.mrb[98].mxu1 %v384_v1  ;;  %1344 = vmatmul.mubr.f32.gmra.mrb[48].mxu0 %v136_v2  ;;  %v444_v1 = vld [vmem:[%s5751_s0 + $0xd70] sm:$0xff] }
 0x108   :  { %1033 = vmatprep.mubr.f32.mxu1 %v390_v3  ;;  %1348 = vmatprep.mubr.f32.mxu0 %v142_v4  ;;  %v196_v2 = vld [vmem:[%s5751_s0 + $0x5b0] sm:$0xff]  ;;  %v450_v3 = vld [vmem:[%s5751_s0 + $0xda0] sm:$0xff] }
 0x109   :  { %v202_v4 = vld [vmem:[%s5751_s0 + $0x5e0] sm:$0xff] }
 0x10b   :  { %1034 = vmatmul.mubr.f32.gmra.mrb[100].mxu1 %v389_v5  ;;  %1349 = vmatmul.mubr.f32.gmra.mrb[50].mxu0 %v141_v6 }
 0x10c   :  { %1038 = vmatprep.mubr.f32.mxu1 %v395_v7  ;;  %1353 = vmatprep.mubr.f32.mxu0 %v147_v8  ;;  %v449_v7 = vld [vmem:[%s5751_s0 + $0xd98] sm:$0xff] }
 0x10d   :  { %v201_v8 = vld [vmem:[%s5751_s0 + $0x5d8] sm:$0xff] }
 0x10f   :  { %1039 = vmatmul.mubr.f32.gmra.mrb[102].mxu1 %v394_v9  ;;  %1354 = vmatmul.mubr.f32.gmra.mrb[52].mxu0 %v146_v10  ;;  %v455_v9 = vld [vmem:[%s5751_s0 + $0xdc8] sm:$0xff] }
 0x110   :  { %1043 = vmatprep.mubr.f32.mxu1 %v400_v11  ;;  %1358 = vmatprep.mubr.f32.mxu0 %v152_v12  ;;  %v207_v10 = vld [vmem:[%s5751_s0 + $0x608] sm:$0xff] }
 0x113   :  { %1044 = vmatmul.mubr.f32.gmra.mrb[104].mxu1 %v399_v13  ;;  %1359 = vmatmul.mubr.f32.gmra.mrb[54].mxu0 %v151_v14  ;;  %v454_v13 = vld [vmem:[%s5751_s0 + $0xdc0] sm:$0xff] }
 0x114   :  { %1048 = vmatprep.mubr.f32.mxu1 %v405_v15  ;;  %1363 = vmatprep.mubr.f32.mxu0 %v157_v16  ;;  %v206_v14 = vld [vmem:[%s5751_s0 + $0x600] sm:$0xff]  ;;  %v460_v15 = vld [vmem:[%s5751_s0 + $0xdf0] sm:$0xff] }
 0x115   :  { %v212_v16 = vld [vmem:[%s5751_s0 + $0x630] sm:$0xff] }
 0x116   :  { %v3998_v21 = vpop.f32.mrb[0].mxu1 }
 0x117   :  { %1049 = vmatmul.mubr.f32.gmra.mrb[106].mxu1 %v404_v17  ;;  %1364 = vmatmul.mubr.f32.gmra.mrb[56].mxu0 %v156_v18  ;;  %v787_v22 = vpop.f32.mrb[1].mxu1 }
 0x118   :  { %1053 = vmatprep.mubr.f32.mxu1 %v410_v19  ;;  %1368 = vmatprep.mubr.f32.mxu0 %v162_v20  ;;  %v459_v19 = vld [vmem:[%s5751_s0 + $0xde8] sm:$0xff]  ;;  %v465_v22 = vld [vmem:[%s5751_s0 + $0xe18] sm:$0xff] }
 0x119   :  { %v211_v20 = vld [vmem:[%s5751_s0 + $0x628] sm:$0xff] }
 0x11a   :  { %v4012_v27 = vpop.f32.mrb[2].mxu1 }
 0x11b   :  { %1054 = vmatmul.mubr.f32.gmra.mrb[108].mxu1 %v409_v23  ;;  %1369 = vmatmul.mubr.f32.gmra.mrb[58].mxu0 %v161_v24  ;;  %v792_v28 = vpop.f32.mrb[3].mxu1  ;;  %v217_v23 = vld [vmem:[%s5751_s0 + $0x658] sm:$0xff] }
 0x11c   :  { %1058 = vmatprep.mubr.f32.mxu1 %v415_v25  ;;  %1373 = vmatprep.mubr.f32.mxu0 %v167_v26  ;;  %v464_v26 = vld [vmem:[%s5751_s0 + $0xe10] sm:$0xff] }
 0x11d   :  { %v216_v28 = vld [vmem:[%s5751_s0 + $0x650] sm:$0xff] }
 0x11e   :  { %v4026_v33 = vpop.f32.mrb[4].mxu1 }
 0x11f   :  { %1059 = vmatmul.mubr.f32.gmra.mrb[110].mxu1 %v414_v29  ;;  %1374 = vmatmul.mubr.f32.gmra.mrb[60].mxu0 %v166_v30  ;;  %v797_v34 = vpop.f32.mrb[5].mxu1  ;;  %v470_v29 = vld [vmem:[%s5751_s0 + $0xe40] sm:$0xff] }
 0x120   :  { %1063 = vmatprep.mubr.f32.mxu1 %v420_v31  ;;  %1378 = vmatprep.mubr.f32.mxu0 %v172_v32  ;;  %v222_v30 = vld [vmem:[%s5751_s0 + $0x680] sm:$0xff]  ;;  %v469_v34 = vld [vmem:[%s5751_s0 + $0xe38] sm:$0xff] }
 0x122   :  { %v4040_v39 = vpop.f32.mrb[6].mxu1 }
 0x123   :  { %1064 = vmatmul.mubr.f32.gmra.mrb[112].mxu1 %v419_v35  ;;  %1379 = vmatmul.mubr.f32.gmra.mrb[62].mxu0 %v171_v36  ;;  %v802_v40 = vpop.f32.mrb[7].mxu1  ;;  %v221_v35 = vld [vmem:[%s5751_s0 + $0x678] sm:$0xff]  ;;  %v475_v36 = vld [vmem:[%s5751_s0 + $0xe68] sm:$0xff] }
 0x124   :  { %1068 = vmatprep.mubr.f32.mxu1 %v425_v37  ;;  %1383 = vmatprep.mubr.f32.mxu0 %v177_v38  ;;  %v227_v37 = vld [vmem:[%s5751_s0 + $0x6a8] sm:$0xff] }
 0x126   :  { %v4054_v45 = vpop.f32.mrb[8].mxu1 }
 0x127   :  { %1069 = vmatmul.mubr.f32.gmra.mrb[114].mxu1 %v424_v41  ;;  %1384 = vmatmul.mubr.f32.gmra.mrb[64].mxu0 %v176_v42  ;;  %v807_v46 = vpop.f32.mrb[9].mxu1  ;;  %v474_v41 = vld [vmem:[%s5751_s0 + $0xe60] sm:$0xff] }
 0x128   :  { %1073 = vmatprep.mubr.f32.mxu1 %v430_v43  ;;  %1388 = vmatprep.mubr.f32.mxu0 %v182_v44  ;;  %v226_v42 = vld [vmem:[%s5751_s0 + $0x6a0] sm:$0xff]  ;;  %v480_v43 = vld [vmem:[%s5751_s0 + $0xe90] sm:$0xff] }
 0x129   :  { %v232_v44 = vld [vmem:[%s5751_s0 + $0x6d0] sm:$0xff] }
 0x12a   :  { %v4068_v51 = vpop.f32.mrb[10].mxu1 }
 0x12b   :  { %1074 = vmatmul.mubr.f32.gmra.mrb[116].mxu1 %v429_v47  ;;  %1389 = vmatmul.mubr.f32.gmra.mrb[66].mxu0 %v181_v48  ;;  %v812_v52 = vpop.f32.mrb[11].mxu1  ;;  %v479_v48 = vld [vmem:[%s5751_s0 + $0xe88] sm:$0xff] }
 0x12c   :  { %1078 = vmatprep.mubr.f32.mxu1 %v435_v49  ;;  %1393 = vmatprep.mubr.f32.mxu0 %v187_v50  ;;  %v231_v49 = vld [vmem:[%s5751_s0 + $0x6c8] sm:$0xff]  ;;  %v485_v50 = vld [vmem:[%s5751_s0 + $0xeb8] sm:$0xff] }
 0x12d   :  { %v237_v52 = vld [vmem:[%s5751_s0 + $0x6f8] sm:$0xff] }
 0x12e   :  { %v4082_v56 = vpop.f32.mrb[12].mxu1 }
 0x12f   :  { %1079 = vmatmul.mubr.f32.gmra.mrb[118].mxu1 %v434_v53  ;;  %1394 = vmatmul.mubr.f32.gmra.mrb[68].mxu0 %v186_v54  ;;  %v817_v57 = vpop.f32.mrb[13].mxu1 }
 0x130   :  { %1083 = vmatprep.mubr.f32.mxu1 %v440_v0  ;;  %1398 = vmatprep.mubr.f32.mxu0 %v192_v55  ;;  %v484_v0 = vld [vmem:[%s5751_s0 + $0xeb0] sm:$0xff]  ;;  %v490_v57 = vld [vmem:[%s5751_s0 + $0xee0] sm:$0xff] }
 0x131   :  { %v236_v55 = vld [vmem:[%s5751_s0 + $0x6f0] sm:$0xff] }
 0x132   :  { %v4096_v62 = vpop.f32.mrb[14].mxu1 }
 0x133   :  { %1084 = vmatmul.mubr.f32.gmra.mrb[120].mxu1 %v439_v58  ;;  %1399 = vmatmul.mubr.f32.gmra.mrb[70].mxu0 %v191_v59  ;;  %v822_v63 = vpop.f32.mrb[15].mxu1  ;;  %v242_v58 = vld [vmem:[%s5751_s0 + $0x720] sm:$0xff] }
 0x134   :  { %1088 = vmatprep.mubr.f32.mxu1 %v445_v60  ;;  %1403 = vmatprep.mubr.f32.mxu0 %v197_v61  ;;  %v489_v61 = vld [vmem:[%s5751_s0 + $0xed8] sm:$0xff] }
 0x135   :  { %v241_v63 = vld [vmem:[%s5751_s0 + $0x718] sm:$0xff] }
 0x136   :  { %v4110_v5 = vpop.f32.mrb[16].mxu1 }
 0x137   :  { %1089 = vmatmul.mubr.f32.gmra.mrb[122].mxu1 %v444_v1  ;;  %1404 = vmatmul.mubr.f32.gmra.mrb[72].mxu0 %v196_v2  ;;  %v827_v6 = vpop.f32.mrb[17].mxu1  ;;  %v495_v1 = vld [vmem:[%s5751_s0 + $0xf08] sm:$0xff] }
 0x138   :  { %1093 = vmatprep.mubr.f32.mxu1 %v450_v3  ;;  %1408 = vmatprep.mubr.f32.mxu0 %v202_v4  ;;  %v247_v2 = vld [vmem:[%s5751_s0 + $0x748] sm:$0xff]  ;;  %v494_v6 = vld [vmem:[%s5751_s0 + $0xf00] sm:$0xff] }
 0x13a   :  { %v4124_v11 = vpop.f32.mrb[18].mxu1 }
 0x13b   :  { %1094 = vmatmul.mubr.f32.gmra.mrb[124].mxu1 %v449_v7  ;;  %1409 = vmatmul.mubr.f32.gmra.mrb[74].mxu0 %v201_v8  ;;  %v832_v12 = vpop.f32.mrb[19].mxu1  ;;  %v246_v7 = vld [vmem:[%s5751_s0 + $0x740] sm:$0xff]  ;;  %v500_v8 = vld [vmem:[%s5751_s0 + $0xf30] sm:$0xff] }
 0x13c   :  { %1098 = vmatprep.mubr.f32.mxu1 %v455_v9  ;;  %1413 = vmatprep.mubr.f32.mxu0 %v207_v10  ;;  %v252_v9 = vld [vmem:[%s5751_s0 + $0x770] sm:$0xff] }
 0x13e   :  { %v4138_v17 = vpop.f32.mrb[20].mxu1 }
 0x13f   :  { %1099 = vmatmul.mubr.f32.gmra.mrb[126].mxu1 %v454_v13  ;;  %1414 = vmatmul.mubr.f32.gmra.mrb[76].mxu0 %v206_v14  ;;  %v837_v18 = vpop.f32.mrb[21].mxu1  ;;  %v499_v13 = vld [vmem:[%s5751_s0 + $0xf28] sm:$0xff] }
 0x140   :  { %1103 = vmatprep.mubr.f32.mxu1 %v460_v15  ;;  %1418 = vmatprep.mubr.f32.mxu0 %v212_v16  ;;  %v251_v14 = vld [vmem:[%s5751_s0 + $0x768] sm:$0xff]  ;;  %v505_v15 = vld [vmem:[%s5751_s0 + $0xf58] sm:$0xff] }
 0x141   :  { %v257_v16 = vld [vmem:[%s5751_s0 + $0x798] sm:$0xff] }
 0x142   :  { %v4152_v24 = vpop.f32.mrb[22].mxu1 }
 0x143   :  { %1104 = vmatmul.mubr.f32.gmra.mrb[128].mxu1 %v459_v19  ;;  %1419 = vmatmul.mubr.f32.gmra.mrb[78].mxu0 %v211_v20  ;;  %v842_v25 = vpop.f32.mrb[23].mxu1  ;;  %v504_v20 = vld [vmem:[%s5751_s0 + $0xf50] sm:$0xff] }
 0x144   :  { %1108 = vmatprep.mubr.f32.mxu1 %v465_v22  ;;  %1423 = vmatprep.mubr.f32.mxu0 %v217_v23  ;;  %v256_v22 = vld [vmem:[%s5751_s0 + $0x790] sm:$0xff]  ;;  %v510_v23 = vld [vmem:[%s5751_s0 + $0xf80] sm:$0xff] }
 0x145   :  { %v262_v25 = vld [vmem:[%s5751_s0 + $0x7c0] sm:$0xff] }
 0x146   :  { %v4166_v31 = vpop.f32.mrb[24].mxu1 }
 0x147   :  { %1109 = vmatmul.mubr.f32.gmra.mrb[130].mxu1 %v464_v26  ;;  %1424 = vmatmul.mubr.f32.gmra.mrb[80].mxu0 %v216_v28  ;;  %v847_v32 = vpop.f32.mrb[25].mxu1 }
 0x148   :  { %1113 = vmatprep.mubr.f32.mxu1 %v470_v29  ;;  %1428 = vmatprep.mubr.f32.mxu0 %v222_v30  ;;  %v509_v29 = vld [vmem:[%s5751_s0 + $0xf78] sm:$0xff]  ;;  %v267_v32 = vld [vmem:[%s5751_s0 + $0x7e8] sm:$0xff] }
 0x149   :  { %v261_v30 = vld [vmem:[%s5751_s0 + $0x7b8] sm:$0xff] }
 0x14a   :  { %v4180_v38 = vpop.f32.mrb[26].mxu1 }
 0x14b   :  { %1114 = vmatmul.mubr.f32.gmra.mrb[132].mxu1 %v469_v34  ;;  %1429 = vmatmul.mubr.f32.gmra.mrb[82].mxu0 %v221_v35  ;;  %v852_v40 = vpop.f32.mrb[27].mxu1  ;;  %v18_v34 = vld [vmem:[%s5751_s0 + $0x20] sm:$0xff] }
 0x14c   :  { %1118 = vmatprep.mubr.f32.mxu1 %v475_v36  ;;  %1433 = vmatprep.mubr.f32.mxu0 %v227_v37  ;;  %v266_v37 = vld [vmem:[%s5751_s0 + $0x7e0] sm:$0xff]  ;;  %v23_v40 = vld [vmem:[%s5751_s0 + $0x48] sm:$0xff] }
 0x14e   :  { %v4194_v46 = vpop.f32.mrb[28].mxu1 }
 0x14f   :  { %1119 = vmatmul.mubr.f32.gmra.mrb[134].mxu1 %v474_v41  ;;  %1434 = vmatmul.mubr.f32.gmra.mrb[84].mxu0 %v226_v42  ;;  %v857_v47 = vpop.f32.mrb[29].mxu1  ;;  %v272_v41 = vld [vmem:[%s5751_s0 + $0x810] sm:$0xff] }
 0x150   :  { %1123 = vmatprep.mubr.f32.mxu1 %v480_v43  ;;  %1438 = vmatprep.mubr.f32.mxu0 %v232_v44  ;;  %v28_v42 = vld [vmem:[%s5751_s0 + $0x70] sm:$0xff]  ;;  %v271_v47 = vld [vmem:[%s5751_s0 + $0x808] sm:$0xff] }
 0x152   :  { %v4208_v53 = vpop.f32.mrb[30].mxu1 }
 0x153   :  { %1124 = vmatmul.mubr.f32.gmra.mrb[136].mxu1 %v479_v48  ;;  %1439 = vmatmul.mubr.f32.gmra.mrb[86].mxu0 %v231_v49  ;;  %v862_v54 = vpop.f32.mrb[31].mxu1  ;;  %v33_v48 = vld [vmem:[%s5751_s0 + $0x98] sm:$0xff] }
 0x154   :  { %1128 = vmatprep.mubr.f32.mxu1 %v485_v50  ;;  %1443 = vmatprep.mubr.f32.mxu0 %v237_v52  ;;  %v277_v49 = vld [vmem:[%s5751_s0 + $0x838] sm:$0xff]  ;;  %v38_v50 = vld [vmem:[%s5751_s0 + $0xc0] sm:$0xff] }
 0x156   :  { %v4222_v59 = vpop.f32.mrb[32].mxu1 }
 0x157   :  { %1129 = vmatmul.mubr.f32.gmra.mrb[138].mxu1 %v484_v0  ;;  %1444 = vmatmul.mubr.f32.gmra.mrb[88].mxu0 %v236_v55  ;;  %v867_v60 = vpop.f32.mrb[33].mxu1  ;;  %v276_v0 = vld [vmem:[%s5751_s0 + $0x830] sm:$0xff]  ;;  %v43_v55 = vld [vmem:[%s5751_s0 + $0xe8] sm:$0xff] }
 0x158   :  { %1133 = vmatprep.mubr.f32.mxu1 %v490_v57  ;;  %1448 = vmatprep.mubr.f32.mxu0 %v242_v58  ;;  %v282_v57 = vld [vmem:[%s5751_s0 + $0x860] sm:$0xff]  ;;  %v48_v58 = vld [vmem:[%s5751_s0 + $0x110] sm:$0xff] }
 0x15a   :  { %v4236_v3 = vpop.f32.mrb[34].mxu1 }
 0x15b   :  { %1134 = vmatmul.mubr.f32.gmra.mrb[140].mxu1 %v489_v61  ;;  %1449 = vmatmul.mubr.f32.gmra.mrb[90].mxu0 %v241_v63  ;;  %v872_v4 = vpop.f32.mrb[35].mxu1  ;;  %v281_v63 = vld [vmem:[%s5751_s0 + $0x858] sm:$0xff] }
 0x15c   :  { %1138 = vmatprep.mubr.f32.mxu1 %v495_v1  ;;  %1453 = vmatprep.mubr.f32.mxu0 %v247_v2  ;;  %v53_v1 = vld [vmem:[%s5751_s0 + $0x138] sm:$0xff]  ;;  %v287_v2 = vld [vmem:[%s5751_s0 + $0x888] sm:$0xff]  ;;  %v58_v4 = vld [vmem:[%s5751_s0 + $0x160] sm:$0xff] }
 0x15e   :  { %v4250_v10 = vpop.f32.mrb[36].mxu1 }
 0x15f   :  { %1139 = vmatmul.mubr.f32.gmra.mrb[142].mxu1 %v494_v6  ;;  %1454 = vmatmul.mubr.f32.gmra.mrb[92].mxu0 %v246_v7  ;;  %v877_v12 = vpop.f32.mrb[37].mxu1 }
 0x160   :  { %1143 = vmatprep.mubr.f32.mxu1 %v500_v8  ;;  %1458 = vmatprep.mubr.f32.mxu0 %v252_v9  ;;  %v286_v12 = vld [vmem:[%s5751_s0 + $0x880] sm:$0xff] }
 0x162   :  { %v4264_v18 = vpop.f32.mrb[38].mxu1 }
 0x163   :  { %1144 = vmatmul.mubr.f32.gmra.mrb[144].mxu1 %v499_v13  ;;  %1459 = vmatmul.mubr.f32.gmra.mrb[94].mxu0 %v251_v14  ;;  %v882_v19 = vpop.f32.mrb[39].mxu1  ;;  %v63_v13 = vld [vmem:[%s5751_s0 + $0x188] sm:$0xff]  ;;  %v292_v14 = vld [vmem:[%s5751_s0 + $0x8b0] sm:$0xff] }
 0x164   :  { %1148 = vmatprep.mubr.f32.mxu1 %v505_v15  ;;  %1463 = vmatprep.mubr.f32.mxu0 %v257_v16  ;;  %v68_v15 = vld [vmem:[%s5751_s0 + $0x1b0] sm:$0xff] }
 0x166   :  { %v4278_v26 = vpop.f32.mrb[40].mxu1 }
 0x167   :  { %1149 = vmatmul.mubr.f32.gmra.mrb[146].mxu1 %v504_v20  ;;  %1464 = vmatmul.mubr.f32.gmra.mrb[96].mxu0 %v256_v22  ;;  %v887_v28 = vpop.f32.mrb[41].mxu1 }
 0x168   :  { %1153 = vmatprep.mubr.f32.mxu1 %v510_v23  ;;  %1468 = vmatprep.mubr.f32.mxu0 %v262_v25  ;;  %v291_v23 = vld [vmem:[%s5751_s0 + $0x8a8] sm:$0xff]  ;;  %v73_v25 = vld [vmem:[%s5751_s0 + $0x1d8] sm:$0xff] }
 0x169   :  { %v297_v28 = vld [vmem:[%s5751_s0 + $0x8d8] sm:$0xff] }
 0x16a   :  { %v4292_v35 = vpop.f32.mrb[42].mxu1 }
 0x16b   :  { %1154 = vmatmul.mubr.f32.gmra.mrb[148].mxu1 %v509_v29  ;;  %1469 = vmatmul.mubr.f32.gmra.mrb[98].mxu0 %v261_v30  ;;  %v892_v36 = vpop.f32.mrb[43].mxu1  ;;  %v78_v29 = vld [vmem:[%s5751_s0 + $0x200] sm:$0xff] }
 0x16c   :  { %1473 = vmatprep.mubr.f32.mxu0 %v267_v32  ;;  %2599 = vmatprep.mubr.f32.mxu1 %v18_v34 }
 0x16e   :  { %v4306_v43 = vpop.f32.mrb[44].mxu1 }
 0x16f   :  { %1474 = vmatmul.mubr.f32.gmra.mrb[100].mxu0 %v266_v37  ;;  %2600 = vmatmul.mubr.f32.vlgmr.msra.gmra.mrb[150].mxu1 %v23_v40  ;;  %v897_v44 = vpop.f32.mrb[45].mxu1  ;;  %v296_v37 = vld [vmem:[%s5751_s0 + $0x8d0] sm:$0xff]  ;;  %v83_v40 = vld [vmem:[%s5751_s0 + $0x228] sm:$0xff] }
 0x170   :  { %1478 = vmatprep.mubr.f32.mxu0 %v272_v41  ;;  %2602 = vmatprep.mubr.f32.mxu1 %v28_v42  ;;  %v302_v41 = vld [vmem:[%s5751_s0 + $0x900] sm:$0xff]  ;;  %v88_v42 = vld [vmem:[%s5751_s0 + $0x250] sm:$0xff] }
 0x172   :  { %v4320_v52 = vpop.f32.mrb[46].mxu1 }
 0x173   :  { %1479 = vmatmul.mubr.f32.gmra.mrb[102].mxu0 %v271_v47  ;;  %2603 = vmatmul.mubr.f32.gmra.mrb[152].mxu1 %v33_v48  ;;  %v902_v54 = vpop.f32.mrb[47].mxu1 }
 0x174   :  { %1483 = vmatprep.mubr.f32.mxu0 %v277_v49  ;;  %2605 = vmatprep.mubr.f32.mxu1 %v38_v50  ;;  %v301_v50 = vld [vmem:[%s5751_s0 + $0x8f8] sm:$0xff] }
 0x175   :  { %v93_v54 = vld [vmem:[%s5751_s0 + $0x278] sm:$0xff] }
 0x176   :  { %v4334_v60 = vpop.f32.mrb[48].mxu1 }
 0x177   :  { %1484 = vmatmul.mubr.f32.gmra.mrb[104].mxu0 %v276_v0  ;;  %2606 = vmatmul.mubr.f32.gmra.mrb[154].mxu1 %v43_v55  ;;  %v907_v61 = vpop.f32.mrb[49].mxu1  ;;  %v307_v0 = vld [vmem:[%s5751_s0 + $0x928] sm:$0xff]  ;;  %v98_v55 = vld [vmem:[%s5751_s0 + $0x2a0] sm:$0xff] }
 0x178   :  { %1488 = vmatprep.mubr.f32.mxu0 %v282_v57  ;;  %2608 = vmatprep.mubr.f32.mxu1 %v48_v58 }
 0x17a   :  { %v4348_v6 = vpop.f32.mrb[0].mxu0  ;;  %v4350_v7 = vpop.f32.mrb[50].mxu1 }
 0x17b   :  { %v1227_v8 = vpop.f32.mrb[1].mxu0  ;;  %1489 = vmatmul.mubr.f32.gmra.mrb[106].mxu0 %v281_v63  ;;  %2609 = vmatmul.mubr.f32.gmra.mrb[156].mxu1 %v53_v1  ;;  %v912_v9 = vpop.f32.mrb[51].mxu1  ;;  %v306_v1 = vld [vmem:[%s5751_s0 + $0x920] sm:$0xff] }
 0x17c   :  { %1493 = vmatprep.mubr.f32.mxu0 %v287_v2  ;;  %2611 = vmatprep.mubr.f32.mxu1 %v58_v4  ;;  %v103_v2 = vld [vmem:[%s5751_s0 + $0x2c8] sm:$0xff]  ;;  %v312_v4 = vld [vmem:[%s5751_s0 + $0x950] sm:$0xff] }
 0x17d   :  { %v108_v8 = vld [vmem:[%s5751_s0 + $0x2f0] sm:$0xff] }
 0x17e   :  { %v4364_v16 = vpop.f32.mrb[2].mxu0  ;;  %v4366_v19 = vpop.f32.mrb[52].mxu1 }
 0x17f   :  { %v1232_v20 = vpop.f32.mrb[3].mxu0  ;;  %1494 = vmatmul.mubr.f32.gmra.mrb[108].mxu0 %v286_v12  ;;  %2612 = vmatmul.mubr.f32.gmra.mrb[158].mxu1 %v63_v13  ;;  %v917_v22 = vpop.f32.mrb[53].mxu1 }
 0x180   :  { %1498 = vmatprep.mubr.f32.mxu0 %v292_v14  ;;  %2614 = vmatprep.mubr.f32.mxu1 %v68_v15  ;;  %v311_v15 = vld [vmem:[%s5751_s0 + $0x948] sm:$0xff]  ;;  %v113_v20 = vld [vmem:[%s5751_s0 + $0x318] sm:$0xff] }
 0x181   :  { %v317_v22 = vld [vmem:[%s5751_s0 + $0x978] sm:$0xff] }
 0x182   :  { %v4380_v30 = vpop.f32.mrb[4].mxu0  ;;  %v4382_v32 = vpop.f32.mrb[54].mxu1 }
 0x183   :  { %v1237_v34 = vpop.f32.mrb[5].mxu0  ;;  %1499 = vmatmul.mubr.f32.gmra.mrb[110].mxu0 %v291_v23  ;;  %2615 = vmatmul.mubr.f32.gmra.mrb[160].mxu1 %v73_v25  ;;  %v922_v36 = vpop.f32.mrb[55].mxu1  ;;  %v118_v23 = vld [vmem:[%s5751_s0 + $0x340] sm:$0xff] }
 0x184   :  { %1503 = vmatprep.mubr.f32.mxu0 %v297_v28  ;;  %2617 = vmatprep.mubr.f32.mxu1 %v78_v29  ;;  %v316_v36 = vld [vmem:[%s5751_s0 + $0x970] sm:$0xff] }
 0x186   :  { %v4396_v44 = vpop.f32.mrb[6].mxu0  ;;  %v4398_v47 = vpop.f32.mrb[56].mxu1 }
 0x187   :  { %v1242_v48 = vpop.f32.mrb[7].mxu0  ;;  %1504 = vmatmul.mubr.f32.gmra.mrb[112].mxu0 %v296_v37  ;;  %2618 = vmatmul.mubr.f32.gmra.mrb[162].mxu1 %v83_v40  ;;  %v927_v49 = vpop.f32.mrb[57].mxu1  ;;  %v123_v37 = vld [vmem:[%s5751_s0 + $0x368] sm:$0xff]  ;;  %v322_v40 = vld [vmem:[%s5751_s0 + $0x9a0] sm:$0xff] }
 0x188   :  { %1508 = vmatprep.mubr.f32.mxu0 %v302_v41  ;;  %2620 = vmatprep.mubr.f32.mxu1 %v88_v42  ;;  %v128_v41 = vld [vmem:[%s5751_s0 + $0x390] sm:$0xff] }
 0x18a   :  { %v4412_v57 = vpop.f32.mrb[8].mxu0  ;;  %v4414_v58 = vpop.f32.mrb[58].mxu1 }
 0x18b   :  { %v1247_v61 = vpop.f32.mrb[9].mxu0  ;;  %1509 = vmatmul.mubr.f32.gmra.mrb[114].mxu0 %v301_v50  ;;  %2621 = vmatmul.mubr.f32.gmra.mrb[164].mxu1 %v93_v54  ;;  %v932_v63 = vpop.f32.mrb[59].mxu1  ;;  %v321_v54 = vld [vmem:[%s5751_s0 + $0x998] sm:$0xff] }
 0x18c   :  { %1513 = vmatprep.mubr.f32.mxu0 %v307_v0  ;;  %2623 = vmatprep.mubr.f32.mxu1 %v98_v55  ;;  %v133_v0 = vld [vmem:[%s5751_s0 + $0x3b8] sm:$0xff]  ;;  %v327_v55 = vld [vmem:[%s5751_s0 + $0x9c8] sm:$0xff]  ;;  %v138_v61 = vld [vmem:[%s5751_s0 + $0x3e0] sm:$0xff] }
 0x18e   :  { %v4428_v9 = vpop.f32.mrb[10].mxu0  ;;  %v4430_v12 = vpop.f32.mrb[60].mxu1 }
 0x18f   :  { %v1252_v13 = vpop.f32.mrb[11].mxu0  ;;  %1514 = vmatmul.mubr.f32.gmra.mrb[116].mxu0 %v306_v1  ;;  %2624 = vmatmul.mubr.f32.gmra.mrb[166].mxu1 %v103_v2  ;;  %v937_v14 = vpop.f32.mrb[61].mxu1 }
 0x190   :  { %1518 = vmatprep.mubr.f32.mxu0 %v312_v4  ;;  %2626 = vmatprep.mubr.f32.mxu1 %v108_v8  ;;  %v326_v8 = vld [vmem:[%s5751_s0 + $0x9c0] sm:$0xff]  ;;  %v143_v13 = vld [vmem:[%s5751_s0 + $0x408] sm:$0xff]  ;;  %v332_v14 = vld [vmem:[%s5751_s0 + $0x9f0] sm:$0xff] }
 0x192   :  { %v4444_v25 = vpop.f32.mrb[12].mxu0  ;;  %v4446_v28 = vpop.f32.mrb[62].mxu1 }
 0x193   :  { %v1257_v29 = vpop.f32.mrb[13].mxu0  ;;  %1519 = vmatmul.mubr.f32.gmra.mrb[118].mxu0 %v311_v15  ;;  %2627 = vmatmul.mubr.f32.gmra.mrb[168].mxu1 %v113_v20  ;;  %v942_v34 = vpop.f32.mrb[63].mxu1  ;;  %v148_v15 = vld [vmem:[%s5751_s0 + $0x430] sm:$0xff] }
 0x194   :  { %1523 = vmatprep.mubr.f32.mxu0 %v317_v22  ;;  %2629 = vmatprep.mubr.f32.mxu1 %v118_v23  ;;  %v331_v34 = vld [vmem:[%s5751_s0 + $0x9e8] sm:$0xff] }
 0x196   :  { %v4460_v42 = vpop.f32.mrb[14].mxu0  ;;  %v4462_v48 = vpop.f32.mrb[64].mxu1 }
 0x197   :  { %v1262_v49 = vpop.f32.mrb[15].mxu0  ;;  %1524 = vmatmul.mubr.f32.gmra.mrb[120].mxu0 %v316_v36  ;;  %2630 = vmatmul.mubr.f32.gmra.mrb[170].mxu1 %v123_v37  ;;  %v947_v50 = vpop.f32.mrb[65].mxu1  ;;  %v153_v36 = vld [vmem:[%s5751_s0 + $0x458] sm:$0xff] }
 0x198   :  { %1528 = vmatprep.mubr.f32.mxu0 %v322_v40  ;;  %2632 = vmatprep.mubr.f32.mxu1 %v128_v41  ;;  %v337_v37 = vld [vmem:[%s5751_s0 + $0xa18] sm:$0xff]  ;;  %v158_v40 = vld [vmem:[%s5751_s0 + $0x480] sm:$0xff] }
 0x19a   :  { %v4476_v63 = vpop.f32.mrb[16].mxu0  ;;  %v4478_v1 = vpop.f32.mrb[66].mxu1 }
 0x19b   :  { %v1267_v2 = vpop.f32.mrb[17].mxu0  ;;  %1529 = vmatmul.mubr.f32.gmra.mrb[122].mxu0 %v321_v54  ;;  %2633 = vmatmul.mubr.f32.gmra.mrb[172].mxu1 %v133_v0  ;;  %v952_v4 = vpop.f32.mrb[67].mxu1  ;;  %v336_v0 = vld [vmem:[%s5751_s0 + $0xa10] sm:$0xff] }
 0x19c   :  { %1533 = vmatprep.mubr.f32.mxu0 %v327_v55  ;;  %2635 = vmatprep.mubr.f32.mxu1 %v138_v61  ;;  %v163_v55 = vld [vmem:[%s5751_s0 + $0x4a8] sm:$0xff]  ;;  %v342_v61 = vld [vmem:[%s5751_s0 + $0xa40] sm:$0xff]  ;;  %v168_v2 = vld [vmem:[%s5751_s0 + $0x4d0] sm:$0xff] }
 0x19e   :  { %v4492_v20 = vpop.f32.mrb[18].mxu0  ;;  %v4494_v22 = vpop.f32.mrb[68].mxu1 }
 0x19f   :  { %v1272_v23 = vpop.f32.mrb[19].mxu0  ;;  %1534 = vmatmul.mubr.f32.gmra.mrb[124].mxu0 %v326_v8  ;;  %2636 = vmatmul.mubr.f32.gmra.mrb[174].mxu1 %v143_v13  ;;  %v957_v29 = vpop.f32.mrb[69].mxu1 }
 0x1a0   :  { %1538 = vmatprep.mubr.f32.mxu0 %v332_v14  ;;  %2638 = vmatprep.mubr.f32.mxu1 %v148_v15  ;;  %v341_v15 = vld [vmem:[%s5751_s0 + $0xa38] sm:$0xff]  ;;  %v347_v29 = vld [vmem:[%s5751_s0 + $0xa68] sm:$0xff] }
 0x1a1   :  { %v173_v23 = vld [vmem:[%s5751_s0 + $0x4f8] sm:$0xff] }
 0x1a2   :  { %v4508_v41 = vpop.f32.mrb[20].mxu0  ;;  %v4510_v49 = vpop.f32.mrb[70].mxu1 }
 0x1a3   :  { %5759 = vst [vmem:[#allocation2_spill] sm:$0xff] %v4510_v49  ;;  %v1277_v50 = vpop.f32.mrb[21].mxu0  ;;  %1539 = vmatmul.mubr.f32.gmra.mrb[126].mxu0 %v331_v34  ;;  %2639 = vmatmul.mubr.f32.gmra.mrb[176].mxu1 %v153_v36  ;;  %v962_v54 = vpop.f32.mrb[71].mxu1  ;;  %v178_v34 = vld [vmem:[%s5751_s0 + $0x520] sm:$0xff] }
 0x1a4   :  { %1543 = vmatprep.mubr.f32.mxu0 %v337_v37  ;;  %2641 = vmatprep.mubr.f32.mxu1 %v158_v40  ;;  %v346_v54 = vld [vmem:[%s5751_s0 + $0xa60] sm:$0xff] }
 0x1a5   :  { %v382_v49 = vld [vmem:[%s5751_s0 + $0xb80] sm:$0xff] }
 0x1a6   :  { %v4524_v4 = vpop.f32.mrb[22].mxu0  ;;  %v4526_v8 = vpop.f32.mrb[72].mxu1 }
 0x1a7   :  { %5760 = vst [vmem:[#allocation3_spill] sm:$0xff] %v4526_v8  ;;  %v1282_v13 = vpop.f32.mrb[23].mxu0  ;;  %1544 = vmatmul.mubr.f32.gmra.mrb[128].mxu0 %v336_v0  ;;  %2642 = vmatmul.mubr.f32.gmra.mrb[178].mxu1 %v163_v55  ;;  %v967_v14 = vpop.f32.mrb[73].mxu1  ;;  %v183_v0 = vld [vmem:[%s5751_s0 + $0x548] sm:$0xff]  ;;  %v352_v55 = vld [vmem:[%s5751_s0 + $0xa90] sm:$0xff]  ;;  %v377_v8 = vld [vmem:[%s5751_s0 + $0xb58] sm:$0xff] }
 0x1a8   :  { %1548 = vmatprep.mubr.f32.mxu0 %v342_v61  ;;  %2644 = vmatprep.mubr.f32.mxu1 %v168_v2  ;;  %v188_v61 = vld [vmem:[%s5751_s0 + $0x570] sm:$0xff] }
 0x1aa   :  { %v4540_v36 = vpop.f32.mrb[24].mxu0  ;;  %v4542_v37 = vpop.f32.mrb[74].mxu1 }
 0x1ab   :  { %5761 = vst [vmem:[#allocation4_spill] sm:$0xff] %v4542_v37  ;;  %v1287_v40 = vpop.f32.mrb[25].mxu0  ;;  %1549 = vmatmul.mubr.f32.gmra.mrb[130].mxu0 %v341_v15  ;;  %2645 = vmatmul.mubr.f32.gmra.mrb[180].mxu1 %v173_v23  ;;  %v972_v50 = vpop.f32.mrb[75].mxu1  ;;  %v351_v23 = vld [vmem:[%s5751_s0 + $0xa88] sm:$0xff]  ;;  %v372_v37 = vld [vmem:[%s5751_s0 + $0xb30] sm:$0xff] }
 0x1ac   :  { %1553 = vmatprep.mubr.f32.mxu0 %v347_v29  ;;  %2647 = vmatprep.mubr.f32.mxu1 %v178_v34  ;;  %v193_v29 = vld [vmem:[%s5751_s0 + $0x598] sm:$0xff]  ;;  %v198_v40 = vld [vmem:[%s5751_s0 + $0x5c0] sm:$0xff] }
 0x1ad   :  { %v357_v34 = vld [vmem:[%s5751_s0 + $0xab8] sm:$0xff] }
 0x1ae   :  { %v4556_v2 = vpop.f32.mrb[26].mxu0  ;;  %v4558_v13 = vpop.f32.mrb[76].mxu1 }
 0x1af   :  { %5762 = vst [vmem:[#allocation5_spill] sm:$0xff] %v4558_v13  ;;  %v1292_v14 = vpop.f32.mrb[27].mxu0  ;;  %1554 = vmatmul.mubr.f32.gmra.mrb[132].mxu0 %v346_v54  ;;  %2648 = vmatmul.mubr.f32.gmra.mrb[182].mxu1 %v183_v0  ;;  %v977_v15 = vpop.f32.mrb[77].mxu1  ;;  %v367_v13 = vld [vmem:[%s5751_s0 + $0xb08] sm:$0xff] }
 0x1b0   :  { %1558 = vmatprep.mubr.f32.mxu0 %v352_v55  ;;  %2650 = vmatprep.mubr.f32.mxu1 %v188_v61  ;;  %v356_v61 = vld [vmem:[%s5751_s0 + $0xab0] sm:$0xff]  ;;  %v203_v14 = vld [vmem:[%s5751_s0 + $0x5e8] sm:$0xff]  ;;  %v362_v15 = vld [vmem:[%s5751_s0 + $0xae0] sm:$0xff] }
 0x1b2   :  { %v4572_v50 = vpop.f32.mrb[28].mxu0  ;;  %v4574_v54 = vpop.f32.mrb[78].mxu1 }
 0x1b3   :  { %5763 = vst [vmem:[#allocation6_spill] sm:$0xff] %v4574_v54  ;;  %v1297_v0 = vpop.f32.mrb[29].mxu0  ;;  %1559 = vmatmul.mubr.f32.gmra.mrb[134].mxu0 %v351_v23  ;;  %2651 = vmatmul.mubr.f32.gmra.mrb[184].mxu1 %v193_v29  ;;  %v982_v55 = vpop.f32.mrb[79].mxu1  ;;  %v208_v23 = vld [vmem:[%s5751_s0 + $0x610] sm:$0xff]  ;;  %v213_v54 = vld [vmem:[%s5751_s0 + $0x638] sm:$0xff] }
 0x1b4   :  { %1563 = vmatprep.mubr.f32.mxu0 %v357_v34  ;;  %2653 = vmatprep.mubr.f32.mxu1 %v198_v40  ;;  %v361_v55 = vld [vmem:[%s5751_s0 + $0xad8] sm:$0xff] }
 0x1b6   :  { %v4588_v29 = vpop.f32.mrb[30].mxu0  ;;  %v4590_v34 = vpop.f32.mrb[80].mxu1 }
 0x1b7   :  { %5764 = vst [vmem:[#allocation7_spill] sm:$0xff] %v4590_v34  ;;  %v1302_v40 = vpop.f32.mrb[31].mxu0  ;;  %1564 = vmatmul.mubr.f32.gmra.mrb[136].mxu0 %v356_v61  ;;  %2654 = vmatmul.mubr.f32.gmra.mrb[186].mxu1 %v203_v14  ;;  %v987_v0 = vpop.f32.mrb[81].mxu1  ;;  %v218_v61 = vld [vmem:[%s5751_s0 + $0x660] sm:$0xff]  ;;  %v223_v34 = vld [vmem:[%s5751_s0 + $0x688] sm:$0xff] }
 0x1b8   :  { %1568 = vmatprep.mubr.f32.mxu0 %v362_v15  ;;  %2656 = vmatprep.mubr.f32.mxu1 %v208_v23  ;;  %v366_v0 = vld [vmem:[%s5751_s0 + $0xb00] sm:$0xff] }
 0x1ba   :  { %v4604_v14 = vpop.f32.mrb[32].mxu0  ;;  %v4606_v15 = vpop.f32.mrb[82].mxu1 }
 0x1bb   :  { %5765 = vst [vmem:[#allocation8_spill] sm:$0xff] %v4606_v15  ;;  %v1307_v23 = vpop.f32.mrb[33].mxu0  ;;  %1569 = vmatmul.mubr.f32.gmra.mrb[138].mxu0 %v361_v55  ;;  %2657 = vmatmul.mubr.f32.gmra.mrb[188].mxu1 %v213_v54  ;;  %v992_v40 = vpop.f32.mrb[83].mxu1  ;;  %v228_v55 = vld [vmem:[%s5751_s0 + $0x6b0] sm:$0xff]  ;;  %v233_v15 = vld [vmem:[%s5751_s0 + $0x6d8] sm:$0xff] }
 0x1bc   :  { %1573 = vmatprep.mubr.f32.mxu0 %v367_v13  ;;  %2659 = vmatprep.mubr.f32.mxu1 %v218_v61  ;;  %v371_v40 = vld [vmem:[%s5751_s0 + $0xb28] sm:$0xff] }
 0x1be   :  { %v4620_v54 = vpop.f32.mrb[34].mxu0  ;;  %v4622_v13 = vpop.f32.mrb[84].mxu1 }
 0x1bf   :  { %5766 = vst [vmem:[#allocation9_spill] sm:$0xff] %v4622_v13  ;;  %v1312_v61 = vpop.f32.mrb[35].mxu0  ;;  %1574 = vmatmul.mubr.f32.gmra.mrb[140].mxu0 %v366_v0  ;;  %2660 = vmatmul.mubr.f32.gmra.mrb[190].mxu1 %v223_v34  ;;  %v997_v23 = vpop.f32.mrb[85].mxu1  ;;  %v238_v0 = vld [vmem:[%s5751_s0 + $0x700] sm:$0xff]  ;;  %v243_v13 = vld [vmem:[%s5751_s0 + $0x728] sm:$0xff] }
 0x1c0   :  { %1578 = vmatprep.mubr.f32.mxu0 %v372_v37  ;;  %2662 = vmatprep.mubr.f32.mxu1 %v228_v55  ;;  %v376_v23 = vld [vmem:[%s5751_s0 + $0xb50] sm:$0xff] }
 0x1c2   :  { %v4636_v34 = vpop.f32.mrb[36].mxu0  ;;  %v4638_v37 = vpop.f32.mrb[86].mxu1 }
 0x1c3   :  { %5767 = vst [vmem:[#allocation10_spill] sm:$0xff] %v4636_v34  ;;  %5768 = vst [vmem:[#allocation11_spill] sm:$0xff] %v4638_v37  ;;  %v1317_v55 = vpop.f32.mrb[37].mxu0  ;;  %1579 = vmatmul.mubr.f32.gmra.mrb[142].mxu0 %v371_v40  ;;  %2663 = vmatmul.mubr.f32.gmra.mrb[192].mxu1 %v233_v15  ;;  %v1002_v61 = vpop.f32.mrb[87].mxu1  ;;  %v248_v40 = vld [vmem:[%s5751_s0 + $0x750] sm:$0xff]  ;;  %v253_v37 = vld [vmem:[%s5751_s0 + $0x778] sm:$0xff] }
 0x1c4   :  { %1583 = vmatprep.mubr.f32.mxu0 %v377_v8  ;;  %2665 = vmatprep.mubr.f32.mxu1 %v238_v0  ;;  %v381_v61 = vld [vmem:[%s5751_s0 + $0xb78] sm:$0xff]  ;;  %v387_v34 = vld [vmem:[%s5751_s0 + $0xba8] sm:$0xff] }
 0x1c6   :  { %v4652_v15 = vpop.f32.mrb[38].mxu0  ;;  %v4654_v8 = vpop.f32.mrb[88].mxu1 }
 0x1c7   :  { %5769 = vst [vmem:[#allocation12_spill] sm:$0xff] %v4652_v15  ;;  %5770 = vst [vmem:[#allocation13_spill] sm:$0xff] %v4654_v8  ;;  %v1322_v0 = vpop.f32.mrb[39].mxu0  ;;  %1584 = vmatmul.mubr.f32.gmra.mrb[144].mxu0 %v376_v23  ;;  %2666 = vmatmul.mubr.f32.gmra.mrb[194].mxu1 %v243_v13  ;;  %v1007_v55 = vpop.f32.mrb[89].mxu1  ;;  %v258_v23 = vld [vmem:[%s5751_s0 + $0x7a0] sm:$0xff]  ;;  %v263_v8 = vld [vmem:[%s5751_s0 + $0x7c8] sm:$0xff] }
 0x1c8   :  { %1588 = vmatprep.mubr.f32.mxu0 %v382_v49  ;;  %2668 = vmatprep.mubr.f32.mxu1 %v248_v40  ;;  %v386_v55 = vld [vmem:[%s5751_s0 + $0xba0] sm:$0xff]  ;;  %v313_v15 = vld [vmem:[%s5751_s0 + $0x958] sm:$0xff] }
 0x1ca   :  { %v4668_v13 = vpop.f32.mrb[40].mxu0  ;;  %v4670_v49 = vpop.f32.mrb[90].mxu1 }
 0x1cb   :  { %5771 = vst [vmem:[#allocation14_spill] sm:$0xff] %v4668_v13  ;;  %5772 = vst [vmem:[#allocation15_spill] sm:$0xff] %v4670_v49  ;;  %v1327_v40 = vpop.f32.mrb[41].mxu0  ;;  %1589 = vmatmul.mubr.f32.gmra.mrb[146].mxu0 %v381_v61  ;;  %2669 = vmatmul.mubr.f32.gmra.mrb[196].mxu1 %v253_v37  ;;  %v1012_v0 = vpop.f32.mrb[91].mxu1  ;;  %v392_v13 = vld [vmem:[%s5751_s0 + $0xbd0] sm:$0xff]  ;;  %v273_v49 = vld [vmem:[%s5751_s0 + $0x818] sm:$0xff] }
 0x1cc   :  { %1593 = vmatprep.mubr.f32.mxu0 %v387_v34  ;;  %2671 = vmatprep.mubr.f32.mxu1 %v258_v23  ;;  %v268_v61 = vld [vmem:[%s5751_s0 + $0x7f0] sm:$0xff]  ;;  %v391_v0 = vld [vmem:[%s5751_s0 + $0xbc8] sm:$0xff] }
 0x1ce   :  { %v4684_v37 = vpop.f32.mrb[42].mxu0  ;;  %v4686_v34 = vpop.f32.mrb[92].mxu1 }
 0x1cf   :  { %5773 = vst [vmem:[#allocation16_spill] sm:$0xff] %v4684_v37  ;;  %5774 = vst [vmem:[#allocation17_spill] sm:$0xff] %v4686_v34  ;;  %v1332_v23 = vpop.f32.mrb[43].mxu0  ;;  %1594 = vmatmul.mubr.f32.gmra.mrb[148].mxu0 %v386_v55  ;;  %2672 = vmatmul.mubr.f32.gmra.mrb[198].mxu1 %v263_v8  ;;  %v1017_v40 = vpop.f32.mrb[93].mxu1  ;;  %v397_v37 = vld [vmem:[%s5751_s0 + $0xbf8] sm:$0xff]  ;;  %v278_v55 = vld [vmem:[%s5751_s0 + $0x840] sm:$0xff] }
 0x1d0   :  { %1598 = vmatprep.mubr.f32.mxu0 %v392_v13  ;;  %2674 = vmatprep.mubr.f32.mxu1 %v268_v61  ;;  %v396_v40 = vld [vmem:[%s5751_s0 + $0xbf0] sm:$0xff]  ;;  %v283_v34 = vld [vmem:[%s5751_s0 + $0x868] sm:$0xff] }
 0x1d2   :  { %v4700_v8 = vpop.f32.mrb[44].mxu0  ;;  %v4702_v13 = vpop.f32.mrb[94].mxu1 }
 0x1d3   :  { %5775 = vst [vmem:[#allocation18_spill] sm:$0xff] %v4700_v8  ;;  %5776 = vst [vmem:[#allocation19_spill] sm:$0xff] %v4702_v13  ;;  %v1337_v61 = vpop.f32.mrb[45].mxu0  ;;  %1599 = vmatmul.mubr.f32.gmra.mrb[150].mxu0 %v391_v0  ;;  %2675 = vmatmul.mubr.f32.gmra.mrb[200].mxu1 %v273_v49  ;;  %v1022_v23 = vpop.f32.mrb[95].mxu1  ;;  %v402_v8 = vld [vmem:[%s5751_s0 + $0xc20] sm:$0xff]  ;;  %v288_v0 = vld [vmem:[%s5751_s0 + $0x890] sm:$0xff] }
 0x1d4   :  { %1603 = vmatprep.mubr.f32.mxu0 %v397_v37  ;;  %2677 = vmatprep.mubr.f32.mxu1 %v278_v55  ;;  %v401_v23 = vld [vmem:[%s5751_s0 + $0xc18] sm:$0xff] }
 0x1d5   :  { %v293_v13 = vld [vmem:[%s5751_s0 + $0x8b8] sm:$0xff] }
 0x1d6   :  { %v4716_v49 = vpop.f32.mrb[46].mxu0  ;;  %v4718_v37 = vpop.f32.mrb[96].mxu1 }
 0x1d7   :  { %5777 = vst [vmem:[#allocation20_spill] sm:$0xff] %v4716_v49  ;;  %5778 = vst [vmem:[#allocation21_spill] sm:$0xff] %v4718_v37  ;;  %v1342_v55 = vpop.f32.mrb[47].mxu0  ;;  %1604 = vmatmul.mubr.f32.gmra.mrb[152].mxu0 %v396_v40  ;;  %2678 = vmatmul.mubr.f32.gmra.mrb[202].mxu1 %v283_v34  ;;  %v1027_v61 = vpop.f32.mrb[97].mxu1  ;;  %v407_v49 = vld [vmem:[%s5751_s0 + $0xc48] sm:$0xff]  ;;  %v298_v40 = vld [vmem:[%s5751_s0 + $0x8e0] sm:$0xff] }
 0x1d8   :  { %1608 = vmatprep.mubr.f32.mxu0 %v402_v8  ;;  %2680 = vmatprep.mubr.f32.mxu1 %v288_v0  ;;  %v406_v61 = vld [vmem:[%s5751_s0 + $0xc40] sm:$0xff]  ;;  %v303_v37 = vld [vmem:[%s5751_s0 + $0x908] sm:$0xff] }
 0x1da   :  { %v4732_v34 = vpop.f32.mrb[48].mxu0  ;;  %v4734_v8 = vpop.f32.mrb[98].mxu1 }
 0x1db   :  { %5779 = vst [vmem:[#allocation22_spill] sm:$0xff] %v4732_v34  ;;  %5780 = vst [vmem:[#allocation23_spill] sm:$0xff] %v4734_v8  ;;  %v1347_v0 = vpop.f32.mrb[49].mxu0  ;;  %1609 = vmatmul.mubr.f32.gmra.mrb[154].mxu0 %v401_v23  ;;  %2681 = vmatmul.mubr.f32.gmra.mrb[204].mxu1 %v293_v13  ;;  %v1032_v55 = vpop.f32.mrb[99].mxu1  ;;  %v412_v34 = vld [vmem:[%s5751_s0 + $0xc70] sm:$0xff]  ;;  %v411_v8 = vld [vmem:[%s5751_s0 + $0xc68] sm:$0xff] }
 0x1dc   :  { %1613 = vmatprep.mubr.f32.mxu0 %v407_v49  ;;  %2683 = vmatprep.mubr.f32.mxu1 %v298_v40  ;;  %v308_v23 = vld [vmem:[%s5751_s0 + $0x930] sm:$0xff] }
 0x1de   :  { %v1350_v13 = vpop.f32.mrb[50].mxu0  ;;  %v4748_v0 = vpop.f32.mrb[100].mxu1 }
 0x1df   :  { %5781 = vst [vmem:[#allocation24_spill] sm:$0xff] %v4748_v0  ;;  %v4751_v49 = vadd.f32 %v1350_v13, %v3998_v21  ;;  %v1352_v40 = vpop.f32.mrb[51].mxu0  ;;  %1614 = vmatmul.mubr.f32.gmra.mrb[156].mxu0 %v406_v61  ;;  %2684 = vmatmul.mubr.f32.gmra.mrb[206].mxu1 %v303_v37  ;;  %v1037_v55 = vpop.f32.mrb[101].mxu1  ;;  %v417_v0 = vld [vmem:[%s5751_s0 + $0xc98] sm:$0xff]  ;;  %v318_v21 = vld [vmem:[%s5751_s0 + $0x980] sm:$0xff] }
 0x1e0   :  { %1618 = vmatprep.mubr.f32.mxu0 %v412_v34  ;;  %2686 = vmatprep.mubr.f32.mxu1 %v308_v23  ;;  %v416_v40 = vld [vmem:[%s5751_s0 + $0xc90] sm:$0xff]  ;;  %v323_v55 = vld [vmem:[%s5751_s0 + $0x9a8] sm:$0xff] }
 0x1e2   :  { %v1355_v37 = vpop.f32.mrb[52].mxu0  ;;  %v4765_v61 = vpop.f32.mrb[102].mxu1 }
 0x1e3   :  { %5782 = vst [vmem:[#allocation25_spill] sm:$0xff] %v4765_v61  ;;  %v4768_v34 = vadd.f32 %v1355_v37, %v4012_v27  ;;  %v1357_v23 = vpop.f32.mrb[53].mxu0  ;;  %1619 = vmatmul.mubr.f32.gmra.mrb[158].mxu0 %v411_v8  ;;  %2687 = vmatmul.mubr.f32.gmra.mrb[208].mxu1 %v313_v15  ;;  %v1042_v13 = vpop.f32.mrb[103].mxu1  ;;  %v422_v61 = vld [vmem:[%s5751_s0 + $0xcc0] sm:$0xff]  ;;  %v328_v27 = vld [vmem:[%s5751_s0 + $0x9d0] sm:$0xff] }
 0x1e4   :  { %1623 = vmatprep.mubr.f32.mxu0 %v417_v0  ;;  %2689 = vmatprep.mubr.f32.mxu1 %v318_v21  ;;  %v421_v23 = vld [vmem:[%s5751_s0 + $0xcb8] sm:$0xff] }
 0x1e5   :  { %v333_v13 = vld [vmem:[%s5751_s0 + $0x9f8] sm:$0xff] }
 0x1e6   :  { %v1360_v15 = vpop.f32.mrb[54].mxu0  ;;  %v4782_v8 = vpop.f32.mrb[104].mxu1 }
 0x1e7   :  { %5783 = vst [vmem:[#allocation26_spill] sm:$0xff] %v4782_v8  ;;  %v4785_v0 = vadd.f32 %v1360_v15, %v4026_v33  ;;  %v1362_v21 = vpop.f32.mrb[55].mxu0  ;;  %1624 = vmatmul.mubr.f32.gmra.mrb[160].mxu0 %v416_v40  ;;  %2690 = vmatmul.mubr.f32.gmra.mrb[210].mxu1 %v323_v55  ;;  %v1047_v37 = vpop.f32.mrb[105].mxu1  ;;  %v427_v8 = vld [vmem:[%s5751_s0 + $0xce8] sm:$0xff]  ;;  %v338_v33 = vld [vmem:[%s5751_s0 + $0xa20] sm:$0xff] }
 0x1e8   :  { %1628 = vmatprep.mubr.f32.mxu0 %v422_v61  ;;  %2692 = vmatprep.mubr.f32.mxu1 %v328_v27  ;;  %v426_v21 = vld [vmem:[%s5751_s0 + $0xce0] sm:$0xff]  ;;  %v343_v37 = vld [vmem:[%s5751_s0 + $0xa48] sm:$0xff] }
 0x1ea   :  { %v1365_v40 = vpop.f32.mrb[56].mxu0  ;;  %v4799_v55 = vpop.f32.mrb[106].mxu1 }
 0x1eb   :  { %5784 = vst [vmem:[#allocation27_spill] sm:$0xff] %v4799_v55  ;;  %v4802_v61 = vadd.f32 %v1365_v40, %v4040_v39  ;;  %v1367_v27 = vpop.f32.mrb[57].mxu0  ;;  %1629 = vmatmul.mubr.f32.gmra.mrb[162].mxu0 %v421_v23  ;;  %2693 = vmatmul.mubr.f32.gmra.mrb[212].mxu1 %v333_v13  ;;  %v1052_v15 = vpop.f32.mrb[107].mxu1  ;;  %v432_v55 = vld [vmem:[%s5751_s0 + $0xd10] sm:$0xff] }
 0x1ec   :  { %1633 = vmatprep.mubr.f32.mxu0 %v427_v8  ;;  %2695 = vmatprep.mubr.f32.mxu1 %v338_v33  ;;  %v348_v39 = vld [vmem:[%s5751_s0 + $0xa70] sm:$0xff]  ;;  %v431_v27 = vld [vmem:[%s5751_s0 + $0xd08] sm:$0xff]  ;;  %v353_v15 = vld [vmem:[%s5751_s0 + $0xa98] sm:$0xff] }
 0x1ee   :  { %v1370_v23 = vpop.f32.mrb[58].mxu0  ;;  %v4816_v13 = vpop.f32.mrb[108].mxu1 }
 0x1ef   :  { %5785 = vst [vmem:[#allocation28_spill] sm:$0xff] %v4816_v13  ;;  %v4819_v8 = vadd.f32 %v1370_v23, %v4054_v45  ;;  %v1372_v33 = vpop.f32.mrb[59].mxu0  ;;  %1634 = vmatmul.mubr.f32.gmra.mrb[164].mxu0 %v426_v21  ;;  %2696 = vmatmul.mubr.f32.gmra.mrb[214].mxu1 %v343_v37  ;;  %v1057_v40 = vpop.f32.mrb[109].mxu1  ;;  %v437_v13 = vld [vmem:[%s5751_s0 + $0xd38] sm:$0xff]  ;;  %v358_v45 = vld [vmem:[%s5751_s0 + $0xac0] sm:$0xff] }
 0x1f0   :  { %1638 = vmatprep.mubr.f32.mxu0 %v432_v55  ;;  %2698 = vmatprep.mubr.f32.mxu1 %v348_v39  ;;  %v436_v33 = vld [vmem:[%s5751_s0 + $0xd30] sm:$0xff]  ;;  %v363_v40 = vld [vmem:[%s5751_s0 + $0xae8] sm:$0xff] }
 0x1f2   :  { %v1375_v21 = vpop.f32.mrb[60].mxu0  ;;  %v4833_v37 = vpop.f32.mrb[110].mxu1 }
 0x1f3   :  { %5786 = vst [vmem:[#allocation29_spill] sm:$0xff] %v4833_v37  ;;  %v4836_v55 = vadd.f32 %v1375_v21, %v4068_v51  ;;  %v1377_v39 = vpop.f32.mrb[61].mxu0  ;;  %1639 = vmatmul.mubr.f32.gmra.mrb[166].mxu0 %v431_v27  ;;  %2699 = vmatmul.mubr.f32.gmra.mrb[216].mxu1 %v353_v15  ;;  %v1062_v23 = vpop.f32.mrb[111].mxu1  ;;  %v442_v37 = vld [vmem:[%s5751_s0 + $0xd60] sm:$0xff]  ;;  %v368_v51 = vld [vmem:[%s5751_s0 + $0xb10] sm:$0xff] }
 0x1f4   :  { %1643 = vmatprep.mubr.f32.mxu0 %v437_v13  ;;  %2701 = vmatprep.mubr.f32.mxu1 %v358_v45  ;;  %v441_v39 = vld [vmem:[%s5751_s0 + $0xd58] sm:$0xff] }
 0x1f5   :  { %v373_v23 = vld [vmem:[%s5751_s0 + $0xb38] sm:$0xff] }
 0x1f6   :  { %v1380_v27 = vpop.f32.mrb[62].mxu0  ;;  %v4850_v15 = vpop.f32.mrb[112].mxu1 }
 0x1f7   :  { %5787 = vst [vmem:[#allocation30_spill] sm:$0xff] %v4850_v15  ;;  %v4853_v13 = vadd.f32 %v1380_v27, %v4082_v56  ;;  %v1382_v45 = vpop.f32.mrb[63].mxu0  ;;  %1644 = vmatmul.mubr.f32.gmra.mrb[168].mxu0 %v436_v33  ;;  %2702 = vmatmul.mubr.f32.gmra.mrb[218].mxu1 %v363_v40  ;;  %v1067_v21 = vpop.f32.mrb[113].mxu1  ;;  %v447_v15 = vld [vmem:[%s5751_s0 + $0xd88] sm:$0xff]  ;;  %v378_v56 = vld [vmem:[%s5751_s0 + $0xb60] sm:$0xff] }
 0x1f8   :  { %1648 = vmatprep.mubr.f32.mxu0 %v442_v37  ;;  %2704 = vmatprep.mubr.f32.mxu1 %v368_v51  ;;  %v446_v45 = vld [vmem:[%s5751_s0 + $0xd80] sm:$0xff]  ;;  %v383_v21 = vld [vmem:[%s5751_s0 + $0xb88] sm:$0xff] }
 0x1fa   :  { %v1385_v33 = vpop.f32.mrb[64].mxu0  ;;  %v4867_v40 = vpop.f32.mrb[114].mxu1 }
 0x1fb   :  { %5788 = vst [vmem:[#allocation31_spill] sm:$0xff] %v4867_v40  ;;  %v4870_v37 = vadd.f32 %v1385_v33, %v4096_v62  ;;  %v1387_v51 = vpop.f32.mrb[65].mxu0  ;;  %1649 = vmatmul.mubr.f32.gmra.mrb[170].mxu0 %v441_v39  ;;  %2705 = vmatmul.mubr.f32.gmra.mrb[220].mxu1 %v373_v23  ;;  %v1072_v27 = vpop.f32.mrb[115].mxu1  ;;  %v452_v40 = vld [vmem:[%s5751_s0 + $0xdb0] sm:$0xff] }
 0x1fc   :  { %1653 = vmatprep.mubr.f32.mxu0 %v447_v15  ;;  %2707 = vmatprep.mubr.f32.mxu1 %v378_v56  ;;  %v388_v62 = vld [vmem:[%s5751_s0 + $0xbb0] sm:$0xff]  ;;  %v451_v51 = vld [vmem:[%s5751_s0 + $0xda8] sm:$0xff]  ;;  %v393_v27 = vld [vmem:[%s5751_s0 + $0xbd8] sm:$0xff] }
 0x1fe   :  { %v1390_v39 = vpop.f32.mrb[66].mxu0  ;;  %v4884_v23 = vpop.f32.mrb[116].mxu1 }
 0x1ff   :  { %5789 = vst [vmem:[#allocation32_spill] sm:$0xff] %v4884_v23  ;;  %v4887_v15 = vadd.f32 %v1390_v39, %v4110_v5  ;;  %v1392_v56 = vpop.f32.mrb[67].mxu0  ;;  %1654 = vmatmul.mubr.f32.gmra.mrb[172].mxu0 %v446_v45  ;;  %2708 = vmatmul.mubr.f32.gmra.mrb[222].mxu1 %v383_v21  ;;  %v1077_v33 = vpop.f32.mrb[117].mxu1  ;;  %v457_v23 = vld [vmem:[%s5751_s0 + $0xdd8] sm:$0xff]  ;;  %v398_v5 = vld [vmem:[%s5751_s0 + $0xc00] sm:$0xff] }
 0x200   :  { %1658 = vmatprep.mubr.f32.mxu0 %v452_v40  ;;  %2710 = vmatprep.mubr.f32.mxu1 %v388_v62  ;;  %v456_v56 = vld [vmem:[%s5751_s0 + $0xdd0] sm:$0xff]  ;;  %v403_v33 = vld [vmem:[%s5751_s0 + $0xc28] sm:$0xff] }
 0x202   :  { %v1395_v45 = vpop.f32.mrb[68].mxu0  ;;  %v4901_v21 = vpop.f32.mrb[118].mxu1 }
 0x203   :  { %5790 = vst [vmem:[#allocation33_spill] sm:$0xff] %v4901_v21  ;;  %v4904_v40 = vadd.f32 %v1395_v45, %v4124_v11  ;;  %v1397_v62 = vpop.f32.mrb[69].mxu0  ;;  %1659 = vmatmul.mubr.f32.gmra.mrb[174].mxu0 %v451_v51  ;;  %2711 = vmatmul.mubr.f32.gmra.mrb[224].mxu1 %v393_v27  ;;  %v1082_v39 = vpop.f32.mrb[119].mxu1  ;;  %v462_v21 = vld [vmem:[%s5751_s0 + $0xe00] sm:$0xff]  ;;  %v408_v11 = vld [vmem:[%s5751_s0 + $0xc50] sm:$0xff] }
 0x204   :  { %1663 = vmatprep.mubr.f32.mxu0 %v457_v23  ;;  %2713 = vmatprep.mubr.f32.mxu1 %v398_v5  ;;  %v461_v62 = vld [vmem:[%s5751_s0 + $0xdf8] sm:$0xff] }
 0x205   :  { %v413_v39 = vld [vmem:[%s5751_s0 + $0xc78] sm:$0xff] }
 0x206   :  { %v1400_v51 = vpop.f32.mrb[70].mxu0  ;;  %v4918_v27 = vpop.f32.mrb[120].mxu1 }
 0x207   :  { %5791 = vst [vmem:[#allocation34_spill] sm:$0xff] %v4918_v27  ;;  %v4921_v23 = vadd.f32 %v1400_v51, %v4138_v17  ;;  %v1402_v5 = vpop.f32.mrb[71].mxu0  ;;  %1664 = vmatmul.mubr.f32.gmra.mrb[176].mxu0 %v456_v56  ;;  %2714 = vmatmul.mubr.f32.gmra.mrb[226].mxu1 %v403_v33  ;;  %v1087_v45 = vpop.f32.mrb[121].mxu1  ;;  %v467_v27 = vld [vmem:[%s5751_s0 + $0xe28] sm:$0xff]  ;;  %v418_v17 = vld [vmem:[%s5751_s0 + $0xca0] sm:$0xff] }
 0x208   :  { %1668 = vmatprep.mubr.f32.mxu0 %v462_v21  ;;  %2716 = vmatprep.mubr.f32.mxu1 %v408_v11  ;;  %v466_v5 = vld [vmem:[%s5751_s0 + $0xe20] sm:$0xff]  ;;  %v423_v45 = vld [vmem:[%s5751_s0 + $0xcc8] sm:$0xff] }
 0x20a   :  { %v1405_v56 = vpop.f32.mrb[72].mxu0  ;;  %v4935_v33 = vpop.f32.mrb[122].mxu1 }
 0x20b   :  { %5792 = vst [vmem:[#allocation35_spill] sm:$0xff] %v4935_v33  ;;  %v4938_v21 = vadd.f32 %v1405_v56, %v4152_v24  ;;  %v1407_v11 = vpop.f32.mrb[73].mxu0  ;;  %1669 = vmatmul.mubr.f32.gmra.mrb[178].mxu0 %v461_v62  ;;  %2717 = vmatmul.mubr.f32.gmra.mrb[228].mxu1 %v413_v39  ;;  %v1092_v51 = vpop.f32.mrb[123].mxu1  ;;  %v472_v33 = vld [vmem:[%s5751_s0 + $0xe50] sm:$0xff] }
 0x20c   :  { %1673 = vmatprep.mubr.f32.mxu0 %v467_v27  ;;  %2719 = vmatprep.mubr.f32.mxu1 %v418_v17  ;;  %v428_v24 = vld [vmem:[%s5751_s0 + $0xcf0] sm:$0xff]  ;;  %v471_v11 = vld [vmem:[%s5751_s0 + $0xe48] sm:$0xff]  ;;  %v433_v51 = vld [vmem:[%s5751_s0 + $0xd18] sm:$0xff] }
 0x20e   :  { %v1410_v62 = vpop.f32.mrb[74].mxu0  ;;  %v4952_v39 = vpop.f32.mrb[124].mxu1 }
 0x20f   :  { %5793 = vst [vmem:[#allocation36_spill] sm:$0xff] %v4952_v39  ;;  %v4955_v27 = vadd.f32 %v1410_v62, %v4166_v31  ;;  %v1412_v17 = vpop.f32.mrb[75].mxu0  ;;  %1674 = vmatmul.mubr.f32.gmra.mrb[180].mxu0 %v466_v5  ;;  %2720 = vmatmul.mubr.f32.gmra.mrb[230].mxu1 %v423_v45  ;;  %v1097_v56 = vpop.f32.mrb[125].mxu1  ;;  %v477_v39 = vld [vmem:[%s5751_s0 + $0xe78] sm:$0xff]  ;;  %v438_v31 = vld [vmem:[%s5751_s0 + $0xd40] sm:$0xff] }
 0x210   :  { %1678 = vmatprep.mubr.f32.mxu0 %v472_v33  ;;  %2722 = vmatprep.mubr.f32.mxu1 %v428_v24  ;;  %v476_v17 = vld [vmem:[%s5751_s0 + $0xe70] sm:$0xff]  ;;  %v443_v56 = vld [vmem:[%s5751_s0 + $0xd68] sm:$0xff] }
 0x212   :  { %v1415_v5 = vpop.f32.mrb[76].mxu0  ;;  %v4969_v45 = vpop.f32.mrb[126].mxu1 }
 0x213   :  { %5794 = vst [vmem:[#allocation37_spill] sm:$0xff] %v4969_v45  ;;  %v4972_v33 = vadd.f32 %v1415_v5, %v4180_v38  ;;  %v1417_v24 = vpop.f32.mrb[77].mxu0  ;;  %1679 = vmatmul.mubr.f32.gmra.mrb[182].mxu0 %v471_v11  ;;  %2723 = vmatmul.mubr.f32.gmra.mrb[232].mxu1 %v433_v51  ;;  %v1102_v62 = vpop.f32.mrb[127].mxu1  ;;  %v482_v45 = vld [vmem:[%s5751_s0 + $0xea0] sm:$0xff]  ;;  %v448_v38 = vld [vmem:[%s5751_s0 + $0xd90] sm:$0xff] }
 0x214   :  { %1683 = vmatprep.mubr.f32.mxu0 %v477_v39  ;;  %2725 = vmatprep.mubr.f32.mxu1 %v438_v31  ;;  %v481_v24 = vld [vmem:[%s5751_s0 + $0xe98] sm:$0xff] }
 0x215   :  { %v453_v62 = vld [vmem:[%s5751_s0 + $0xdb8] sm:$0xff] }
 0x216   :  { %v1420_v11 = vpop.f32.mrb[78].mxu0  ;;  %v4986_v51 = vpop.f32.mrb[128].mxu1 }
 0x217   :  { %5795 = vst [vmem:[#allocation38_spill] sm:$0xff] %v4986_v51  ;;  %v4989_v39 = vadd.f32 %v1420_v11, %v4194_v46  ;;  %v1422_v31 = vpop.f32.mrb[79].mxu0  ;;  %1684 = vmatmul.mubr.f32.gmra.mrb[184].mxu0 %v476_v17  ;;  %2726 = vmatmul.mubr.f32.gmra.mrb[234].mxu1 %v443_v56  ;;  %v1107_v5 = vpop.f32.mrb[129].mxu1  ;;  %v487_v51 = vld [vmem:[%s5751_s0 + $0xec8] sm:$0xff]  ;;  %v458_v46 = vld [vmem:[%s5751_s0 + $0xde0] sm:$0xff] }
 0x218   :  { %1688 = vmatprep.mubr.f32.mxu0 %v482_v45  ;;  %2728 = vmatprep.mubr.f32.mxu1 %v448_v38  ;;  %v486_v31 = vld [vmem:[%s5751_s0 + $0xec0] sm:$0xff]  ;;  %v463_v5 = vld [vmem:[%s5751_s0 + $0xe08] sm:$0xff] }
 0x21a   :  { %v1425_v17 = vpop.f32.mrb[80].mxu0  ;;  %v5003_v56 = vpop.f32.mrb[130].mxu1 }
 0x21b   :  { %5796 = vst [vmem:[#allocation39_spill] sm:$0xff] %v5003_v56  ;;  %v5006_v45 = vadd.f32 %v1425_v17, %v4208_v53  ;;  %v1427_v38 = vpop.f32.mrb[81].mxu0  ;;  %1689 = vmatmul.mubr.f32.gmra.mrb[186].mxu0 %v481_v24  ;;  %2729 = vmatmul.mubr.f32.gmra.mrb[236].mxu1 %v453_v62  ;;  %v1112_v11 = vpop.f32.mrb[131].mxu1  ;;  %v492_v56 = vld [vmem:[%s5751_s0 + $0xef0] sm:$0xff] }
 0x21c   :  { %1693 = vmatprep.mubr.f32.mxu0 %v487_v51  ;;  %2731 = vmatprep.mubr.f32.mxu1 %v458_v46  ;;  %v468_v53 = vld [vmem:[%s5751_s0 + $0xe30] sm:$0xff]  ;;  %v491_v38 = vld [vmem:[%s5751_s0 + $0xee8] sm:$0xff]  ;;  %v473_v11 = vld [vmem:[%s5751_s0 + $0xe58] sm:$0xff] }
 0x21e   :  { %v1430_v24 = vpop.f32.mrb[82].mxu0  ;;  %v5020_v62 = vpop.f32.mrb[132].mxu1 }
 0x21f   :  { %5797 = vst [vmem:[#allocation40_spill] sm:$0xff] %v5020_v62  ;;  %v5023_v51 = vadd.f32 %v1430_v24, %v4222_v59  ;;  %v1432_v46 = vpop.f32.mrb[83].mxu0  ;;  %1694 = vmatmul.mubr.f32.gmra.mrb[188].mxu0 %v486_v31  ;;  %2732 = vmatmul.mubr.f32.gmra.mrb[238].mxu1 %v463_v5  ;;  %v1117_v17 = vpop.f32.mrb[133].mxu1  ;;  %v497_v62 = vld [vmem:[%s5751_s0 + $0xf18] sm:$0xff]  ;;  %v478_v59 = vld [vmem:[%s5751_s0 + $0xe80] sm:$0xff] }
 0x220   :  { %1698 = vmatprep.mubr.f32.mxu0 %v492_v56  ;;  %2734 = vmatprep.mubr.f32.mxu1 %v468_v53  ;;  %v496_v46 = vld [vmem:[%s5751_s0 + $0xf10] sm:$0xff]  ;;  %v483_v17 = vld [vmem:[%s5751_s0 + $0xea8] sm:$0xff] }
 0x222   :  { %v1435_v31 = vpop.f32.mrb[84].mxu0  ;;  %v5037_v5 = vpop.f32.mrb[134].mxu1 }
 0x223   :  { %5798 = vst [vmem:[#allocation41_spill] sm:$0xff] %v5037_v5  ;;  %v5040_v56 = vadd.f32 %v1435_v31, %v4236_v3  ;;  %v1437_v53 = vpop.f32.mrb[85].mxu0  ;;  %1699 = vmatmul.mubr.f32.gmra.mrb[190].mxu0 %v491_v38  ;;  %2735 = vmatmul.mubr.f32.gmra.mrb[240].mxu1 %v473_v11  ;;  %v1122_v24 = vpop.f32.mrb[135].mxu1  ;;  %v502_v5 = vld [vmem:[%s5751_s0 + $0xf40] sm:$0xff]  ;;  %v488_v3 = vld [vmem:[%s5751_s0 + $0xed0] sm:$0xff] }
 0x224   :  { %1703 = vmatprep.mubr.f32.mxu0 %v497_v62  ;;  %2737 = vmatprep.mubr.f32.mxu1 %v478_v59  ;;  %v501_v53 = vld [vmem:[%s5751_s0 + $0xf38] sm:$0xff] }
 0x225   :  { %5799 = vst [vmem:[#allocation42_spill] sm:$0xff] %v5040_v56  ;;  %v493_v24 = vld [vmem:[%s5751_s0 + $0xef8] sm:$0xff] }
 0x226   :  { %v1440_v38 = vpop.f32.mrb[86].mxu0  ;;  %v5054_v11 = vpop.f32.mrb[136].mxu1 }
 0x227   :  { %5800 = vst [vmem:[#allocation43_spill] sm:$0xff] %v5054_v11  ;;  %v5057_v62 = vadd.f32 %v1440_v38, %v4250_v10  ;;  %v1442_v59 = vpop.f32.mrb[87].mxu0  ;;  %1704 = vmatmul.mubr.f32.gmra.mrb[192].mxu0 %v496_v46  ;;  %2738 = vmatmul.mubr.f32.gmra.mrb[242].mxu1 %v483_v17  ;;  %v1127_v31 = vpop.f32.mrb[137].mxu1  ;;  %v507_v11 = vld [vmem:[%s5751_s0 + $0xf68] sm:$0xff]  ;;  %v498_v10 = vld [vmem:[%s5751_s0 + $0xf20] sm:$0xff] }
 0x228   :  { %1708 = vmatprep.mubr.f32.mxu0 %v502_v5  ;;  %2740 = vmatprep.mubr.f32.mxu1 %v488_v3  ;;  %v506_v59 = vld [vmem:[%s5751_s0 + $0xf60] sm:$0xff]  ;;  %v503_v31 = vld [vmem:[%s5751_s0 + $0xf48] sm:$0xff] }
 0x22a   :  { %v1445_v46 = vpop.f32.mrb[88].mxu0  ;;  %v5071_v17 = vpop.f32.mrb[138].mxu1 }
 0x22b   :  { %5801 = vst [vmem:[#allocation44_spill] sm:$0xff] %v5071_v17  ;;  %v5074_v5 = vadd.f32 %v1445_v46, %v4264_v18  ;;  %v1447_v3 = vpop.f32.mrb[89].mxu0  ;;  %1709 = vmatmul.mubr.f32.gmra.mrb[194].mxu0 %v501_v53  ;;  %2741 = vmatmul.mubr.f32.gmra.mrb[244].mxu1 %v493_v24  ;;  %v1132_v38 = vpop.f32.mrb[139].mxu1  ;;  %v512_v17 = vld [vmem:[%s5751_s0 + $0xf90] sm:$0xff] }
 0x22c   :  { %1713 = vmatprep.mubr.f32.mxu0 %v507_v11  ;;  %2743 = vmatprep.mubr.f32.mxu1 %v498_v10  ;;  %v508_v18 = vld [vmem:[%s5751_s0 + $0xf70] sm:$0xff]  ;;  %v511_v3 = vld [vmem:[%s5751_s0 + $0xf88] sm:$0xff]  ;;  %v513_v38 = vld [vmem:[%s5751_s0 + $0xf98] sm:$0xff] }
 0x22d   :  { %5802 = vst [vmem:[#allocation45_spill] sm:$0xff] %v5074_v5 }
 0x22e   :  { %v1450_v53 = vpop.f32.mrb[90].mxu0  ;;  %v5088_v24 = vpop.f32.mrb[140].mxu1 }
 0x22f   :  { %5803 = vst [vmem:[#allocation46_spill] sm:$0xff] %v5088_v24  ;;  %v5091_v11 = vadd.f32 %v1450_v53, %v4278_v26  ;;  %v1452_v10 = vpop.f32.mrb[91].mxu0  ;;  %1714 = vmatmul.mubr.f32.gmra.mrb[196].mxu0 %v506_v59  ;;  %2744 = vmatmul.mubr.f32.gmra.mrb[246].mxu1 %v503_v31  ;;  %v1137_v46 = vpop.f32.mrb[141].mxu1 }
 0x230   :  { %1718 = vmatprep.mubr.f32.mxu0 %v512_v17  ;;  %2746 = vmatprep.mubr.f32.mxu1 %v508_v18 }
 0x231   :  { %5804 = vst [vmem:[#allocation47_spill] sm:$0xff] %v5091_v11 }
 0x232   :  { %v1455_v5 = vpop.f32.mrb[92].mxu0  ;;  %v5099_v56 = vpop.f32.mrb[142].mxu1 }
 0x233   :  { %5805 = vst [vmem:[#allocation48_spill] sm:$0xff] %v5099_v56  ;;  %v5102_v26 = vadd.f32 %v1455_v5, %v4292_v35  ;;  %v1457_v53 = vpop.f32.mrb[93].mxu0  ;;  %1719 = vmatmul.mubr.f32.gmra.mrb[198].mxu0 %v511_v3  ;;  %2747 = vmatmul.mubr.f32.gmra.mrb[248].mxu1 %v513_v38  ;;  %v1142_v59 = vpop.f32.mrb[143].mxu1 }
 0x236   :  { %v1460_v17 = vpop.f32.mrb[94].mxu0  ;;  %v5104_v31 = vpop.f32.mrb[144].mxu1 }
 0x237   :  { %5806 = vst [vmem:[#allocation49_spill] sm:$0xff] %v5104_v31  ;;  %v5107_v18 = vadd.f32 %v1460_v17, %v4306_v43  ;;  %v1462_v10 = vpop.f32.mrb[95].mxu0  ;;  %v1147_v46 = vpop.f32.mrb[145].mxu1 }
 0x23a   :  { %v1465_v24 = vpop.f32.mrb[96].mxu0  ;;  %v5109_v11 = vpop.f32.mrb[146].mxu1 }
 0x23b   :  { %5807 = vst [vmem:[#allocation50_spill] sm:$0xff] %v5109_v11  ;;  %v5112_v56 = vadd.f32 %v1465_v24, %v4320_v52  ;;  %v1467_v35 = vpop.f32.mrb[97].mxu0  ;;  %v1152_v5 = vpop.f32.mrb[147].mxu1 }
 0x23e   :  { %v1470_v53 = vpop.f32.mrb[98].mxu0  ;;  %v5114_v3 = vpop.f32.mrb[148].mxu1 }
 0x23f   :  { %5808 = vst [vmem:[#allocation51_spill] sm:$0xff] %v5114_v3  ;;  %v5117_v38 = vadd.f32 %v1470_v53, %v4334_v60  ;;  %v1472_v59 = vpop.f32.mrb[99].mxu0  ;;  %v1157_v31 = vpop.f32.mrb[149].mxu1 }
 0x242   :  { %v1475_v43 = vpop.f32.mrb[100].mxu0  ;;  %v2601_v17 = vpop.f32.mrb[150].mxu1 }
 0x243   :  { %v5120_v10 = vadd.f32 %v1475_v43, %v4350_v7  ;;  %v5123_v46 = vadd.f32 %v2601_v17, %v4364_v16  ;;  %v1477_v52 = vpop.f32.mrb[101].mxu0  ;;  %v1790_v24 = vpop.f32.mrb[151].mxu1 }
 0x244   :  { %v5126_v35 = vadd.f32 %v1790_v24, %v4348_v6 }
 0x246   :  { %v1480_v5 = vpop.f32.mrb[102].mxu0  ;;  %v2604_v3 = vpop.f32.mrb[152].mxu1 }
 0x247   :  { %v5129_v60 = vadd.f32 %v1480_v5, %v4366_v19  ;;  %v5132_v31 = vadd.f32 %v2604_v3, %v4396_v44  ;;  %v1482_v53 = vpop.f32.mrb[103].mxu0  ;;  %v1800_v59 = vpop.f32.mrb[153].mxu1 }
 0x248   :  { %v5135_v7 = vadd.f32 %v1800_v59, %v4380_v30 }
 0x24a   :  { %v1485_v16 = vpop.f32.mrb[104].mxu0  ;;  %v2607_v43 = vpop.f32.mrb[154].mxu1 }
 0x24b   :  { %v5138_v17 = vadd.f32 %v1485_v16, %v4382_v32  ;;  %v5141_v6 = vadd.f32 %v2607_v43, %v4428_v9  ;;  %v1487_v52 = vpop.f32.mrb[105].mxu0  ;;  %v1810_v24 = vpop.f32.mrb[155].mxu1 }
 0x24c   :  { %v5144_v19 = vadd.f32 %v1810_v24, %v4412_v57 }
 0x24d   :  { %5809 = vst [vmem:[#allocation52_spill] sm:$0xff] %v5138_v17 }
 0x24e   :  { %v1490_v44 = vpop.f32.mrb[106].mxu0  ;;  %v2610_v3 = vpop.f32.mrb[156].mxu1 }
 0x24f   :  { %v5147_v5 = vadd.f32 %v1490_v44, %v4398_v47  ;;  %v5150_v30 = vadd.f32 %v2610_v3, %v4460_v42  ;;  %v1492_v53 = vpop.f32.mrb[107].mxu0  ;;  %v1820_v59 = vpop.f32.mrb[157].mxu1 }
 0x250   :  { %v5153_v32 = vadd.f32 %v1820_v59, %v4444_v25 }
 0x252   :  { %v1495_v9 = vpop.f32.mrb[108].mxu0  ;;  %v2613_v16 = vpop.f32.mrb[158].mxu1 }
 0x253   :  { %v5156_v43 = vadd.f32 %v1495_v9, %v4414_v58  ;;  %v5159_v57 = vadd.f32 %v2613_v16, %v4492_v20  ;;  %v1497_v52 = vpop.f32.mrb[109].mxu0  ;;  %v1830_v24 = vpop.f32.mrb[159].mxu1 }
 0x254   :  { %v5162_v47 = vadd.f32 %v1830_v24, %v4476_v63 }
 0x255   :  { %5810 = vst [vmem:[#allocation53_spill] sm:$0xff] %v5156_v43 }
 0x256   :  { %v1500_v42 = vpop.f32.mrb[110].mxu0  ;;  %v2616_v44 = vpop.f32.mrb[160].mxu1 }
 0x257   :  { %v5165_v3 = vadd.f32 %v1500_v42, %v4430_v12  ;;  %v5168_v25 = vadd.f32 %v2616_v44, %v4524_v4  ;;  %v1502_v53 = vpop.f32.mrb[111].mxu0  ;;  %v1840_v59 = vpop.f32.mrb[161].mxu1 }
 0x258   :  { %v5171_v58 = vadd.f32 %v1840_v59, %v4508_v41 }
 0x259   :  { %5811 = vst [vmem:[#allocation54_spill] sm:$0xff] %v5165_v3 }
 0x25a   :  { %v1505_v20 = vpop.f32.mrb[112].mxu0  ;;  %v2619_v9 = vpop.f32.mrb[162].mxu1 }
 0x25b   :  { %v5174_v16 = vadd.f32 %v1505_v20, %v4446_v28  ;;  %v5177_v63 = vadd.f32 %v2619_v9, %v4556_v2  ;;  %v1507_v52 = vpop.f32.mrb[113].mxu0  ;;  %v1850_v24 = vpop.f32.mrb[163].mxu1 }
 0x25c   :  { %v5180_v12 = vadd.f32 %v1850_v24, %v4540_v36 }
 0x25d   :  { %5812 = vst [vmem:[#allocation55_spill] sm:$0xff] %v5174_v16 }
 0x25e   :  { %v1510_v4 = vpop.f32.mrb[114].mxu0  ;;  %v2622_v42 = vpop.f32.mrb[164].mxu1 }
 0x25f   :  { %v5183_v44 = vadd.f32 %v1510_v4, %v4462_v48  ;;  %v5186_v41 = vadd.f32 %v2622_v42, %v4588_v29  ;;  %v1512_v53 = vpop.f32.mrb[115].mxu0  ;;  %v1860_v59 = vpop.f32.mrb[165].mxu1 }
 0x260   :  { %v5189_v28 = vadd.f32 %v1860_v59, %v4572_v50  ;;  %v5816_v50 = vld [vmem:[#allocation12_spill] sm:$0xff] }
 0x261   :  { %5813 = vst [vmem:[#allocation56_spill] sm:$0xff] %v5183_v44 }
 0x262   :  { %v1515_v2 = vpop.f32.mrb[116].mxu0  ;;  %v2625_v20 = vpop.f32.mrb[166].mxu1 }
 0x263   :  { %v5192_v9 = vadd.f32 %v1515_v2, %v4478_v1  ;;  %v5195_v36 = vadd.f32 %v2625_v20, %v4620_v54  ;;  %v1517_v52 = vpop.f32.mrb[117].mxu0  ;;  %v1870_v24 = vpop.f32.mrb[167].mxu1  ;;  %v5817_v1 = vld [vmem:[#allocation10_spill] sm:$0xff] }
 0x264   :  { %v5198_v48 = vadd.f32 %v1870_v24, %v4604_v14  ;;  %v5819_v52 = vld [vmem:[#allocation2_spill] sm:$0xff]  ;;  %v5821_v14 = vld [vmem:[#allocation16_spill] sm:$0xff] }
 0x265   :  { %5814 = vst [vmem:[#allocation57_spill] sm:$0xff] %v5192_v9 }
 0x266   :  { %v1520_v29 = vpop.f32.mrb[118].mxu0  ;;  %v2628_v4 = vpop.f32.mrb[168].mxu1 }
 0x267   :  { %v5201_v42 = vadd.f32 %v1520_v29, %v4494_v22  ;;  %v5204_v53 = vadd.f32 %v2628_v4, %v5816_v50  ;;  %v1522_v59 = vpop.f32.mrb[119].mxu0  ;;  %v1880_v11 = vpop.f32.mrb[169].mxu1  ;;  %v5822_v22 = vld [vmem:[#allocation14_spill] sm:$0xff] }
 0x268   :  { %v5207_v2 = vadd.f32 %v1880_v11, %v5817_v1  ;;  %v5823_v59 = vld [vmem:[#allocation3_spill] sm:$0xff]  ;;  %v5825_v11 = vld [vmem:[#allocation20_spill] sm:$0xff] }
 0x269   :  { %5815 = vst [vmem:[#allocation58_spill] sm:$0xff] %v5201_v42 }
 0x26a   :  { %5818 = vst [vmem:[#allocation12_spill] sm:$0xff] %v5207_v2  ;;  %v1525_v54 = vpop.f32.mrb[120].mxu0  ;;  %v2631_v20 = vpop.f32.mrb[170].mxu1 }
 0x26b   :  { %v5210_v9 = vadd.f32 %v1525_v54, %v5819_v52  ;;  %v5213_v24 = vadd.f32 %v2631_v20, %v5821_v14  ;;  %v1527_v16 = vpop.f32.mrb[121].mxu0  ;;  %v1890_v44 = vpop.f32.mrb[171].mxu1  ;;  %v5826_v54 = vld [vmem:[#allocation18_spill] sm:$0xff] }
 0x26c   :  { %v5216_v29 = vadd.f32 %v1890_v44, %v5822_v22  ;;  %v5827_v16 = vld [vmem:[#allocation4_spill] sm:$0xff] }
 0x26d   :  { %5820 = vst [vmem:[#allocation10_spill] sm:$0xff] %v5210_v9 }
 0x26e   :  { %v1530_v4 = vpop.f32.mrb[122].mxu0  ;;  %v2634_v50 = vpop.f32.mrb[172].mxu1 }
 0x26f   :  { %v5219_v42 = vadd.f32 %v1530_v4, %v5823_v59  ;;  %v5222_v1 = vadd.f32 %v2634_v50, %v5825_v11  ;;  %v1532_v43 = vpop.f32.mrb[123].mxu0  ;;  %v1900_v3 = vpop.f32.mrb[173].mxu1  ;;  %v5829_v4 = vld [vmem:[#allocation22_spill] sm:$0xff] }
 0x270   :  { %v5225_v52 = vadd.f32 %v1900_v3, %v5826_v54  ;;  %v5830_v3 = vld [vmem:[#allocation5_spill] sm:$0xff]  ;;  %v5832_v43 = vld [vmem:[#allocation6_spill] sm:$0xff] }
 0x271   :  { %5824 = vst [vmem:[#allocation2_spill] sm:$0xff] %v5219_v42 }
 0x272   :  { %v1535_v20 = vpop.f32.mrb[124].mxu0  ;;  %v2637_v14 = vpop.f32.mrb[174].mxu1 }
 0x273   :  { %v5228_v9 = vadd.f32 %v1535_v20, %v5827_v16  ;;  %v5231_v44 = vadd.f32 %v2637_v14, %v4751_v49  ;;  %v1537_v22 = vpop.f32.mrb[125].mxu0  ;;  %v1910_v17 = vpop.f32.mrb[175].mxu1  ;;  %v5834_v14 = vld [vmem:[#allocation7_spill] sm:$0xff] }
 0x274   :  { %v5234_v59 = vadd.f32 %v1910_v17, %v5829_v4 }
 0x275   :  { %5828 = vst [vmem:[#allocation16_spill] sm:$0xff] %v5228_v9 }
 0x276   :  { %v1540_v50 = vpop.f32.mrb[126].mxu0  ;;  %v2640_v11 = vpop.f32.mrb[176].mxu1 }
 0x277   :  { %v5239_v54 = vadd.f32 %v1540_v50, %v5830_v3  ;;  %v5242_v42 = vadd.f32 %v2640_v11, %v4785_v0  ;;  %v1542_v20 = vpop.f32.mrb[127].mxu0  ;;  %v1920_v16 = vpop.f32.mrb[177].mxu1 }
 0x278   :  { %v5245_v49 = vadd.f32 %v1920_v16, %v4768_v34  ;;  %v5836_v20 = vld [vmem:[#allocation8_spill] sm:$0xff] }
 0x279   :  { %5831 = vst [vmem:[#allocation14_spill] sm:$0xff] %v5239_v54 }
 0x27a   :  { %v1545_v22 = vpop.f32.mrb[128].mxu0  ;;  %v2643_v4 = vpop.f32.mrb[178].mxu1 }
 0x27b   :  { %v5252_v9 = vadd.f32 %v1545_v22, %v5832_v43  ;;  %v5255_v50 = vadd.f32 %v2643_v4, %v4819_v8  ;;  %v1547_v0 = vpop.f32.mrb[129].mxu0  ;;  %v1930_v11 = vpop.f32.mrb[179].mxu1 }
 0x27c   :  { %v5258_v3 = vadd.f32 %v1930_v11, %v4802_v61  ;;  %v5838_v0 = vld [vmem:[#allocation9_spill] sm:$0xff] }
 0x27d   :  { %5833 = vst [vmem:[#allocation3_spill] sm:$0xff] %v5252_v9 }
 0x27e   :  { %v1550_v16 = vpop.f32.mrb[130].mxu0  ;;  %v2646_v17 = vpop.f32.mrb[180].mxu1 }
 0x27f   :  { %v5265_v54 = vadd.f32 %v1550_v16, %v5834_v14  ;;  %v5268_v43 = vadd.f32 %v2646_v17, %v4853_v13  ;;  %v1552_v8 = vpop.f32.mrb[131].mxu0  ;;  %v1940_v22 = vpop.f32.mrb[181].mxu1 }
 0x280   :  { %v5271_v4 = vadd.f32 %v1940_v22, %v4836_v55  ;;  %v5840_v8 = vld [vmem:[#allocation11_spill] sm:$0xff] }
 0x281   :  { %5835 = vst [vmem:[#allocation20_spill] sm:$0xff] %v5265_v54 }
 0x282   :  { %v1555_v11 = vpop.f32.mrb[132].mxu0  ;;  %v2649_v34 = vpop.f32.mrb[182].mxu1 }
 0x283   :  { %v5278_v9 = vadd.f32 %v1555_v11, %v5836_v20  ;;  %v5281_v14 = vadd.f32 %v2649_v34, %v4887_v15  ;;  %v1557_v13 = vpop.f32.mrb[133].mxu0  ;;  %v1950_v17 = vpop.f32.mrb[183].mxu1 }
 0x284   :  { %v5284_v16 = vadd.f32 %v1950_v17, %v4870_v37  ;;  %v5842_v13 = vld [vmem:[#allocation13_spill] sm:$0xff] }
 0x285   :  { %5837 = vst [vmem:[#allocation18_spill] sm:$0xff] %v5278_v9 }
 0x286   :  { %v1560_v22 = vpop.f32.mrb[134].mxu0  ;;  %v2652_v61 = vpop.f32.mrb[184].mxu1 }
 0x287   :  { %v5291_v54 = vadd.f32 %v1560_v22, %v5838_v0  ;;  %v5294_v20 = vadd.f32 %v2652_v61, %v4921_v23  ;;  %v1562_v15 = vpop.f32.mrb[135].mxu0  ;;  %v1960_v34 = vpop.f32.mrb[185].mxu1 }
 0x288   :  { %v5297_v11 = vadd.f32 %v1960_v34, %v4904_v40  ;;  %v5844_v15 = vld [vmem:[#allocation15_spill] sm:$0xff] }
 0x289   :  { %5839 = vst [vmem:[#allocation4_spill] sm:$0xff] %v5291_v54 }
 0x28a   :  { %v1565_v17 = vpop.f32.mrb[136].mxu0  ;;  %v2655_v55 = vpop.f32.mrb[186].mxu1 }
 0x28b   :  { %v5304_v9 = vadd.f32 %v1565_v17, %v5840_v8  ;;  %v5307_v0 = vadd.f32 %v2655_v55, %v4955_v27  ;;  %v1567_v23 = vpop.f32.mrb[137].mxu0  ;;  %v1970_v61 = vpop.f32.mrb[187].mxu1 }
 0x28c   :  { %v5310_v22 = vadd.f32 %v1970_v61, %v4938_v21  ;;  %v5847_v23 = vld [vmem:[#allocation17_spill] sm:$0xff] }
 0x28d   :  { %5841 = vst [vmem:[#allocation22_spill] sm:$0xff] %v5304_v9 }
 0x28e   :  { %v1570_v34 = vpop.f32.mrb[138].mxu0  ;;  %v2658_v37 = vpop.f32.mrb[188].mxu1 }
 0x28f   :  { %v5317_v54 = vadd.f32 %v1570_v34, %v5842_v13  ;;  %v5320_v8 = vadd.f32 %v2658_v37, %v4989_v39  ;;  %v1572_v27 = vpop.f32.mrb[139].mxu0  ;;  %v1980_v55 = vpop.f32.mrb[189].mxu1 }
 0x290   :  { %v5323_v17 = vadd.f32 %v1980_v55, %v4972_v33 }
 0x291   :  { %5843 = vst [vmem:[#allocation5_spill] sm:$0xff] %v5317_v54 }
 0x292   :  { %v1575_v61 = vpop.f32.mrb[140].mxu0  ;;  %v2661_v40 = vpop.f32.mrb[190].mxu1 }
 0x293   :  { %v5330_v9 = vadd.f32 %v1575_v61, %v5844_v15  ;;  %v5333_v13 = vadd.f32 %v2661_v40, %v5023_v51  ;;  %v1577_v39 = vpop.f32.mrb[141].mxu0  ;;  %v1990_v37 = vpop.f32.mrb[191].mxu1  ;;  %v5850_v61 = vld [vmem:[#allocation42_spill] sm:$0xff] }
 0x294   :  { %v5336_v34 = vadd.f32 %v1990_v37, %v5006_v45 }
 0x295   :  { %5845 = vst [vmem:[#allocation6_spill] sm:$0xff] %v5330_v9  ;;  %5846 = vst [vmem:[#allocation7_spill] sm:$0xff] %v5333_v13  ;;  %v5851_v9 = vld [vmem:[#allocation19_spill] sm:$0xff] }
 0x296   :  { %v1580_v55 = vpop.f32.mrb[142].mxu0  ;;  %v2664_v21 = vpop.f32.mrb[192].mxu1 }
 0x297   :  { %v5343_v54 = vadd.f32 %v1580_v55, %v5847_v23  ;;  %v5346_v15 = vadd.f32 %v2664_v21, %v5057_v62  ;;  %v1582_v51 = vpop.f32.mrb[143].mxu0  ;;  %v2000_v40 = vpop.f32.mrb[193].mxu1  ;;  %v5853_v23 = vld [vmem:[#allocation47_spill] sm:$0xff] }
 0x298   :  { %v5349_v39 = vadd.f32 %v2000_v40, %v5850_v61  ;;  %v5854_v51 = vld [vmem:[#allocation45_spill] sm:$0xff]  ;;  %v5857_v61 = vld [vmem:[#allocation23_spill] sm:$0xff] }
 0x299   :  { %5848 = vst [vmem:[#allocation8_spill] sm:$0xff] %v5343_v54  ;;  %5849 = vst [vmem:[#allocation9_spill] sm:$0xff] %v5346_v15  ;;  %v5855_v15 = vld [vmem:[#allocation21_spill] sm:$0xff] }
 0x29a   :  { %v1585_v33 = vpop.f32.mrb[144].mxu0  ;;  %v2667_v27 = vpop.f32.mrb[194].mxu1 }
 0x29b   :  { %v5356_v13 = vadd.f32 %v1585_v33, %v5851_v9  ;;  %v5359_v55 = vadd.f32 %v2667_v27, %v5853_v23  ;;  %v1587_v62 = vpop.f32.mrb[145].mxu0  ;;  %v2010_v21 = vpop.f32.mrb[195].mxu1 }
 0x29c   :  { %v5362_v54 = vadd.f32 %v2010_v21, %v5854_v51  ;;  %v5859_v21 = vld [vmem:[#allocation24_spill] sm:$0xff] }
 0x29d   :  { %5852 = vst [vmem:[#allocation11_spill] sm:$0xff] %v5356_v13 }
 0x29e   :  { %v1590_v45 = vpop.f32.mrb[146].mxu0  ;;  %v2670_v37 = vpop.f32.mrb[196].mxu1 }
 0x29f   :  { %v5369_v2 = vadd.f32 %v1590_v45, %v5855_v15  ;;  %v5372_v9 = vadd.f32 %v2670_v37, %v5107_v18  ;;  %v1592_v33 = vpop.f32.mrb[147].mxu0  ;;  %v2020_v27 = vpop.f32.mrb[197].mxu1 }
 0x2a0   :  { %v5375_v23 = vadd.f32 %v2020_v27, %v5102_v26 }
 0x2a1   :  { %5856 = vst [vmem:[#allocation13_spill] sm:$0xff] %v5372_v9 }
 0x2a2   :  { %v1595_v51 = vpop.f32.mrb[148].mxu0  ;;  %v2673_v40 = vpop.f32.mrb[198].mxu1 }
 0x2a3   :  { %v5382_v13 = vadd.f32 %v1595_v51, %v5857_v61  ;;  %v5385_v15 = vadd.f32 %v2673_v40, %v5117_v38  ;;  %v1597_v18 = vpop.f32.mrb[149].mxu0  ;;  %v2030_v45 = vpop.f32.mrb[199].mxu1 }
 0x2a4   :  { %v5388_v37 = vadd.f32 %v2030_v45, %v5112_v56  ;;  %v5860_v56 = vmax.f32 %v5123_v46, %v5245_v49  ;;  %v5861_v45 = vmax.f32 %v5126_v35, %v5231_v44  ;;  %v5864_v46 = vmax.f32 %v5132_v31, %v5258_v3 }
 0x2a5   :  { %5858 = vst [vmem:[#allocation15_spill] sm:$0xff] %v5385_v15  ;;  %v5865_v35 = vmax.f32 %v5135_v7, %v5242_v42  ;;  %v5869_v31 = vmax.f32 %v5141_v6, %v5271_v4  ;;  %v5870_v7 = vmax.f32 %v5144_v19, %v5255_v50  ;;  %v5874_v6 = vmax.f32 %v5150_v30, %v5284_v16 }
 0x2a6   :  { %v1600_v27 = vpop.f32.mrb[150].mxu0  ;;  %v2676_v62 = vpop.f32.mrb[200].mxu1  ;;  %v5875_v19 = vmax.f32 %v5153_v32, %v5268_v43  ;;  %v5879_v30 = vmax.f32 %v5159_v57, %v5297_v11  ;;  %v5880_v32 = vmax.f32 %v5162_v47, %v5281_v14  ;;  %v5884_v57 = vmax.f32 %v5168_v25, %v5310_v22 }
 0x2a7   :  { %v5395_v9 = vadd.f32 %v1600_v27, %v5859_v21  ;;  %v2046_v61 = vadd.f32 %v2676_v62, %v5129_v60  ;;  %v1602_v38 = vpop.f32.mrb[151].mxu0  ;;  %v2040_v40 = vpop.f32.mrb[201].mxu1  ;;  %v5862_v21 = vld [vmem:[#allocation25_spill] sm:$0xff]  ;;  %v5885_v47 = vmax.f32 %v5171_v58, %v5294_v20  ;;  %v5889_v25 = vmax.f32 %v5177_v63, %v5323_v17 }
 0x2a8   :  { %v2041_v51 = vadd.f32 %v2040_v40, %v5120_v10  ;;  %v5863_v10 = vld [vmem:[#allocation52_spill] sm:$0xff]  ;;  %v5890_v58 = vmax.f32 %v5180_v12, %v5307_v0  ;;  %v5894_v63 = vmax.f32 %v5186_v41, %v5336_v34  ;;  %v5895_v12 = vmax.f32 %v5189_v28, %v5320_v8  ;;  %v5900_v28 = vld [vmem:[#allocation7_spill] sm:$0xff] }
 0x2a9   :  { %v5402_v18 = vmax.f32 %v5860_v56, %v2046_v61  ;;  %v5899_v41 = vmax.f32 %v5195_v36, %v5349_v39  ;;  %v5901_v8 = vmax.f32 %v5198_v48, %v5900_v28  ;;  %v5905_v36 = vmax.f32 %v5204_v53, %v5362_v54  ;;  %v5907_v48 = vld [vmem:[#allocation9_spill] sm:$0xff] }
 0x2aa   :  { %v5407_v26 = vmax.f32 %v5861_v45, %v2041_v51  ;;  %v1605_v33 = vpop.f32.mrb[152].mxu0  ;;  %v2679_v15 = vpop.f32.mrb[202].mxu1  ;;  %v5912_v53 = vmax.f32 %v5213_v24, %v5375_v23  ;;  %v5916_v24 = vmax.f32 %v5222_v1, %v5388_v37  ;;  %v5581_v1 = vld [vmem:[%s5752_s2] ss:$0 sm:$0xff] }
 0x2ab   :  { %v5410_v27 = vadd.f32 %v1605_v33, %v5862_v21  ;;  %v2056_v60 = vadd.f32 %v2679_v15, %v5147_v5  ;;  %v1607_v62 = vpop.f32.mrb[153].mxu0  ;;  %v2050_v38 = vpop.f32.mrb[203].mxu1  ;;  %v5866_v33 = vld [vmem:[#allocation26_spill] sm:$0xff] }
 0x2ac   :  { %v2051_v40 = vadd.f32 %v2050_v38, %v5863_v10  ;;  %v5867_v5 = vld [vmem:[#allocation54_spill] sm:$0xff]  ;;  %v5868_v62 = vld [vmem:[#allocation53_spill] sm:$0xff] }
 0x2ad   :  { %v5417_v49 = vmax.f32 %v5864_v46, %v2056_v60 }
 0x2ae   :  { %v5422_v44 = vmax.f32 %v5865_v35, %v2051_v40  ;;  %v1610_v61 = vpop.f32.mrb[154].mxu0  ;;  %v2682_v51 = vpop.f32.mrb[204].mxu1  ;;  %v5871_v40 = vld [vmem:[#allocation27_spill] sm:$0xff]  ;;  %v5872_v35 = vld [vmem:[#allocation56_spill] sm:$0xff] }
 0x2af   :  { %v5425_v56 = vadd.f32 %v1610_v61, %v5866_v33  ;;  %v2066_v15 = vadd.f32 %v2682_v51, %v5867_v5  ;;  %v1612_v45 = vpop.f32.mrb[155].mxu0  ;;  %v2060_v21 = vpop.f32.mrb[205].mxu1  ;;  %v5873_v5 = vld [vmem:[#allocation55_spill] sm:$0xff] }
 0x2b0   :  { %v2061_v38 = vadd.f32 %v2060_v21, %v5868_v62  ;;  %v5876_v62 = vld [vmem:[#allocation28_spill] sm:$0xff] }
 0x2b1   :  { %v5432_v3 = vmax.f32 %v5869_v31, %v2066_v15  ;;  %v5877_v31 = vld [vmem:[#allocation58_spill] sm:$0xff] }
 0x2b2   :  { %v5437_v42 = vmax.f32 %v5870_v7, %v2061_v38  ;;  %v1615_v60 = vpop.f32.mrb[156].mxu0  ;;  %v2685_v10 = vpop.f32.mrb[206].mxu1 }
 0x2b3   :  { %v5440_v46 = vadd.f32 %v1615_v60, %v5871_v40  ;;  %v2076_v61 = vadd.f32 %v2685_v10, %v5872_v35  ;;  %v1617_v51 = vpop.f32.mrb[157].mxu0  ;;  %v2070_v33 = vpop.f32.mrb[207].mxu1  ;;  %v5878_v40 = vld [vmem:[#allocation57_spill] sm:$0xff] }
 0x2b4   :  { %v2071_v45 = vadd.f32 %v2070_v33, %v5873_v5  ;;  %v5881_v33 = vld [vmem:[#allocation29_spill] sm:$0xff] }
 0x2b5   :  { %v5447_v4 = vmax.f32 %v5874_v6, %v2076_v61 }
 0x2b6   :  { %v5452_v50 = vmax.f32 %v5875_v19, %v2071_v45  ;;  %v1620_v15 = vpop.f32.mrb[158].mxu0  ;;  %v2688_v21 = vpop.f32.mrb[208].mxu1  ;;  %v5882_v45 = vld [vmem:[#allocation2_spill] sm:$0xff] }
 0x2b7   :  { %v5455_v38 = vadd.f32 %v1620_v15, %v5876_v62  ;;  %v2086_v7 = vadd.f32 %v2688_v21, %v5877_v31  ;;  %v1622_v60 = vpop.f32.mrb[159].mxu0  ;;  %v2080_v10 = vpop.f32.mrb[209].mxu1  ;;  %v5883_v21 = vld [vmem:[#allocation10_spill] sm:$0xff] }
 0x2b8   :  { %v2081_v35 = vadd.f32 %v2080_v10, %v5878_v40  ;;  %v5886_v60 = vld [vmem:[#allocation30_spill] sm:$0xff] }
 0x2b9   :  { %v5462_v16 = vmax.f32 %v5879_v30, %v2086_v7  ;;  %v5887_v40 = vld [vmem:[#allocation14_spill] sm:$0xff] }
 0x2ba   :  { %v5467_v43 = vmax.f32 %v5880_v32, %v2081_v35  ;;  %v1625_v61 = vpop.f32.mrb[160].mxu0  ;;  %v2691_v51 = vpop.f32.mrb[210].mxu1 }
 0x2bb   :  { %v5470_v5 = vadd.f32 %v1625_v61, %v5881_v33  ;;  %v2096_v6 = vadd.f32 %v2691_v51, %v5882_v45  ;;  %v1627_v19 = vpop.f32.mrb[161].mxu0  ;;  %v2090_v15 = vpop.f32.mrb[211].mxu1  ;;  %v5888_v61 = vld [vmem:[#allocation16_spill] sm:$0xff] }
 0x2bc   :  { %v2091_v62 = vadd.f32 %v2090_v15, %v5883_v21  ;;  %v5892_v15 = vld [vmem:[#allocation20_spill] sm:$0xff] }
 0x2bd   :  { %v5477_v11 = vmax.f32 %v5884_v57, %v2096_v6  ;;  %v5891_v6 = vld [vmem:[#allocation31_spill] sm:$0xff] }
 0x2be   :  { %v5482_v14 = vmax.f32 %v5885_v47, %v2091_v62  ;;  %v1630_v31 = vpop.f32.mrb[162].mxu0  ;;  %v2694_v7 = vpop.f32.mrb[212].mxu1  ;;  %v5893_v47 = vld [vmem:[#allocation3_spill] sm:$0xff] }
 0x2bf   :  { %v5485_v10 = vadd.f32 %v1630_v31, %v5886_v60  ;;  %v2106_v35 = vadd.f32 %v2694_v7, %v5887_v40  ;;  %v1632_v30 = vpop.f32.mrb[163].mxu0  ;;  %v2100_v32 = vpop.f32.mrb[213].mxu1  ;;  %v5896_v40 = vld [vmem:[#allocation32_spill] sm:$0xff] }
 0x2c0   :  { %v2101_v51 = vadd.f32 %v2100_v32, %v5888_v61  ;;  %v5897_v30 = vld [vmem:[#allocation4_spill] sm:$0xff] }
 0x2c1   :  { %v5492_v22 = vmax.f32 %v5889_v25, %v2106_v35  ;;  %v5898_v25 = vld [vmem:[#allocation18_spill] sm:$0xff] }
 0x2c2   :  { %v5497_v20 = vmax.f32 %v5890_v58, %v2101_v51  ;;  %v1635_v33 = vpop.f32.mrb[164].mxu0  ;;  %v2697_v45 = vpop.f32.mrb[214].mxu1 }
 0x2c3   :  { %v5500_v19 = vadd.f32 %v1635_v33, %v5891_v6  ;;  %v2116_v21 = vadd.f32 %v2697_v45, %v5892_v15  ;;  %v1637_v62 = vpop.f32.mrb[165].mxu0  ;;  %v2110_v57 = vpop.f32.mrb[215].mxu1  ;;  %v5902_v15 = vld [vmem:[#allocation33_spill] sm:$0xff] }
 0x2c4   :  { %v2111_v31 = vadd.f32 %v2110_v57, %v5893_v47  ;;  %v5903_v62 = vld [vmem:[#allocation5_spill] sm:$0xff] }
 0x2c5   :  { %v5507_v17 = vmax.f32 %v5894_v63, %v2116_v21  ;;  %v5904_v63 = vld [vmem:[#allocation22_spill] sm:$0xff] }
 0x2c6   :  { %v5512_v0 = vmax.f32 %v5895_v12, %v2111_v31  ;;  %v1640_v7 = vpop.f32.mrb[166].mxu0  ;;  %v2700_v60 = vpop.f32.mrb[216].mxu1 }
 0x2c7   :  { %v5515_v35 = vadd.f32 %v1640_v7, %v5896_v40  ;;  %v2126_v32 = vadd.f32 %v2700_v60, %v5897_v30  ;;  %v1642_v61 = vpop.f32.mrb[167].mxu0  ;;  %v2120_v51 = vpop.f32.mrb[217].mxu1  ;;  %v5906_v7 = vld [vmem:[#allocation12_spill] sm:$0xff] }
 0x2c8   :  { %v2121_v58 = vadd.f32 %v2120_v51, %v5898_v25  ;;  %v5908_v60 = vmax.f32 %v5906_v7, %v5907_v48  ;;  %v5909_v61 = vld [vmem:[#allocation34_spill] sm:$0xff]  ;;  %v5910_v25 = vld [vmem:[#allocation8_spill] sm:$0xff]  ;;  %v5915_v7 = vld [vmem:[#allocation11_spill] sm:$0xff] }
 0x2c9   :  { %v5522_v34 = vmax.f32 %v5899_v41, %v2126_v32 }
 0x2ca   :  { %v5527_v33 = vmax.f32 %v5901_v8, %v2121_v58  ;;  %v1645_v45 = vpop.f32.mrb[168].mxu0  ;;  %v2703_v6 = vpop.f32.mrb[218].mxu1  ;;  %v5911_v8 = vld [vmem:[#allocation6_spill] sm:$0xff] }
 0x2cb   :  { %v5530_v21 = vadd.f32 %v1645_v45, %v5902_v15  ;;  %v2136_v57 = vadd.f32 %v2703_v6, %v5903_v62  ;;  %v1647_v47 = vpop.f32.mrb[169].mxu0  ;;  %v2130_v31 = vpop.f32.mrb[219].mxu1  ;;  %v5913_v6 = vmax.f32 %v5216_v29, %v5359_v55  ;;  %v5917_v29 = vld [vmem:[#allocation13_spill] sm:$0xff] }
 0x2cc   :  { %v2131_v12 = vadd.f32 %v2130_v31, %v5904_v63  ;;  %v5914_v47 = vld [vmem:[#allocation35_spill] sm:$0xff]  ;;  %v5918_v55 = vmax.f32 %v5225_v52, %v5917_v29  ;;  %v5923_v29 = vld [vmem:[#allocation38_spill] sm:$0xff] }
 0x2cd   :  { %v5537_v39 = vmax.f32 %v5905_v36, %v2136_v57 }
 0x2ce   :  { %v5542_v40 = vmax.f32 %v5908_v60, %v2131_v12  ;;  %v1650_v30 = vpop.f32.mrb[170].mxu0  ;;  %v2706_v32 = vpop.f32.mrb[220].mxu1 }
 0x2cf   :  { %v5545_v51 = vadd.f32 %v1650_v30, %v5909_v61  ;;  %v2146_v58 = vadd.f32 %v2706_v32, %v5910_v25  ;;  %v1652_v41 = vpop.f32.mrb[171].mxu0  ;;  %v2140_v28 = vpop.f32.mrb[221].mxu1  ;;  %v5919_v61 = vld [vmem:[#allocation36_spill] sm:$0xff] }
 0x2d0   :  { %v2141_v45 = vadd.f32 %v2140_v28, %v5911_v8  ;;  %v5920_v28 = vld [vmem:[#allocation15_spill] sm:$0xff] }
 0x2d1   :  { %v5552_v54 = vmax.f32 %v5912_v53, %v2146_v58  ;;  %v5921_v8 = vmax.f32 %v5234_v59, %v5920_v28 }
 0x2d2   :  { %v5557_v15 = vmax.f32 %v5913_v6, %v2141_v45  ;;  %v1655_v62 = vpop.f32.mrb[172].mxu0  ;;  %v2709_v57 = vpop.f32.mrb[222].mxu1 }
 0x2d3   :  { %v5560_v31 = vadd.f32 %v1655_v62, %v5914_v47  ;;  %v2156_v63 = vadd.f32 %v2709_v57, %v5369_v2  ;;  %v1657_v12 = vpop.f32.mrb[173].mxu0  ;;  %v2150_v36 = vpop.f32.mrb[223].mxu1  ;;  %v5922_v62 = vld [vmem:[#allocation37_spill] sm:$0xff] }
 0x2d4   :  { %v2151_v48 = vadd.f32 %v2150_v36, %v5915_v7 }
 0x2d5   :  { %v5567_v23 = vmax.f32 %v5916_v24, %v2156_v63 }
 0x2d6   :  { %v5572_v60 = vmax.f32 %v5918_v55, %v2151_v48  ;;  %v1660_v30 = vpop.f32.mrb[174].mxu0  ;;  %v2712_v32 = vpop.f32.mrb[224].mxu1 }
 0x2d7   :  { %v5575_v25 = vadd.f32 %v1660_v30, %v5919_v61  ;;  %v2166_v2 = vadd.f32 %v2712_v32, %v5395_v9  ;;  %v1662_v58 = vpop.f32.mrb[175].mxu0  ;;  %v2160_v41 = vpop.f32.mrb[225].mxu1 }
 0x2d8   :  { %v2161_v37 = vadd.f32 %v2160_v41, %v5382_v13 }
 0x2d9   :  { %v2339_v52 = vmax.f32 %v5407_v26, %v2166_v2 }
 0x2da   :  { %v5588_v45 = vmax.f32 %v5921_v8, %v2161_v37  ;;  %v1665_v53 = vpop.f32.mrb[176].mxu0  ;;  %v2715_v6 = vpop.f32.mrb[226].mxu1 }
 0x2db   :  { %v2371_v9 = vadd.f32 %v5581_v1, %v2339_v52  ;;  %v5592_v57 = vadd.f32 %v1665_v53, %v5922_v62  ;;  %v2176_v47 = vadd.f32 %v2715_v6, %v5425_v56  ;;  %v1667_v63 = vpop.f32.mrb[177].mxu0  ;;  %v2170_v12 = vpop.f32.mrb[227].mxu1  ;;  %v5924_v52 = vld [vmem:[#allocation39_spill] sm:$0xff] }
 0x2dc   :  { %v2171_v13 = vadd.f32 %v2170_v12, %v5410_v27 }
 0x2dd   :  { %v2396_v36 = vmax.f32 %v2371_v9, 0.0  ;;  %v2341_v26 = vmax.f32 %v5422_v44, %v2176_v47 }
 0x2de   :  { %v2340_v59 = vmax.f32 %v5402_v18, %v2171_v13  ;;  %v1670_v7 = vpop.f32.mrb[178].mxu0  ;;  %v2718_v48 = vpop.f32.mrb[228].mxu1  ;;  %v5925_v13 = vld [vmem:[#allocation40_spill] sm:$0xff] }
 0x2df   :  { %2421 = vst [vmem:[%s5753_s3] sm:$0xff] %v2396_v36  ;;  %v2373_v24 = vadd.f32 %v5581_v1, %v2341_v26  ;;  %v5603_v55 = vadd.f32 %v1670_v7, %v5923_v29  ;;  %v2186_v56 = vadd.f32 %v2718_v48, %v5455_v38  ;;  %v1672_v30 = vpop.f32.mrb[179].mxu0  ;;  %v2180_v27 = vpop.f32.mrb[229].mxu1 }
 0x2e0   :  { %v2372_v32 = vadd.f32 %v5581_v1, %v2340_v59  ;;  %v2181_v44 = vadd.f32 %v2180_v27, %v5440_v46  ;;  %v5926_v27 = vld [vmem:[#allocation41_spill] sm:$0xff] }
 0x2e1   :  { %v2398_v18 = vmax.f32 %v2373_v24, 0.0  ;;  %v2343_v61 = vmax.f32 %v5437_v42, %v2186_v56 }
 0x2e2   :  { %v2397_v2 = vmax.f32 %v2372_v32, 0.0  ;;  %v2342_v58 = vmax.f32 %v5417_v49, %v2181_v44  ;;  %v1675_v41 = vpop.f32.mrb[180].mxu0  ;;  %v2721_v37 = vpop.f32.mrb[230].mxu1 }
 0x2e3   :  { %2423 = vst [vmem:[%s5753_s3 + $0x10] sm:$0xff] %v2398_v18  ;;  %v2375_v38 = vadd.f32 %v5581_v1, %v2343_v61  ;;  %v5615_v28 = vadd.f32 %v1675_v41, %v5924_v52  ;;  %v2196_v8 = vadd.f32 %v2721_v37, %v5485_v10  ;;  %v1677_v46 = vpop.f32.mrb[181].mxu0  ;;  %v2190_v53 = vpop.f32.mrb[231].mxu1  ;;  %v5927_v52 = vld [vmem:[#allocation43_spill] sm:$0xff] }
 0x2e4   :  { %2422 = vst [vmem:[%s5753_s3 + $0x8] sm:$0xff] %v2397_v2  ;;  %v2374_v49 = vadd.f32 %v5581_v1, %v2342_v58  ;;  %v2191_v42 = vadd.f32 %v2190_v53, %v5470_v5 }
 0x2e5   :  { %v2400_v6 = vmax.f32 %v2375_v38, 0.0  ;;  %v2345_v9 = vmax.f32 %v5452_v50, %v2196_v8 }
 0x2e6   :  { %v2399_v62 = vmax.f32 %v2374_v49, 0.0  ;;  %v2344_v47 = vmax.f32 %v5432_v3, %v2191_v42  ;;  %v1680_v63 = vpop.f32.mrb[182].mxu0  ;;  %v2724_v12 = vpop.f32.mrb[232].mxu1 }
 0x2e7   :  { %2425 = vst [vmem:[%s5753_s3 + $0x20] sm:$0xff] %v2400_v6  ;;  %v2377_v10 = vadd.f32 %v5581_v1, %v2345_v9  ;;  %v1681_v36 = vadd.f32 %v1680_v63, %v5925_v13  ;;  %v2206_v26 = vadd.f32 %v2724_v12, %v5515_v35  ;;  %v1682_v59 = vpop.f32.mrb[183].mxu0  ;;  %v2200_v5 = vpop.f32.mrb[233].mxu1  ;;  %v5928_v63 = vld [vmem:[#allocation44_spill] sm:$0xff] }
 0x2e8   :  { %2424 = vst [vmem:[%s5753_s3 + $0x18] sm:$0xff] %v2399_v62  ;;  %v2376_v3 = vadd.f32 %v5581_v1, %v2344_v47  ;;  %v2201_v50 = vadd.f32 %v2200_v5, %v5500_v19 }
 0x2e9   :  { %v2402_v7 = vmax.f32 %v2377_v10, 0.0  ;;  %v2347_v48 = vmax.f32 %v5467_v43, %v2206_v26 }
 0x2ea   :  { %v2401_v24 = vmax.f32 %v2376_v3, 0.0  ;;  %v2346_v29 = vmax.f32 %v5447_v4, %v2201_v50  ;;  %v1685_v56 = vpop.f32.mrb[184].mxu0  ;;  %v2727_v30 = vpop.f32.mrb[234].mxu1 }
 0x2eb   :  { %2427 = vst [vmem:[%s5753_s3 + $0x30] sm:$0xff] %v2402_v7  ;;  %v2379_v35 = vadd.f32 %v5581_v1, %v2347_v48  ;;  %v5643_v32 = vadd.f32 %v1685_v56, %v5926_v27  ;;  %v2216_v44 = vadd.f32 %v2727_v30, %v5545_v51  ;;  %v1687_v19 = vpop.f32.mrb[185].mxu0  ;;  %v2210_v18 = vpop.f32.mrb[235].mxu1  ;;  %v5929_v48 = vld [vmem:[#allocation46_spill] sm:$0xff] }
 0x2ec   :  { %2426 = vst [vmem:[%s5753_s3 + $0x28] sm:$0xff] %v2401_v24  ;;  %v2378_v4 = vadd.f32 %v5581_v1, %v2346_v29  ;;  %v2211_v43 = vadd.f32 %v2210_v18, %v5530_v21 }
 0x2ed   :  { %v2404_v61 = vmax.f32 %v2379_v35, 0.0  ;;  %v2349_v2 = vmax.f32 %v5482_v14, %v2216_v44 }
 0x2ee   :  { %v2403_v58 = vmax.f32 %v2378_v4, 0.0  ;;  %v2348_v41 = vmax.f32 %v5462_v16, %v2211_v43  ;;  %v1690_v37 = vpop.f32.mrb[186].mxu0  ;;  %v2730_v38 = vpop.f32.mrb[236].mxu1  ;;  %v5930_v4 = vld [vmem:[#allocation48_spill] sm:$0xff] }
 0x2ef   :  { %2429 = vst [vmem:[%s5753_s3 + $0x40] sm:$0xff] %v2404_v61  ;;  %v2381_v51 = vadd.f32 %v5581_v1, %v2349_v2  ;;  %v1691_v8 = vadd.f32 %v1690_v37, %v5927_v52  ;;  %v2226_v46 = vadd.f32 %v2730_v38, %v5575_v25  ;;  %v1692_v53 = vpop.f32.mrb[187].mxu0  ;;  %v2220_v21 = vpop.f32.mrb[237].mxu1 }
 0x2f0   :  { %2428 = vst [vmem:[%s5753_s3 + $0x38] sm:$0xff] %v2403_v58  ;;  %v2380_v16 = vadd.f32 %v5581_v1, %v2348_v41  ;;  %v2221_v14 = vadd.f32 %v2220_v21, %v5560_v31 }
 0x2f1   :  { %v2406_v49 = vmax.f32 %v2381_v51, 0.0  ;;  %v2351_v42 = vmax.f32 %v5497_v20, %v2226_v46  ;;  %v5931_v46 = vld [vmem:[#allocation49_spill] sm:$0xff] }
 0x2f2   :  { %v2405_v6 = vmax.f32 %v2380_v16, 0.0  ;;  %v2350_v9 = vmax.f32 %v5477_v11, %v2221_v14  ;;  %v1695_v62 = vpop.f32.mrb[188].mxu0  ;;  %v2733_v47 = vpop.f32.mrb[238].mxu1 }
 0x2f3   :  { %2431 = vst [vmem:[%s5753_s3 + $0x50] sm:$0xff] %v2406_v49  ;;  %v2383_v25 = vadd.f32 %v5581_v1, %v2351_v42  ;;  %v1696_v12 = vadd.f32 %v1695_v62, %v5928_v63  ;;  %v2236_v10 = vadd.f32 %v2733_v47, %v5603_v55  ;;  %v1697_v13 = vpop.f32.mrb[189].mxu0  ;;  %v2230_v31 = vpop.f32.mrb[239].mxu1 }
 0x2f4   :  { %2430 = vst [vmem:[%s5753_s3 + $0x48] sm:$0xff] %v2405_v6  ;;  %v2382_v11 = vadd.f32 %v5581_v1, %v2350_v9  ;;  %v2231_v20 = vadd.f32 %v2230_v31, %v5592_v57 }
 0x2f5   :  { %v2408_v26 = vmax.f32 %v2383_v25, 0.0  ;;  %v2353_v59 = vmax.f32 %v5512_v0, %v2236_v10  ;;  %v5932_v25 = vld [vmem:[#allocation50_spill] sm:$0xff] }
 0x2f6   :  { %v2407_v5 = vmax.f32 %v2382_v11, 0.0  ;;  %v2352_v3 = vmax.f32 %v5492_v22, %v2231_v20  ;;  %v1700_v50 = vpop.f32.mrb[190].mxu0  ;;  %v2736_v7 = vpop.f32.mrb[240].mxu1 }
 0x2f7   :  { %2433 = vst [vmem:[%s5753_s3 + $0x60] sm:$0xff] %v2408_v26  ;;  %v2385_v55 = vadd.f32 %v5581_v1, %v2353_v59  ;;  %v1701_v24 = vadd.f32 %v1700_v50, %v5929_v48  ;;  %v2246_v29 = vadd.f32 %v2736_v7, %v1681_v36  ;;  %v1702_v56 = vpop.f32.mrb[191].mxu0  ;;  %v2240_v30 = vpop.f32.mrb[241].mxu1  ;;  %v5933_v50 = vld [vmem:[#allocation51_spill] sm:$0xff] }
 0x2f8   :  { %2432 = vst [vmem:[%s5753_s3 + $0x58] sm:$0xff] %v2407_v5  ;;  %v2384_v0 = vadd.f32 %v5581_v1, %v2352_v3  ;;  %v2241_v22 = vadd.f32 %v2240_v30, %v5615_v28 }
 0x2f9   :  { %v2410_v57 = vmax.f32 %v2385_v55, 0.0  ;;  %v2355_v35 = vmax.f32 %v5527_v33, %v2246_v29 }
 0x2fa   :  { %v2409_v27 = vmax.f32 %v2384_v0, 0.0  ;;  %v2354_v44 = vmax.f32 %v5507_v17, %v2241_v22  ;;  %v1705_v19 = vpop.f32.mrb[192].mxu0  ;;  %v2739_v18 = vpop.f32.mrb[242].mxu1 }
 0x2fb   :  { %2435 = vst [vmem:[%s5753_s3 + $0x70] sm:$0xff] %v2410_v57  ;;  %v2387_v36 = vadd.f32 %v5581_v1, %v2355_v35  ;;  %v1706_v43 = vadd.f32 %v1705_v19, %v5930_v4  ;;  %v2256_v61 = vadd.f32 %v2739_v18, %v1691_v8  ;;  %v1707_v2 = vpop.f32.mrb[193].mxu0  ;;  %v2250_v58 = vpop.f32.mrb[243].mxu1 }
 0x2fc   :  { %2434 = vst [vmem:[%s5753_s3 + $0x68] sm:$0xff] %v2409_v27  ;;  %v2386_v33 = vadd.f32 %v5581_v1, %v2354_v44  ;;  %v2251_v17 = vadd.f32 %v2250_v58, %v5643_v32 }
 0x2fd   :  { %v2412_v28 = vmax.f32 %v2387_v36, 0.0  ;;  %v2357_v41 = vmax.f32 %v5542_v40, %v2256_v61 }
 0x2fe   :  { %v2411_v37 = vmax.f32 %v2386_v33, 0.0  ;;  %v2356_v38 = vmax.f32 %v5522_v34, %v2251_v17  ;;  %v1710_v51 = vpop.f32.mrb[194].mxu0  ;;  %v2742_v52 = vpop.f32.mrb[244].mxu1 }
 0x2ff   :  { %2437 = vst [vmem:[%s5753_s3 + $0x80] sm:$0xff] %v2412_v28  ;;  %v2389_v8 = vadd.f32 %v5581_v1, %v2357_v41  ;;  %v1711_v53 = vadd.f32 %v1710_v51, %v5931_v46  ;;  %v2266_v21 = vadd.f32 %v2742_v52, %v1701_v24  ;;  %v1712_v16 = vpop.f32.mrb[195].mxu0  ;;  %v2260_v14 = vpop.f32.mrb[245].mxu1 }
 0x300   :  { %2436 = vst [vmem:[%s5753_s3 + $0x78] sm:$0xff] %v2411_v37  ;;  %v2388_v40 = vadd.f32 %v5581_v1, %v2356_v38  ;;  %v2261_v34 = vadd.f32 %v2260_v14, %v1696_v12 }
 0x301   :  { %v2414_v32 = vmax.f32 %v2389_v8, 0.0  ;;  %v2359_v49 = vmax.f32 %v5557_v15, %v2266_v21 }
 0x302   :  { %v2413_v42 = vmax.f32 %v2388_v40, 0.0  ;;  %v2358_v6 = vmax.f32 %v5537_v39, %v2261_v34  ;;  %v1715_v9 = vpop.f32.mrb[196].mxu0  ;;  %v2745_v62 = vpop.f32.mrb[246].mxu1 }
 0x303   :  { %2439 = vst [vmem:[%s5753_s3 + $0x90] sm:$0xff] %v2414_v32  ;;  %v2391_v47 = vadd.f32 %v5581_v1, %v2359_v49  ;;  %v1716_v63 = vadd.f32 %v1715_v9, %v5932_v25  ;;  %v2276_v10 = vadd.f32 %v2745_v62, %v1711_v53  ;;  %v1717_v13 = vpop.f32.mrb[197].mxu0  ;;  %v2270_v31 = vpop.f32.mrb[247].mxu1 }
 0x304   :  { %2438 = vst [vmem:[%s5753_s3 + $0x88] sm:$0xff] %v2413_v42  ;;  %v2390_v15 = vadd.f32 %v5581_v1, %v2358_v6  ;;  %v2271_v39 = vadd.f32 %v2270_v31, %v1706_v43 }
 0x305   :  { %v2416_v12 = vmax.f32 %v2391_v47, 0.0  ;;  %v2361_v11 = vmax.f32 %v5572_v60, %v2276_v10 }
 0x306   :  { %v2415_v20 = vmax.f32 %v2390_v15, 0.0  ;;  %v2360_v26 = vmax.f32 %v5552_v54, %v2271_v39  ;;  %v1720_v59 = vpop.f32.mrb[198].mxu0  ;;  %v2748_v5 = vpop.f32.mrb[248].mxu1 }
 0x307   :  { %2441 = vst [vmem:[%s5753_s3 + $0xa0] sm:$0xff] %v2416_v12  ;;  %v2393_v3 = vadd.f32 %v5581_v1, %v2361_v11  ;;  %v1721_v7 = vadd.f32 %v1720_v59, %v5933_v50  ;;  %v1722_v55 = vpop.f32.mrb[199].mxu0  ;;  %v2280_v48 = vpop.f32.mrb[249].mxu1 }
 0x308   :  { %2440 = vst [vmem:[%s5753_s3 + $0x98] sm:$0xff] %v2415_v20  ;;  %v2392_v60 = vadd.f32 %v5581_v1, %v2360_v26  ;;  %v2281_v24 = vadd.f32 %v2280_v48, %v1716_v63 }
 0x309   :  { %v2418_v54 = vmax.f32 %v2393_v3, 0.0  ;;  %v2286_v29 = vadd.f32 %v2748_v5, %v1721_v7 }
 0x30a   :  { %v2417_v56 = vmax.f32 %v2392_v60, 0.0  ;;  %v2362_v30 = vmax.f32 %v5567_v23, %v2281_v24 }
 0x30b   :  { %2443 = vst [vmem:[%s5753_s3 + $0xb0] sm:$0xff] %v2418_v54  ;;  %v2363_v0 = vmax.f32 %v5588_v45, %v2286_v29 }
 0x30c   :  { %2442 = vst [vmem:[%s5753_s3 + $0xa8] sm:$0xff] %v2417_v56  ;;  %v2394_v22 = vadd.f32 %v5581_v1, %v2362_v30 }
 0x30d   :  { %v2395_v57 = vadd.f32 %v5581_v1, %v2363_v0 }
 0x30e   :  { %v2419_v35 = vmax.f32 %v2394_v22, 0.0 }
 0x30f   :  { %v2420_v27 = vmax.f32 %v2395_v57, 0.0 }
 0x310   :  { %2444 = vst [vmem:[%s5753_s3 + $0xb8] sm:$0xff] %v2419_v35 }
 0x311   :  { %2445 = vst [vmem:[%s5753_s3 + $0xc0] sm:$0xff] %v2420_v27 }

// kernel: gazenet_forward.5
= control target key start
LH: loop header
LB: loop body
LE: loop exit
PB: predicated region body
PF: predicated region fallthrough
CT: control target
= control target key end

     0   :  { %10 = vsyncpa [#allocation4], 0  ;;  %s5117_s18 = smov 0   ;;  %s6166_s0 = inlined_call_operand.vmem [shape: f32[2,12544], index: 0, kind: input, shape index: {}]   ;;  %s6167_s1 = inlined_call_operand.vmem [shape: f32[12544,128], index: 1, kind: input, shape index: {}]   ;;  %s6168_s2 = inlined_call_operand.vmem [shape: f32[1,128], index: 2, kind: input, shape index: {}]   ;;  %s6169_s3 = inlined_call_operand.vmem [shape: f32[128,5], index: 3, kind: input, shape index: {}]   ;;  %s6170_s4 = inlined_call_operand.vmem [shape: f32[1,5], index: 4, kind: input, shape index: {}]   ;;  %s6171_s5 = inlined_call_operand.hbm [shape: f32[2,5], index: 5, kind: output, shape index: {}]  }
   0x1 LB: > { %s5123_s19 = sadd.s32 4294967295, %s5076_s18   ;;  %p3233_p0 = scmp.ge.s32.totalorder %s5076_s18, 1  ;;  %s5076_s18 = sphi %s5117_s18, %s16_s18  }
   0x2   : > { %p195_p1 = scmp.lt.s32.totalorder %s5076_s18, 3 }
   0x4   : > { %p196_p2 = pnand %p3233_p0, %p195_p1 }
   0x5   : > { %s223_s20 = smul.u32 (!%p196_p2), 49, %s5123_s19  ;;  %p3236_p5 = scmp.ne.s32.totalorder (!%p196_p2), %s5123_s19, 0 }
   0x6   : > { %199 = sbr.rel (%p196_p2) target bundleno = 911 (0x38f), region = 40 }
   0x7   : > { %s229_s21 = smul.u32 (!%p196_p2), 784, %s5123_s19  ;;  %p224_p3 = scmp.lt.s32.totalorder (!%p196_p2), %s223_s20, 97 }
   0x9   : > { %p230_p4 = scmp.lt.s32.totalorder (!%p196_p2), %s229_s21, 1567 }
   0xd   : > { %s6173_s20 = smov (!%p224_p3, %s223_s20), 97  ;;  %s6175_s21 = smov (!%p230_p4, %s229_s21), 1567 }
   0xe   : > { %s3234_s22 = sshll.u32 %s6173_s20, 1  ;;  %s3235_s26 = sshll.u32 %s6175_s21, 3  ;;  %v5078_v0 = vmov (!%p3236_p5), 0.0  }
   0xf   : > { %s5132_s25 = scalar_lea.vmem %s6166_s0, %s3234_s22  ;;  %s5137_s29 = scalar_lea.vmem %s6167_s1, %s3235_s26  ;;  %239 = vst [vmem:[#allocation2] sm:$0x3] (!%p3236_p5), %v5078_v0 }
  0x10   : > { %238 = sbr.rel (%p3236_p5) target bundleno = 23 (0x17), region = 44 }
  0x17 PF: > { %v270_v1 = vld [vmem:[%s5137_s29 + $0x80] sm:$0xff]  ;;  %v271_v2 = vld [vmem:[%s5137_s29 + $0x88] sm:$0xff]  ;;  %v272_v12 = vld [vmem:[%s5137_s29 + $0x90] sm:$0xff]  ;;  %v5079_v48 = vmov 1983009808   ;;  %v1055_v50 = vlaneseq  ;;  %vm5081_vm0 = vmmov 0  }
  0x18   : > { %v302_v3 = vld [vmem:[%s5137_s29 + $0x180] sm:$0xff]  ;;  %v4189_v4 = vpack.c.bf16 %v271_v2, %v270_v1  ;;  %v303_v5 = vld [vmem:[%s5137_s29 + $0x188] sm:$0xff]  ;;  %v273_v14 = vld [vmem:[%s5137_s29 + $0x98] sm:$0xff]  ;;  %v1053_v49 = vunpack.c.l.s4 %v5079_v48  ;;  %p3238_p6 = scmp.ne.s32.totalorder %s5123_s19, 1 }
  0x19   : > { %v254_v6 = vld [vmem:[%s5137_s29] sm:$0xff]  ;;  %v255_v7 = vld [vmem:[%s5137_s29 + $0x8] sm:$0xff]  ;;  %v4221_v8 = vpack.c.bf16 %v303_v5, %v302_v3  ;;  %v304_v15 = vld [vmem:[%s5137_s29 + $0x190] sm:$0xff]  ;;  %v4193_v17 = vpack.c.bf16 %v273_v14, %v272_v12  ;;  %v1056_v1 = vshrl.u32 %v1055_v50, 7  ;;  %vm5084_vm1 = vmmov (!%p3238_p6), 0  }
  0x1a   : > { %v4191_v9 = vpack.c.bf16 %v255_v7, %v254_v6  ;;  %v286_v10 = vld [vmem:[%s5137_s29 + $0x100] sm:$0xff]  ;;  %v287_v11 = vld [vmem:[%s5137_s29 + $0x108] sm:$0xff]  ;;  %4190 = vmatprep.subr.bf16.mxu0 %v4189_v4  ;;  %v305_v16 = vld [vmem:[%s5137_s29 + $0x198] sm:$0xff]  ;;  %v1054_v0 = vunpack.c.0.s8 %v1053_v49  ;;  %vm3170_vm2 = vcmask (!%p3238_p6), 33792  }
  0x1b   : > { %v4223_v13 = vpack.c.bf16 %v287_v11, %v286_v10  ;;  %4222 = vmatprep.subr.bf16.mxu1 %v4221_v8  ;;  %v4225_v18 = vpack.c.bf16 %v305_v16, %v304_v15  ;;  %v256_v19 = vld [vmem:[%s5137_s29 + $0x10] sm:$0xff]  ;;  %v257_v20 = vld [vmem:[%s5137_s29 + $0x18] sm:$0xff]  ;;  %v274_v24 = vld [vmem:[%s5137_s29 + $0xa0] sm:$0xff] }
  0x1c   : > { %4192 = vmatpush3.bf16.msra.mxu0 %v4191_v9  ;;  %v288_v21 = vld [vmem:[%s5137_s29 + $0x110] sm:$0xff]  ;;  %v4195_v22 = vpack.c.bf16 %v257_v20, %v256_v19  ;;  %v289_v23 = vld [vmem:[%s5137_s29 + $0x118] sm:$0xff]  ;;  %v275_v25 = vld [vmem:[%s5137_s29 + $0xa8] sm:$0xff]  ;;  %v5190_v14 = vsub.s32 %v1054_v0, %v1056_v1 }
  0x1d   : > { %4224 = vmatpush3.bf16.msra.mxu1 %v4223_v13  ;;  %4194 = vmatprep.subr.bf16.mxu0 %v4193_v17  ;;  %v4227_v26 = vpack.c.bf16 %v289_v23, %v288_v21  ;;  %v4197_v27 = vpack.c.bf16 %v275_v25, %v274_v24  ;;  %v306_v28 = vld [vmem:[%s5137_s29 + $0x1a0] sm:$0xff]  ;;  %v307_v29 = vld [vmem:[%s5137_s29 + $0x1a8] sm:$0xff]  ;;  %v276_v36 = vld [vmem:[%s5137_s29 + $0xb0] sm:$0xff] }
  0x1e   : > { %4226 = vmatprep.subr.bf16.mxu1 %v4225_v18  ;;  %v258_v30 = vld [vmem:[%s5137_s29 + $0x20] sm:$0xff]  ;;  %v4229_v31 = vpack.c.bf16 %v307_v29, %v306_v28  ;;  %v259_v32 = vld [vmem:[%s5137_s29 + $0x28] sm:$0xff]  ;;  %v277_v37 = vld [vmem:[%s5137_s29 + $0xb8] sm:$0xff] }
  0x1f   : > { %v290_v33 = vld [vmem:[%s5137_s29 + $0x120] sm:$0xff]  ;;  %v291_v34 = vld [vmem:[%s5137_s29 + $0x128] sm:$0xff]  ;;  %v4199_v35 = vpack.c.bf16 %v259_v32, %v258_v30  ;;  %v308_v38 = vld [vmem:[%s5137_s29 + $0x1b0] sm:$0xff]  ;;  %v4201_v40 = vpack.c.bf16 %v277_v37, %v276_v36 }
  0x20   : > { %4196 = vmatpush3.bf16.msra.mxu0 %v4195_v22  ;;  %v4231_v39 = vpack.c.bf16 %v291_v34, %v290_v33  ;;  %v309_v41 = vld [vmem:[%s5137_s29 + $0x1b8] sm:$0xff]  ;;  %v260_v42 = vld [vmem:[%s5137_s29 + $0x30] sm:$0xff]  ;;  %v278_v47 = vld [vmem:[%s5137_s29 + $0xc0] sm:$0xff] }
  0x21   : > { %4228 = vmatpush3.bf16.msra.mxu1 %v4227_v26  ;;  %4198 = vmatprep.subr.bf16.mxu0 %v4197_v27  ;;  %v261_v43 = vld [vmem:[%s5137_s29 + $0x38] sm:$0xff]  ;;  %v4233_v44 = vpack.c.bf16 %v309_v41, %v308_v38  ;;  %v292_v45 = vld [vmem:[%s5137_s29 + $0x130] sm:$0xff]  ;;  %v279_v51 = vld [vmem:[%s5137_s29 + $0xc8] sm:$0xff] }
  0x22   : > { %4230 = vmatprep.subr.bf16.mxu1 %v4229_v31  ;;  %v293_v46 = vld [vmem:[%s5137_s29 + $0x138] sm:$0xff]  ;;  %v310_v52 = vld [vmem:[%s5137_s29 + $0x1c0] sm:$0xff]  ;;  %v311_v53 = vld [vmem:[%s5137_s29 + $0x1c8] sm:$0xff]  ;;  %v4203_v54 = vpack.c.bf16 %v261_v43, %v260_v42  ;;  %v4205_v56 = vpack.c.bf16 %v279_v51, %v278_v47 }
  0x23   : > { %v4235_v55 = vpack.c.bf16 %v293_v46, %v292_v45  ;;  %v262_v57 = vld [vmem:[%s5137_s29 + $0x40] sm:$0xff]  ;;  %v263_v58 = vld [vmem:[%s5137_s29 + $0x48] sm:$0xff]  ;;  %v4237_v60 = vpack.c.bf16 %v311_v53, %v310_v52  ;;  %v280_v62 = vld [vmem:[%s5137_s29 + $0xd0] sm:$0xff] }
  0x24   : > { %4200 = vmatpush3.bf16.msra.mxu0 %v4199_v35  ;;  %v294_v59 = vld [vmem:[%s5137_s29 + $0x140] sm:$0xff]  ;;  %v295_v61 = vld [vmem:[%s5137_s29 + $0x148] sm:$0xff]  ;;  %v281_v63 = vld [vmem:[%s5137_s29 + $0xd8] sm:$0xff]  ;;  %v4207_v4 = vpack.c.bf16 %v263_v58, %v262_v57 }
  0x25   : > { %4232 = vmatpush3.bf16.msra.mxu1 %v4231_v39  ;;  %4202 = vmatprep.subr.bf16.mxu0 %v4201_v40  ;;  %v312_v2 = vld [vmem:[%s5137_s29 + $0x1d0] sm:$0xff]  ;;  %v313_v3 = vld [vmem:[%s5137_s29 + $0x1d8] sm:$0xff]  ;;  %v4239_v5 = vpack.c.bf16 %v295_v61, %v294_v59  ;;  %v4209_v6 = vpack.c.bf16 %v281_v63, %v280_v62  ;;  %v282_v12 = vld [vmem:[%s5137_s29 + $0xe0] sm:$0xff] }
  0x26   : > { %4234 = vmatprep.subr.bf16.mxu1 %v4233_v44  ;;  %v264_v7 = vld [vmem:[%s5137_s29 + $0x50] sm:$0xff]  ;;  %v265_v8 = vld [vmem:[%s5137_s29 + $0x58] sm:$0xff]  ;;  %v4241_v10 = vpack.c.bf16 %v313_v3, %v312_v2  ;;  %v283_v13 = vld [vmem:[%s5137_s29 + $0xe8] sm:$0xff] }
  0x27   : > { %v296_v9 = vld [vmem:[%s5137_s29 + $0x150] sm:$0xff]  ;;  %v297_v11 = vld [vmem:[%s5137_s29 + $0x158] sm:$0xff]  ;;  %v314_v15 = vld [vmem:[%s5137_s29 + $0x1e0] sm:$0xff]  ;;  %v4211_v17 = vpack.c.bf16 %v265_v8, %v264_v7  ;;  %v4213_v20 = vpack.c.bf16 %v283_v13, %v282_v12 }
  0x28   : > { %4204 = vmatpush3.bf16.msra.mxu0 %v4203_v54  ;;  %v315_v16 = vld [vmem:[%s5137_s29 + $0x1e8] sm:$0xff]  ;;  %v266_v18 = vld [vmem:[%s5137_s29 + $0x60] sm:$0xff]  ;;  %v4243_v19 = vpack.c.bf16 %v297_v11, %v296_v9  ;;  %v284_v26 = vld [vmem:[%s5137_s29 + $0xf0] sm:$0xff] }
  0x29   : > { %4236 = vmatpush3.bf16.msra.mxu1 %v4235_v55  ;;  %4206 = vmatprep.subr.bf16.mxu0 %v4205_v56  ;;  %v267_v21 = vld [vmem:[%s5137_s29 + $0x68] sm:$0xff]  ;;  %v298_v22 = vld [vmem:[%s5137_s29 + $0x160] sm:$0xff]  ;;  %v4245_v24 = vpack.c.bf16 %v315_v16, %v314_v15  ;;  %v285_v27 = vld [vmem:[%s5137_s29 + $0xf8] sm:$0xff] }
  0x2a   : > { %4238 = vmatprep.subr.bf16.mxu1 %v4237_v60  ;;  %v241_v23 = vld [vmem:[%s5132_s25] sm:$0xff]  ;;  %v299_v25 = vld [vmem:[%s5137_s29 + $0x168] sm:$0xff]  ;;  %v316_v30 = vld [vmem:[%s5137_s29 + $0x1f0] sm:$0xff]  ;;  %v4215_v32 = vpack.c.bf16 %v267_v21, %v266_v18  ;;  %v4217_v36 = vpack.c.bf16 %v285_v27, %v284_v26 }
  0x2b   : > { %v1058_v28 = vrot.slane %v241_v23, %v5190_v14  ;;  %v1051_v29 = vcombine.high %v241_v23, %v241_v23  ;;  %v317_v31 = vld [vmem:[%s5137_s29 + $0x1f8] sm:$0xff]  ;;  %v4247_v35 = vpack.c.bf16 %v299_v25, %v298_v22  ;;  %v268_v37 = vld [vmem:[%s5137_s29 + $0x70] sm:$0xff]  ;;  %v334_v43 = vld [vmem:[%s5137_s29 + $0x280] sm:$0xff] }
  0x2c   : > { %4208 = vmatpush3.bf16.msra.mxu0 %v4207_v4  ;;  %v269_v38 = vld [vmem:[%s5137_s29 + $0x78] sm:$0xff]  ;;  %v300_v39 = vld [vmem:[%s5137_s29 + $0x170] sm:$0xff]  ;;  %v4249_v40 = vpack.c.bf16 %v317_v31, %v316_v30  ;;  %v335_v44 = vld [vmem:[%s5137_s29 + $0x288] sm:$0xff] }
  0x2d   : > { %4240 = vmatpush3.bf16.msra.mxu1 %v4239_v5  ;;  %4210 = vmatprep.subr.bf16.mxu0 %v4209_v6  ;;  %v1066_v33 = vcombine.high %v1058_v28, %v1058_v28  ;;  %v1065_v34 = vrot.slane %v1051_v29, %v5190_v14  ;;  %v301_v41 = vld [vmem:[%s5137_s29 + $0x178] sm:$0xff]  ;;  %v366_v45 = vld [vmem:[%s5137_s29 + $0x380] sm:$0xff]  ;;  %v367_v46 = vld [vmem:[%s5137_s29 + $0x388] sm:$0xff]  ;;  %v4219_v47 = vpack.c.bf16 %v269_v38, %v268_v37 }
  0x2e   : > { %4242 = vmatprep.subr.bf16.mxu1 %v4241_v10  ;;  %v4251_v48 = vpack.c.bf16 %v301_v41, %v300_v39  ;;  %v4253_v49 = vpack.c.bf16 %v335_v44, %v334_v43  ;;  %v318_v50 = vld [vmem:[%s5137_s29 + $0x200] sm:$0xff]  ;;  %v319_v51 = vld [vmem:[%s5137_s29 + $0x208] sm:$0xff]  ;;  %v4285_v53 = vpack.c.bf16 %v367_v46, %v366_v45  ;;  %v336_v55 = vld [vmem:[%s5137_s29 + $0x290] sm:$0xff] }
  0x2f   : > { %1375 = vmatprep.mubr.f32.mxu0 %v1066_v33  ;;  %v1067_v42 = vcombine.high %v1065_v34, %v1065_v34  ;;  %v350_v52 = vld [vmem:[%s5137_s29 + $0x300] sm:$0xff]  ;;  %v351_v54 = vld [vmem:[%s5137_s29 + $0x308] sm:$0xff]  ;;  %v337_v56 = vld [vmem:[%s5137_s29 + $0x298] sm:$0xff]  ;;  %v4255_v59 = vpack.c.bf16 %v319_v51, %v318_v50 }
  0x30   : > { %4212 = vmatpush3.bf16.msra.mxu0 %v4211_v17  ;;  %v368_v57 = vld [vmem:[%s5137_s29 + $0x390] sm:$0xff]  ;;  %v369_v58 = vld [vmem:[%s5137_s29 + $0x398] sm:$0xff]  ;;  %v4287_v60 = vpack.c.bf16 %v351_v54, %v350_v52  ;;  %v4257_v61 = vpack.c.bf16 %v337_v56, %v336_v55  ;;  %v338_v3 = vld [vmem:[%s5137_s29 + $0x2a0] sm:$0xff] }
  0x31   : > { %4244 = vmatpush3.bf16.msra.mxu1 %v4243_v19  ;;  %4214 = vmatprep.subr.bf16.mxu0 %v4213_v20  ;;  %v320_v62 = vld [vmem:[%s5137_s29 + $0x210] sm:$0xff]  ;;  %v321_v63 = vld [vmem:[%s5137_s29 + $0x218] sm:$0xff]  ;;  %v4289_v1 = vpack.c.bf16 %v369_v58, %v368_v57  ;;  %v339_v4 = vld [vmem:[%s5137_s29 + $0x2a8] sm:$0xff] }
  0x32   : > { %4246 = vmatprep.subr.bf16.mxu1 %v4245_v24  ;;  %1445 = vmatprep.mubr.f32.mxu1 %v1067_v42  ;;  %v352_v0 = vld [vmem:[%s5137_s29 + $0x310] sm:$0xff]  ;;  %v353_v2 = vld [vmem:[%s5137_s29 + $0x318] sm:$0xff]  ;;  %v370_v5 = vld [vmem:[%s5137_s29 + $0x3a0] sm:$0xff]  ;;  %v4259_v7 = vpack.c.bf16 %v321_v63, %v320_v62  ;;  %v4261_v9 = vpack.c.bf16 %v339_v4, %v338_v3 }
  0x33   : > { %v371_v6 = vld [vmem:[%s5137_s29 + $0x3a8] sm:$0xff]  ;;  %v4291_v8 = vpack.c.bf16 %v353_v2, %v352_v0  ;;  %v322_v10 = vld [vmem:[%s5137_s29 + $0x220] sm:$0xff]  ;;  %v340_v16 = vld [vmem:[%s5137_s29 + $0x2b0] sm:$0xff] }
  0x34   : > { %4216 = vmatpush3.bf16.msra.mxu0 %v4215_v32  ;;  %v323_v11 = vld [vmem:[%s5137_s29 + $0x228] sm:$0xff]  ;;  %v354_v12 = vld [vmem:[%s5137_s29 + $0x320] sm:$0xff]  ;;  %v4293_v13 = vpack.c.bf16 %v371_v6, %v370_v5  ;;  %v341_v17 = vld [vmem:[%s5137_s29 + $0x2b8] sm:$0xff] }
  0x35   : > { %4248 = vmatpush3.bf16.msra.mxu1 %v4247_v35  ;;  %4218 = vmatprep.subr.bf16.mxu0 %v4217_v36  ;;  %v355_v15 = vld [vmem:[%s5137_s29 + $0x328] sm:$0xff]  ;;  %v372_v18 = vld [vmem:[%s5137_s29 + $0x3b0] sm:$0xff]  ;;  %v373_v19 = vld [vmem:[%s5137_s29 + $0x3b8] sm:$0xff]  ;;  %v4263_v20 = vpack.c.bf16 %v323_v11, %v322_v10  ;;  %v4265_v23 = vpack.c.bf16 %v341_v17, %v340_v16 }
  0x36   : > { %4250 = vmatprep.subr.bf16.mxu1 %v4249_v40  ;;  %v324_v21 = vld [vmem:[%s5137_s29 + $0x230] sm:$0xff]  ;;  %v4295_v22 = vpack.c.bf16 %v355_v15, %v354_v12  ;;  %v325_v24 = vld [vmem:[%s5137_s29 + $0x238] sm:$0xff]  ;;  %v4297_v27 = vpack.c.bf16 %v373_v19, %v372_v18  ;;  %v343_v29 = vld [vmem:[%s5137_s29 + $0x2c8] sm:$0xff] }
  0x37   : > { %v356_v25 = vld [vmem:[%s5137_s29 + $0x330] sm:$0xff]  ;;  %v357_v26 = vld [vmem:[%s5137_s29 + $0x338] sm:$0xff]  ;;  %v242_v30 = vld [vmem:[%s5132_s25 + $0x8] sm:$0xff]  ;;  %v4267_v35 = vpack.c.bf16 %v325_v24, %v324_v21 }
  0x38   : > { %4220 = vmatpush3.bf16.msra.mxu0 %v4219_v47  ;;  %v374_v31 = vld [vmem:[%s5137_s29 + $0x3c0] sm:$0xff]  ;;  %v375_v32 = vld [vmem:[%s5137_s29 + $0x3c8] sm:$0xff]  ;;  %v5247_v33 = vrot.slane %v242_v30, %v5190_v14  ;;  %v4299_v36 = vpack.c.bf16 %v357_v26, %v356_v25  ;;  %v344_v45 = vld [vmem:[%s5137_s29 + $0x2d0] sm:$0xff] }
  0x39   : > { %4252 = vmatpush3.bf16.msra.mxu1 %v4251_v48  ;;  %4254 = vmatprep.subr.bf16.mxu0 %v4253_v49  ;;  %v326_v38 = vld [vmem:[%s5137_s29 + $0x240] sm:$0xff]  ;;  %v327_v39 = vld [vmem:[%s5137_s29 + $0x248] sm:$0xff]  ;;  %v4301_v43 = vpack.c.bf16 %v375_v32, %v374_v31  ;;  %v345_v46 = vld [vmem:[%s5137_s29 + $0x2d8] sm:$0xff] }
  0x3a   : > { %4286 = vmatprep.subr.bf16.mxu1 %v4285_v53  ;;  %v358_v40 = vld [vmem:[%s5137_s29 + $0x340] sm:$0xff]  ;;  %v1083_v41 = vcombine.high %v5247_v33, %v5247_v33  ;;  %v359_v44 = vld [vmem:[%s5137_s29 + $0x348] sm:$0xff]  ;;  %v376_v47 = vld [vmem:[%s5137_s29 + $0x3d0] sm:$0xff]  ;;  %v4271_v50 = vpack.c.bf16 %v327_v39, %v326_v38  ;;  %v4273_v52 = vpack.c.bf16 %v345_v46, %v344_v45 }
  0x3b   : > { %1376 = vmatmul.mubr.f32.vlgmr.msra.gmra.mrb[0].mxu0 %v1058_v28  ;;  %v342_v28 = vld [vmem:[%s5137_s29 + $0x2c0] sm:$0xff]  ;;  %v377_v48 = vld [vmem:[%s5137_s29 + $0x3d8] sm:$0xff]  ;;  %v4303_v51 = vpack.c.bf16 %v359_v44, %v358_v40  ;;  %v328_v53 = vld [vmem:[%s5137_s29 + $0x250] sm:$0xff] }
  0x3c   : > { %1446 = vmatmul.mubr.f32.vlgmr.msra.gmra.mrb[0].mxu1 %v1065_v34  ;;  %4256 = vmatpush3.bf16.msra.mxu0 %v4255_v59  ;;  %v1068_v34 = vcombine.high %v242_v30, %v242_v30  ;;  %v4269_v37 = vpack.c.bf16 %v343_v29, %v342_v28  ;;  %v329_v54 = vld [vmem:[%s5137_s29 + $0x258] sm:$0xff]  ;;  %v360_v55 = vld [vmem:[%s5137_s29 + $0x350] sm:$0xff]  ;;  %v4305_v56 = vpack.c.bf16 %v377_v48, %v376_v47  ;;  %v346_v58 = vld [vmem:[%s5137_s29 + $0x2e0] sm:$0xff] }
  0x3d   : > { %4288 = vmatpush3.bf16.msra.mxu1 %v4287_v60  ;;  %4258 = vmatprep.subr.bf16.mxu0 %v4257_v61  ;;  %v361_v57 = vld [vmem:[%s5137_s29 + $0x358] sm:$0xff]  ;;  %v347_v59 = vld [vmem:[%s5137_s29 + $0x2e8] sm:$0xff]  ;;  %v378_v60 = vld [vmem:[%s5137_s29 + $0x3e0] sm:$0xff]  ;;  %v4275_v62 = vpack.c.bf16 %v329_v54, %v328_v53 }
  0x3e   : > { %4290 = vmatprep.subr.bf16.mxu1 %v4289_v1  ;;  %v5255_v42 = vrot.slane %v1068_v34, %v5190_v14  ;;  %1515 = vmatprep.mubr.f32.mxu0 %v1083_v41  ;;  %v379_v61 = vld [vmem:[%s5137_s29 + $0x3e8] sm:$0xff]  ;;  %v4307_v63 = vpack.c.bf16 %v361_v57, %v360_v55  ;;  %v4277_v0 = vpack.c.bf16 %v347_v59, %v346_v58  ;;  %v330_v1 = vld [vmem:[%s5137_s29 + $0x260] sm:$0xff]  ;;  %v348_v6 = vld [vmem:[%s5137_s29 + $0x2f0] sm:$0xff] }
  0x3f   : > { %v331_v2 = vld [vmem:[%s5137_s29 + $0x268] sm:$0xff]  ;;  %v362_v3 = vld [vmem:[%s5137_s29 + $0x360] sm:$0xff]  ;;  %v4309_v4 = vpack.c.bf16 %v379_v61, %v378_v60  ;;  %v333_v15 = vld [vmem:[%s5137_s29 + $0x278] sm:$0xff] }
  0x40   : > { %4260 = vmatpush3.bf16.msra.mxu0 %v4259_v7  ;;  %v1084_v49 = vcombine.high %v5255_v42, %v5255_v42  ;;  %v363_v5 = vld [vmem:[%s5137_s29 + $0x368] sm:$0xff]  ;;  %v349_v7 = vld [vmem:[%s5137_s29 + $0x2f8] sm:$0xff]  ;;  %v4279_v10 = vpack.c.bf16 %v331_v2, %v330_v1  ;;  %v364_v16 = vld [vmem:[%s5137_s29 + $0x370] sm:$0xff] }
  0x41   : > { %4292 = vmatpush3.bf16.msra.mxu1 %v4291_v8  ;;  %4262 = vmatprep.subr.bf16.mxu0 %v4261_v9  ;;  %v380_v8 = vld [vmem:[%s5137_s29 + $0x3f0] sm:$0xff]  ;;  %v381_v9 = vld [vmem:[%s5137_s29 + $0x3f8] sm:$0xff]  ;;  %v4311_v11 = vpack.c.bf16 %v363_v5, %v362_v3  ;;  %v4281_v12 = vpack.c.bf16 %v349_v7, %v348_v6  ;;  %v398_v19 = vld [vmem:[%s5137_s29 + $0x480] sm:$0xff] }
  0x42   : > { %4294 = vmatprep.subr.bf16.mxu1 %v4293_v13  ;;  %1585 = vmatprep.mubr.f32.mxu1 %v1084_v49  ;;  %v332_v13 = vld [vmem:[%s5137_s29 + $0x270] sm:$0xff]  ;;  %v4313_v17 = vpack.c.bf16 %v381_v9, %v380_v8  ;;  %v365_v18 = vld [vmem:[%s5137_s29 + $0x378] sm:$0xff]  ;;  %v430_v21 = vld [vmem:[%s5137_s29 + $0x580] sm:$0xff] }
  0x43   : > { %v382_v24 = vld [vmem:[%s5137_s29 + $0x400] sm:$0xff]  ;;  %v4315_v25 = vpack.c.bf16 %v365_v18, %v364_v16  ;;  %v415_v29 = vld [vmem:[%s5137_s29 + $0x508] sm:$0xff]  ;;  %v400_v31 = vld [vmem:[%s5137_s29 + $0x490] sm:$0xff] }
  0x44   : > { %4264 = vmatpush3.bf16.msra.mxu0 %v4263_v20  ;;  %v399_v20 = vld [vmem:[%s5137_s29 + $0x488] sm:$0xff]  ;;  %v414_v28 = vld [vmem:[%s5137_s29 + $0x500] sm:$0xff]  ;;  %v401_v32 = vld [vmem:[%s5137_s29 + $0x498] sm:$0xff] }
  0x45   : > { %4296 = vmatpush3.bf16.msra.mxu1 %v4295_v22  ;;  %4266 = vmatprep.subr.bf16.mxu0 %v4265_v23  ;;  %v431_v22 = vld [vmem:[%s5137_s29 + $0x588] sm:$0xff]  ;;  %v4283_v23 = vpack.c.bf16 %v333_v15, %v332_v13  ;;  %v4317_v26 = vpack.c.bf16 %v399_v20, %v398_v19  ;;  %v432_v34 = vld [vmem:[%s5137_s29 + $0x590] sm:$0xff]  ;;  %v4321_v39 = vpack.c.bf16 %v401_v32, %v400_v31  ;;  %v385_v41 = vld [vmem:[%s5137_s29 + $0x418] sm:$0xff] }
  0x46   : > { %4298 = vmatprep.subr.bf16.mxu1 %v4297_v27  ;;  %v383_v27 = vld [vmem:[%s5137_s29 + $0x408] sm:$0xff]  ;;  %v4349_v30 = vpack.c.bf16 %v431_v22, %v430_v21  ;;  %v243_v38 = vld [vmem:[%s5132_s25 + $0x10] sm:$0xff]  ;;  %v417_v47 = vld [vmem:[%s5137_s29 + $0x518] sm:$0xff] }
  0x47   : > { %v384_v40 = vld [vmem:[%s5137_s29 + $0x410] sm:$0xff]  ;;  %v5301_v44 = vrot.slane %v243_v38, %v5190_v14  ;;  %v1085_v45 = vcombine.high %v243_v38, %v243_v38  ;;  %v402_v48 = vld [vmem:[%s5137_s29 + $0x4a0] sm:$0xff]  ;;  %v403_v49 = vld [vmem:[%s5137_s29 + $0x4a8] sm:$0xff] }
  0x48   : > { %4268 = vmatpush3.bf16.msra.mxu0 %v4267_v35  ;;  %v433_v35 = vld [vmem:[%s5137_s29 + $0x598] sm:$0xff]  ;;  %v4323_v54 = vpack.c.bf16 %v385_v41, %v384_v40  ;;  %v4325_v55 = vpack.c.bf16 %v403_v49, %v402_v48  ;;  %v387_v57 = vld [vmem:[%s5137_s29 + $0x428] sm:$0xff]  ;;  %v418_v58 = vld [vmem:[%s5137_s29 + $0x520] sm:$0xff] }
  0x49   : > { %4300 = vmatpush3.bf16.msra.mxu1 %v4299_v36  ;;  %4270 = vmatprep.subr.bf16.mxu0 %v4269_v37  ;;  %v4319_v36 = vpack.c.bf16 %v383_v27, %v382_v24  ;;  %v4351_v37 = vpack.c.bf16 %v415_v29, %v414_v28  ;;  %v4353_v46 = vpack.c.bf16 %v433_v35, %v432_v34  ;;  %v419_v61 = vld [vmem:[%s5137_s29 + $0x528] sm:$0xff]  ;;  %v389_v5 = vld [vmem:[%s5137_s29 + $0x438] sm:$0xff]  ;;  %v420_v6 = vld [vmem:[%s5137_s29 + $0x530] sm:$0xff] }
  0x4a   : > { %4302 = vmatprep.subr.bf16.mxu1 %v4301_v43  ;;  %v416_v43 = vld [vmem:[%s5137_s29 + $0x510] sm:$0xff]  ;;  %v5312_v53 = vrot.slane %v1085_v45, %v5190_v14  ;;  %v4359_v2 = vpack.c.bf16 %v419_v61, %v418_v58  ;;  %v421_v8 = vld [vmem:[%s5137_s29 + $0x538] sm:$0xff]  ;;  %v406_v9 = vld [vmem:[%s5137_s29 + $0x4c0] sm:$0xff] }
  0x4b   : > { %v4363_v15 = vpack.c.bf16 %v421_v8, %v420_v6  ;;  %v391_v18 = vld [vmem:[%s5137_s29 + $0x448] sm:$0xff]  ;;  %v422_v19 = vld [vmem:[%s5137_s29 + $0x540] sm:$0xff]  ;;  %v408_v22 = vld [vmem:[%s5137_s29 + $0x4d0] sm:$0xff] }
  0x4c   : > { %4272 = vmatpush3.bf16.msra.mxu0 %v4271_v50  ;;  %v434_v50 = vld [vmem:[%s5137_s29 + $0x5a0] sm:$0xff]  ;;  %v1101_v59 = vcombine.high %v5312_v53, %v5312_v53  ;;  %v423_v21 = vld [vmem:[%s5137_s29 + $0x548] sm:$0xff]  ;;  %v440_v24 = vld [vmem:[%s5137_s29 + $0x5d0] sm:$0xff] }
  0x4d   : > { %4304 = vmatpush3.bf16.msra.mxu1 %v4303_v51  ;;  %4274 = vmatprep.subr.bf16.mxu0 %v4273_v52  ;;  %v435_v51 = vld [vmem:[%s5137_s29 + $0x5a8] sm:$0xff]  ;;  %v1100_v52 = vcombine.high %v5301_v44, %v5301_v44  ;;  %v4367_v27 = vpack.c.bf16 %v423_v21, %v422_v19  ;;  %v392_v29 = vld [vmem:[%s5137_s29 + $0x450] sm:$0xff]  ;;  %v425_v34 = vld [vmem:[%s5137_s29 + $0x558] sm:$0xff] }
  0x4e   : > { %4306 = vmatprep.subr.bf16.mxu1 %v4305_v56  ;;  %v386_v56 = vld [vmem:[%s5137_s29 + $0x420] sm:$0xff]  ;;  %v4357_v60 = vpack.c.bf16 %v435_v51, %v434_v50  ;;  %v424_v31 = vld [vmem:[%s5137_s29 + $0x550] sm:$0xff]  ;;  %v443_v38 = vld [vmem:[%s5137_s29 + $0x5e8] sm:$0xff] }
  0x4f   : > { %v4327_v1 = vpack.c.bf16 %v387_v57, %v386_v56  ;;  %v410_v35 = vld [vmem:[%s5137_s29 + $0x4e0] sm:$0xff]  ;;  %v4371_v40 = vpack.c.bf16 %v425_v34, %v424_v31  ;;  %v395_v45 = vld [vmem:[%s5137_s29 + $0x468] sm:$0xff]  ;;  %v412_v49 = vld [vmem:[%s5137_s29 + $0x4f0] sm:$0xff] }
  0x50   : > { %4276 = vmatpush3.bf16.msra.mxu0 %v4275_v62  ;;  %v405_v62 = vld [vmem:[%s5137_s29 + $0x4b8] sm:$0xff]  ;;  %v427_v48 = vld [vmem:[%s5137_s29 + $0x568] sm:$0xff]  ;;  %v444_v51 = vld [vmem:[%s5137_s29 + $0x5f0] sm:$0xff] }
  0x51   : > { %4308 = vmatpush3.bf16.msra.mxu1 %v4307_v63  ;;  %4278 = vmatprep.subr.bf16.mxu0 %v4277_v0  ;;  %v436_v63 = vld [vmem:[%s5137_s29 + $0x5b0] sm:$0xff]  ;;  %v437_v0 = vld [vmem:[%s5137_s29 + $0x5b8] sm:$0xff]  ;;  %v447_v6 = vld [vmem:[%s5137_s29 + $0x608] sm:$0xff] }
  0x52   : > { %4310 = vmatprep.subr.bf16.mxu1 %v4309_v4  ;;  %v388_v4 = vld [vmem:[%s5137_s29 + $0x430] sm:$0xff]  ;;  %v4361_v7 = vpack.c.bf16 %v437_v0, %v436_v63  ;;  %v413_v50 = vld [vmem:[%s5137_s29 + $0x4f8] sm:$0xff]  ;;  %v494_v63 = vld [vmem:[%s5137_s29 + $0x780] sm:$0xff] }
  0x53   : > { %v4331_v13 = vpack.c.bf16 %v389_v5, %v388_v4  ;;  %v4345_v56 = vpack.c.bf16 %v413_v50, %v412_v49  ;;  %v396_v57 = vld [vmem:[%s5137_s29 + $0x470] sm:$0xff]  ;;  %v397_v58 = vld [vmem:[%s5137_s29 + $0x478] sm:$0xff]  ;;  %v495_v0 = vld [vmem:[%s5137_s29 + $0x788] sm:$0xff] }
  0x54   : > { %4280 = vmatpush3.bf16.msra.mxu0 %v4279_v10  ;;  %v407_v10 = vld [vmem:[%s5137_s29 + $0x4c8] sm:$0xff]  ;;  %v429_v61 = vld [vmem:[%s5137_s29 + $0x578] sm:$0xff]  ;;  %v446_v5 = vld [vmem:[%s5137_s29 + $0x600] sm:$0xff]  ;;  %v4413_v8 = vpack.c.bf16 %v495_v0, %v494_v63 }
  0x55   : > { %4312 = vmatpush3.bf16.msra.mxu1 %v4311_v11  ;;  %4282 = vmatprep.subr.bf16.mxu0 %v4281_v12  ;;  %v438_v11 = vld [vmem:[%s5137_s29 + $0x5c0] sm:$0xff]  ;;  %v439_v12 = vld [vmem:[%s5137_s29 + $0x5c8] sm:$0xff]  ;;  %v4333_v16 = vpack.c.bf16 %v407_v10, %v406_v9  ;;  %v464_v10 = vld [vmem:[%s5137_s29 + $0x690] sm:$0xff] }
  0x56   : > { %4314 = vmatprep.subr.bf16.mxu1 %v4313_v17  ;;  %v390_v17 = vld [vmem:[%s5137_s29 + $0x440] sm:$0xff]  ;;  %v4365_v20 = vpack.c.bf16 %v439_v12, %v438_v11  ;;  %v479_v9 = vld [vmem:[%s5137_s29 + $0x708] sm:$0xff]  ;;  %v465_v11 = vld [vmem:[%s5137_s29 + $0x698] sm:$0xff] }
  0x57   : > { %v4385_v19 = vpack.c.bf16 %v465_v11, %v464_v10  ;;  %v449_v21 = vld [vmem:[%s5137_s29 + $0x618] sm:$0xff]  ;;  %v484_v49 = vld [vmem:[%s5137_s29 + $0x730] sm:$0xff]  ;;  %v474_v11 = vld [vmem:[%s5137_s29 + $0x6e0] sm:$0xff] }
  0x58   : > { %4284 = vmatpush3.bf16.msra.mxu0 %v4283_v23  ;;  %v409_v23 = vld [vmem:[%s5137_s29 + $0x4d8] sm:$0xff]  ;;  %v472_v63 = vld [vmem:[%s5137_s29 + $0x6d0] sm:$0xff] }
  0x59   : > { %4316 = vmatpush3.bf16.msra.mxu1 %v4315_v25  ;;  %4318 = vmatprep.subr.bf16.mxu0 %v4317_v26  ;;  %v441_v25 = vld [vmem:[%s5137_s29 + $0x5d8] sm:$0xff]  ;;  %v4335_v26 = vpack.c.bf16 %v391_v18, %v390_v17  ;;  %v4337_v28 = vpack.c.bf16 %v409_v23, %v408_v22  ;;  %v4383_v17 = vpack.c.bf16 %v447_v6, %v446_v5  ;;  %v480_v22 = vld [vmem:[%s5137_s29 + $0x710] sm:$0xff] }
  0x5a   : > { %4350 = vmatprep.subr.bf16.mxu1 %v4349_v30  ;;  %v393_v30 = vld [vmem:[%s5137_s29 + $0x458] sm:$0xff]  ;;  %v4369_v32 = vpack.c.bf16 %v441_v25, %v440_v24  ;;  %v466_v25 = vld [vmem:[%s5137_s29 + $0x6a0] sm:$0xff]  ;;  %v456_v6 = vld [vmem:[%s5137_s29 + $0x650] sm:$0xff] }
  0x5b   : > { %1516 = vmatmul.mubr.f32.vlgmr.msra.gmra.mrb[2].mxu0 %v5247_v33  ;;  %v4355_v33 = vpack.c.bf16 %v417_v47, %v416_v43  ;;  %v394_v43 = vld [vmem:[%s5137_s29 + $0x460] sm:$0xff]  ;;  %v481_v24 = vld [vmem:[%s5137_s29 + $0x718] sm:$0xff] }
  0x5c   : > { %4320 = vmatpush3.bf16.msra.mxu0 %v4319_v36  ;;  %1586 = vmatmul.mubr.f32.vlgmr.msra.gmra.mrb[2].mxu1 %v5255_v42  ;;  %v404_v42 = vld [vmem:[%s5137_s29 + $0x4b0] sm:$0xff]  ;;  %v411_v36 = vld [vmem:[%s5137_s29 + $0x4e8] sm:$0xff]  ;;  %v473_v0 = vld [vmem:[%s5137_s29 + $0x6d8] sm:$0xff] }
  0x5d   : > { %4352 = vmatpush3.bf16.msra.mxu1 %v4351_v37  ;;  %4322 = vmatprep.subr.bf16.mxu0 %v4321_v39  ;;  %v4329_v3 = vpack.c.bf16 %v405_v62, %v404_v42  ;;  %v442_v37 = vld [vmem:[%s5137_s29 + $0x5e0] sm:$0xff]  ;;  %v4339_v39 = vpack.c.bf16 %v393_v30, %v392_v29  ;;  %v4341_v41 = vpack.c.bf16 %v411_v36, %v410_v35  ;;  %v463_v62 = vld [vmem:[%s5137_s29 + $0x688] sm:$0xff]  ;;  %v489_v10 = vld [vmem:[%s5137_s29 + $0x758] sm:$0xff] }
  0x5e   : > { %4354 = vmatprep.subr.bf16.mxu1 %v4353_v46  ;;  %1655 = vmatprep.mubr.f32.mxu0 %v1100_v52  ;;  %v426_v46 = vld [vmem:[%s5137_s29 + $0x560] sm:$0xff]  ;;  %v4373_v47 = vpack.c.bf16 %v443_v38, %v442_v37  ;;  %v445_v52 = vld [vmem:[%s5137_s29 + $0x5f8] sm:$0xff]  ;;  %v499_v29 = vld [vmem:[%s5137_s29 + $0x7a8] sm:$0xff]  ;;  %v4401_v5 = vpack.c.bf16 %v473_v0, %v472_v63 }
  0x5f   : > { %1725 = vmatprep.mubr.f32.mxu1 %v1101_v59  ;;  %v428_v59 = vld [vmem:[%s5137_s29 + $0x570] sm:$0xff]  ;;  %v462_v42 = vld [vmem:[%s5137_s29 + $0x680] sm:$0xff]  ;;  %v483_v38 = vld [vmem:[%s5137_s29 + $0x728] sm:$0xff] }
  0x60   : > { %4324 = vmatpush3.bf16.msra.mxu0 %v4323_v54  ;;  %v4343_v54 = vpack.c.bf16 %v395_v45, %v394_v43  ;;  %v4381_v4 = vpack.c.bf16 %v463_v62, %v462_v42  ;;  %v450_v35 = vld [vmem:[%s5137_s29 + $0x620] sm:$0xff]  ;;  %v487_v62 = vld [vmem:[%s5137_s29 + $0x748] sm:$0xff]  ;;  %v544_v63 = vld [vmem:[%s5137_s29 + $0x910] sm:$0xff] }
  0x61   : > { %4356 = vmatpush3.bf16.msra.mxu1 %v4355_v33  ;;  %4326 = vmatprep.subr.bf16.mxu0 %v4325_v55  ;;  %v244_v33 = vld [vmem:[%s5132_s25 + $0x18] sm:$0xff]  ;;  %v4375_v55 = vpack.c.bf16 %v427_v48, %v426_v46  ;;  %v482_v36 = vld [vmem:[%s5137_s29 + $0x720] sm:$0xff] }
  0x62   : > { %4358 = vmatprep.subr.bf16.mxu1 %v4357_v60  ;;  %v4377_v60 = vpack.c.bf16 %v445_v52, %v444_v51  ;;  %v5373_v12 = vrot.slane %v244_v33, %v5190_v14  ;;  %v4423_v45 = vpack.c.bf16 %v483_v38, %v482_v36  ;;  %v453_v48 = vld [vmem:[%s5137_s29 + $0x638] sm:$0xff]  ;;  %v470_v52 = vld [vmem:[%s5137_s29 + $0x6c0] sm:$0xff]  ;;  %v492_v36 = vld [vmem:[%s5137_s29 + $0x770] sm:$0xff] }
  0x63   : > { %v485_v51 = vld [vmem:[%s5137_s29 + $0x738] sm:$0xff] }
  0x64   : > { %4328 = vmatpush3.bf16.msra.mxu0 %v4327_v1  ;;  %v1102_v1 = vcombine.high %v244_v33, %v244_v33  ;;  %v502_v33 = vld [vmem:[%s5137_s29 + $0x7c0] sm:$0xff]  ;;  %v493_v38 = vld [vmem:[%s5137_s29 + $0x778] sm:$0xff] }
  0x65   : > { %4360 = vmatpush3.bf16.msra.mxu1 %v4359_v2  ;;  %4330 = vmatprep.subr.bf16.mxu0 %v4329_v3  ;;  %v4347_v2 = vpack.c.bf16 %v397_v58, %v396_v57  ;;  %v4379_v3 = vpack.c.bf16 %v429_v61, %v428_v59  ;;  %v4427_v57 = vpack.c.bf16 %v485_v51, %v484_v49  ;;  %v454_v59 = vld [vmem:[%s5137_s29 + $0x640] sm:$0xff]  ;;  %v511_v49 = vld [vmem:[%s5137_s29 + $0x808] sm:$0xff] }
  0x66   : > { %4362 = vmatprep.subr.bf16.mxu1 %v4361_v7  ;;  %v478_v7 = vld [vmem:[%s5137_s29 + $0x700] sm:$0xff] }
  0x67   : > { %v4415_v18 = vpack.c.bf16 %v479_v9, %v478_v7  ;;  %v486_v61 = vld [vmem:[%s5137_s29 + $0x740] sm:$0xff]  ;;  %v457_v7 = vld [vmem:[%s5137_s29 + $0x658] sm:$0xff] }
  0x68   : > { %4332 = vmatpush3.bf16.msra.mxu0 %v4331_v13  ;;  %v496_v13 = vld [vmem:[%s5137_s29 + $0x790] sm:$0xff] }
  0x69   : > { %4364 = vmatpush3.bf16.msra.mxu1 %v4363_v15  ;;  %4334 = vmatprep.subr.bf16.mxu0 %v4333_v16  ;;  %v497_v15 = vld [vmem:[%s5137_s29 + $0x798] sm:$0xff]  ;;  %v5378_v16 = vrot.slane %v1102_v1, %v5190_v14  ;;  %v504_v1 = vld [vmem:[%s5137_s29 + $0x7d0] sm:$0xff] }
  0x6a   : > { %4366 = vmatprep.subr.bf16.mxu1 %v4365_v20  ;;  %v448_v20 = vld [vmem:[%s5137_s29 + $0x610] sm:$0xff]  ;;  %v4417_v23 = vpack.c.bf16 %v497_v15, %v496_v13  ;;  %v475_v13 = vld [vmem:[%s5137_s29 + $0x6e8] sm:$0xff]  ;;  %v506_v15 = vld [vmem:[%s5137_s29 + $0x7e0] sm:$0xff] }
  0x6b   : > { %v1118_v30 = vcombine.high %v5378_v16, %v5378_v16  ;;  %v4387_v31 = vpack.c.bf16 %v449_v21, %v448_v20  ;;  %v4405_v20 = vpack.c.bf16 %v475_v13, %v474_v11  ;;  %v458_v21 = vld [vmem:[%s5137_s29 + $0x660] sm:$0xff] }
  0x6c   : > { %4336 = vmatpush3.bf16.msra.mxu0 %v4335_v26  ;;  %v467_v26 = vld [vmem:[%s5137_s29 + $0x6a8] sm:$0xff]  ;;  %v514_v11 = vld [vmem:[%s5137_s29 + $0x820] sm:$0xff] }
  0x6d   : > { %4368 = vmatpush3.bf16.msra.mxu1 %v4367_v27  ;;  %4338 = vmatprep.subr.bf16.mxu0 %v4337_v28  ;;  %v1117_v27 = vcombine.high %v5373_v12, %v5373_v12  ;;  %v498_v28 = vld [vmem:[%s5137_s29 + $0x7a0] sm:$0xff]  ;;  %v4389_v34 = vpack.c.bf16 %v467_v26, %v466_v25  ;;  %v491_v25 = vld [vmem:[%s5137_s29 + $0x768] sm:$0xff]  ;;  %v476_v26 = vld [vmem:[%s5137_s29 + $0x6f0] sm:$0xff] }
  0x6e   : > { %4370 = vmatprep.subr.bf16.mxu1 %v4369_v32  ;;  %v4419_v32 = vpack.c.bf16 %v481_v24, %v480_v22  ;;  %v4421_v37 = vpack.c.bf16 %v499_v29, %v498_v28  ;;  %v459_v22 = vld [vmem:[%s5137_s29 + $0x668] sm:$0xff]  ;;  %v508_v28 = vld [vmem:[%s5137_s29 + $0x7f0] sm:$0xff]  ;;  %v509_v29 = vld [vmem:[%s5137_s29 + $0x7f8] sm:$0xff] }
  0x6f   : > { %v546_v13 = vld [vmem:[%s5137_s29 + $0x920] sm:$0xff] }
  0x70   : > { %4340 = vmatpush3.bf16.msra.mxu0 %v4339_v39  ;;  %v468_v39 = vld [vmem:[%s5137_s29 + $0x6b0] sm:$0xff] }
  0x71   : > { %4372 = vmatpush3.bf16.msra.mxu1 %v4371_v40  ;;  %4342 = vmatprep.subr.bf16.mxu0 %v4341_v41  ;;  %v469_v40 = vld [vmem:[%s5137_s29 + $0x6b8] sm:$0xff] }
  0x72   : > { %4374 = vmatprep.subr.bf16.mxu1 %v4373_v47  ;;  %v501_v41 = vld [vmem:[%s5137_s29 + $0x7b8] sm:$0xff]  ;;  %v4393_v46 = vpack.c.bf16 %v469_v40, %v468_v39  ;;  %v452_v47 = vld [vmem:[%s5137_s29 + $0x630] sm:$0xff]  ;;  %v526_v39 = vld [vmem:[%s5137_s29 + $0x880] sm:$0xff] }
  0x73   : > { %v527_v40 = vld [vmem:[%s5137_s29 + $0x888] sm:$0xff] }
  0x74   : > { %4344 = vmatpush3.bf16.msra.mxu0 %v4343_v54  ;;  %v471_v54 = vld [vmem:[%s5137_s29 + $0x6c8] sm:$0xff] }
  0x75   : > { %4376 = vmatpush3.bf16.msra.mxu1 %v4375_v55  ;;  %4346 = vmatprep.subr.bf16.mxu0 %v4345_v56  ;;  %v503_v55 = vld [vmem:[%s5137_s29 + $0x7c8] sm:$0xff]  ;;  %v4395_v56 = vpack.c.bf16 %v453_v48, %v452_v47  ;;  %v4397_v58 = vpack.c.bf16 %v471_v54, %v470_v52  ;;  %v4445_v47 = vpack.c.bf16 %v527_v40, %v526_v39  ;;  %v510_v48 = vld [vmem:[%s5137_s29 + $0x800] sm:$0xff]  ;;  %v528_v54 = vld [vmem:[%s5137_s29 + $0x890] sm:$0xff] }
  0x76   : > { %4378 = vmatprep.subr.bf16.mxu1 %v4377_v60  ;;  %v455_v60 = vld [vmem:[%s5137_s29 + $0x648] sm:$0xff]  ;;  %v4429_v42 = vpack.c.bf16 %v503_v55, %v502_v33  ;;  %v529_v33 = vld [vmem:[%s5137_s29 + $0x898] sm:$0xff] }
  0x77   : > { %v543_v52 = vld [vmem:[%s5137_s29 + $0x908] sm:$0xff] }
  0x78   : > { %4348 = vmatpush3.bf16.msra.mxu0 %v4347_v2  ;;  %v505_v2 = vld [vmem:[%s5137_s29 + $0x7d8] sm:$0xff]  ;;  %v551_v40 = vld [vmem:[%s5137_s29 + $0x948] sm:$0xff] }
  0x79   : > { %4380 = vmatpush3.bf16.msra.mxu1 %v4379_v3  ;;  %4382 = vmatprep.subr.bf16.mxu0 %v4381_v4  ;;  %v4399_v3 = vpack.c.bf16 %v455_v60, %v454_v59  ;;  %v4431_v4 = vpack.c.bf16 %v487_v62, %v486_v61  ;;  %v4433_v9 = vpack.c.bf16 %v505_v2, %v504_v1  ;;  %v513_v62 = vld [vmem:[%s5137_s29 + $0x818] sm:$0xff]  ;;  %v530_v2 = vld [vmem:[%s5137_s29 + $0x8a0] sm:$0xff] }
  0x7a   : > { %4414 = vmatprep.subr.bf16.mxu1 %v4413_v8  ;;  %v488_v8 = vld [vmem:[%s5137_s29 + $0x750] sm:$0xff]  ;;  %v4447_v59 = vpack.c.bf16 %v511_v49, %v510_v48  ;;  %v4449_v61 = vpack.c.bf16 %v529_v33, %v528_v54  ;;  %v545_v1 = vld [vmem:[%s5137_s29 + $0x918] sm:$0xff]  ;;  %v538_v33 = vld [vmem:[%s5137_s29 + $0x8e0] sm:$0xff] }
  0x7b   : > { %1656 = vmatmul.mubr.f32.vlgmr.msra.gmra.mrb[4].mxu0 %v5301_v44  ;;  %v451_v44 = vld [vmem:[%s5137_s29 + $0x628] sm:$0xff]  ;;  %v520_v49 = vld [vmem:[%s5137_s29 + $0x850] sm:$0xff]  ;;  %v553_v54 = vld [vmem:[%s5137_s29 + $0x958] sm:$0xff] }
  0x7c   : > { %4384 = vmatpush3.bf16.msra.mxu0 %v4383_v17  ;;  %1726 = vmatmul.mubr.f32.vlgmr.msra.gmra.mrb[4].mxu1 %v5312_v53  ;;  %v500_v53 = vld [vmem:[%s5137_s29 + $0x7b0] sm:$0xff]  ;;  %v4391_v43 = vpack.c.bf16 %v451_v44, %v450_v35  ;;  %v507_v17 = vld [vmem:[%s5137_s29 + $0x7e8] sm:$0xff]  ;;  %v461_v44 = vld [vmem:[%s5137_s29 + $0x678] sm:$0xff] }
  0x7d   : > { %4416 = vmatpush3.bf16.msra.mxu1 %v4415_v18  ;;  %4386 = vmatprep.subr.bf16.mxu0 %v4385_v19  ;;  %v4425_v50 = vpack.c.bf16 %v501_v41, %v500_v53  ;;  %v4403_v18 = vpack.c.bf16 %v457_v7, %v456_v6  ;;  %v4435_v19 = vpack.c.bf16 %v489_v10, %v488_v8  ;;  %v460_v35 = vld [vmem:[%s5137_s29 + $0x670] sm:$0xff]  ;;  %v558_v53 = vld [vmem:[%s5137_s29 + $0x980] sm:$0xff]  ;;  %v559_v41 = vld [vmem:[%s5137_s29 + $0x988] sm:$0xff] }
  0x7e   : > { %4418 = vmatprep.subr.bf16.mxu1 %v4417_v23  ;;  %1795 = vmatprep.mubr.f32.mxu0 %v1117_v27  ;;  %v490_v23 = vld [vmem:[%s5137_s29 + $0x760] sm:$0xff]  ;;  %v4437_v24 = vpack.c.bf16 %v507_v17, %v506_v15  ;;  %v477_v27 = vld [vmem:[%s5137_s29 + $0x6f8] sm:$0xff]  ;;  %v4477_v51 = vpack.c.bf16 %v559_v41, %v558_v53  ;;  %v563_v6 = vld [vmem:[%s5137_s29 + $0x9a8] sm:$0xff] }
  0x7f   : > { %1865 = vmatprep.mubr.f32.mxu1 %v1118_v30  ;;  %v4407_v30 = vpack.c.bf16 %v459_v22, %v458_v21  ;;  %v547_v17 = vld [vmem:[%s5137_s29 + $0x928] sm:$0xff]  ;;  %v536_v53 = vld [vmem:[%s5137_s29 + $0x8d0] sm:$0xff]  ;;  %v537_v41 = vld [vmem:[%s5137_s29 + $0x8d8] sm:$0xff] }
  0x80   : > { %4388 = vmatpush3.bf16.msra.mxu0 %v4387_v31  ;;  %v245_v31 = vld [vmem:[%s5132_s25 + $0x20] sm:$0xff]  ;;  %v4487_v22 = vpack.c.bf16 %v547_v17, %v546_v13  ;;  %v4465_v48 = vpack.c.bf16 %v537_v41, %v536_v53  ;;  %v556_v13 = vld [vmem:[%s5137_s29 + $0x970] sm:$0xff]  ;;  %v557_v17 = vld [vmem:[%s5137_s29 + $0x978] sm:$0xff] }
  0x81   : > { %4420 = vmatpush3.bf16.msra.mxu1 %v4419_v32  ;;  %4390 = vmatprep.subr.bf16.mxu0 %v4389_v34  ;;  %v4439_v32 = vpack.c.bf16 %v491_v25, %v490_v23  ;;  %v4409_v34 = vpack.c.bf16 %v477_v27, %v476_v26  ;;  %v5450_v55 = vrot.slane %v245_v31, %v5190_v14  ;;  %v517_v25 = vld [vmem:[%s5137_s29 + $0x838] sm:$0xff]  ;;  %v548_v26 = vld [vmem:[%s5137_s29 + $0x930] sm:$0xff] }
  0x82   : > { %4422 = vmatprep.subr.bf16.mxu1 %v4421_v37  ;;  %v4441_v37 = vpack.c.bf16 %v509_v29, %v508_v28  ;;  %v549_v28 = vld [vmem:[%s5137_s29 + $0x938] sm:$0xff]  ;;  %v534_v29 = vld [vmem:[%s5137_s29 + $0x8c0] sm:$0xff]  ;;  %v608_v53 = vld [vmem:[%s5137_s29 + $0xb10] sm:$0xff] }
  0x84   : > { %4392 = vmatpush3.bf16.msra.mxu0 %v4391_v43  ;;  %v1119_v43 = vcombine.high %v245_v31, %v245_v31  ;;  %v566_v31 = vld [vmem:[%s5137_s29 + $0x9c0] sm:$0xff] }
  0x85   : > { %4424 = vmatpush3.bf16.msra.mxu1 %v4423_v45  ;;  %4394 = vmatprep.subr.bf16.mxu0 %v4393_v46  ;;  %v4411_v45 = vpack.c.bf16 %v461_v44, %v460_v35  ;;  %v4443_v46 = vpack.c.bf16 %v493_v38, %v492_v36  ;;  %v4491_v35 = vpack.c.bf16 %v549_v28, %v548_v26  ;;  %v518_v36 = vld [vmem:[%s5137_s29 + $0x840] sm:$0xff]  ;;  %v575_v26 = vld [vmem:[%s5137_s29 + $0xa08] sm:$0xff] }
  0x86   : > { %4426 = vmatprep.subr.bf16.mxu1 %v4425_v50  ;;  %v542_v50 = vld [vmem:[%s5137_s29 + $0x900] sm:$0xff] }
  0x87   : > { %v4479_v60 = vpack.c.bf16 %v543_v52, %v542_v50  ;;  %v550_v38 = vld [vmem:[%s5137_s29 + $0x940] sm:$0xff]  ;;  %v521_v50 = vld [vmem:[%s5137_s29 + $0x858] sm:$0xff] }
  0x88   : > { %4396 = vmatpush3.bf16.msra.mxu0 %v4395_v56  ;;  %v560_v56 = vld [vmem:[%s5137_s29 + $0x990] sm:$0xff] }
  0x89   : > { %4428 = vmatpush3.bf16.msra.mxu1 %v4427_v57  ;;  %4398 = vmatprep.subr.bf16.mxu0 %v4397_v58  ;;  %v561_v57 = vld [vmem:[%s5137_s29 + $0x998] sm:$0xff]  ;;  %v5455_v58 = vrot.slane %v1119_v43, %v5190_v14  ;;  %v568_v43 = vld [vmem:[%s5137_s29 + $0x9d0] sm:$0xff] }
  0x8a   : > { %4430 = vmatprep.subr.bf16.mxu1 %v4429_v42  ;;  %v512_v42 = vld [vmem:[%s5137_s29 + $0x810] sm:$0xff]  ;;  %v4481_v0 = vpack.c.bf16 %v561_v57, %v560_v56  ;;  %v539_v56 = vld [vmem:[%s5137_s29 + $0x8e8] sm:$0xff]  ;;  %v570_v57 = vld [vmem:[%s5137_s29 + $0x9e0] sm:$0xff] }
  0x8b   : > { %v1135_v7 = vcombine.high %v5455_v58, %v5455_v58  ;;  %v4451_v8 = vpack.c.bf16 %v513_v62, %v512_v42  ;;  %v4469_v42 = vpack.c.bf16 %v539_v56, %v538_v33  ;;  %v522_v62 = vld [vmem:[%s5137_s29 + $0x860] sm:$0xff] }
  0x8c   : > { %4400 = vmatpush3.bf16.msra.mxu0 %v4399_v3  ;;  %v531_v3 = vld [vmem:[%s5137_s29 + $0x8a8] sm:$0xff]  ;;  %v578_v33 = vld [vmem:[%s5137_s29 + $0xa20] sm:$0xff] }
  0x8d   : > { %4432 = vmatpush3.bf16.msra.mxu1 %v4431_v4  ;;  %4402 = vmatprep.subr.bf16.mxu0 %v4401_v5  ;;  %v1134_v4 = vcombine.high %v5450_v55, %v5450_v55  ;;  %v562_v5 = vld [vmem:[%s5137_s29 + $0x9a0] sm:$0xff]  ;;  %v4453_v10 = vpack.c.bf16 %v531_v3, %v530_v2  ;;  %v555_v2 = vld [vmem:[%s5137_s29 + $0x968] sm:$0xff]  ;;  %v540_v3 = vld [vmem:[%s5137_s29 + $0x8f0] sm:$0xff] }
  0x8e   : > { %4434 = vmatprep.subr.bf16.mxu1 %v4433_v9  ;;  %v4483_v9 = vpack.c.bf16 %v545_v1, %v544_v63  ;;  %v4485_v15 = vpack.c.bf16 %v563_v6, %v562_v5  ;;  %v523_v63 = vld [vmem:[%s5137_s29 + $0x868] sm:$0xff]  ;;  %v572_v5 = vld [vmem:[%s5137_s29 + $0x9f0] sm:$0xff]  ;;  %v573_v6 = vld [vmem:[%s5137_s29 + $0x9f8] sm:$0xff] }
  0x8f   : > { %v610_v56 = vld [vmem:[%s5137_s29 + $0xb20] sm:$0xff] }
  0x90   : > { %4404 = vmatpush3.bf16.msra.mxu0 %v4403_v18  ;;  %v532_v18 = vld [vmem:[%s5137_s29 + $0x8b0] sm:$0xff] }
  0x91   : > { %4436 = vmatpush3.bf16.msra.mxu1 %v4435_v19  ;;  %4406 = vmatprep.subr.bf16.mxu0 %v4405_v20  ;;  %v533_v19 = vld [vmem:[%s5137_s29 + $0x8b8] sm:$0xff] }
  0x92   : > { %4438 = vmatprep.subr.bf16.mxu1 %v4437_v24  ;;  %v565_v20 = vld [vmem:[%s5137_s29 + $0x9b8] sm:$0xff]  ;;  %v4457_v23 = vpack.c.bf16 %v533_v19, %v532_v18  ;;  %v516_v24 = vld [vmem:[%s5137_s29 + $0x830] sm:$0xff]  ;;  %v590_v18 = vld [vmem:[%s5137_s29 + $0xa80] sm:$0xff] }
  0x93   : > { %v591_v19 = vld [vmem:[%s5137_s29 + $0xa88] sm:$0xff] }
  0x94   : > { %4408 = vmatpush3.bf16.msra.mxu0 %v4407_v30  ;;  %v535_v30 = vld [vmem:[%s5137_s29 + $0x8c8] sm:$0xff] }
  0x95   : > { %4440 = vmatpush3.bf16.msra.mxu1 %v4439_v32  ;;  %4410 = vmatprep.subr.bf16.mxu0 %v4409_v34  ;;  %v567_v32 = vld [vmem:[%s5137_s29 + $0x9c8] sm:$0xff]  ;;  %v4459_v34 = vpack.c.bf16 %v517_v25, %v516_v24  ;;  %v4461_v44 = vpack.c.bf16 %v535_v30, %v534_v29  ;;  %v4509_v24 = vpack.c.bf16 %v591_v19, %v590_v18  ;;  %v574_v25 = vld [vmem:[%s5137_s29 + $0xa00] sm:$0xff]  ;;  %v592_v30 = vld [vmem:[%s5137_s29 + $0xa90] sm:$0xff] }
  0x96   : > { %4442 = vmatprep.subr.bf16.mxu1 %v4441_v37  ;;  %v519_v37 = vld [vmem:[%s5137_s29 + $0x848] sm:$0xff]  ;;  %v4493_v39 = vpack.c.bf16 %v567_v32, %v566_v31  ;;  %v593_v31 = vld [vmem:[%s5137_s29 + $0xa98] sm:$0xff] }
  0x97   : > { %v607_v29 = vld [vmem:[%s5137_s29 + $0xb08] sm:$0xff] }
  0x98   : > { %4412 = vmatpush3.bf16.msra.mxu0 %v4411_v45  ;;  %v569_v45 = vld [vmem:[%s5137_s29 + $0x9d8] sm:$0xff]  ;;  %v615_v19 = vld [vmem:[%s5137_s29 + $0xb48] sm:$0xff] }
  0x99   : > { %4444 = vmatpush3.bf16.msra.mxu1 %v4443_v46  ;;  %4446 = vmatprep.subr.bf16.mxu0 %v4445_v47  ;;  %v4463_v46 = vpack.c.bf16 %v519_v37, %v518_v36  ;;  %v4495_v47 = vpack.c.bf16 %v551_v40, %v550_v38  ;;  %v4497_v52 = vpack.c.bf16 %v569_v45, %v568_v43  ;;  %v577_v40 = vld [vmem:[%s5137_s29 + $0xa18] sm:$0xff]  ;;  %v594_v45 = vld [vmem:[%s5137_s29 + $0xaa0] sm:$0xff] }
  0x9a   : > { %4478 = vmatprep.subr.bf16.mxu1 %v4477_v51  ;;  %v552_v51 = vld [vmem:[%s5137_s29 + $0x950] sm:$0xff]  ;;  %v4511_v36 = vpack.c.bf16 %v575_v26, %v574_v25  ;;  %v4513_v38 = vpack.c.bf16 %v593_v31, %v592_v30  ;;  %v609_v43 = vld [vmem:[%s5137_s29 + $0xb18] sm:$0xff]  ;;  %v602_v31 = vld [vmem:[%s5137_s29 + $0xae0] sm:$0xff] }
  0x9b   : > { %1796 = vmatmul.mubr.f32.vlgmr.msra.gmra.mrb[6].mxu0 %v5373_v12  ;;  %v515_v12 = vld [vmem:[%s5137_s29 + $0x828] sm:$0xff]  ;;  %v584_v26 = vld [vmem:[%s5137_s29 + $0xa50] sm:$0xff]  ;;  %v617_v30 = vld [vmem:[%s5137_s29 + $0xb58] sm:$0xff] }
  0x9c   : > { %4448 = vmatpush3.bf16.msra.mxu0 %v4447_v59  ;;  %1866 = vmatmul.mubr.f32.vlgmr.msra.gmra.mrb[6].mxu1 %v5378_v16  ;;  %v564_v16 = vld [vmem:[%s5137_s29 + $0x9b0] sm:$0xff]  ;;  %v4455_v21 = vpack.c.bf16 %v515_v12, %v514_v11  ;;  %v571_v59 = vld [vmem:[%s5137_s29 + $0x9e8] sm:$0xff]  ;;  %v525_v12 = vld [vmem:[%s5137_s29 + $0x878] sm:$0xff] }
  0x9d   : > { %4480 = vmatpush3.bf16.msra.mxu1 %v4479_v60  ;;  %4450 = vmatprep.subr.bf16.mxu0 %v4449_v61  ;;  %v4489_v27 = vpack.c.bf16 %v565_v20, %v564_v16  ;;  %v4467_v60 = vpack.c.bf16 %v521_v50, %v520_v49  ;;  %v4499_v61 = vpack.c.bf16 %v553_v54, %v552_v51  ;;  %v524_v11 = vld [vmem:[%s5137_s29 + $0x870] sm:$0xff]  ;;  %v622_v16 = vld [vmem:[%s5137_s29 + $0xb80] sm:$0xff]  ;;  %v623_v20 = vld [vmem:[%s5137_s29 + $0xb88] sm:$0xff] }
  0x9e   : > { %4482 = vmatprep.subr.bf16.mxu1 %v4481_v0  ;;  %1935 = vmatprep.mubr.f32.mxu0 %v1134_v4  ;;  %v554_v0 = vld [vmem:[%s5137_s29 + $0x960] sm:$0xff]  ;;  %v4501_v1 = vpack.c.bf16 %v571_v59, %v570_v57  ;;  %v541_v4 = vld [vmem:[%s5137_s29 + $0x8f8] sm:$0xff]  ;;  %v4541_v28 = vpack.c.bf16 %v623_v20, %v622_v16  ;;  %v627_v49 = vld [vmem:[%s5137_s29 + $0xba8] sm:$0xff] }
  0x9f   : > { %2005 = vmatprep.mubr.f32.mxu1 %v1135_v7  ;;  %v4471_v7 = vpack.c.bf16 %v523_v63, %v522_v62  ;;  %v611_v59 = vld [vmem:[%s5137_s29 + $0xb28] sm:$0xff]  ;;  %v600_v16 = vld [vmem:[%s5137_s29 + $0xad0] sm:$0xff]  ;;  %v601_v20 = vld [vmem:[%s5137_s29 + $0xad8] sm:$0xff] }
  0xa0   : > { %4452 = vmatpush3.bf16.msra.mxu0 %v4451_v8  ;;  %v246_v8 = vld [vmem:[%s5132_s25 + $0x28] sm:$0xff]  ;;  %v4551_v63 = vpack.c.bf16 %v611_v59, %v610_v56  ;;  %v4529_v25 = vpack.c.bf16 %v601_v20, %v600_v16  ;;  %v620_v56 = vld [vmem:[%s5137_s29 + $0xb70] sm:$0xff]  ;;  %v621_v59 = vld [vmem:[%s5137_s29 + $0xb78] sm:$0xff] }
  0xa1   : > { %4484 = vmatpush3.bf16.msra.mxu1 %v4483_v9  ;;  %4454 = vmatprep.subr.bf16.mxu0 %v4453_v10  ;;  %v4503_v9 = vpack.c.bf16 %v555_v2, %v554_v0  ;;  %v4473_v10 = vpack.c.bf16 %v541_v4, %v540_v3  ;;  %v5527_v32 = vrot.slane %v246_v8, %v5190_v14  ;;  %v581_v2 = vld [vmem:[%s5137_s29 + $0xa38] sm:$0xff]  ;;  %v612_v3 = vld [vmem:[%s5137_s29 + $0xb30] sm:$0xff] }
  0xa2   : > { %4486 = vmatprep.subr.bf16.mxu1 %v4485_v15  ;;  %v4505_v15 = vpack.c.bf16 %v573_v6, %v572_v5  ;;  %v613_v5 = vld [vmem:[%s5137_s29 + $0xb38] sm:$0xff]  ;;  %v598_v6 = vld [vmem:[%s5137_s29 + $0xac0] sm:$0xff]  ;;  %v672_v16 = vld [vmem:[%s5137_s29 + $0xd10] sm:$0xff] }
  0xa4   : > { %4456 = vmatpush3.bf16.msra.mxu0 %v4455_v21  ;;  %v1136_v21 = vcombine.high %v246_v8, %v246_v8  ;;  %v630_v8 = vld [vmem:[%s5137_s29 + $0xbc0] sm:$0xff] }
  0xa5   : > { %4488 = vmatpush3.bf16.msra.mxu1 %v4487_v22  ;;  %4458 = vmatprep.subr.bf16.mxu0 %v4457_v23  ;;  %v4475_v22 = vpack.c.bf16 %v525_v12, %v524_v11  ;;  %v4507_v23 = vpack.c.bf16 %v557_v17, %v556_v13  ;;  %v4555_v11 = vpack.c.bf16 %v613_v5, %v612_v3  ;;  %v582_v13 = vld [vmem:[%s5137_s29 + $0xa40] sm:$0xff]  ;;  %v639_v3 = vld [vmem:[%s5137_s29 + $0xc08] sm:$0xff] }
  0xa6   : > { %4490 = vmatprep.subr.bf16.mxu1 %v4489_v27  ;;  %v606_v27 = vld [vmem:[%s5137_s29 + $0xb00] sm:$0xff] }
  0xa7   : > { %v4543_v37 = vpack.c.bf16 %v607_v29, %v606_v27  ;;  %v614_v17 = vld [vmem:[%s5137_s29 + $0xb40] sm:$0xff]  ;;  %v585_v27 = vld [vmem:[%s5137_s29 + $0xa58] sm:$0xff] }
  0xa8   : > { %4460 = vmatpush3.bf16.msra.mxu0 %v4459_v34  ;;  %v624_v34 = vld [vmem:[%s5137_s29 + $0xb90] sm:$0xff] }
  0xa9   : > { %4492 = vmatpush3.bf16.msra.mxu1 %v4491_v35  ;;  %4462 = vmatprep.subr.bf16.mxu0 %v4461_v44  ;;  %v625_v35 = vld [vmem:[%s5137_s29 + $0xb98] sm:$0xff]  ;;  %v5532_v44 = vrot.slane %v1136_v21, %v5190_v14  ;;  %v632_v21 = vld [vmem:[%s5137_s29 + $0xbd0] sm:$0xff] }
  0xaa   : > { %4494 = vmatprep.subr.bf16.mxu1 %v4493_v39  ;;  %v576_v39 = vld [vmem:[%s5137_s29 + $0xa10] sm:$0xff]  ;;  %v4545_v41 = vpack.c.bf16 %v625_v35, %v624_v34  ;;  %v603_v34 = vld [vmem:[%s5137_s29 + $0xae8] sm:$0xff]  ;;  %v634_v35 = vld [vmem:[%s5137_s29 + $0xbe0] sm:$0xff] }
  0xab   : > { %v1152_v50 = vcombine.high %v5532_v44, %v5532_v44  ;;  %v4515_v51 = vpack.c.bf16 %v577_v40, %v576_v39  ;;  %v4533_v39 = vpack.c.bf16 %v603_v34, %v602_v31  ;;  %v586_v40 = vld [vmem:[%s5137_s29 + $0xa60] sm:$0xff] }
  0xac   : > { %4464 = vmatpush3.bf16.msra.mxu0 %v4463_v46  ;;  %v595_v46 = vld [vmem:[%s5137_s29 + $0xaa8] sm:$0xff]  ;;  %v642_v31 = vld [vmem:[%s5137_s29 + $0xc20] sm:$0xff] }
  0xad   : > { %4496 = vmatpush3.bf16.msra.mxu1 %v4495_v47  ;;  %4466 = vmatprep.subr.bf16.mxu0 %v4465_v48  ;;  %v1151_v47 = vcombine.high %v5527_v32, %v5527_v32  ;;  %v626_v48 = vld [vmem:[%s5137_s29 + $0xba0] sm:$0xff]  ;;  %v4517_v54 = vpack.c.bf16 %v595_v46, %v594_v45  ;;  %v619_v45 = vld [vmem:[%s5137_s29 + $0xb68] sm:$0xff]  ;;  %v604_v46 = vld [vmem:[%s5137_s29 + $0xaf0] sm:$0xff] }
  0xae   : > { %4498 = vmatprep.subr.bf16.mxu1 %v4497_v52  ;;  %v4547_v52 = vpack.c.bf16 %v609_v43, %v608_v53  ;;  %v4549_v57 = vpack.c.bf16 %v627_v49, %v626_v48  ;;  %v587_v53 = vld [vmem:[%s5137_s29 + $0xa68] sm:$0xff]  ;;  %v636_v48 = vld [vmem:[%s5137_s29 + $0xbf0] sm:$0xff]  ;;  %v637_v49 = vld [vmem:[%s5137_s29 + $0xbf8] sm:$0xff] }
  0xaf   : > { %v674_v34 = vld [vmem:[%s5137_s29 + $0xd20] sm:$0xff] }
  0xb0   : > { %4468 = vmatpush3.bf16.msra.mxu0 %v4467_v60  ;;  %v596_v60 = vld [vmem:[%s5137_s29 + $0xab0] sm:$0xff] }
  0xb1   : > { %4500 = vmatpush3.bf16.msra.mxu1 %v4499_v61  ;;  %4470 = vmatprep.subr.bf16.mxu0 %v4469_v42  ;;  %v597_v61 = vld [vmem:[%s5137_s29 + $0xab8] sm:$0xff] }
  0xb2   : > { %4502 = vmatprep.subr.bf16.mxu1 %v4501_v1  ;;  %v629_v42 = vld [vmem:[%s5137_s29 + $0xbb8] sm:$0xff]  ;;  %v4521_v0 = vpack.c.bf16 %v597_v61, %v596_v60  ;;  %v580_v1 = vld [vmem:[%s5137_s29 + $0xa30] sm:$0xff]  ;;  %v654_v60 = vld [vmem:[%s5137_s29 + $0xc80] sm:$0xff] }
  0xb3   : > { %v655_v61 = vld [vmem:[%s5137_s29 + $0xc88] sm:$0xff] }
  0xb4   : > { %4472 = vmatpush3.bf16.msra.mxu0 %v4471_v7  ;;  %v599_v7 = vld [vmem:[%s5137_s29 + $0xac8] sm:$0xff] }
  0xb5   : > { %4504 = vmatpush3.bf16.msra.mxu1 %v4503_v9  ;;  %4474 = vmatprep.subr.bf16.mxu0 %v4473_v10  ;;  %v631_v9 = vld [vmem:[%s5137_s29 + $0xbc8] sm:$0xff]  ;;  %v4523_v10 = vpack.c.bf16 %v581_v2, %v580_v1  ;;  %v4525_v12 = vpack.c.bf16 %v599_v7, %v598_v6  ;;  %v4573_v1 = vpack.c.bf16 %v655_v61, %v654_v60  ;;  %v638_v2 = vld [vmem:[%s5137_s29 + $0xc00] sm:$0xff]  ;;  %v656_v7 = vld [vmem:[%s5137_s29 + $0xc90] sm:$0xff] }
  0xb6   : > { %4506 = vmatprep.subr.bf16.mxu1 %v4505_v15  ;;  %v583_v15 = vld [vmem:[%s5137_s29 + $0xa48] sm:$0xff]  ;;  %v4557_v18 = vpack.c.bf16 %v631_v9, %v630_v8  ;;  %v657_v8 = vld [vmem:[%s5137_s29 + $0xc98] sm:$0xff] }
  0xb7   : > { %v671_v6 = vld [vmem:[%s5137_s29 + $0xd08] sm:$0xff] }
  0xb8   : > { %4476 = vmatpush3.bf16.msra.mxu0 %v4475_v22  ;;  %v633_v22 = vld [vmem:[%s5137_s29 + $0xbd8] sm:$0xff]  ;;  %v679_v61 = vld [vmem:[%s5137_s29 + $0xd48] sm:$0xff] }
  0xb9   : > { %4508 = vmatpush3.bf16.msra.mxu1 %v4507_v23  ;;  %4510 = vmatprep.subr.bf16.mxu0 %v4509_v24  ;;  %v4527_v23 = vpack.c.bf16 %v583_v15, %v582_v13  ;;  %v4559_v24 = vpack.c.bf16 %v615_v19, %v614_v17  ;;  %v4561_v29 = vpack.c.bf16 %v633_v22, %v632_v21  ;;  %v641_v19 = vld [vmem:[%s5137_s29 + $0xc18] sm:$0xff]  ;;  %v658_v22 = vld [vmem:[%s5137_s29 + $0xca0] sm:$0xff] }
  0xba   : > { %4542 = vmatprep.subr.bf16.mxu1 %v4541_v28  ;;  %v616_v28 = vld [vmem:[%s5137_s29 + $0xb50] sm:$0xff]  ;;  %v4575_v13 = vpack.c.bf16 %v639_v3, %v638_v2  ;;  %v4577_v17 = vpack.c.bf16 %v657_v8, %v656_v7  ;;  %v673_v21 = vld [vmem:[%s5137_s29 + $0xd18] sm:$0xff]  ;;  %v666_v8 = vld [vmem:[%s5137_s29 + $0xce0] sm:$0xff] }
  0xbb   : > { %1936 = vmatmul.mubr.f32.vlgmr.msra.gmra.mrb[8].mxu0 %v5450_v55  ;;  %v579_v55 = vld [vmem:[%s5137_s29 + $0xa28] sm:$0xff]  ;;  %v648_v3 = vld [vmem:[%s5137_s29 + $0xc50] sm:$0xff]  ;;  %v681_v7 = vld [vmem:[%s5137_s29 + $0xd58] sm:$0xff] }
  0xbc   : > { %4512 = vmatpush3.bf16.msra.mxu0 %v4511_v36  ;;  %2006 = vmatmul.mubr.f32.vlgmr.msra.gmra.mrb[8].mxu1 %v5455_v58  ;;  %v628_v58 = vld [vmem:[%s5137_s29 + $0xbb0] sm:$0xff]  ;;  %v4519_v62 = vpack.c.bf16 %v579_v55, %v578_v33  ;;  %v635_v36 = vld [vmem:[%s5137_s29 + $0xbe8] sm:$0xff]  ;;  %v589_v55 = vld [vmem:[%s5137_s29 + $0xa78] sm:$0xff] }
  0xbd   : > { %4544 = vmatpush3.bf16.msra.mxu1 %v4543_v37  ;;  %4514 = vmatprep.subr.bf16.mxu0 %v4513_v38  ;;  %v4553_v4 = vpack.c.bf16 %v629_v42, %v628_v58  ;;  %v4531_v37 = vpack.c.bf16 %v585_v27, %v584_v26  ;;  %v4563_v38 = vpack.c.bf16 %v617_v30, %v616_v28  ;;  %v588_v33 = vld [vmem:[%s5137_s29 + $0xa70] sm:$0xff]  ;;  %v686_v58 = vld [vmem:[%s5137_s29 + $0xd80] sm:$0xff]  ;;  %v687_v42 = vld [vmem:[%s5137_s29 + $0xd88] sm:$0xff] }
  0xbe   : > { %4546 = vmatprep.subr.bf16.mxu1 %v4545_v41  ;;  %2075 = vmatprep.mubr.f32.mxu0 %v1151_v47  ;;  %v618_v41 = vld [vmem:[%s5137_s29 + $0xb60] sm:$0xff]  ;;  %v4565_v43 = vpack.c.bf16 %v635_v36, %v634_v35  ;;  %v605_v47 = vld [vmem:[%s5137_s29 + $0xaf8] sm:$0xff]  ;;  %v4605_v5 = vpack.c.bf16 %v687_v42, %v686_v58  ;;  %v691_v26 = vld [vmem:[%s5137_s29 + $0xda8] sm:$0xff] }
  0xbf   : > { %2145 = vmatprep.mubr.f32.mxu1 %v1152_v50  ;;  %v4535_v50 = vpack.c.bf16 %v587_v53, %v586_v40  ;;  %v675_v36 = vld [vmem:[%s5137_s29 + $0xd28] sm:$0xff]  ;;  %v664_v58 = vld [vmem:[%s5137_s29 + $0xcd0] sm:$0xff]  ;;  %v665_v42 = vld [vmem:[%s5137_s29 + $0xcd8] sm:$0xff] }
  0xc0   : > { %4516 = vmatpush3.bf16.msra.mxu0 %v4515_v51  ;;  %v247_v51 = vld [vmem:[%s5132_s25 + $0x30] sm:$0xff]  ;;  %v4615_v53 = vpack.c.bf16 %v675_v36, %v674_v34  ;;  %v4593_v2 = vpack.c.bf16 %v665_v42, %v664_v58  ;;  %v685_v36 = vld [vmem:[%s5137_s29 + $0xd78] sm:$0xff] }
  0xc1   : > { %4548 = vmatpush3.bf16.msra.mxu1 %v4547_v52  ;;  %4518 = vmatprep.subr.bf16.mxu0 %v4517_v54  ;;  %v4567_v52 = vpack.c.bf16 %v619_v45, %v618_v41  ;;  %v4537_v54 = vpack.c.bf16 %v605_v47, %v604_v46  ;;  %v5604_v9 = vrot.slane %v247_v51, %v5190_v14  ;;  %v645_v45 = vld [vmem:[%s5137_s29 + $0xc38] sm:$0xff]  ;;  %v676_v46 = vld [vmem:[%s5137_s29 + $0xd30] sm:$0xff] }
  0xc2   : > { %4550 = vmatprep.subr.bf16.mxu1 %v4549_v57  ;;  %v4569_v57 = vpack.c.bf16 %v637_v49, %v636_v48  ;;  %v677_v48 = vld [vmem:[%s5137_s29 + $0xd38] sm:$0xff]  ;;  %v662_v49 = vld [vmem:[%s5137_s29 + $0xcc0] sm:$0xff]  ;;  %v684_v34 = vld [vmem:[%s5137_s29 + $0xd70] sm:$0xff] }
  0xc3   : > { %v736_v58 = vld [vmem:[%s5137_s29 + $0xf10] sm:$0xff] }
  0xc4   : > { %4520 = vmatpush3.bf16.msra.mxu0 %v4519_v62  ;;  %v1153_v62 = vcombine.high %v247_v51, %v247_v51  ;;  %v694_v51 = vld [vmem:[%s5137_s29 + $0xdc0] sm:$0xff] }
  0xc5   : > { %4552 = vmatpush3.bf16.msra.mxu1 %v4551_v63  ;;  %4522 = vmatprep.subr.bf16.mxu0 %v4521_v0  ;;  %v4539_v63 = vpack.c.bf16 %v589_v55, %v588_v33  ;;  %v4571_v0 = vpack.c.bf16 %v621_v59, %v620_v56  ;;  %v4619_v33 = vpack.c.bf16 %v677_v48, %v676_v46  ;;  %v646_v56 = vld [vmem:[%s5137_s29 + $0xc40] sm:$0xff]  ;;  %v703_v46 = vld [vmem:[%s5137_s29 + $0xe08] sm:$0xff] }
  0xc6   : > { %4554 = vmatprep.subr.bf16.mxu1 %v4553_v4  ;;  %v670_v4 = vld [vmem:[%s5137_s29 + $0xd00] sm:$0xff] }
  0xc7   : > { %v4607_v15 = vpack.c.bf16 %v671_v6, %v670_v4  ;;  %v678_v59 = vld [vmem:[%s5137_s29 + $0xd40] sm:$0xff]  ;;  %v649_v4 = vld [vmem:[%s5137_s29 + $0xc58] sm:$0xff] }
  0xc8   : > { %4524 = vmatpush3.bf16.msra.mxu0 %v4523_v10  ;;  %v688_v10 = vld [vmem:[%s5137_s29 + $0xd90] sm:$0xff] }
  0xc9   : > { %4556 = vmatpush3.bf16.msra.mxu1 %v4555_v11  ;;  %4526 = vmatprep.subr.bf16.mxu0 %v4525_v12  ;;  %v689_v11 = vld [vmem:[%s5137_s29 + $0xd98] sm:$0xff]  ;;  %v5609_v12 = vrot.slane %v1153_v62, %v5190_v14  ;;  %v696_v62 = vld [vmem:[%s5137_s29 + $0xdd0] sm:$0xff] }
  0xca   : > { %4558 = vmatprep.subr.bf16.mxu1 %v4557_v18  ;;  %v640_v18 = vld [vmem:[%s5137_s29 + $0xc10] sm:$0xff]  ;;  %v4609_v20 = vpack.c.bf16 %v689_v11, %v688_v10  ;;  %v667_v10 = vld [vmem:[%s5137_s29 + $0xce8] sm:$0xff]  ;;  %v698_v11 = vld [vmem:[%s5137_s29 + $0xde0] sm:$0xff] }
  0xcb   : > { %v1169_v27 = vcombine.high %v5609_v12, %v5609_v12  ;;  %v4579_v28 = vpack.c.bf16 %v641_v19, %v640_v18  ;;  %v4597_v18 = vpack.c.bf16 %v667_v10, %v666_v8  ;;  %v650_v19 = vld [vmem:[%s5137_s29 + $0xc60] sm:$0xff] }
  0xcc   : > { %4528 = vmatpush3.bf16.msra.mxu0 %v4527_v23  ;;  %v659_v23 = vld [vmem:[%s5137_s29 + $0xca8] sm:$0xff]  ;;  %v706_v8 = vld [vmem:[%s5137_s29 + $0xe20] sm:$0xff] }
  0xcd   : > { %4560 = vmatpush3.bf16.msra.mxu1 %v4559_v24  ;;  %4530 = vmatprep.subr.bf16.mxu0 %v4529_v25  ;;  %v1168_v24 = vcombine.high %v5604_v9, %v5604_v9  ;;  %v690_v25 = vld [vmem:[%s5137_s29 + $0xda0] sm:$0xff]  ;;  %v4581_v30 = vpack.c.bf16 %v659_v23, %v658_v22  ;;  %v683_v22 = vld [vmem:[%s5137_s29 + $0xd68] sm:$0xff]  ;;  %v668_v23 = vld [vmem:[%s5137_s29 + $0xcf0] sm:$0xff] }
  0xce   : > { %4562 = vmatprep.subr.bf16.mxu1 %v4561_v29  ;;  %v4611_v29 = vpack.c.bf16 %v673_v21, %v672_v16  ;;  %v4613_v35 = vpack.c.bf16 %v691_v26, %v690_v25  ;;  %v651_v16 = vld [vmem:[%s5137_s29 + $0xc68] sm:$0xff]  ;;  %v700_v25 = vld [vmem:[%s5137_s29 + $0xdf0] sm:$0xff]  ;;  %v701_v26 = vld [vmem:[%s5137_s29 + $0xdf8] sm:$0xff] }
  0xcf   : > { %v738_v10 = vld [vmem:[%s5137_s29 + $0xf20] sm:$0xff] }
  0xd0   : > { %4532 = vmatpush3.bf16.msra.mxu0 %v4531_v37  ;;  %v660_v37 = vld [vmem:[%s5137_s29 + $0xcb0] sm:$0xff] }
  0xd1   : > { %4564 = vmatpush3.bf16.msra.mxu1 %v4563_v38  ;;  %4534 = vmatprep.subr.bf16.mxu0 %v4533_v39  ;;  %v661_v38 = vld [vmem:[%s5137_s29 + $0xcb8] sm:$0xff] }
  0xd2   : > { %4566 = vmatprep.subr.bf16.mxu1 %v4565_v43  ;;  %v693_v39 = vld [vmem:[%s5137_s29 + $0xdb8] sm:$0xff]  ;;  %v4585_v41 = vpack.c.bf16 %v661_v38, %v660_v37  ;;  %v644_v43 = vld [vmem:[%s5137_s29 + $0xc30] sm:$0xff]  ;;  %v718_v37 = vld [vmem:[%s5137_s29 + $0xe80] sm:$0xff] }
  0xd3   : > { %v719_v38 = vld [vmem:[%s5137_s29 + $0xe88] sm:$0xff] }
  0xd4   : > { %4536 = vmatpush3.bf16.msra.mxu0 %v4535_v50  ;;  %v663_v50 = vld [vmem:[%s5137_s29 + $0xcc8] sm:$0xff] }
  0xd5   : > { %4568 = vmatpush3.bf16.msra.mxu1 %v4567_v52  ;;  %4538 = vmatprep.subr.bf16.mxu0 %v4537_v54  ;;  %v695_v52 = vld [vmem:[%s5137_s29 + $0xdc8] sm:$0xff]  ;;  %v4587_v54 = vpack.c.bf16 %v645_v45, %v644_v43  ;;  %v4589_v55 = vpack.c.bf16 %v663_v50, %v662_v49  ;;  %v4637_v43 = vpack.c.bf16 %v719_v38, %v718_v37  ;;  %v702_v45 = vld [vmem:[%s5137_s29 + $0xe00] sm:$0xff]  ;;  %v720_v50 = vld [vmem:[%s5137_s29 + $0xe90] sm:$0xff] }
  0xd6   : > { %4570 = vmatprep.subr.bf16.mxu1 %v4569_v57  ;;  %v647_v57 = vld [vmem:[%s5137_s29 + $0xc48] sm:$0xff]  ;;  %v4621_v60 = vpack.c.bf16 %v695_v52, %v694_v51  ;;  %v721_v51 = vld [vmem:[%s5137_s29 + $0xe98] sm:$0xff] }
  0xd7   : > { %v735_v49 = vld [vmem:[%s5137_s29 + $0xf08] sm:$0xff] }
  0xd8   : > { %4540 = vmatpush3.bf16.msra.mxu0 %v4539_v63  ;;  %v697_v63 = vld [vmem:[%s5137_s29 + $0xdd8] sm:$0xff]  ;;  %v743_v38 = vld [vmem:[%s5137_s29 + $0xf48] sm:$0xff] }
  0xd9   : > { %4572 = vmatpush3.bf16.msra.mxu1 %v4571_v0  ;;  %4574 = vmatprep.subr.bf16.mxu0 %v4573_v1  ;;  %v4591_v0 = vpack.c.bf16 %v647_v57, %v646_v56  ;;  %v4623_v1 = vpack.c.bf16 %v679_v61, %v678_v59  ;;  %v4625_v6 = vpack.c.bf16 %v697_v63, %v696_v62  ;;  %v705_v61 = vld [vmem:[%s5137_s29 + $0xe18] sm:$0xff]  ;;  %v722_v63 = vld [vmem:[%s5137_s29 + $0xea0] sm:$0xff] }
  0xda   : > { %4606 = vmatprep.subr.bf16.mxu1 %v4605_v5  ;;  %v680_v5 = vld [vmem:[%s5137_s29 + $0xd50] sm:$0xff]  ;;  %v4639_v56 = vpack.c.bf16 %v703_v46, %v702_v45  ;;  %v4641_v59 = vpack.c.bf16 %v721_v51, %v720_v50  ;;  %v737_v62 = vld [vmem:[%s5137_s29 + $0xf18] sm:$0xff]  ;;  %v730_v51 = vld [vmem:[%s5137_s29 + $0xee0] sm:$0xff] }
  0xdb   : > { %2076 = vmatmul.mubr.f32.vlgmr.msra.gmra.mrb[10].mxu0 %v5527_v32  ;;  %v643_v32 = vld [vmem:[%s5137_s29 + $0xc28] sm:$0xff]  ;;  %v712_v46 = vld [vmem:[%s5137_s29 + $0xe50] sm:$0xff]  ;;  %v745_v50 = vld [vmem:[%s5137_s29 + $0xf58] sm:$0xff] }
  0xdc   : > { %4576 = vmatpush3.bf16.msra.mxu0 %v4575_v13  ;;  %2146 = vmatmul.mubr.f32.vlgmr.msra.gmra.mrb[10].mxu1 %v5532_v44  ;;  %v692_v44 = vld [vmem:[%s5137_s29 + $0xdb0] sm:$0xff]  ;;  %v4583_v40 = vpack.c.bf16 %v643_v32, %v642_v31  ;;  %v699_v13 = vld [vmem:[%s5137_s29 + $0xde8] sm:$0xff]  ;;  %v653_v32 = vld [vmem:[%s5137_s29 + $0xc78] sm:$0xff] }
  0xdd   : > { %4608 = vmatpush3.bf16.msra.mxu1 %v4607_v15  ;;  %4578 = vmatprep.subr.bf16.mxu0 %v4577_v17  ;;  %v4617_v47 = vpack.c.bf16 %v693_v39, %v692_v44  ;;  %v4595_v15 = vpack.c.bf16 %v649_v4, %v648_v3  ;;  %v4627_v17 = vpack.c.bf16 %v681_v7, %v680_v5  ;;  %v652_v31 = vld [vmem:[%s5137_s29 + $0xc70] sm:$0xff]  ;;  %v750_v44 = vld [vmem:[%s5137_s29 + $0xf80] sm:$0xff]  ;;  %v751_v39 = vld [vmem:[%s5137_s29 + $0xf88] sm:$0xff] }
  0xde   : > { %4610 = vmatprep.subr.bf16.mxu1 %v4609_v20  ;;  %2215 = vmatprep.mubr.f32.mxu0 %v1168_v24  ;;  %v682_v20 = vld [vmem:[%s5137_s29 + $0xd60] sm:$0xff]  ;;  %v4629_v21 = vpack.c.bf16 %v699_v13, %v698_v11  ;;  %v669_v24 = vld [vmem:[%s5137_s29 + $0xcf8] sm:$0xff]  ;;  %v4669_v48 = vpack.c.bf16 %v751_v39, %v750_v44  ;;  %v755_v3 = vld [vmem:[%s5137_s29 + $0xfa8] sm:$0xff] }
  0xdf   : > { %2285 = vmatprep.mubr.f32.mxu1 %v1169_v27  ;;  %v4599_v27 = vpack.c.bf16 %v651_v16, %v650_v19  ;;  %v739_v13 = vld [vmem:[%s5137_s29 + $0xf28] sm:$0xff]  ;;  %v728_v44 = vld [vmem:[%s5137_s29 + $0xed0] sm:$0xff]  ;;  %v729_v39 = vld [vmem:[%s5137_s29 + $0xed8] sm:$0xff] }
  0xe0   : > { %4580 = vmatpush3.bf16.msra.mxu0 %v4579_v28  ;;  %v248_v28 = vld [vmem:[%s5132_s25 + $0x38] sm:$0xff]  ;;  %v4679_v16 = vpack.c.bf16 %v739_v13, %v738_v10  ;;  %v4657_v45 = vpack.c.bf16 %v729_v39, %v728_v44  ;;  %v249_v10 = vld [vmem:[%s5132_s25 + $0x40] sm:$0xff] }
  0xe1   : > { %4612 = vmatpush3.bf16.msra.mxu1 %v4611_v29  ;;  %4582 = vmatprep.subr.bf16.mxu0 %v4581_v30  ;;  %v4631_v29 = vpack.c.bf16 %v683_v22, %v682_v20  ;;  %v4601_v30 = vpack.c.bf16 %v669_v24, %v668_v23  ;;  %v5681_v52 = vrot.slane %v248_v28, %v5190_v14  ;;  %v709_v22 = vld [vmem:[%s5137_s29 + $0xe38] sm:$0xff]  ;;  %v740_v23 = vld [vmem:[%s5137_s29 + $0xf30] sm:$0xff] }
  0xe2   : > { %4614 = vmatprep.subr.bf16.mxu1 %v4613_v35  ;;  %v4633_v35 = vpack.c.bf16 %v701_v26, %v700_v25  ;;  %v741_v25 = vld [vmem:[%s5137_s29 + $0xf38] sm:$0xff]  ;;  %v726_v26 = vld [vmem:[%s5137_s29 + $0xec0] sm:$0xff] }
  0xe3   : > { %v817_v44 = vld [vmem:[%s5137_s29 + $0x1198] sm:$0xff] }
  0xe4   : > { %4584 = vmatpush3.bf16.msra.mxu0 %v4583_v40  ;;  %v1170_v40 = vcombine.high %v248_v28, %v248_v28  ;;  %v758_v28 = vld [vmem:[%s5137_s29 + $0xfc0] sm:$0xff] }
  0xe5   : > { %4616 = vmatpush3.bf16.msra.mxu1 %v4615_v53  ;;  %4586 = vmatprep.subr.bf16.mxu0 %v4585_v41  ;;  %v4603_v53 = vpack.c.bf16 %v653_v32, %v652_v31  ;;  %v4635_v41 = vpack.c.bf16 %v685_v36, %v684_v34  ;;  %v4683_v31 = vpack.c.bf16 %v741_v25, %v740_v23  ;;  %v710_v34 = vld [vmem:[%s5137_s29 + $0xe40] sm:$0xff] }
  0xe6   : > { %4618 = vmatprep.subr.bf16.mxu1 %v4617_v47  ;;  %v734_v47 = vld [vmem:[%s5137_s29 + $0xf00] sm:$0xff]  ;;  %v1187_v25 = vcombine.high %v249_v10, %v249_v10 }
  0xe7   : > { %v4671_v57 = vpack.c.bf16 %v735_v49, %v734_v47  ;;  %v742_v36 = vld [vmem:[%s5137_s29 + $0xf40] sm:$0xff]  ;;  %v713_v47 = vld [vmem:[%s5137_s29 + $0xe58] sm:$0xff] }
  0xe8   : > { %4588 = vmatpush3.bf16.msra.mxu0 %v4587_v54  ;;  %v752_v54 = vld [vmem:[%s5137_s29 + $0xf90] sm:$0xff]  ;;  %v814_v23 = vld [vmem:[%s5137_s29 + $0x1180] sm:$0xff]  ;;  %v5765_v39 = vrot.slane %v1187_v25, %v5190_v14  ;;  %v793_v25 = vld [vmem:[%s5137_s29 + $0x10d8] sm:$0xff] }
  0xe9   : > { %4620 = vmatpush3.bf16.msra.mxu1 %v4619_v33  ;;  %4590 = vmatprep.subr.bf16.mxu0 %v4589_v55  ;;  %v753_v33 = vld [vmem:[%s5137_s29 + $0xf98] sm:$0xff]  ;;  %v5686_v55 = vrot.slane %v1170_v40, %v5190_v14  ;;  %v760_v40 = vld [vmem:[%s5137_s29 + $0xfd0] sm:$0xff] }
  0xea   : > { %4622 = vmatprep.subr.bf16.mxu1 %v4621_v60  ;;  %v704_v60 = vld [vmem:[%s5137_s29 + $0xe10] sm:$0xff]  ;;  %v4673_v42 = vpack.c.bf16 %v753_v33, %v752_v54  ;;  %v731_v54 = vld [vmem:[%s5137_s29 + $0xee8] sm:$0xff]  ;;  %v762_v33 = vld [vmem:[%s5137_s29 + $0xfe0] sm:$0xff] }
  0xeb   : > { %v1186_v4 = vcombine.high %v5686_v55, %v5686_v55  ;;  %v4643_v5 = vpack.c.bf16 %v705_v61, %v704_v60  ;;  %v4661_v60 = vpack.c.bf16 %v731_v54, %v730_v51  ;;  %v714_v61 = vld [vmem:[%s5137_s29 + $0xe60] sm:$0xff] }
  0xec   : > { %4592 = vmatpush3.bf16.msra.mxu0 %v4591_v0  ;;  %v723_v0 = vld [vmem:[%s5137_s29 + $0xea8] sm:$0xff]  ;;  %v818_v54 = vld [vmem:[%s5137_s29 + $0x11a0] sm:$0xff] }
  0xed   : > { %4624 = vmatpush3.bf16.msra.mxu1 %v4623_v1  ;;  %4594 = vmatprep.subr.bf16.mxu0 %v4593_v2  ;;  %v1185_v1 = vcombine.high %v5681_v52, %v5681_v52  ;;  %v754_v2 = vld [vmem:[%s5137_s29 + $0xfa0] sm:$0xff]  ;;  %v4645_v7 = vpack.c.bf16 %v723_v0, %v722_v63  ;;  %v747_v0 = vld [vmem:[%s5137_s29 + $0xf68] sm:$0xff] }
  0xee   : > { %4626 = vmatprep.subr.bf16.mxu1 %v4625_v6  ;;  %v4675_v6 = vpack.c.bf16 %v737_v62, %v736_v58  ;;  %v4677_v11 = vpack.c.bf16 %v755_v3, %v754_v2  ;;  %v715_v58 = vld [vmem:[%s5137_s29 + $0xe68] sm:$0xff]  ;;  %v733_v2 = vld [vmem:[%s5137_s29 + $0xef8] sm:$0xff] }
  0xf0   : > { %4596 = vmatpush3.bf16.msra.mxu0 %v4595_v15  ;;  %v724_v15 = vld [vmem:[%s5137_s29 + $0xeb0] sm:$0xff] }
  0xf1   : > { %4628 = vmatpush3.bf16.msra.mxu1 %v4627_v17  ;;  %4598 = vmatprep.subr.bf16.mxu0 %v4597_v18  ;;  %v725_v17 = vld [vmem:[%s5137_s29 + $0xeb8] sm:$0xff] }
  0xf2   : > { %4630 = vmatprep.subr.bf16.mxu1 %v4629_v21  ;;  %v757_v18 = vld [vmem:[%s5137_s29 + $0xfb8] sm:$0xff]  ;;  %v4649_v20 = vpack.c.bf16 %v725_v17, %v724_v15  ;;  %v708_v21 = vld [vmem:[%s5137_s29 + $0xe30] sm:$0xff] }
  0xf3   : > { %v716_v17 = vld [vmem:[%s5137_s29 + $0xe70] sm:$0xff] }
  0xf4   : > { %4600 = vmatpush3.bf16.msra.mxu0 %v4599_v27  ;;  %v727_v27 = vld [vmem:[%s5137_s29 + $0xec8] sm:$0xff] }
  0xf5   : > { %4632 = vmatpush3.bf16.msra.mxu1 %v4631_v29  ;;  %4602 = vmatprep.subr.bf16.mxu0 %v4601_v30  ;;  %v759_v29 = vld [vmem:[%s5137_s29 + $0xfc8] sm:$0xff]  ;;  %v4651_v30 = vpack.c.bf16 %v709_v22, %v708_v21  ;;  %v4653_v32 = vpack.c.bf16 %v727_v27, %v726_v26 }
  0xf6   : > { %4634 = vmatprep.subr.bf16.mxu1 %v4633_v35  ;;  %v711_v35 = vld [vmem:[%s5137_s29 + $0xe48] sm:$0xff]  ;;  %v4685_v37 = vpack.c.bf16 %v759_v29, %v758_v28  ;;  %v766_v29 = vld [vmem:[%s5137_s29 + $0x1000] sm:$0xff] }
  0xf7   : > { %v783_v21 = vld [vmem:[%s5137_s29 + $0x1088] sm:$0xff] }
  0xf8   : > { %4604 = vmatpush3.bf16.msra.mxu0 %v4603_v53  ;;  %v761_v53 = vld [vmem:[%s5137_s29 + $0xfd8] sm:$0xff] }
  0xf9   : > { %4636 = vmatpush3.bf16.msra.mxu1 %v4635_v41  ;;  %4638 = vmatprep.subr.bf16.mxu0 %v4637_v43  ;;  %v4655_v41 = vpack.c.bf16 %v711_v35, %v710_v34  ;;  %v4687_v43 = vpack.c.bf16 %v743_v38, %v742_v36  ;;  %v4689_v49 = vpack.c.bf16 %v761_v53, %v760_v40  ;;  %v799_v34 = vld [vmem:[%s5137_s29 + $0x1108] sm:$0xff]  ;;  %v784_v35 = vld [vmem:[%s5137_s29 + $0x1090] sm:$0xff]  ;;  %v785_v36 = vld [vmem:[%s5137_s29 + $0x1098] sm:$0xff] }
  0xfa   : > { %4670 = vmatprep.subr.bf16.mxu1 %v4669_v48  ;;  %v744_v48 = vld [vmem:[%s5137_s29 + $0xf50] sm:$0xff] }
  0xfb   : > { %2216 = vmatmul.mubr.f32.vlgmr.msra.gmra.mrb[12].mxu0 %v5604_v9  ;;  %v707_v9 = vld [vmem:[%s5137_s29 + $0xe28] sm:$0xff]  ;;  %v816_v38 = vld [vmem:[%s5137_s29 + $0x1190] sm:$0xff] }
  0xfc   : > { %4640 = vmatpush3.bf16.msra.mxu0 %v4639_v56  ;;  %2286 = vmatmul.mubr.f32.vlgmr.msra.gmra.mrb[12].mxu1 %v5609_v12  ;;  %v756_v12 = vld [vmem:[%s5137_s29 + $0xfb0] sm:$0xff]  ;;  %v4647_v19 = vpack.c.bf16 %v707_v9, %v706_v8  ;;  %v763_v56 = vld [vmem:[%s5137_s29 + $0xfe8] sm:$0xff]  ;;  %v4663_v9 = vpack.c.bf16 %v715_v58, %v714_v61  ;;  %v770_v61 = vld [vmem:[%s5137_s29 + $0x1020] sm:$0xff] }
  0xfd   : > { %4672 = vmatpush3.bf16.msra.mxu1 %v4671_v57  ;;  %4642 = vmatprep.subr.bf16.mxu0 %v4641_v59  ;;  %v4681_v24 = vpack.c.bf16 %v757_v18, %v756_v12  ;;  %v4659_v57 = vpack.c.bf16 %v713_v47, %v712_v46  ;;  %v4691_v59 = vpack.c.bf16 %v745_v50, %v744_v48  ;;  %v717_v12 = vld [vmem:[%s5137_s29 + $0xe78] sm:$0xff]  ;;  %v748_v18 = vld [vmem:[%s5137_s29 + $0xf70] sm:$0xff]  ;;  %v787_v50 = vld [vmem:[%s5137_s29 + $0x10a8] sm:$0xff] }
  0xfe   : > { %4674 = vmatprep.subr.bf16.mxu1 %v4673_v42  ;;  %2355 = vmatprep.mubr.f32.mxu0 %v1185_v1  ;;  %v746_v42 = vld [vmem:[%s5137_s29 + $0xf60] sm:$0xff]  ;;  %v4693_v63 = vpack.c.bf16 %v763_v56, %v762_v33  ;;  %v732_v1 = vld [vmem:[%s5137_s29 + $0xef0] sm:$0xff]  ;;  %v4667_v26 = vpack.c.bf16 %v717_v12, %v716_v17  ;;  %v4737_v47 = vpack.c.bf16 %v817_v44, %v816_v38  ;;  %v801_v48 = vld [vmem:[%s5137_s29 + $0x1118] sm:$0xff] }
  0xff   : > { %2425 = vmatprep.mubr.f32.mxu1 %v1186_v4  ;;  %v4695_v13 = vpack.c.bf16 %v747_v0, %v746_v42  ;;  %v4665_v15 = vpack.c.bf16 %v733_v2, %v732_v1  ;;  %v800_v46 = vld [vmem:[%s5137_s29 + $0x1110] sm:$0xff]  ;;  %v819_v33 = vld [vmem:[%s5137_s29 + $0x11a8] sm:$0xff]  ;;  %v1203_v56 = vcombine.high %v5765_v39, %v5765_v39  ;;  %v802_v58 = vld [vmem:[%s5137_s29 + $0x1120] sm:$0xff] }
 0x100   : > { %4644 = vmatpush3.bf16.msra.mxu0 %v4643_v5  ;;  %v764_v5 = vld [vmem:[%s5137_s29 + $0xff0] sm:$0xff]  ;;  %v4741_v42 = vpack.c.bf16 %v819_v33, %v818_v54  ;;  %v789_v0 = vld [vmem:[%s5137_s29 + $0x10b8] sm:$0xff]  ;;  %v794_v38 = vld [vmem:[%s5137_s29 + $0x10e0] sm:$0xff] }
 0x101   : > { %4676 = vmatpush3.bf16.msra.mxu1 %v4675_v6  ;;  %4646 = vmatprep.subr.bf16.mxu0 %v4645_v7  ;;  %v765_v6 = vld [vmem:[%s5137_s29 + $0xff8] sm:$0xff]  ;;  %v795_v44 = vld [vmem:[%s5137_s29 + $0x10e8] sm:$0xff]  ;;  %v796_v54 = vld [vmem:[%s5137_s29 + $0x10f0] sm:$0xff] }
 0x102   : > { %4678 = vmatprep.subr.bf16.mxu1 %v4677_v11  ;;  %v821_v1 = vld [vmem:[%s5137_s29 + $0x11b8] sm:$0xff] }
 0x103   : > { %v797_v33 = vld [vmem:[%s5137_s29 + $0x10f8] sm:$0xff] }
 0x104   : > { %4648 = vmatpush3.bf16.msra.mxu0 %v4647_v19  ;;  %v4697_v19 = vpack.c.bf16 %v765_v6, %v764_v5  ;;  %v772_v5 = vld [vmem:[%s5137_s29 + $0x1030] sm:$0xff]  ;;  %v773_v6 = vld [vmem:[%s5137_s29 + $0x1038] sm:$0xff] }
 0x105   : > { %4680 = vmatpush3.bf16.msra.mxu1 %v4679_v16  ;;  %4650 = vmatprep.subr.bf16.mxu0 %v4649_v20  ;;  %v749_v16 = vld [vmem:[%s5137_s29 + $0xf78] sm:$0xff]  ;;  %v782_v20 = vld [vmem:[%s5137_s29 + $0x1080] sm:$0xff]  ;;  %v4715_v17 = vpack.c.bf16 %v773_v6, %v772_v5 }
 0x106   : > { %4682 = vmatprep.subr.bf16.mxu1 %v4681_v24  ;;  %v815_v24 = vld [vmem:[%s5137_s29 + $0x1188] sm:$0xff]  ;;  %v4699_v27 = vpack.c.bf16 %v749_v16, %v748_v18  ;;  %v4701_v28 = vpack.c.bf16 %v783_v21, %v782_v20  ;;  %v806_v20 = vld [vmem:[%s5137_s29 + $0x1140] sm:$0xff]  ;;  %v813_v5 = vld [vmem:[%s5137_s29 + $0x1178] sm:$0xff] }
 0x107   : > { %v775_v16 = vld [vmem:[%s5137_s29 + $0x1048] sm:$0xff]  ;;  %v846_v6 = vld [vmem:[%s5137_s29 + $0x1280] sm:$0xff] }
 0x108   : > { %4652 = vmatpush3.bf16.msra.mxu0 %v4651_v30  ;;  %v767_v30 = vld [vmem:[%s5137_s29 + $0x1008] sm:$0xff] }
 0x109   : > { %4684 = vmatpush3.bf16.msra.mxu1 %v4683_v31  ;;  %4654 = vmatprep.subr.bf16.mxu0 %v4653_v32  ;;  %v798_v31 = vld [vmem:[%s5137_s29 + $0x1100] sm:$0xff]  ;;  %v4733_v32 = vpack.c.bf16 %v815_v24, %v814_v23  ;;  %v4703_v40 = vpack.c.bf16 %v767_v30, %v766_v29  ;;  %v807_v23 = vld [vmem:[%s5137_s29 + $0x1148] sm:$0xff]  ;;  %v792_v24 = vld [vmem:[%s5137_s29 + $0x10d0] sm:$0xff] }
 0x10a   : > { %4686 = vmatprep.subr.bf16.mxu1 %v4685_v37  ;;  %v5760_v37 = vrot.slane %v249_v10, %v5190_v14  ;;  %v4735_v53 = vpack.c.bf16 %v799_v34, %v798_v31  ;;  %v790_v10 = vld [vmem:[%s5137_s29 + $0x10c0] sm:$0xff]  ;;  %v4751_v29 = vpack.c.bf16 %v807_v23, %v806_v20  ;;  %v4721_v30 = vpack.c.bf16 %v793_v25, %v792_v24  ;;  %v776_v31 = vld [vmem:[%s5137_s29 + $0x1050] sm:$0xff]  ;;  %v881_v25 = vld [vmem:[%s5137_s29 + $0x1398] sm:$0xff] }
 0x10b   : > { %v808_v34 = vld [vmem:[%s5137_s29 + $0x1150] sm:$0xff] }
 0x10c   : > { %4656 = vmatpush3.bf16.msra.mxu0 %v4655_v41  ;;  %v4705_v41 = vpack.c.bf16 %v785_v36, %v784_v35  ;;  %v1202_v51 = vcombine.high %v5760_v37, %v5760_v37  ;;  %v809_v36 = vld [vmem:[%s5137_s29 + $0x1158] sm:$0xff]  ;;  %v848_v20 = vld [vmem:[%s5137_s29 + $0x1290] sm:$0xff] }
 0x10d   : > { %4688 = vmatpush3.bf16.msra.mxu1 %v4687_v43  ;;  %4658 = vmatprep.subr.bf16.mxu0 %v4657_v45  ;;  %v768_v43 = vld [vmem:[%s5137_s29 + $0x1010] sm:$0xff]  ;;  %v769_v45 = vld [vmem:[%s5137_s29 + $0x1018] sm:$0xff] }
 0x10e   : > { %v3277_v62 = vpop.f32.mrb[0].mxu0  ;;  %4690 = vmatprep.subr.bf16.mxu1 %v4689_v49  ;;  %v786_v49 = vld [vmem:[%s5137_s29 + $0x10a0] sm:$0xff]  ;;  %v880_v24 = vld [vmem:[%s5137_s29 + $0x1390] sm:$0xff] }
 0x10f   : > { %v3312_v3 = vpop.f32.mrb[0].mxu1  ;;  %v3278_v4 = vpop.f32.mrb[1].mxu0 }
 0x110   : > { %v3279_v7 = vadd.f32 %v3278_v4, %v3277_v62  ;;  %v3313_v8 = vpop.f32.mrb[1].mxu1  ;;  %4660 = vmatpush3.bf16.msra.mxu0 %v4659_v57  ;;  %v4707_v57 = vpack.c.bf16 %v769_v45, %v768_v43  ;;  %v803_v62 = vld [vmem:[%s5137_s29 + $0x1128] sm:$0xff]  ;;  %v4755_v43 = vpack.c.bf16 %v809_v36, %v808_v34  ;;  %v4725_v45 = vpack.c.bf16 %v795_v44, %v794_v38  ;;  %v850_v36 = vld [vmem:[%s5137_s29 + $0x12a0] sm:$0xff] }
 0x111   : > { %v3314_v11 = vadd.f32 %v3313_v8, %v3312_v3  ;;  %4692 = vmatpush3.bf16.msra.mxu1 %v4691_v59  ;;  %4662 = vmatprep.subr.bf16.mxu0 %v4661_v60  ;;  %v4739_v59 = vpack.c.bf16 %v801_v48, %v800_v46  ;;  %v4709_v60 = vpack.c.bf16 %v787_v50, %v786_v49  ;;  %v778_v46 = vld [vmem:[%s5137_s29 + $0x1060] sm:$0xff]  ;;  %v851_v38 = vld [vmem:[%s5137_s29 + $0x12a8] sm:$0xff] }
 0x112   : > { %4694 = vmatprep.subr.bf16.mxu1 %v4693_v63  ;;  %v788_v63 = vld [vmem:[%s5137_s29 + $0x10b0] sm:$0xff]  ;;  %v4743_v3 = vpack.c.bf16 %v803_v62, %v802_v58  ;;  %v810_v48 = vld [vmem:[%s5137_s29 + $0x1160] sm:$0xff]  ;;  %v4801_v34 = vpack.c.bf16 %v881_v25, %v880_v24  ;;  %v859_v25 = vld [vmem:[%s5137_s29 + $0x12e8] sm:$0xff] }
 0x113   : > { %v5749_v22 = vadd.f32 %v3314_v11, %v3279_v7  ;;  %v4713_v4 = vpack.c.bf16 %v789_v0, %v788_v63  ;;  %v804_v7 = vld [vmem:[%s5137_s29 + $0x1130] sm:$0xff]  ;;  %v791_v11 = vld [vmem:[%s5137_s29 + $0x10c8] sm:$0xff]  ;;  %v4729_v0 = vpack.c.bf16 %v797_v33, %v796_v54  ;;  %v853_v54 = vld [vmem:[%s5137_s29 + $0x12b8] sm:$0xff] }
 0x114   : > { %4664 = vmatpush3.bf16.msra.mxu0 %v4663_v9  ;;  %v805_v9 = vld [vmem:[%s5137_s29 + $0x1138] sm:$0xff]  ;;  %v4717_v18 = vpack.c.bf16 %v791_v11, %v790_v10  ;;  %v858_v24 = vld [vmem:[%s5137_s29 + $0x12e0] sm:$0xff] }
 0x115   : > { %4696 = vmatpush3.bf16.msra.mxu1 %v4695_v13  ;;  %4666 = vmatprep.subr.bf16.mxu0 %v4665_v15  ;;  %v822_v13 = vld [vmem:[%s5137_s29 + $0x11c0] sm:$0xff]  ;;  %v823_v15 = vld [vmem:[%s5137_s29 + $0x11c8] sm:$0xff]  ;;  %v4747_v12 = vpack.c.bf16 %v805_v9, %v804_v7  ;;  %v885_v33 = vld [vmem:[%s5137_s29 + $0x13b8] sm:$0xff] }
 0x116   : > { %4698 = vmatprep.subr.bf16.mxu1 %v4697_v19  ;;  %v774_v19 = vld [vmem:[%s5137_s29 + $0x1040] sm:$0xff]  ;;  %v4749_v21 = vpack.c.bf16 %v823_v15, %v822_v13  ;;  %v847_v7 = vld [vmem:[%s5137_s29 + $0x1288] sm:$0xff] }
 0x117   : > { %v879_v9 = vld [vmem:[%s5137_s29 + $0x1388] sm:$0xff]  ;;  %v4765_v15 = vpack.c.bf16 %v847_v7, %v846_v6  ;;  %v870_v6 = vld [vmem:[%s5137_s29 + $0x1340] sm:$0xff] }
 0x118   : > { %4668 = vmatpush3.bf16.msra.mxu0 %v4667_v26  ;;  %v824_v26 = vld [vmem:[%s5137_s29 + $0x11d0] sm:$0xff] }
 0x119   : > { %4700 = vmatpush3.bf16.msra.mxu1 %v4699_v27  ;;  %4702 = vmatprep.subr.bf16.mxu0 %v4701_v28  ;;  %v825_v27 = vld [vmem:[%s5137_s29 + $0x11d8] sm:$0xff]  ;;  %v4719_v28 = vpack.c.bf16 %v775_v16, %v774_v19  ;;  %v863_v16 = vld [vmem:[%s5137_s29 + $0x1308] sm:$0xff] }
 0x11a   : > { %4734 = vmatprep.subr.bf16.mxu1 %v4733_v32  ;;  %v777_v32 = vld [vmem:[%s5137_s29 + $0x1058] sm:$0xff]  ;;  %v4753_v35 = vpack.c.bf16 %v825_v27, %v824_v26 }
 0x11b   : > { %2356 = vmatmul.mubr.f32.vlgmr.msra.gmra.mrb[14].mxu0 %v5681_v52  ;;  %v771_v52 = vld [vmem:[%s5137_s29 + $0x1028] sm:$0xff] }
 0x11c   : > { %4704 = vmatpush3.bf16.msra.mxu0 %v4703_v40  ;;  %2426 = vmatmul.mubr.f32.vlgmr.msra.gmra.mrb[14].mxu1 %v5686_v55  ;;  %v820_v55 = vld [vmem:[%s5137_s29 + $0x11b0] sm:$0xff]  ;;  %v4711_v2 = vpack.c.bf16 %v771_v52, %v770_v61  ;;  %v826_v40 = vld [vmem:[%s5137_s29 + $0x11e0] sm:$0xff] }
 0x11d   : > { %4736 = vmatpush3.bf16.msra.mxu1 %v4735_v53  ;;  %4706 = vmatprep.subr.bf16.mxu0 %v4705_v41  ;;  %v4745_v8 = vpack.c.bf16 %v821_v1, %v820_v55  ;;  %v827_v53 = vld [vmem:[%s5137_s29 + $0x11e8] sm:$0xff]  ;;  %v4723_v41 = vpack.c.bf16 %v777_v32, %v776_v31  ;;  %v780_v55 = vld [vmem:[%s5137_s29 + $0x1070] sm:$0xff]  ;;  %v781_v1 = vld [vmem:[%s5137_s29 + $0x1078] sm:$0xff] }
 0x11e   : > { %4738 = vmatprep.subr.bf16.mxu1 %v4737_v47  ;;  %2495 = vmatprep.mubr.f32.mxu0 %v1202_v51  ;;  %v779_v47 = vld [vmem:[%s5137_s29 + $0x1068] sm:$0xff]  ;;  %v4757_v50 = vpack.c.bf16 %v827_v53, %v826_v40  ;;  %v833_v31 = vld [vmem:[%s5137_s29 + $0x1218] sm:$0xff]  ;;  %v864_v32 = vld [vmem:[%s5137_s29 + $0x1310] sm:$0xff] }
 0x11f   : > { %2565 = vmatprep.mubr.f32.mxu1 %v1203_v56  ;;  %v811_v51 = vld [vmem:[%s5137_s29 + $0x1168] sm:$0xff]  ;;  %v4727_v58 = vpack.c.bf16 %v779_v47, %v778_v46  ;;  %v882_v40 = vld [vmem:[%s5137_s29 + $0x13a0] sm:$0xff]  ;;  %v4773_v46 = vpack.c.bf16 %v851_v38, %v850_v36 }
 0x120   : > { %4708 = vmatpush3.bf16.msra.mxu0 %v4707_v57  ;;  %v4759_v63 = vpack.c.bf16 %v811_v51, %v810_v48  ;;  %v883_v53 = vld [vmem:[%s5137_s29 + $0x13a8] sm:$0xff]  ;;  %v834_v47 = vld [vmem:[%s5137_s29 + $0x1220] sm:$0xff]  ;;  %v852_v51 = vld [vmem:[%s5137_s29 + $0x12b0] sm:$0xff] }
 0x121   : > { %4740 = vmatpush3.bf16.msra.mxu1 %v4739_v59  ;;  %4710 = vmatprep.subr.bf16.mxu0 %v4709_v60  ;;  %v828_v59 = vld [vmem:[%s5137_s29 + $0x11f0] sm:$0xff]  ;;  %v829_v60 = vld [vmem:[%s5137_s29 + $0x11f8] sm:$0xff]  ;;  %v866_v48 = vld [vmem:[%s5137_s29 + $0x1320] sm:$0xff] }
 0x122   : > { %4742 = vmatprep.subr.bf16.mxu1 %v4741_v42  ;;  %v250_v42 = vld [vmem:[%s5132_s25 + $0x48] sm:$0xff] }
 0x123   : > { %v1204_v10 = vcombine.high %v250_v42, %v250_v42  ;;  %v5840_v23 = vrot.slane %v250_v42, %v5190_v14  ;;  %v869_v42 = vld [vmem:[%s5137_s29 + $0x1338] sm:$0xff] }
 0x124   : > { %4712 = vmatpush3.bf16.msra.mxu0 %v4711_v2  ;;  %v812_v2 = vld [vmem:[%s5137_s29 + $0x1170] sm:$0xff] }
 0x125   : > { %4744 = vmatpush3.bf16.msra.mxu1 %v4743_v3  ;;  %4714 = vmatprep.subr.bf16.mxu0 %v4713_v4  ;;  %v4761_v4 = vpack.c.bf16 %v829_v60, %v828_v59  ;;  %v4763_v13 = vpack.c.bf16 %v813_v5, %v812_v2  ;;  %v5845_v26 = vrot.slane %v1204_v10, %v5190_v14  ;;  %v836_v60 = vld [vmem:[%s5137_s29 + $0x1230] sm:$0xff]  ;;  %v839_v5 = vld [vmem:[%s5137_s29 + $0x1248] sm:$0xff]  ;;  %v857_v10 = vld [vmem:[%s5137_s29 + $0x12d8] sm:$0xff] }
 0x126   : > { %4746 = vmatprep.subr.bf16.mxu1 %v4745_v8  ;;  %v878_v8 = vld [vmem:[%s5137_s29 + $0x1380] sm:$0xff]  ;;  %v1219_v44 = vcombine.high %v5840_v23, %v5840_v23  ;;  %v4777_v59 = vpack.c.bf16 %v853_v54, %v852_v51 }
 0x127   : > { %v4797_v19 = vpack.c.bf16 %v879_v9, %v878_v8  ;;  %v871_v8 = vld [vmem:[%s5137_s29 + $0x1348] sm:$0xff]  ;;  %v856_v9 = vld [vmem:[%s5137_s29 + $0x12d0] sm:$0xff] }
 0x128   : > { %4716 = vmatpush3.bf16.msra.mxu0 %v4715_v17  ;;  %v830_v17 = vld [vmem:[%s5137_s29 + $0x1200] sm:$0xff] }
 0x129   : > { %4748 = vmatpush3.bf16.msra.mxu1 %v4747_v12  ;;  %4718 = vmatprep.subr.bf16.mxu0 %v4717_v18  ;;  %v831_v12 = vld [vmem:[%s5137_s29 + $0x1208] sm:$0xff]  ;;  %v862_v18 = vld [vmem:[%s5137_s29 + $0x1300] sm:$0xff] }
 0x12a   : > { %4750 = vmatprep.subr.bf16.mxu1 %v4749_v21  ;;  %v849_v21 = vld [vmem:[%s5137_s29 + $0x1298] sm:$0xff]  ;;  %v4767_v27 = vpack.c.bf16 %v831_v12, %v830_v17  ;;  %v4815_v17 = vpack.c.bf16 %v871_v8, %v870_v6  ;;  %v4785_v12 = vpack.c.bf16 %v857_v10, %v856_v9  ;;  %v912_v6 = vld [vmem:[%s5137_s29 + $0x1490] sm:$0xff] }
 0x12b   : > { %v944_v9 = vld [vmem:[%s5137_s29 + $0x1590] sm:$0xff]  ;;  %v945_v10 = vld [vmem:[%s5137_s29 + $0x1598] sm:$0xff] }
 0x12c   : > { %4720 = vmatpush3.bf16.msra.mxu0 %v4719_v28  ;;  %v4799_v28 = vpack.c.bf16 %v863_v16, %v862_v18  ;;  %v840_v18 = vld [vmem:[%s5137_s29 + $0x1250] sm:$0xff] }
 0x12d   : > { %4752 = vmatpush3.bf16.msra.mxu1 %v4751_v29  ;;  %4722 = vmatprep.subr.bf16.mxu0 %v4721_v30  ;;  %v4769_v29 = vpack.c.bf16 %v849_v21, %v848_v20  ;;  %v832_v30 = vld [vmem:[%s5137_s29 + $0x1210] sm:$0xff]  ;;  %v873_v21 = vld [vmem:[%s5137_s29 + $0x1358] sm:$0xff] }
 0x12e   : > { %v3347_v49 = vpop.f32.mrb[2].mxu0  ;;  %4754 = vmatprep.subr.bf16.mxu1 %v4753_v35  ;;  %v865_v35 = vld [vmem:[%s5137_s29 + $0x1318] sm:$0xff]  ;;  %v872_v16 = vld [vmem:[%s5137_s29 + $0x1350] sm:$0xff] }
 0x12f   : > { %v3348_v56 = vpop.f32.mrb[3].mxu0  ;;  %v3382_v57 = vpop.f32.mrb[2].mxu1 }
 0x130   : > { %v3349_v61 = vadd.f32 %v3348_v56, %v3347_v49  ;;  %4724 = vmatpush3.bf16.msra.mxu0 %v4723_v41  ;;  %v3383_v52 = vpop.f32.mrb[3].mxu1  ;;  %v1220_v41 = vcombine.high %v5845_v26, %v5845_v26  ;;  %v4805_v49 = vpack.c.bf16 %v883_v53, %v882_v40  ;;  %v860_v40 = vld [vmem:[%s5137_s29 + $0x12f0] sm:$0xff]  ;;  %v861_v53 = vld [vmem:[%s5137_s29 + $0x12f8] sm:$0xff] }
 0x131   : > { %v3384_v62 = vadd.f32 %v3383_v52, %v3382_v57  ;;  %4756 = vmatpush3.bf16.msra.mxu1 %v4755_v43  ;;  %4726 = vmatprep.subr.bf16.mxu0 %v4725_v45  ;;  %v4771_v43 = vpack.c.bf16 %v833_v31, %v832_v30  ;;  %v4803_v45 = vpack.c.bf16 %v865_v35, %v864_v32  ;;  %v868_v52 = vld [vmem:[%s5137_s29 + $0x1330] sm:$0xff]  ;;  %v842_v32 = vld [vmem:[%s5137_s29 + $0x1260] sm:$0xff] }
 0x132   : > { %v1518_v3 = vadd.f32 %v3349_v61, %v5749_v22  ;;  %4758 = vmatprep.subr.bf16.mxu1 %v4757_v50  ;;  %v4731_v22 = vpack.c.bf16 %v781_v1, %v780_v55  ;;  %v867_v50 = vld [vmem:[%s5137_s29 + $0x1328] sm:$0xff]  ;;  %v837_v61 = vld [vmem:[%s5137_s29 + $0x1238] sm:$0xff]  ;;  %v4811_v2 = vpack.c.bf16 %v869_v42, %v868_v52  ;;  %v4819_v30 = vpack.c.bf16 %v873_v21, %v872_v16  ;;  %v874_v35 = vld [vmem:[%s5137_s29 + $0x1360] sm:$0xff] }
 0x133   : > { %v4807_v57 = vpack.c.bf16 %v867_v50, %v866_v48  ;;  %v887_v55 = vld [vmem:[%s5137_s29 + $0x13c8] sm:$0xff]  ;;  %v4779_v1 = vpack.c.bf16 %v837_v61, %v836_v60  ;;  %v4789_v31 = vpack.c.bf16 %v859_v25, %v858_v24  ;;  %v4793_v54 = vpack.c.bf16 %v861_v53, %v860_v40  ;;  %v877_v60 = vld [vmem:[%s5137_s29 + $0x1378] sm:$0xff]  ;;  %v910_v61 = vld [vmem:[%s5137_s29 + $0x1480] sm:$0xff] }
 0x134   : > { %v5831_v11 = vadd.f32 %v3384_v62, %v1518_v3  ;;  %4728 = vmatpush3.bf16.msra.mxu0 %v4727_v58  ;;  %v854_v62 = vld [vmem:[%s5137_s29 + $0x12c0] sm:$0xff]  ;;  %v911_v52 = vld [vmem:[%s5137_s29 + $0x1488] sm:$0xff]  ;;  %v4865_v16 = vpack.c.bf16 %v945_v10, %v944_v9  ;;  %v917_v40 = vld [vmem:[%s5137_s29 + $0x14b8] sm:$0xff] }
 0x135   : > { %4760 = vmatpush3.bf16.msra.mxu1 %v4759_v63  ;;  %4730 = vmatprep.subr.bf16.mxu0 %v4729_v0  ;;  %v855_v63 = vld [vmem:[%s5137_s29 + $0x12c8] sm:$0xff]  ;;  %v886_v0 = vld [vmem:[%s5137_s29 + $0x13c0] sm:$0xff]  ;;  %v949_v53 = vld [vmem:[%s5137_s29 + $0x15b8] sm:$0xff] }
 0x136   : > { %4762 = vmatprep.subr.bf16.mxu1 %v4761_v4  ;;  %v4781_v3 = vpack.c.bf16 %v855_v63, %v854_v62  ;;  %v838_v4 = vld [vmem:[%s5137_s29 + $0x1240] sm:$0xff]  ;;  %v4813_v7 = vpack.c.bf16 %v887_v55, %v886_v0  ;;  %v943_v42 = vld [vmem:[%s5137_s29 + $0x1588] sm:$0xff]  ;;  %v4829_v55 = vpack.c.bf16 %v911_v52, %v910_v61 }
 0x137   : > { %v914_v21 = vld [vmem:[%s5137_s29 + $0x14a0] sm:$0xff]  ;;  %v915_v24 = vld [vmem:[%s5137_s29 + $0x14a8] sm:$0xff] }
 0x138   : > { %4732 = vmatpush3.bf16.msra.mxu0 %v4731_v22  ;;  %v888_v22 = vld [vmem:[%s5137_s29 + $0x13d0] sm:$0xff]  ;;  %v934_v61 = vld [vmem:[%s5137_s29 + $0x1540] sm:$0xff]  ;;  %v923_v10 = vld [vmem:[%s5137_s29 + $0x14e8] sm:$0xff] }
 0x139   : > { %4764 = vmatpush3.bf16.msra.mxu1 %v4763_v13  ;;  %4766 = vmatprep.subr.bf16.mxu0 %v4765_v15  ;;  %v889_v13 = vld [vmem:[%s5137_s29 + $0x13d8] sm:$0xff]  ;;  %v4783_v15 = vpack.c.bf16 %v839_v5, %v838_v4  ;;  %v927_v5 = vld [vmem:[%s5137_s29 + $0x1508] sm:$0xff]  ;;  %v922_v9 = vld [vmem:[%s5137_s29 + $0x14e0] sm:$0xff] }
 0x13a   : > { %4798 = vmatprep.subr.bf16.mxu1 %v4797_v19  ;;  %v841_v19 = vld [vmem:[%s5137_s29 + $0x1258] sm:$0xff]  ;;  %v4817_v20 = vpack.c.bf16 %v889_v13, %v888_v22 }
 0x13b   : > { %2496 = vmatmul.mubr.f32.vlgmr.msra.gmra.mrb[16].mxu0 %v5760_v37  ;;  %v835_v37 = vld [vmem:[%s5137_s29 + $0x1228] sm:$0xff] }
 0x13c   : > { %4768 = vmatpush3.bf16.msra.mxu0 %v4767_v27  ;;  %2566 = vmatmul.mubr.f32.vlgmr.msra.gmra.mrb[16].mxu1 %v5765_v39  ;;  %v884_v39 = vld [vmem:[%s5137_s29 + $0x13b0] sm:$0xff]  ;;  %v4775_v56 = vpack.c.bf16 %v835_v37, %v834_v47  ;;  %v890_v27 = vld [vmem:[%s5137_s29 + $0x13e0] sm:$0xff] }
 0x13d   : > { %4800 = vmatpush3.bf16.msra.mxu1 %v4799_v28  ;;  %4770 = vmatprep.subr.bf16.mxu0 %v4769_v29  ;;  %v4809_v58 = vpack.c.bf16 %v885_v33, %v884_v39  ;;  %v891_v28 = vld [vmem:[%s5137_s29 + $0x13e8] sm:$0xff]  ;;  %v4787_v29 = vpack.c.bf16 %v841_v19, %v840_v18  ;;  %v844_v39 = vld [vmem:[%s5137_s29 + $0x1270] sm:$0xff]  ;;  %v845_v33 = vld [vmem:[%s5137_s29 + $0x1278] sm:$0xff] }
 0x13e   : > { %4802 = vmatprep.subr.bf16.mxu1 %v4801_v34  ;;  %2635 = vmatprep.mubr.f32.mxu0 %v1219_v44  ;;  %v843_v34 = vld [vmem:[%s5137_s29 + $0x1268] sm:$0xff]  ;;  %v4821_v38 = vpack.c.bf16 %v891_v28, %v890_v27  ;;  %v897_v18 = vld [vmem:[%s5137_s29 + $0x1418] sm:$0xff]  ;;  %v928_v19 = vld [vmem:[%s5137_s29 + $0x1510] sm:$0xff] }
 0x13f   : > { %2705 = vmatprep.mubr.f32.mxu1 %v1220_v41  ;;  %v875_v44 = vld [vmem:[%s5137_s29 + $0x1368] sm:$0xff]  ;;  %v4791_v48 = vpack.c.bf16 %v843_v34, %v842_v32  ;;  %v946_v27 = vld [vmem:[%s5137_s29 + $0x15a0] sm:$0xff]  ;;  %v4837_v32 = vpack.c.bf16 %v915_v24, %v914_v21 }
 0x140   : > { %4772 = vmatpush3.bf16.msra.mxu0 %v4771_v43  ;;  %v4823_v51 = vpack.c.bf16 %v875_v44, %v874_v35  ;;  %v947_v28 = vld [vmem:[%s5137_s29 + $0x15a8] sm:$0xff]  ;;  %v898_v34 = vld [vmem:[%s5137_s29 + $0x1420] sm:$0xff]  ;;  %v916_v44 = vld [vmem:[%s5137_s29 + $0x14b0] sm:$0xff] }
 0x141   : > { %4804 = vmatpush3.bf16.msra.mxu1 %v4803_v45  ;;  %4774 = vmatprep.subr.bf16.mxu0 %v4773_v46  ;;  %v892_v45 = vld [vmem:[%s5137_s29 + $0x13f0] sm:$0xff]  ;;  %v893_v46 = vld [vmem:[%s5137_s29 + $0x13f8] sm:$0xff]  ;;  %v930_v35 = vld [vmem:[%s5137_s29 + $0x1520] sm:$0xff] }
 0x142   : > { %4806 = vmatprep.subr.bf16.mxu1 %v4805_v49  ;;  %v251_v49 = vld [vmem:[%s5132_s25 + $0x50] sm:$0xff] }
 0x143   : > { %v1221_v62 = vcombine.high %v251_v49, %v251_v49  ;;  %v5920_v8 = vrot.slane %v251_v49, %v5190_v14  ;;  %v933_v49 = vld [vmem:[%s5137_s29 + $0x1538] sm:$0xff] }
 0x144   : > { %4776 = vmatpush3.bf16.msra.mxu0 %v4775_v56  ;;  %v876_v56 = vld [vmem:[%s5137_s29 + $0x1370] sm:$0xff] }
 0x145   : > { %4808 = vmatpush3.bf16.msra.mxu1 %v4807_v57  ;;  %4778 = vmatprep.subr.bf16.mxu0 %v4777_v59  ;;  %v4825_v59 = vpack.c.bf16 %v893_v46, %v892_v45  ;;  %v4827_v0 = vpack.c.bf16 %v877_v60, %v876_v56  ;;  %v5925_v22 = vrot.slane %v1221_v62, %v5190_v14  ;;  %v900_v46 = vld [vmem:[%s5137_s29 + $0x1430] sm:$0xff]  ;;  %v903_v60 = vld [vmem:[%s5137_s29 + $0x1448] sm:$0xff]  ;;  %v921_v62 = vld [vmem:[%s5137_s29 + $0x14d8] sm:$0xff] }
 0x146   : > { %4810 = vmatprep.subr.bf16.mxu1 %v4809_v58  ;;  %v942_v58 = vld [vmem:[%s5137_s29 + $0x1580] sm:$0xff]  ;;  %v1236_v25 = vcombine.high %v5920_v8, %v5920_v8  ;;  %v4841_v45 = vpack.c.bf16 %v917_v40, %v916_v44 }
 0x147   : > { %v4861_v4 = vpack.c.bf16 %v943_v42, %v942_v58  ;;  %v935_v58 = vld [vmem:[%s5137_s29 + $0x1548] sm:$0xff]  ;;  %v920_v42 = vld [vmem:[%s5137_s29 + $0x14d0] sm:$0xff] }
 0x148   : > { %4780 = vmatpush3.bf16.msra.mxu0 %v4779_v1  ;;  %v894_v1 = vld [vmem:[%s5137_s29 + $0x1400] sm:$0xff] }
 0x149   : > { %4812 = vmatpush3.bf16.msra.mxu1 %v4811_v2  ;;  %4782 = vmatprep.subr.bf16.mxu0 %v4781_v3  ;;  %v895_v2 = vld [vmem:[%s5137_s29 + $0x1408] sm:$0xff]  ;;  %v926_v3 = vld [vmem:[%s5137_s29 + $0x1500] sm:$0xff] }
 0x14a   : > { %4814 = vmatprep.subr.bf16.mxu1 %v4813_v7  ;;  %v913_v7 = vld [vmem:[%s5137_s29 + $0x1498] sm:$0xff]  ;;  %v4831_v13 = vpack.c.bf16 %v895_v2, %v894_v1  ;;  %v4879_v1 = vpack.c.bf16 %v935_v58, %v934_v61  ;;  %v4849_v2 = vpack.c.bf16 %v921_v62, %v920_v42  ;;  %v976_v61 = vld [vmem:[%s5137_s29 + $0x1690] sm:$0xff] }
 0x14b   : > { %v1008_v42 = vld [vmem:[%s5137_s29 + $0x1790] sm:$0xff]  ;;  %v1009_v62 = vld [vmem:[%s5137_s29 + $0x1798] sm:$0xff] }
 0x14c   : > { %4784 = vmatpush3.bf16.msra.mxu0 %v4783_v15  ;;  %v4863_v15 = vpack.c.bf16 %v927_v5, %v926_v3  ;;  %v904_v3 = vld [vmem:[%s5137_s29 + $0x1450] sm:$0xff] }
 0x14d   : > { %4816 = vmatpush3.bf16.msra.mxu1 %v4815_v17  ;;  %4786 = vmatprep.subr.bf16.mxu0 %v4785_v12  ;;  %v4833_v17 = vpack.c.bf16 %v913_v7, %v912_v6  ;;  %v896_v12 = vld [vmem:[%s5137_s29 + $0x1410] sm:$0xff]  ;;  %v937_v7 = vld [vmem:[%s5137_s29 + $0x1558] sm:$0xff] }
 0x14e   : > { %v3417_v36 = vpop.f32.mrb[4].mxu0  ;;  %4818 = vmatprep.subr.bf16.mxu1 %v4817_v20  ;;  %v929_v20 = vld [vmem:[%s5137_s29 + $0x1518] sm:$0xff]  ;;  %v936_v5 = vld [vmem:[%s5137_s29 + $0x1550] sm:$0xff] }
 0x14f   : > { %v3418_v41 = vpop.f32.mrb[5].mxu0  ;;  %v3452_v43 = vpop.f32.mrb[4].mxu1 }
 0x150   : > { %v3419_v47 = vadd.f32 %v3418_v41, %v3417_v36  ;;  %4788 = vmatpush3.bf16.msra.mxu0 %v4787_v29  ;;  %v3453_v37 = vpop.f32.mrb[5].mxu1  ;;  %v1237_v29 = vcombine.high %v5925_v22, %v5925_v22  ;;  %v4869_v36 = vpack.c.bf16 %v947_v28, %v946_v27  ;;  %v924_v27 = vld [vmem:[%s5137_s29 + $0x14f0] sm:$0xff]  ;;  %v925_v28 = vld [vmem:[%s5137_s29 + $0x14f8] sm:$0xff] }
 0x151   : > { %v3454_v50 = vadd.f32 %v3453_v37, %v3452_v43  ;;  %4820 = vmatpush3.bf16.msra.mxu1 %v4819_v30  ;;  %4790 = vmatprep.subr.bf16.mxu0 %v4789_v31  ;;  %v4835_v30 = vpack.c.bf16 %v897_v18, %v896_v12  ;;  %v4867_v31 = vpack.c.bf16 %v929_v20, %v928_v19  ;;  %v932_v37 = vld [vmem:[%s5137_s29 + $0x1530] sm:$0xff]  ;;  %v906_v19 = vld [vmem:[%s5137_s29 + $0x1460] sm:$0xff] }
 0x152   : > { %v1658_v57 = vadd.f32 %v3419_v47, %v5831_v11  ;;  %4822 = vmatprep.subr.bf16.mxu1 %v4821_v38  ;;  %v4795_v11 = vpack.c.bf16 %v845_v33, %v844_v39  ;;  %v931_v38 = vld [vmem:[%s5137_s29 + $0x1528] sm:$0xff]  ;;  %v901_v47 = vld [vmem:[%s5137_s29 + $0x1438] sm:$0xff]  ;;  %v4875_v56 = vpack.c.bf16 %v933_v49, %v932_v37  ;;  %v4883_v12 = vpack.c.bf16 %v937_v7, %v936_v5  ;;  %v938_v20 = vld [vmem:[%s5137_s29 + $0x1560] sm:$0xff] }
 0x153   : > { %v4871_v43 = vpack.c.bf16 %v931_v38, %v930_v35  ;;  %v951_v39 = vld [vmem:[%s5137_s29 + $0x15c8] sm:$0xff]  ;;  %v4843_v33 = vpack.c.bf16 %v901_v47, %v900_v46  ;;  %v4853_v18 = vpack.c.bf16 %v923_v10, %v922_v9  ;;  %v4857_v40 = vpack.c.bf16 %v925_v28, %v924_v27  ;;  %v941_v46 = vld [vmem:[%s5137_s29 + $0x1578] sm:$0xff]  ;;  %v974_v47 = vld [vmem:[%s5137_s29 + $0x1680] sm:$0xff] }
 0x154   : > { %v5911_v63 = vadd.f32 %v3454_v50, %v1658_v57  ;;  %4792 = vmatpush3.bf16.msra.mxu0 %v4791_v48  ;;  %v918_v50 = vld [vmem:[%s5137_s29 + $0x14c0] sm:$0xff]  ;;  %v975_v37 = vld [vmem:[%s5137_s29 + $0x1688] sm:$0xff]  ;;  %v4929_v5 = vpack.c.bf16 %v1009_v62, %v1008_v42  ;;  %v1013_v27 = vld [vmem:[%s5137_s29 + $0x17b8] sm:$0xff] }
 0x155   : > { %4824 = vmatpush3.bf16.msra.mxu1 %v4823_v51  ;;  %4794 = vmatprep.subr.bf16.mxu0 %v4793_v54  ;;  %v919_v51 = vld [vmem:[%s5137_s29 + $0x14c8] sm:$0xff]  ;;  %v950_v54 = vld [vmem:[%s5137_s29 + $0x15c0] sm:$0xff] }
 0x156   : > { %4826 = vmatprep.subr.bf16.mxu1 %v4825_v59  ;;  %v4845_v57 = vpack.c.bf16 %v919_v51, %v918_v50  ;;  %v902_v59 = vld [vmem:[%s5137_s29 + $0x1440] sm:$0xff]  ;;  %v4877_v52 = vpack.c.bf16 %v951_v39, %v950_v54  ;;  %v1007_v49 = vld [vmem:[%s5137_s29 + $0x1788] sm:$0xff]  ;;  %v4893_v39 = vpack.c.bf16 %v975_v37, %v974_v47 }
 0x157   : > { %v978_v7 = vld [vmem:[%s5137_s29 + $0x16a0] sm:$0xff]  ;;  %v999_v37 = vld [vmem:[%s5137_s29 + $0x1748] sm:$0xff] }
 0x158   : > { %4796 = vmatpush3.bf16.msra.mxu0 %v4795_v11  ;;  %v952_v11 = vld [vmem:[%s5137_s29 + $0x15d0] sm:$0xff]  ;;  %v1010_v10 = vld [vmem:[%s5137_s29 + $0x17a0] sm:$0xff]  ;;  %v987_v42 = vld [vmem:[%s5137_s29 + $0x16e8] sm:$0xff] }
 0x159   : > { %4828 = vmatpush3.bf16.msra.mxu1 %v4827_v0  ;;  %4830 = vmatprep.subr.bf16.mxu0 %v4829_v55  ;;  %v953_v0 = vld [vmem:[%s5137_s29 + $0x15d8] sm:$0xff]  ;;  %v4847_v55 = vpack.c.bf16 %v903_v60, %v902_v59  ;;  %v991_v60 = vld [vmem:[%s5137_s29 + $0x1708] sm:$0xff]  ;;  %v1018_v62 = vld [vmem:[%s5137_s29 + $0x17e0] sm:$0xff] }
 0x15a   : > { %4862 = vmatprep.subr.bf16.mxu1 %v4861_v4  ;;  %v905_v4 = vld [vmem:[%s5137_s29 + $0x1458] sm:$0xff]  ;;  %v4881_v6 = vpack.c.bf16 %v953_v0, %v952_v11 }
 0x15b   : > { %2636 = vmatmul.mubr.f32.vlgmr.msra.gmra.mrb[18].mxu0 %v5840_v23  ;;  %v899_v23 = vld [vmem:[%s5137_s29 + $0x1428] sm:$0xff] }
 0x15c   : > { %4832 = vmatpush3.bf16.msra.mxu0 %v4831_v13  ;;  %2706 = vmatmul.mubr.f32.vlgmr.msra.gmra.mrb[18].mxu1 %v5845_v26  ;;  %v948_v26 = vld [vmem:[%s5137_s29 + $0x15b0] sm:$0xff]  ;;  %v4839_v41 = vpack.c.bf16 %v899_v23, %v898_v34  ;;  %v954_v13 = vld [vmem:[%s5137_s29 + $0x15e0] sm:$0xff] }
 0x15d   : > { %4864 = vmatpush3.bf16.msra.mxu1 %v4863_v15  ;;  %4834 = vmatprep.subr.bf16.mxu0 %v4833_v17  ;;  %v4873_v48 = vpack.c.bf16 %v949_v53, %v948_v26  ;;  %v955_v15 = vld [vmem:[%s5137_s29 + $0x15e8] sm:$0xff]  ;;  %v4851_v17 = vpack.c.bf16 %v905_v4, %v904_v3  ;;  %v908_v26 = vld [vmem:[%s5137_s29 + $0x1470] sm:$0xff]  ;;  %v909_v53 = vld [vmem:[%s5137_s29 + $0x1478] sm:$0xff] }
 0x15e   : > { %4866 = vmatprep.subr.bf16.mxu1 %v4865_v16  ;;  %2775 = vmatprep.mubr.f32.mxu0 %v1236_v25  ;;  %v907_v16 = vld [vmem:[%s5137_s29 + $0x1468] sm:$0xff]  ;;  %v4885_v24 = vpack.c.bf16 %v955_v15, %v954_v13  ;;  %v961_v3 = vld [vmem:[%s5137_s29 + $0x1618] sm:$0xff]  ;;  %v992_v4 = vld [vmem:[%s5137_s29 + $0x1710] sm:$0xff] }
 0x15f   : > { %2845 = vmatprep.mubr.f32.mxu1 %v1237_v29  ;;  %v939_v25 = vld [vmem:[%s5137_s29 + $0x1568] sm:$0xff]  ;;  %v4855_v35 = vpack.c.bf16 %v907_v16, %v906_v19  ;;  %v962_v19 = vld [vmem:[%s5137_s29 + $0x1620] sm:$0xff] }
 0x160   : > { %4836 = vmatpush3.bf16.msra.mxu0 %v4835_v30  ;;  %v4887_v44 = vpack.c.bf16 %v939_v25, %v938_v20  ;;  %v1011_v13 = vld [vmem:[%s5137_s29 + $0x17a8] sm:$0xff]  ;;  %v994_v16 = vld [vmem:[%s5137_s29 + $0x1720] sm:$0xff]  ;;  %v981_v25 = vld [vmem:[%s5137_s29 + $0x16b8] sm:$0xff] }
 0x161   : > { %4868 = vmatpush3.bf16.msra.mxu1 %v4867_v31  ;;  %4838 = vmatprep.subr.bf16.mxu0 %v4837_v32  ;;  %v956_v31 = vld [vmem:[%s5137_s29 + $0x15f0] sm:$0xff]  ;;  %v957_v32 = vld [vmem:[%s5137_s29 + $0x15f8] sm:$0xff]  ;;  %v4933_v20 = vpack.c.bf16 %v1011_v13, %v1010_v10 }
 0x162   : > { %4870 = vmatprep.subr.bf16.mxu1 %v4869_v36  ;;  %v252_v36 = vld [vmem:[%s5132_s25 + $0x58] sm:$0xff] }
 0x163   : > { %v1238_v50 = vcombine.high %v252_v36, %v252_v36  ;;  %v6000_v58 = vrot.slane %v252_v36, %v5190_v14  ;;  %v982_v36 = vld [vmem:[%s5137_s29 + $0x16c0] sm:$0xff]  ;;  %v989_v10 = vld [vmem:[%s5137_s29 + $0x16f8] sm:$0xff] }
 0x164   : > { %4840 = vmatpush3.bf16.msra.mxu0 %v4839_v41  ;;  %v940_v41 = vld [vmem:[%s5137_s29 + $0x1570] sm:$0xff] }
 0x165   : > { %4872 = vmatpush3.bf16.msra.mxu1 %v4871_v43  ;;  %4842 = vmatprep.subr.bf16.mxu0 %v4841_v45  ;;  %v4889_v45 = vpack.c.bf16 %v957_v32, %v956_v31  ;;  %v4891_v54 = vpack.c.bf16 %v941_v46, %v940_v41  ;;  %v6005_v11 = vrot.slane %v1238_v50, %v5190_v14  ;;  %v979_v14 = vld [vmem:[%s5137_s29 + $0x16a8] sm:$0xff]  ;;  %v964_v31 = vld [vmem:[%s5137_s29 + $0x1630] sm:$0xff]  ;;  %v965_v32 = vld [vmem:[%s5137_s29 + $0x1638] sm:$0xff] }
 0x166   : > { %4874 = vmatprep.subr.bf16.mxu1 %v4873_v48  ;;  %v1006_v48 = vld [vmem:[%s5137_s29 + $0x1780] sm:$0xff]  ;;  %v1253_v9 = vcombine.high %v6000_v58, %v6000_v58  ;;  %v1016_v50 = vld [vmem:[%s5137_s29 + $0x17d0] sm:$0xff] }
 0x167   : > { %v4925_v59 = vpack.c.bf16 %v1007_v49, %v1006_v48  ;;  %v1254_v15 = vcombine.high %v6005_v11, %v6005_v11  ;;  %v998_v46 = vld [vmem:[%s5137_s29 + $0x1740] sm:$0xff]  ;;  %v984_v48 = vld [vmem:[%s5137_s29 + $0x16d0] sm:$0xff]  ;;  %v985_v49 = vld [vmem:[%s5137_s29 + $0x16d8] sm:$0xff] }
 0x168   : > { %4844 = vmatpush3.bf16.msra.mxu0 %v4843_v33  ;;  %v958_v33 = vld [vmem:[%s5137_s29 + $0x1600] sm:$0xff] }
 0x169   : > { %4876 = vmatpush3.bf16.msra.mxu1 %v4875_v56  ;;  %4846 = vmatprep.subr.bf16.mxu0 %v4845_v57  ;;  %v959_v56 = vld [vmem:[%s5137_s29 + $0x1608] sm:$0xff]  ;;  %v990_v57 = vld [vmem:[%s5137_s29 + $0x1700] sm:$0xff] }
 0x16a   : > { %4878 = vmatprep.subr.bf16.mxu1 %v4877_v52  ;;  %v977_v52 = vld [vmem:[%s5137_s29 + $0x1698] sm:$0xff]  ;;  %v4895_v0 = vpack.c.bf16 %v959_v56, %v958_v33  ;;  %v4913_v33 = vpack.c.bf16 %v985_v49, %v984_v48  ;;  %v968_v56 = vld [vmem:[%s5137_s29 + $0x1650] sm:$0xff] }
 0x16b   : > { %v1033_v48 = vld [vmem:[%s5137_s29 + $0x1858] sm:$0xff] }
 0x16c   : > { %4848 = vmatpush3.bf16.msra.mxu0 %v4847_v55  ;;  %v4927_v55 = vpack.c.bf16 %v991_v60, %v990_v57  ;;  %v969_v57 = vld [vmem:[%s5137_s29 + $0x1658] sm:$0xff] }
 0x16d   : > { %4880 = vmatpush3.bf16.msra.mxu1 %v4879_v1  ;;  %4850 = vmatprep.subr.bf16.mxu0 %v4849_v2  ;;  %v4897_v1 = vpack.c.bf16 %v977_v52, %v976_v61  ;;  %v960_v2 = vld [vmem:[%s5137_s29 + $0x1610] sm:$0xff]  ;;  %v1001_v61 = vld [vmem:[%s5137_s29 + $0x1758] sm:$0xff]  ;;  %v986_v52 = vld [vmem:[%s5137_s29 + $0x16e0] sm:$0xff] }
 0x16e   : > { %v3487_v21 = vpop.f32.mrb[6].mxu0  ;;  %4882 = vmatprep.subr.bf16.mxu1 %v4881_v6  ;;  %v993_v6 = vld [vmem:[%s5137_s29 + $0x1718] sm:$0xff] }
 0x16f   : > { %v3488_v29 = vpop.f32.mrb[7].mxu0  ;;  %v3522_v30 = vpop.f32.mrb[6].mxu1 }
 0x170   : > { %v3489_v34 = vadd.f32 %v3488_v29, %v3487_v21  ;;  %4852 = vmatpush3.bf16.msra.mxu0 %v4851_v17  ;;  %v3523_v23 = vpop.f32.mrb[7].mxu1  ;;  %v4899_v17 = vpack.c.bf16 %v961_v3, %v960_v2  ;;  %v995_v21 = vld [vmem:[%s5137_s29 + $0x1728] sm:$0xff]  ;;  %v4917_v2 = vpack.c.bf16 %v987_v42, %v986_v52  ;;  %v970_v3 = vld [vmem:[%s5137_s29 + $0x1660] sm:$0xff]  ;;  %v1037_v52 = vld [vmem:[%s5137_s29 + $0x1878] sm:$0xff] }
 0x171   : > { %v3524_v38 = vadd.f32 %v3523_v23, %v3522_v30  ;;  %4884 = vmatpush3.bf16.msra.mxu1 %v4883_v12  ;;  %4854 = vmatprep.subr.bf16.mxu0 %v4853_v18  ;;  %v4931_v12 = vpack.c.bf16 %v993_v6, %v992_v4  ;;  %v4901_v18 = vpack.c.bf16 %v979_v14, %v978_v7  ;;  %v971_v4 = vld [vmem:[%s5137_s29 + $0x1668] sm:$0xff] }
 0x172   : > { %v1798_v43 = vadd.f32 %v3489_v34, %v5911_v63  ;;  %4886 = vmatprep.subr.bf16.mxu1 %v4885_v24  ;;  %v4859_v63 = vpack.c.bf16 %v909_v53, %v908_v26  ;;  %v980_v24 = vld [vmem:[%s5137_s29 + $0x16b0] sm:$0xff]  ;;  %v4935_v29 = vpack.c.bf16 %v995_v21, %v994_v16  ;;  %v4907_v26 = vpack.c.bf16 %v965_v32, %v964_v31  ;;  %v1003_v14 = vld [vmem:[%s5137_s29 + $0x1768] sm:$0xff] }
 0x173   : > { %v4905_v30 = vpack.c.bf16 %v981_v25, %v980_v24  ;;  %v996_v34 = vld [vmem:[%s5137_s29 + $0x1730] sm:$0xff]  ;;  %v973_v25 = vld [vmem:[%s5137_s29 + $0x1678] sm:$0xff] }
 0x174   : > { %v5991_v51 = vadd.f32 %v3524_v38, %v1798_v43  ;;  %4856 = vmatpush3.bf16.msra.mxu0 %v4855_v35  ;;  %v997_v35 = vld [vmem:[%s5137_s29 + $0x1738] sm:$0xff]  ;;  %v983_v38 = vld [vmem:[%s5137_s29 + $0x16c8] sm:$0xff]  ;;  %v966_v43 = vld [vmem:[%s5137_s29 + $0x1640] sm:$0xff] }
 0x175   : > { %4888 = vmatpush3.bf16.msra.mxu1 %v4887_v44  ;;  %4858 = vmatprep.subr.bf16.mxu0 %v4857_v40  ;;  %v1014_v44 = vld [vmem:[%s5137_s29 + $0x17c0] sm:$0xff]  ;;  %v1015_v40 = vld [vmem:[%s5137_s29 + $0x17c8] sm:$0xff]  ;;  %v4939_v53 = vpack.c.bf16 %v997_v35, %v996_v34  ;;  %v4909_v41 = vpack.c.bf16 %v983_v38, %v982_v36  ;;  %v972_v24 = vld [vmem:[%s5137_s29 + $0x1670] sm:$0xff] }
 0x176   : > { %4890 = vmatprep.subr.bf16.mxu1 %v4889_v45  ;;  %v967_v45 = vld [vmem:[%s5137_s29 + $0x1648] sm:$0xff]  ;;  %v4941_v47 = vpack.c.bf16 %v1015_v40, %v1014_v44  ;;  %v4923_v31 = vpack.c.bf16 %v973_v25, %v972_v24  ;;  %v1022_v34 = vld [vmem:[%s5137_s29 + $0x1800] sm:$0xff]  ;;  %v1024_v36 = vld [vmem:[%s5137_s29 + $0x1810] sm:$0xff] }
 0x177   : > { %v1025_v38 = vld [vmem:[%s5137_s29 + $0x1818] sm:$0xff]  ;;  %v1026_v40 = vld [vmem:[%s5137_s29 + $0x1820] sm:$0xff] }
 0x178   : > { %4860 = vmatpush3.bf16.msra.mxu0 %v4859_v63  ;;  %v1017_v63 = vld [vmem:[%s5137_s29 + $0x17d8] sm:$0xff]  ;;  %v4961_v44 = vpack.c.bf16 %v1025_v38, %v1024_v36 }
 0x179   : > { %4892 = vmatpush3.bf16.msra.mxu1 %v4891_v54  ;;  %4894 = vmatprep.subr.bf16.mxu0 %v4893_v39  ;;  %v4911_v54 = vpack.c.bf16 %v967_v45, %v966_v43  ;;  %v4943_v39 = vpack.c.bf16 %v999_v37, %v998_v46  ;;  %v4945_v60 = vpack.c.bf16 %v1017_v63, %v1016_v50  ;;  %v1028_v43 = vld [vmem:[%s5137_s29 + $0x1830] sm:$0xff]  ;;  %v1030_v45 = vld [vmem:[%s5137_s29 + $0x1840] sm:$0xff]  ;;  %v1031_v46 = vld [vmem:[%s5137_s29 + $0x1848] sm:$0xff] }
 0x17a   : > { %4926 = vmatprep.subr.bf16.mxu1 %v4925_v59  ;;  %v1000_v59 = vld [vmem:[%s5137_s29 + $0x1750] sm:$0xff]  ;;  %v1034_v50 = vld [vmem:[%s5137_s29 + $0x1860] sm:$0xff]  ;;  %v1035_v63 = vld [vmem:[%s5137_s29 + $0x1868] sm:$0xff] }
 0x17b   : > { %2776 = vmatmul.mubr.f32.vlgmr.msra.gmra.mrb[20].mxu0 %v5920_v8  ;;  %v963_v8 = vld [vmem:[%s5137_s29 + $0x1628] sm:$0xff]  ;;  %v1032_v37 = vld [vmem:[%s5137_s29 + $0x1850] sm:$0xff] }
 0x17c   : > { %4896 = vmatpush3.bf16.msra.mxu0 %v4895_v0  ;;  %2846 = vmatmul.mubr.f32.vlgmr.msra.gmra.mrb[20].mxu1 %v5925_v22  ;;  %v1012_v22 = vld [vmem:[%s5137_s29 + $0x17b0] sm:$0xff]  ;;  %v4903_v28 = vpack.c.bf16 %v963_v8, %v962_v19  ;;  %v1019_v0 = vld [vmem:[%s5137_s29 + $0x17e8] sm:$0xff]  ;;  %v4919_v8 = vpack.c.bf16 %v971_v4, %v970_v3  ;;  %v4973_v49 = vpack.c.bf16 %v1033_v48, %v1032_v37 }
 0x17d   : > { %4928 = vmatpush3.bf16.msra.mxu1 %v4927_v55  ;;  %4898 = vmatprep.subr.bf16.mxu0 %v4897_v1  ;;  %v4937_v23 = vpack.c.bf16 %v1013_v27, %v1012_v22  ;;  %v4915_v55 = vpack.c.bf16 %v969_v57, %v968_v56  ;;  %v4947_v1 = vpack.c.bf16 %v1001_v61, %v1000_v59  ;;  %v1036_v61 = vld [vmem:[%s5137_s29 + $0x1870] sm:$0xff] }
 0x17e   : > { %4930 = vmatprep.subr.bf16.mxu1 %v4929_v5  ;;  %2915 = vmatprep.mubr.f32.mxu0 %v1253_v9  ;;  %v1002_v5 = vld [vmem:[%s5137_s29 + $0x1760] sm:$0xff]  ;;  %v4949_v7 = vpack.c.bf16 %v1019_v0, %v1018_v62  ;;  %v988_v9 = vld [vmem:[%s5137_s29 + $0x16f0] sm:$0xff]  ;;  %v4976_v59 = vpack.c.bf16 %v1035_v63, %v1034_v50  ;;  %v4979_v0 = vpack.c.bf16 %v1037_v52, %v1036_v61  ;;  %v3080_v61 = vld [vmem:[%s6169_s3 + $0x18] sm:$0xff] (!%p3238_p6)  ;;  %v5085_v52 = vmov (!%p3238_p6), 0.0  }
 0x17f   : > { %2985 = vmatprep.mubr.f32.mxu1 %v1254_v15  ;;  %v4921_v21 = vpack.c.bf16 %v989_v10, %v988_v9 }
 0x180   : > { %4900 = vmatpush3.bf16.msra.mxu0 %v4899_v17  ;;  %v1020_v17 = vld [vmem:[%s5137_s29 + $0x17f0] sm:$0xff] }
 0x181   : > { %4932 = vmatpush3.bf16.msra.mxu1 %v4931_v12  ;;  %4902 = vmatprep.subr.bf16.mxu0 %v4901_v18  ;;  %v1021_v12 = vld [vmem:[%s5137_s29 + $0x17f8] sm:$0xff] }
 0x182   : > { %4934 = vmatprep.subr.bf16.mxu1 %v4933_v20  ;;  %v4951_v20 = vpack.c.bf16 %v1003_v14, %v1002_v5  ;;  %v4953_v27 = vpack.c.bf16 %v1021_v12, %v1020_v17 }
 0x184   : > { %4904 = vmatpush3.bf16.msra.mxu0 %v4903_v28  ;;  %v1004_v28 = vld [vmem:[%s5137_s29 + $0x1770] sm:$0xff] }
 0x185   : > { %4936 = vmatpush3.bf16.msra.mxu1 %v4935_v29  ;;  %4906 = vmatprep.subr.bf16.mxu0 %v4905_v30  ;;  %v1005_v29 = vld [vmem:[%s5137_s29 + $0x1778] sm:$0xff] }
 0x186   : > { %4938 = vmatprep.subr.bf16.mxu1 %v4937_v23  ;;  %v4955_v32 = vpack.c.bf16 %v1005_v29, %v1004_v28  ;;  %v1023_v23 = vld [vmem:[%s5137_s29 + $0x1808] sm:$0xff] }
 0x187   : > { %v4958_v35 = vpack.c.bf16 %v1023_v23, %v1022_v34 }
 0x188   : > { %4908 = vmatpush3.bf16.msra.mxu0 %v4907_v26  ;;  %v1027_v26 = vld [vmem:[%s5137_s29 + $0x1828] sm:$0xff] }
 0x189   : > { %4940 = vmatpush3.bf16.msra.mxu1 %v4939_v53  ;;  %4910 = vmatprep.subr.bf16.mxu0 %v4909_v41  ;;  %v5082_v53 = vmov 0.0   ;;  %v4964_v41 = vpack.c.bf16 %v1027_v26, %v1026_v40 }
 0x18a   : > { %4942 = vmatprep.subr.bf16.mxu1 %v4941_v47  ;;  %v4970_v47 = vpack.c.bf16 %v1031_v46, %v1030_v45 }
 0x18c   : > { %4912 = vmatpush3.bf16.msra.mxu0 %v4911_v54 }
 0x18d   : > { %4944 = vmatpush3.bf16.msra.mxu1 %v4943_v39  ;;  %4914 = vmatprep.subr.bf16.mxu0 %v4913_v33 }
 0x18e   : > { %v3557_v6 = vpop.f32.mrb[8].mxu0  ;;  %4946 = vmatprep.subr.bf16.mxu1 %v4945_v60 }
 0x18f   : > { %v3558_v13 = vpop.f32.mrb[9].mxu0  ;;  %v3592_v15 = vpop.f32.mrb[8].mxu1 }
 0x190   : > { %v3559_v18 = vadd.f32 %v3558_v13, %v3557_v6  ;;  %4916 = vmatpush3.bf16.msra.mxu0 %v4915_v55  ;;  %v3593_v19 = vpop.f32.mrb[9].mxu1  ;;  %v3237_v55 = vld.sshfl [vmem:[%s5132_s25 + $0x60] sm:$0x3 pattern:$0x76325410] }
 0x191   : > { %v3594_v16 = vadd.f32 %v3593_v19, %v3592_v15  ;;  %4948 = vmatpush3.bf16.msra.mxu1 %v4947_v1  ;;  %4918 = vmatprep.subr.bf16.mxu0 %v4917_v2 }
 0x192   : > { %v1938_v22 = vadd.f32 %v3559_v18, %v5991_v51  ;;  %4950 = vmatprep.subr.bf16.mxu1 %v4949_v7  ;;  %v5080_v51 = vmov 0.0|0.0  }
 0x194   : > { %v2008_v30 = vadd.f32 %v3594_v16, %v1938_v22  ;;  %4920 = vmatpush3.bf16.msra.mxu0 %v4919_v8 }
 0x195   : > { %4952 = vmatpush3.bf16.msra.mxu1 %v4951_v20  ;;  %4922 = vmatprep.subr.bf16.mxu0 %v4921_v21 }
 0x196   : > { %4954 = vmatprep.subr.bf16.mxu1 %v4953_v27 }
 0x198   : > { %4924 = vmatpush3.bf16.msra.mxu0 %v4923_v31 }
 0x199   : > { %4956 = vmatpush3.bf16.msra.mxu1 %v4955_v32  ;;  %4957 = vmatprep.subr.bf16.mxu0 %v5080_v51 }
 0x19b   : > { %2916 = vmatmul.mubr.f32.vlgmr.msra.gmra.mrb[22].mxu0 %v6000_v58  ;;  %v1029_v58 = vld [vmem:[%s5137_s29 + $0x1838] sm:$0xff] }
 0x19c   : > { %4959 = vmatpush3.bf16.msra.mxu0 %v4958_v35  ;;  %2986 = vmatmul.mubr.f32.vlgmr.msra.gmra.mrb[22].mxu1 %v6005_v11  ;;  %v4967_v11 = vpack.c.bf16 %v1029_v58, %v1028_v43 }
 0x19d   : > { %4960 = vmatprep.subr.bf16.mxu0 %v5080_v51  ;;  %4151 = vmatprep.mubr.msk.f32.mxu0 %vm5081_vm0, %v5082_v53 }
 0x1a0   : > { %4962 = vmatpush3.bf16.msra.mxu0 %v4961_v44 }
 0x1a1   : > { %4963 = vmatprep.subr.bf16.mxu0 %v5080_v51 }
 0x1a4   : > { %4965 = vmatpush3.bf16.msra.mxu0 %v4964_v41 }
 0x1a5   : > { %4966 = vmatprep.subr.bf16.mxu0 %v5080_v51 }
 0x1a8   : > { %4968 = vmatpush3.bf16.msra.mxu0 %v4967_v11 }
 0x1a9   : > { %4969 = vmatprep.subr.bf16.mxu0 %v5080_v51 }
 0x1ac   : > { %4971 = vmatpush3.bf16.msra.mxu0 %v4970_v47 }
 0x1ad   : > { %4972 = vmatprep.subr.bf16.mxu0 %v5080_v51 }
 0x1ae   : > { %v3627_v54 = vpop.f32.mrb[10].mxu0 }
 0x1af   : > { %v3628_v39 = vpop.f32.mrb[11].mxu0  ;;  %v3662_v33 = vpop.f32.mrb[10].mxu1 }
 0x1b0   : > { %v3629_v56 = vadd.f32 %v3628_v39, %v3627_v54  ;;  %4974 = vmatpush3.bf16.msra.mxu0 %v4973_v49  ;;  %v3663_v57 = vpop.f32.mrb[11].mxu1  ;;  %v240_v49 = vld [vmem:[#allocation2] sm:$0x3] }
 0x1b1   : > { %v3664_v60 = vadd.f32 %v3663_v57, %v3662_v33  ;;  %4975 = vmatprep.subr.bf16.mxu0 %v5080_v51  ;;  %v3077_v33 = vld [vmem:[%s6169_s3] sm:$0xff] (!%p3238_p6)  ;;  %v3079_v57 = vld [vmem:[%s6169_s3 + $0x10] sm:$0xff] (!%p3238_p6) }
 0x1b2   : > { %v2078_v42 = vadd.f32 %v3629_v56, %v2008_v30  ;;  %v3078_v56 = vld [vmem:[%s6169_s3 + $0x8] sm:$0xff] (!%p3238_p6) }
 0x1b4   : > { %v2148_v62 = vadd.f32 %v3664_v60, %v2078_v42  ;;  %4977 = vmatpush3.bf16.msra.mxu0 %v4976_v59  ;;  %v5083_v59 = vmov (!%p3238_p6), 0.0|0.0   ;;  %v4982_v60 = vpack.c.bf16 (!%p3238_p6), %v3078_v56, %v3077_v33  ;;  %v4985_v42 = vpack.c.bf16 (!%p3238_p6), %v3080_v61, %v3079_v57 }
 0x1b5   : > { %4978 = vmatprep.subr.bf16.mxu0 %v5080_v51 }
 0x1b8   : > { %4980 = vmatpush3.bf16.msra.mxu0 %v4979_v0  ;;  %v3082_v0 = vld [vmem:[%s6169_s3 + $0x28] sm:$0xff] (!%p3238_p6) }
 0x1b9   : > { %4981 = vmatprep.subr.bf16.mxu0 (!%p3238_p6), %v5083_v59 }
 0x1bb   : > { %4152 = vmatmul.mubr.f32.vlgmr.msra.gmra.mrb[24].mxu0 %v3237_v55 }
 0x1bc   : > { %4186 = vmatprep.mubr.msk.f32.mxu0 (!%p3238_p6), %vm5084_vm1, %v5085_v52  ;;  %4983 = vmatpush3.bf16.msra.mxu0 (!%p3238_p6), %v4982_v60 }
 0x1bd   : > { %4984 = vmatprep.subr.bf16.mxu0 (!%p3238_p6), %v5083_v59 }
 0x1c0   : > { %4986 = vmatpush3.bf16.msra.mxu0 (!%p3238_p6), %v4985_v42 }
 0x1c1   : > { %4987 = vmatprep.subr.bf16.mxu0 (!%p3238_p6), %v5083_v59 }
 0x1ce   : > { %v3697_v1 = vpop.f32.mrb[12].mxu0 }
 0x1cf   : > { %v3698_v2 = vpop.f32.mrb[13].mxu0  ;;  %v3732_v3 = vpop.f32.mrb[12].mxu1 }
 0x1d0   : > { %v3699_v4 = vadd.f32 %v3698_v2, %v3697_v1  ;;  %v3733_v5 = vpop.f32.mrb[13].mxu1  ;;  %v3083_v1 = vld [vmem:[%s6169_s3 + $0x30] sm:$0xff] (!%p3238_p6)  ;;  %v3084_v2 = vld [vmem:[%s6169_s3 + $0x38] sm:$0xff] (!%p3238_p6) }
 0x1d1   : > { %v3734_v6 = vadd.f32 %v3733_v5, %v3732_v3  ;;  %v4991_v3 = vpack.c.bf16 (!%p3238_p6), %v3084_v2, %v3083_v1  ;;  %v3086_v5 = vld [vmem:[%s6169_s3 + $0x48] sm:$0xff] (!%p3238_p6) }
 0x1d2   : > { %v2218_v7 = vadd.f32 %v3699_v4, %v2148_v62  ;;  %v3081_v62 = vld [vmem:[%s6169_s3 + $0x20] sm:$0xff] (!%p3238_p6) }
 0x1d3   : > { %v4988_v55 = vpack.c.bf16 (!%p3238_p6), %v3082_v0, %v3081_v62  ;;  %v3085_v4 = vld [vmem:[%s6169_s3 + $0x40] sm:$0xff] (!%p3238_p6) }
 0x1d4   : > { %v2288_v14 = vadd.f32 %v3734_v6, %v2218_v7  ;;  %v4994_v6 = vpack.c.bf16 (!%p3238_p6), %v3086_v5, %v3085_v4  ;;  %v3087_v7 = vld [vmem:[%s6169_s3 + $0x50] sm:$0xff] (!%p3238_p6) }
 0x1d5   : > { %4989 = vmatpush3.bf16.msra.mxu0 (!%p3238_p6), %v4988_v55 }
 0x1d6   : > { %4990 = vmatprep.subr.bf16.mxu0 (!%p3238_p6), %v5083_v59 }
 0x1d9   : > { %4992 = vmatpush3.bf16.msra.mxu0 (!%p3238_p6), %v4991_v3 }
 0x1da   : > { %4993 = vmatprep.subr.bf16.mxu0 (!%p3238_p6), %v5083_v59 }
 0x1dd   : > { %4995 = vmatpush3.bf16.msra.mxu0 (!%p3238_p6), %v4994_v6 }
 0x1de   : > { %4996 = vmatprep.subr.bf16.mxu0 (!%p3238_p6), %v5083_v59 }
 0x1ee   : > { %v3767_v9 = vpop.f32.mrb[14].mxu0 }
 0x1ef   : > { %v3768_v10 = vpop.f32.mrb[15].mxu0  ;;  %v3802_v13 = vpop.f32.mrb[14].mxu1 }
 0x1f0   : > { %v3769_v15 = vadd.f32 %v3768_v10, %v3767_v9  ;;  %v3803_v17 = vpop.f32.mrb[15].mxu1  ;;  %v3089_v10 = vld [vmem:[%s6169_s3 + $0x60] sm:$0xff] (!%p3238_p6) }
 0x1f1   : > { %v3804_v12 = vadd.f32 %v3803_v17, %v3802_v13  ;;  %v3090_v13 = vld [vmem:[%s6169_s3 + $0x68] sm:$0xff] (!%p3238_p6) }
 0x1f2   : > { %v2358_v18 = vadd.f32 %v3769_v15, %v2288_v14  ;;  %v3088_v14 = vld [vmem:[%s6169_s3 + $0x58] sm:$0xff] (!%p3238_p6)  ;;  %v5000_v15 = vpack.c.bf16 (!%p3238_p6), %v3090_v13, %v3089_v10 }
 0x1f3   : > { %v4997_v9 = vpack.c.bf16 (!%p3238_p6), %v3088_v14, %v3087_v7 }
 0x1f4   : > { %v2428_v19 = vadd.f32 %v3804_v12, %v2358_v18  ;;  %v3239_v12 = vld [vmem:[%s6168_s2] ss:$0 sm:$0xff] (!%p3238_p6)  ;;  %v3091_v18 = vld [vmem:[%s6169_s3 + $0x70] sm:$0xff] (!%p3238_p6) }
 0x1f5   : > { %4998 = vmatpush3.bf16.msra.mxu0 (!%p3238_p6), %v4997_v9 }
 0x1f6   : > { %4999 = vmatprep.subr.bf16.mxu0 (!%p3238_p6), %v5083_v59 }
 0x1f9   : > { %5001 = vmatpush3.bf16.msra.mxu0 (!%p3238_p6), %v5000_v15 }
 0x1fa   : > { %5002 = vmatprep.subr.bf16.mxu0 (!%p3238_p6), %v5083_v59 }
 0x20e   : > { %v3837_v8 = vpop.f32.mrb[16].mxu0 }
 0x20f   : > { %v3838_v16 = vpop.f32.mrb[17].mxu0  ;;  %v3872_v20 = vpop.f32.mrb[16].mxu1 }
 0x210   : > { %v3839_v21 = vadd.f32 %v3838_v16, %v3837_v8  ;;  %v3873_v24 = vpop.f32.mrb[17].mxu1 }
 0x211   : > { %v3874_v25 = vadd.f32 %v3873_v24, %v3872_v20 }
 0x212   : > { %v2498_v22 = vadd.f32 %v3839_v21, %v2428_v19  ;;  %v3092_v19 = vld [vmem:[%s6169_s3 + $0x78] sm:$0xff] (!%p3238_p6)  ;;  %v3240_v21 = vld [vmem:[%s6170_s4] ss:$0 sm:$0xff] (!%p3238_p6) }
 0x213   : > { %v5003_v16 = vpack.c.bf16 (!%p3238_p6), %v3092_v19, %v3091_v18 }
 0x214   : > { %v2568_v27 = vadd.f32 %v3874_v25, %v2498_v22 }
 0x215   : > { %5004 = vmatpush3.bf16.msra.mxu0 (!%p3238_p6), %v5003_v16 }
 0x22e   : > { %v3907_v28 = vpop.f32.mrb[18].mxu0 }
 0x22f   : > { %v3908_v29 = vpop.f32.mrb[19].mxu0  ;;  %v3942_v30 = vpop.f32.mrb[18].mxu1 }
 0x230   : > { %v3909_v31 = vadd.f32 %v3908_v29, %v3907_v28  ;;  %v3943_v32 = vpop.f32.mrb[19].mxu1 }
 0x231   : > { %v3944_v34 = vadd.f32 %v3943_v32, %v3942_v30 }
 0x232   : > { %v2638_v23 = vadd.f32 %v3909_v31, %v2568_v27 }
 0x234   : > { %v2708_v35 = vadd.f32 %v3944_v34, %v2638_v23 }
 0x24e   : > { %v3977_v51 = vpop.f32.mrb[20].mxu0 }
 0x24f   : > { %v3978_v36 = vpop.f32.mrb[21].mxu0  ;;  %v4012_v38 = vpop.f32.mrb[20].mxu1 }
 0x250   : > { %v3979_v44 = vadd.f32 %v3978_v36, %v3977_v51  ;;  %v4013_v40 = vpop.f32.mrb[21].mxu1 }
 0x251   : > { %v4014_v26 = vadd.f32 %v4013_v40, %v4012_v38 }
 0x252   : > { %v2778_v53 = vadd.f32 %v3979_v44, %v2708_v35 }
 0x254   : > { %v2848_v41 = vadd.f32 %v4014_v26, %v2778_v53 }
 0x26e   : > { %v4047_v43 = vpop.f32.mrb[22].mxu0 }
 0x26f   : > { %v4048_v58 = vpop.f32.mrb[23].mxu0  ;;  %v4082_v11 = vpop.f32.mrb[22].mxu1 }
 0x270   : > { %v4049_v45 = vadd.f32 %v4048_v58, %v4047_v43  ;;  %v4083_v46 = vpop.f32.mrb[23].mxu1 }
 0x271   : > { %v4084_v47 = vadd.f32 %v4083_v46, %v4082_v11 }
 0x272   : > { %v2918_v37 = vadd.f32 %v4049_v45, %v2848_v41 }
 0x274   : > { %v2988_v48 = vadd.f32 %v4084_v47, %v2918_v37 }
 0x28d   : > { %3066 = sbr.rel (%p3238_p6) target bundleno = 886 (0x376), region = 48 }
 0x28e   : > { %v3057_v50 = vpop.f32.mrb[24].mxu0 }
 0x28f   : > { %v3058_v63 = vadd.f32 %v3057_v50, %v2988_v48  ;;  %v4153_v54 = vpop.f32.mrb[25].mxu0 }
 0x291   : > { %v3061_v39 = vadd.f32 %v3058_v63, %v240_v49 }
 0x293   : > { %3062 = vst [vmem:[#allocation2] sm:$0x3] %v3061_v39 }
 0x29a   : > { %v3067_v17 = vld [vmem:[#allocation2] sm:$0x3] }
 0x29b   : > { %v3075_v8 = vadd.f32 %v3239_v12, %v3067_v17 }
 0x29d   : > { %v3076_v20 = vmax.f32 %v3075_v8, 0.0 }
 0x29f   : > { %4187 = vmatmul.mubr.f32.vlgmr.msra.gmra.mrb[0].mxu0 %v3076_v20 }
 0x372   : > { %v3166_v24 = vpop.f32.mrb[0].mxu0 }
 0x373   : > { %v3167_v25 = vadd.f32 %v3240_v21, %v3166_v24  ;;  %v4188_v22 = vpop.f32.mrb[1].mxu0 }
 0x375   : > { %3171 = vst.msk [vmem:[#allocation3] sm:$0x3] %vm3170_vm2, %v3167_v25 }
 0x376 PF: > { %p5009_p7 = scmp.eq.s32.totalorder %s5123_s19, 1  ;;  %s5086_s20 = smov [#allocation3]  }
 0x377   : > { %s3179_s21 = sshll.u32 %s5086_s20, 4  ;;  %s3180_s21 = int_to_ptr.vmem [resolvable:$true] %s3179_s21 }
 0x378   : > { %s5040_s22 = scalar_lea.vmem %s3180_s21, 32  ;;  %p5047_p11 = scmp.lt.s32.totalorder %s3180_s21, %s3180_s21 }
 0x379   : > { %p5041_p8 = scmp.ne.s32.totalorder %s3180_s21, %s5040_s22  ;;  %p5048_p12 = scmp.lt.s32.totalorder %s5040_s22, %s5040_s22 }
 0x37b   : > { %p5042_p9 = pnand %p5041_p8, %p5009_p7  ;;  %p5049_p13 = por %p5048_p12, %p5047_p11 }
 0x37d   : > { %p5043_p10 = pneg %p5042_p9 }
 0x37f   : > { %p5050_p0 = pnand %p5049_p13, %p5043_p10 }
 0x381   : > { %5053 = shalt.err (!%p5050_p0)
}
 0x382   : > { %s5054_s25 = scalar_lea.hbm %s6171_s5, 32 }
 0x383   : > { %p5055_p1 = scmp.ne.s32.totalorder %s6171_s5, %s5054_s25  ;;  %p5060_p4 = scmp.lt.u32.totalorder %s5054_s25, %s6171_s5 }
 0x385   : > { %p5056_p2 = pnand %p5055_p1, %p5009_p7 }
 0x387   : > { %p5057_p3 = pneg %p5056_p2 }
 0x389   : > { %p5062_p5 = pnand %p5060_p4, %p5057_p3 }
 0x38b   : > { %5065 = shalt.err (!%p5062_p5)
}
 0x38c   : > { %5006 = dma.vmem_to_hbm [thread:$0]  (%p5009_p7), %s3180_s21, 32, %s6171_s5, [#allocation4]  }
 0x38d   : > { %5071 = dma.done.wait (%p5009_p7), [#allocation4], 32  }
 0x38e   : > { %5073 = vsyncadd (%p5009_p7), [#allocation4], 4294967264 }
 0x38f PF: > { %s16_s18 = sadd.s32 1, %s5076_s18  }
 0x390   : > { %p13_p6 = scmp.ge.s32.totalorder %s16_s18, 4  }
 0x392   :  { %15 = sbr.rel (!%p13_p6) target bundleno = 1 (0x1), region = 78 }
 0x399   :  { %3192 = vsyncpa [#allocation4], 1 }
 0x39a   :  { %3194 = vsyncpa [#allocation4 + $0x1], 1 }

</bundles_post_ra>
